<compile_context>
chip_gen: v7x
topology: tpu7x:2x2x1
jax: 0.10.0
libtpu: 0.0.40
codegen_flags: <defaults>
</compile_context>

<pallas_src>
import functools

import numpy as np
import jax
import jax.numpy as jnp
from jax.experimental import pallas as pl
from jax.experimental.pallas import tpu as pltpu


# ----------------------------------------------------------------------------
# Bilinear-resize matrices (align_corners=True), built once at trace time.
# ----------------------------------------------------------------------------
def _linear_resize_matrix(in_size, out_size):
    """(out, in) row-interp matrix matching F.interpolate(bilinear, align_corners=True)."""
    if in_size == 1:
        return np.ones((out_size, 1), np.float64)
    if out_size == 1:
        m = np.zeros((1, in_size), np.float64)
        m[0, 0] = 1.0
        return m
    src = np.arange(out_size, dtype=np.float64) * ((in_size - 1) / (out_size - 1))
    i0 = np.clip(np.floor(src).astype(np.int64), 0, in_size - 1)
    i1 = np.minimum(i0 + 1, in_size - 1)
    frac = src - i0
    m = np.zeros((out_size, in_size), np.float64)
    m[np.arange(out_size), i0] += 1.0 - frac
    m[np.arange(out_size), i1] += frac
    return m


def _bilinear_matrix(in_hw, out_hw):
    """R with out_flat(HoWo, C) = R @ x_flat(HiWi, C), row-major (h*W + w) flattening."""
    mh = _linear_resize_matrix(in_hw[0], out_hw[0])
    mw = _linear_resize_matrix(in_hw[1], out_hw[1])
    return jnp.asarray(np.kron(mh, mw), dtype=jnp.float32)


def _dx_shift_matrix(H, W, dx):
    """(H*W, H*W) 0/1 matrix: (M @ z)[h*W+w] = z[h*W+w+dx] if 0 <= w+dx < W else 0."""
    n = H * W
    m = np.zeros((n, n), np.float32)
    r = np.arange(n)
    ok = ((r % W) + dx >= 0) & ((r % W) + dx < W)
    m[r[ok], r[ok] + dx] = 1.0
    return jnp.asarray(m)


# ----------------------------------------------------------------------------
# Fused decoder kernel: one grid step == one batch element.
# ----------------------------------------------------------------------------
def _decoder_kernel(f2_ref, f3_ref, f4_ref, x5_ref,
                    rcomb_ref, sm1_ref, sp1_ref,
                    wd2_ref, sd2_ref, wd3_ref, sd3_ref,
                    wd4_ref, sd4_ref, wd5_ref, sd5_ref,
                    wcat_ref, sc1_ref, wc2_ref, sc2_ref,
                    o_ref, rhs_ref, slab_ref,
                    *, H, W, hw5, hw3, hw4):
    HW = H * W
    CB = wd2_ref.shape[1]            # padded DR channel block (128 lanes)
    CS = slab_ref.shape[1]           # 4 * CB = 512 concat channels
    CMID = sc1_ref.shape[1]          # 256
    COUT = wc2_ref.shape[1]          # padded fc (128)

    def dr(x_ref, w_ref, s_ref):     # 1x1 conv (BN scale pre-folded) + shift + ReLU
        y = jnp.dot(x_ref[0], w_ref[...], preferred_element_type=jnp.float32) + s_ref[...]
        return jnp.maximum(y, 0.0)

    x2 = dr(f2_ref, wd2_ref, sd2_ref)            # (HW,  128) f32
    x3 = dr(f3_ref, wd3_ref, sd3_ref)            # (hw3, 128)
    x4 = dr(f4_ref, wd4_ref, sd4_ref)            # (hw4, 128)
    x5 = dr(x5_ref, wd5_ref, sd5_ref)            # (hw5, 128)

    # ---- fused bilinear resize (align_corners=True) of x5/x3/x4: ONE matmul.
    # The RHS is block-diagonal bf16; re-zeroed every step (cheap, core-safe).
    rhs_ref[...] = jnp.zeros_like(rhs_ref)
    rhs_ref[0:hw5, 0:CB] = x5.astype(jnp.bfloat16)
    rhs_ref[hw5:hw5 + hw3, 2 * CB:3 * CB] = x3.astype(jnp.bfloat16)
    rhs_ref[hw5 + hw3:hw5 + hw3 + hw4, 3 * CB:4 * CB] = x4.astype(jnp.bfloat16)
    up = jnp.dot(rcomb_ref[...], rhs_ref[...],
                 preferred_element_type=jnp.float32)         # (HW, 512); x2 block zero

    # ---- concat slab (x5_up, x2, x3_up, x4_up), bf16, with one zero image-row
    #      above and below (dy boundary of the 3x3 conv).  Only the pad rows are
    #      zeroed; the interior is fully rewritten.
    slab_ref[0:W, :] = jnp.zeros((W, CS), jnp.bfloat16)
    slab_ref[W + HW:2 * W + HW, :] = jnp.zeros((W, CS), jnp.bfloat16)
    slab_ref[W:W + HW, :] = up.astype(jnp.bfloat16)
    slab_ref[W:W + HW, CB:2 * CB] = x2.astype(jnp.bfloat16)

    # ---- 3x3 conv 384->256 (BN scale folded into wcat):
    #      dy taps = tile-aligned row windows fused into ONE K=1536 bf16 matmul;
    #      dx = +-1 applied after the channel contraction via constant 0/1 shift
    #      matrices (exact; keeps everything on the MXU, zero shuffles).
    rv = jnp.concatenate(
        [slab_ref[0:HW, :],                      # dy = -1
         slab_ref[W:W + HW, :],                  # dy =  0
         slab_ref[2 * W:2 * W + HW, :]],         # dy = +1
        axis=1)                                  # (HW, 1536) bf16
    z = jnp.dot(rv, wcat_ref[...], preferred_element_type=jnp.float32)   # (HW, 768) f32
    y1 = (z[:, CMID:2 * CMID]
          + jnp.dot(sm1_ref[...], z[:, 0:CMID], preferred_element_type=jnp.float32)
          + jnp.dot(sp1_ref[...], z[:, 2 * CMID:3 * CMID],
                    preferred_element_type=jnp.float32))
    y1 = jnp.maximum(y1 + sc1_ref[...], 0.0)     # folded BN shift + ReLU

    # TODO(synk): Dropout(0.5) treated as identity (inference semantics); no RNG mask.

    # ---- final 1x1 conv 256 -> fc (padded to 128) + folded BN + ReLU ----
    y2 = jnp.maximum(jnp.dot(y1, wc2_ref[...], preferred_element_type=jnp.float32)
                     + sc2_ref[...], 0.0)        # (HW, 128)
    o_ref[...] = y2.reshape(1, H, W, COUT)


# ----------------------------------------------------------------------------
# Parameter init (deterministic, mirrors the module's _init_weight + BN fold).
# ----------------------------------------------------------------------------
def _kaiming(key, shape, fan_in):
    return jax.random.normal(key, shape, jnp.float32) * (2.0 / fan_in) ** 0.5


def _bn_fold(channels, eps=1e-5):
    # _init_weight: gamma=1, beta=0; fresh buffers: running_mean=0, running_var=1.
    # NOTE: if trained weights are ever loaded, recompute this fold from the real
    # running stats or results will be wrong.
    gamma = jnp.ones((channels,), jnp.float32)
    beta = jnp.zeros((channels,), jnp.float32)
    mean = jnp.zeros((channels,), jnp.float32)
    var = jnp.ones((channels,), jnp.float32)
    scale = gamma / jnp.sqrt(var + eps)
    shift = beta - mean * scale
    return scale, shift


def _pad_cols(a, n):
    return jnp.pad(a, ((0, 0),) * (a.ndim - 1) + ((0, n - a.shape[-1]),))


def init_params(key, encoder_out_channels, fc):
    C_DR, C_DRP, C_MID = 96, 128, 256
    fc_pad = ((fc + 127) // 128) * 128
    ks = jax.random.split(key, 6)
    p = {"fc": fc}

    dr_cins = (encoder_out_channels[2], encoder_out_channels[3],
               encoder_out_channels[4], encoder_out_channels[5])
    for name, kk, cin in zip(("dr2", "dr3", "dr4", "dr5"), ks[:4], dr_cins):
        w = _kaiming(kk, (cin, C_DR), fan_in=cin)            # (Cin, 96) == PyTorch (96,Cin,1,1)^T
        scale, shift = _bn_fold(C_DR)
        p[f"{name}_w"] = _pad_cols(w * scale[None, :], C_DRP)        # BN scale folded, pad -> 128
        p[f"{name}_s"] = _pad_cols(shift[None, :], C_DRP)

    # last_conv[0]: Conv2d(384, 256, k=3, pad=1, bias=False) + BN(256) folded.
    # Re-laid out as wcat (3*4*128, 3*256):
    #   rows    = dy-block (kh) * 512 + concat-channel-block * 128 + channel (0..95)
    #   columns = dx-block (kw) * 256 + out-channel
    w = _kaiming(ks[4], (C_MID, 4 * C_DR, 3, 3), fan_in=4 * C_DR * 9)   # OIHW
    scale, shift = _bn_fold(C_MID)
    w = w * scale[:, None, None, None]                        # fold BN scale (per out channel)
    w_t = jnp.transpose(w, (2, 3, 1, 0))                      # (kh, kw, in, out)
    wcat = jnp.zeros((3 * 4 * C_DRP, 3 * C_MID), jnp.float32)
    for kh in range(3):
        for blk in range(4):
            r0 = kh * 4 * C_DRP + blk * C_DRP
            for kw in range(3):
                wcat = wcat.at[r0:r0 + C_DR, kw * C_MID:(kw + 1) * C_MID].set(
                    w_t[kh, kw, blk * C_DR:(blk + 1) * C_DR, :])
    p["lc1_w"] = wcat.astype(jnp.bfloat16)                    # bf16 MXU operand
    p["lc1_s"] = shift[None, :]

    # last_conv[4]: Conv2d(256, fc, k=1, bias=False) + BN(fc) + ReLU.
    w = _kaiming(ks[5], (C_MID, fc), fan_in=C_MID)
    scale, shift = _bn_fold(fc)
    p["lc2_w"] = _pad_cols(w * scale[None, :], fc_pad)
    p["lc2_s"] = _pad_cols(shift[None, :], fc_pad)
    return p


# ----------------------------------------------------------------------------
# BackboneDecoder forward (inputs/outputs in PyTorch NCHW).
# ----------------------------------------------------------------------------
def backbone_decoder_forward(params, x, low_level_feat2, low_level_feat3,
                             low_level_feat4, *, core_parallel=True):
    f2, f3, f4 = low_level_feat2, low_level_feat3, low_level_feat4
    N = f2.shape[0]
    Ho, Wo = int(f2.shape[2]), int(f2.shape[3])
    hw5 = int(x.shape[2]) * int(x.shape[3])
    hw3 = int(f3.shape[2]) * int(f3.shape[3])
    hw4 = int(f4.shape[2]) * int(f4.shape[3])

    def flat(a):  # NCHW -> (N, H*W, C), channels on the lane axis (tiny boundary transpose)
        n, c, h, w = a.shape
        return jnp.transpose(a.astype(jnp.float32), (0, 2, 3, 1)).reshape(n, h * w, c)

    f2f, f3f, f4f, xf = flat(f2), flat(f3), flat(f4), flat(x)

    # Fused resize matrix [R5 | R3 | R4] and the two dx-shift matrices (trace-time constants).
    rcomb = jnp.concatenate(
        [_bilinear_matrix((int(x.shape[2]), int(x.shape[3])), (Ho, Wo)),
         _bilinear_matrix((int(f3.shape[2]), int(f3.shape[3])), (Ho, Wo)),
         _bilinear_matrix((int(f4.shape[2]), int(f4.shape[3])), (Ho, Wo))],
        axis=1).astype(jnp.bfloat16)                          # (Ho*Wo, hw5+hw3+hw4)
    sm1 = _dx_shift_matrix(Ho, Wo, -1)
    sp1 = _dx_shift_matrix(Ho, Wo, +1)

    c_drp = params["dr2_w"].shape[1]      # 128
    c_out = params["lc2_w"].shape[1]      # padded fc (128)

    full = lambda a: pl.BlockSpec(a.shape, lambda b: (0,) * a.ndim)          # grid-constant
    perb = lambda a: pl.BlockSpec((1,) + a.shape[1:], lambda b: (b, 0, 0))   # per-batch block

    kernel = functools.partial(_decoder_kernel, H=Ho, W=Wo,
                               hw5=hw5, hw3=hw3, hw4=hw4)
    sem = pltpu.CORE_PARALLEL if core_parallel else pltpu.PARALLEL
    out = pl.pallas_call(
        kernel,
        out_shape=jax.ShapeDtypeStruct((N, Ho, Wo, c_out), jnp.float32),
        grid=(N,),
        in_specs=[
            perb(f2f), perb(f3f), perb(f4f), perb(xf),
            full(rcomb), full(sm1), full(sp1),
            full(params["dr2_w"]), full(params["dr2_s"]),
            full(params["dr3_w"]), full(params["dr3_s"]),
            full(params["dr4_w"]), full(params["dr4_s"]),
            full(params["dr5_w"]), full(params["dr5_s"]),
            full(params["lc1_w"]), full(params["lc1_s"]),
            full(params["lc2_w"]), full(params["lc2_s"]),
        ],
        out_specs=pl.BlockSpec((1, Ho, Wo, c_out), lambda b: (b, 0, 0, 0)),
        scratch_shapes=[
            pltpu.VMEM((hw5 + hw3 + hw4, 4 * c_drp), jnp.bfloat16),   # block-diag resize RHS
            pltpu.VMEM(((Ho + 2) * Wo, 4 * c_drp), jnp.bfloat16),     # row-padded concat slab
        ],
        compiler_params=pltpu.CompilerParams(
            dimension_semantics=(sem,),       # CORE_PARALLEL: one image per TC on v7x
            vmem_limit_bytes=32 << 20,        # ~9 MiB used at 16x16; headroom for v7x 64 MiB
        ),
    )(f2f, f3f, f4f, xf, rcomb, sm1, sp1,
      params["dr2_w"], params["dr2_s"], params["dr3_w"], params["dr3_s"],
      params["dr4_w"], params["dr4_s"], params["dr5_w"], params["dr5_s"],
      params["lc1_w"], params["lc1_s"], params["lc2_w"], params["lc2_s"])

    fc = params["fc"]
    return jnp.transpose(out[:, :, :, :fc], (0, 3, 1, 2))     # drop channel padding, back to NCHW


# ----------------------------------------------------------------------------
if __name__ == "__main__":
    encoder_out_channels = [8, 8, 16, 32, 64, 64]
    fc = 8

    key = jax.random.PRNGKey(0)
    k_params, k2, k3, k4, k5 = jax.random.split(key, 5)
    params = init_params(k_params, encoder_out_channels, fc)

    # PyTorch NCHW inputs (feature pyramid: f2 is the largest spatially).
    low_level_feat2 = jax.random.normal(k2, (2, encoder_out_channels[2], 16, 16), jnp.float32)
    low_level_feat3 = jax.random.normal(k3, (2, encoder_out_channels[3], 8, 8), jnp.float32)
    low_level_feat4 = jax.random.normal(k4, (2, encoder_out_channels[4], 4, 4), jnp.float32)
    x = jax.random.normal(k5, (2, encoder_out_channels[5], 4, 4), jnp.float32)

    def run(core_parallel):
        fwd = jax.jit(functools.partial(backbone_decoder_forward, params,
                                        core_parallel=core_parallel))
        return jax.block_until_ready(fwd(x, low_level_feat2, low_level_feat3, low_level_feat4))

    try:
        out = run(True)        # v7x: split the batch across both TensorCores
    except Exception:
        out = run(False)       # single-TC chips / runtimes without core-parallel support

    assert out.shape == (2, fc, 16, 16), out.shape
    assert bool(jnp.all(jnp.isfinite(out)))
    print("KERNEL_OK")
</pallas_src>

<mosaic_0001>
module attributes {stable_mosaic.version = 11 : i64} {
  func.func @_decoder_kernel(%arg0: i32, %arg1: memref<1x256x16xf32, #tpu.memory_space<vmem>>, %arg2: memref<1x64x32xf32, #tpu.memory_space<vmem>>, %arg3: memref<1x16x64xf32, #tpu.memory_space<vmem>>, %arg4: memref<1x16x64xf32, #tpu.memory_space<vmem>>, %arg5: memref<256x96xbf16, #tpu.memory_space<vmem>>, %arg6: memref<256x256xf32, #tpu.memory_space<vmem>>, %arg7: memref<256x256xf32, #tpu.memory_space<vmem>>, %arg8: memref<16x128xf32, #tpu.memory_space<vmem>>, %arg9: memref<1x128xf32, #tpu.memory_space<vmem>>, %arg10: memref<32x128xf32, #tpu.memory_space<vmem>>, %arg11: memref<1x128xf32, #tpu.memory_space<vmem>>, %arg12: memref<64x128xf32, #tpu.memory_space<vmem>>, %arg13: memref<1x128xf32, #tpu.memory_space<vmem>>, %arg14: memref<64x128xf32, #tpu.memory_space<vmem>>, %arg15: memref<1x128xf32, #tpu.memory_space<vmem>>, %arg16: memref<1536x768xbf16, #tpu.memory_space<vmem>>, %arg17: memref<1x256xf32, #tpu.memory_space<vmem>>, %arg18: memref<256x128xf32, #tpu.memory_space<vmem>>, %arg19: memref<1x128xf32, #tpu.memory_space<vmem>>, %arg20: memref<1x16x16x128xf32, #tpu.memory_space<vmem>>, %arg21: memref<96x512xbf16, #tpu.memory_space<vmem>>, %arg22: memref<288x512xbf16, #tpu.memory_space<vmem>>) attributes {dimension_semantics = [#tpu.dimension_semantics<core_parallel>], iteration_bounds = array<i64: 2>, scalar_prefetch = 0 : i64, scratch_operands = 2 : i64, tpu.core_type = #tpu.core_type<tc>, window_params = [{transform_indices = @transform_0, window_bounds = array<i64: 1, 256, 16>}, {transform_indices = @transform_1, window_bounds = array<i64: 1, 64, 32>}, {transform_indices = @transform_2, window_bounds = array<i64: 1, 16, 64>}, {transform_indices = @transform_3, window_bounds = array<i64: 1, 16, 64>}, {pipeline_mode = #tpu.pipeline_mode<synchronous>, transform_indices = @transform_4, window_bounds = array<i64: 256, 96>}, {pipeline_mode = #tpu.pipeline_mode<synchronous>, transform_indices = @transform_5, window_bounds = array<i64: 256, 256>}, {pipeline_mode = #tpu.pipeline_mode<synchronous>, transform_indices = @transform_6, window_bounds = array<i64: 256, 256>}, {pipeline_mode = #tpu.pipeline_mode<synchronous>, transform_indices = @transform_7, window_bounds = array<i64: 16, 128>}, {pipeline_mode = #tpu.pipeline_mode<synchronous>, transform_indices = @transform_8, window_bounds = array<i64: 1, 128>}, {pipeline_mode = #tpu.pipeline_mode<synchronous>, transform_indices = @transform_9, window_bounds = array<i64: 32, 128>}, {pipeline_mode = #tpu.pipeline_mode<synchronous>, transform_indices = @transform_10, window_bounds = array<i64: 1, 128>}, {pipeline_mode = #tpu.pipeline_mode<synchronous>, transform_indices = @transform_11, window_bounds = array<i64: 64, 128>}, {pipeline_mode = #tpu.pipeline_mode<synchronous>, transform_indices = @transform_12, window_bounds = array<i64: 1, 128>}, {pipeline_mode = #tpu.pipeline_mode<synchronous>, transform_indices = @transform_13, window_bounds = array<i64: 64, 128>}, {pipeline_mode = #tpu.pipeline_mode<synchronous>, transform_indices = @transform_14, window_bounds = array<i64: 1, 128>}, {pipeline_mode = #tpu.pipeline_mode<synchronous>, transform_indices = @transform_15, window_bounds = array<i64: 1536, 768>}, {pipeline_mode = #tpu.pipeline_mode<synchronous>, transform_indices = @transform_16, window_bounds = array<i64: 1, 256>}, {pipeline_mode = #tpu.pipeline_mode<synchronous>, transform_indices = @transform_17, window_bounds = array<i64: 256, 128>}, {pipeline_mode = #tpu.pipeline_mode<synchronous>, transform_indices = @transform_18, window_bounds = array<i64: 1, 128>}, {transform_indices = @transform_19, window_bounds = array<i64: 1, 16, 16, 128>}]} {
    %c0 = arith.constant 0 : index
    %c0_0 = arith.constant 0 : index
    %c0_1 = arith.constant 0 : index
    %0 = vector.load %arg1[%c0, %c0_0, %c0_1] : memref<1x256x16xf32, #tpu.memory_space<vmem>>, vector<1x256x16xf32>
    %1 = vector.shape_cast %0 : vector<1x256x16xf32> to vector<256x16xf32>
    %c0_2 = arith.constant 0 : index
    %c0_3 = arith.constant 0 : index
    %2 = vector.load %arg8[%c0_2, %c0_3] : memref<16x128xf32, #tpu.memory_space<vmem>>, vector<16x128xf32>
    %cst = arith.constant dense<0.000000e+00> : vector<256x128xf32>
    %3 = tpu.matmul %1, %2, %cst {dimension_numbers = #tpu.dot_dimension_numbers<[1], [0], [0], [1], [0, 0, 1, 1], [], []>} : vector<256x16xf32>, vector<16x128xf32>, vector<256x128xf32> -> vector<256x128xf32>
    %c0_4 = arith.constant 0 : index
    %c0_5 = arith.constant 0 : index
    %4 = vector.load %arg9[%c0_4, %c0_5] : memref<1x128xf32, #tpu.memory_space<vmem>>, vector<1x128xf32>
    %5 = vector.broadcast %4 : vector<1x128xf32> to vector<256x128xf32>
    %6 = arith.addf %3, %5 : vector<256x128xf32>
    %cst_6 = arith.constant 0.000000e+00 : f32
    %7 = vector.broadcast %cst_6 : f32 to vector<256x128xf32>
    %8 = arith.maximumf %6, %7 : vector<256x128xf32>
    %c0_7 = arith.constant 0 : index
    %c0_8 = arith.constant 0 : index
    %c0_9 = arith.constant 0 : index
    %9 = vector.load %arg2[%c0_7, %c0_8, %c0_9] : memref<1x64x32xf32, #tpu.memory_space<vmem>>, vector<1x64x32xf32>
    %10 = vector.shape_cast %9 : vector<1x64x32xf32> to vector<64x32xf32>
    %c0_10 = arith.constant 0 : index
    %c0_11 = arith.constant 0 : index
    %11 = vector.load %arg10[%c0_10, %c0_11] : memref<32x128xf32, #tpu.memory_space<vmem>>, vector<32x128xf32>
    %cst_12 = arith.constant dense<0.000000e+00> : vector<64x128xf32>
    %12 = tpu.matmul %10, %11, %cst_12 {dimension_numbers = #tpu.dot_dimension_numbers<[1], [0], [0], [1], [0, 0, 1, 1], [], []>} : vector<64x32xf32>, vector<32x128xf32>, vector<64x128xf32> -> vector<64x128xf32>
    %c0_13 = arith.constant 0 : index
    %c0_14 = arith.constant 0 : index
    %13 = vector.load %arg11[%c0_13, %c0_14] : memref<1x128xf32, #tpu.memory_space<vmem>>, vector<1x128xf32>
    %14 = vector.broadcast %13 : vector<1x128xf32> to vector<64x128xf32>
    %15 = arith.addf %12, %14 : vector<64x128xf32>
    %cst_15 = arith.constant 0.000000e+00 : f32
    %16 = vector.broadcast %cst_15 : f32 to vector<64x128xf32>
    %17 = arith.maximumf %15, %16 : vector<64x128xf32>
    %c0_16 = arith.constant 0 : index
    %c0_17 = arith.constant 0 : index
    %c0_18 = arith.constant 0 : index
    %18 = vector.load %arg3[%c0_16, %c0_17, %c0_18] : memref<1x16x64xf32, #tpu.memory_space<vmem>>, vector<1x16x64xf32>
    %19 = vector.shape_cast %18 : vector<1x16x64xf32> to vector<16x64xf32>
    %c0_19 = arith.constant 0 : index
    %c0_20 = arith.constant 0 : index
    %20 = vector.load %arg12[%c0_19, %c0_20] : memref<64x128xf32, #tpu.memory_space<vmem>>, vector<64x128xf32>
    %cst_21 = arith.constant dense<0.000000e+00> : vector<16x128xf32>
    %21 = tpu.matmul %19, %20, %cst_21 {dimension_numbers = #tpu.dot_dimension_numbers<[1], [0], [0], [1], [0, 0, 1, 1], [], []>} : vector<16x64xf32>, vector<64x128xf32>, vector<16x128xf32> -> vector<16x128xf32>
    %c0_22 = arith.constant 0 : index
    %c0_23 = arith.constant 0 : index
    %22 = vector.load %arg13[%c0_22, %c0_23] : memref<1x128xf32, #tpu.memory_space<vmem>>, vector<1x128xf32>
    %23 = vector.broadcast %22 : vector<1x128xf32> to vector<16x128xf32>
    %24 = arith.addf %21, %23 : vector<16x128xf32>
    %cst_24 = arith.constant 0.000000e+00 : f32
    %25 = vector.broadcast %cst_24 : f32 to vector<16x128xf32>
    %26 = arith.maximumf %24, %25 : vector<16x128xf32>
    %c0_25 = arith.constant 0 : index
    %c0_26 = arith.constant 0 : index
    %c0_27 = arith.constant 0 : index
    %27 = vector.load %arg4[%c0_25, %c0_26, %c0_27] : memref<1x16x64xf32, #tpu.memory_space<vmem>>, vector<1x16x64xf32>
    %28 = vector.shape_cast %27 : vector<1x16x64xf32> to vector<16x64xf32>
    %c0_28 = arith.constant 0 : index
    %c0_29 = arith.constant 0 : index
    %29 = vector.load %arg14[%c0_28, %c0_29] : memref<64x128xf32, #tpu.memory_space<vmem>>, vector<64x128xf32>
    %cst_30 = arith.constant dense<0.000000e+00> : vector<16x128xf32>
    %30 = tpu.matmul %28, %29, %cst_30 {dimension_numbers = #tpu.dot_dimension_numbers<[1], [0], [0], [1], [0, 0, 1, 1], [], []>} : vector<16x64xf32>, vector<64x128xf32>, vector<16x128xf32> -> vector<16x128xf32>
    %c0_31 = arith.constant 0 : index
    %c0_32 = arith.constant 0 : index
    %31 = vector.load %arg15[%c0_31, %c0_32] : memref<1x128xf32, #tpu.memory_space<vmem>>, vector<1x128xf32>
    %32 = vector.broadcast %31 : vector<1x128xf32> to vector<16x128xf32>
    %33 = arith.addf %30, %32 : vector<16x128xf32>
    %cst_33 = arith.constant 0.000000e+00 : f32
    %34 = vector.broadcast %cst_33 : f32 to vector<16x128xf32>
    %35 = arith.maximumf %33, %34 : vector<16x128xf32>
    %cst_34 = arith.constant 0.000000e+00 : bf16
    %36 = vector.broadcast %cst_34 : bf16 to vector<96x512xbf16>
    %c0_35 = arith.constant 0 : index
    %c0_36 = arith.constant 0 : index
    %37 = vector.load %arg21[%c0_35, %c0_36] : memref<96x512xbf16, #tpu.memory_space<vmem>>, vector<96x512xbf16>
    tpu.vector_store %arg21[%c0_35, %c0_36], %36 {strides = array<i32>} : memref<96x512xbf16, #tpu.memory_space<vmem>>, vector<96x512xbf16>,
    %38 = arith.truncf %35 : vector<16x128xf32> to vector<16x128xbf16>
    %c0_37 = arith.constant 0 : index
    %c0_38 = arith.constant 0 : index
    %39 = vector.load %arg21[%c0_37, %c0_38] : memref<96x512xbf16, #tpu.memory_space<vmem>>, vector<16x128xbf16>
    tpu.vector_store %arg21[%c0_37, %c0_38], %38 {strides = array<i32>} : memref<96x512xbf16, #tpu.memory_space<vmem>>, vector<16x128xbf16>,
    %40 = arith.truncf %17 : vector<64x128xf32> to vector<64x128xbf16>
    %c16 = arith.constant 16 : index
    %c256 = arith.constant 256 : index
    %41 = vector.load %arg21[%c16, %c256] : memref<96x512xbf16, #tpu.memory_space<vmem>>, vector<64x128xbf16>
    tpu.vector_store %arg21[%c16, %c256], %40 {strides = array<i32>} : memref<96x512xbf16, #tpu.memory_space<vmem>>, vector<64x128xbf16>,
    %42 = arith.truncf %26 : vector<16x128xf32> to vector<16x128xbf16>
    %c80 = arith.constant 80 : index
    %c384 = arith.constant 384 : index
    %43 = vector.load %arg21[%c80, %c384] : memref<96x512xbf16, #tpu.memory_space<vmem>>, vector<16x128xbf16>
    tpu.vector_store %arg21[%c80, %c384], %42 {strides = array<i32>} : memref<96x512xbf16, #tpu.memory_space<vmem>>, vector<16x128xbf16>,
    %c0_39 = arith.constant 0 : index
    %c0_40 = arith.constant 0 : index
    %44 = vector.load %arg5[%c0_39, %c0_40] : memref<256x96xbf16, #tpu.memory_space<vmem>>, vector<256x96xbf16>
    %c0_41 = arith.constant 0 : index
    %c0_42 = arith.constant 0 : index
    %45 = vector.load %arg21[%c0_41, %c0_42] : memref<96x512xbf16, #tpu.memory_space<vmem>>, vector<96x512xbf16>
    %cst_43 = arith.constant dense<0.000000e+00> : vector<256x512xf32>
    %46 = tpu.matmul %44, %45, %cst_43 {dimension_numbers = #tpu.dot_dimension_numbers<[1], [0], [0], [1], [0, 0, 1, 1], [], []>} : vector<256x96xbf16>, vector<96x512xbf16>, vector<256x512xf32> -> vector<256x512xf32>
    %cst_44 = arith.constant 0.000000e+00 : bf16
    %47 = vector.broadcast %cst_44 : bf16 to vector<16x512xbf16>
    %c0_45 = arith.constant 0 : index
    %c0_46 = arith.constant 0 : index
    %48 = vector.load %arg22[%c0_45, %c0_46] : memref<288x512xbf16, #tpu.memory_space<vmem>>, vector<16x512xbf16>
    tpu.vector_store %arg22[%c0_45, %c0_46], %47 {strides = array<i32>} : memref<288x512xbf16, #tpu.memory_space<vmem>>, vector<16x512xbf16>,
    %cst_47 = arith.constant 0.000000e+00 : bf16
    %49 = vector.broadcast %cst_47 : bf16 to vector<16x512xbf16>
    %c272 = arith.constant 272 : index
    %c0_48 = arith.constant 0 : index
    %50 = vector.load %arg22[%c272, %c0_48] : memref<288x512xbf16, #tpu.memory_space<vmem>>, vector<16x512xbf16>
    tpu.vector_store %arg22[%c272, %c0_48], %49 {strides = array<i32>} : memref<288x512xbf16, #tpu.memory_space<vmem>>, vector<16x512xbf16>,
    %51 = arith.truncf %46 : vector<256x512xf32> to vector<256x512xbf16>
    %c16_49 = arith.constant 16 : index
    %c0_50 = arith.constant 0 : index
    %52 = vector.load %arg22[%c16_49, %c0_50] : memref<288x512xbf16, #tpu.memory_space<vmem>>, vector<256x512xbf16>
    tpu.vector_store %arg22[%c16_49, %c0_50], %51 {strides = array<i32>} : memref<288x512xbf16, #tpu.memory_space<vmem>>, vector<256x512xbf16>,
    %53 = arith.truncf %8 : vector<256x128xf32> to vector<256x128xbf16>
    %c16_51 = arith.constant 16 : index
    %c128 = arith.constant 128 : index
    %54 = vector.load %arg22[%c16_51, %c128] : memref<288x512xbf16, #tpu.memory_space<vmem>>, vector<256x128xbf16>
    tpu.vector_store %arg22[%c16_51, %c128], %53 {strides = array<i32>} : memref<288x512xbf16, #tpu.memory_space<vmem>>, vector<256x128xbf16>,
    %c0_52 = arith.constant 0 : index
    %c0_53 = arith.constant 0 : index
    %55 = vector.load %arg22[%c0_52, %c0_53] : memref<288x512xbf16, #tpu.memory_space<vmem>>, vector<256x512xbf16>
    %c16_54 = arith.constant 16 : index
    %c0_55 = arith.constant 0 : index
    %56 = vector.load %arg22[%c16_54, %c0_55] : memref<288x512xbf16, #tpu.memory_space<vmem>>, vector<256x512xbf16>
    %c32 = arith.constant 32 : index
    %c0_56 = arith.constant 0 : index
    %57 = vector.load %arg22[%c32, %c0_56] : memref<288x512xbf16, #tpu.memory_space<vmem>>, vector<256x512xbf16>
    %58 = tpu.concatenate %55, %56, %57 in 1 : vector<256x512xbf16>, vector<256x512xbf16>, vector<256x512xbf16> -> vector<256x1536xbf16>
    %c0_57 = arith.constant 0 : index
    %c0_58 = arith.constant 0 : index
    %59 = vector.load %arg16[%c0_57, %c0_58] : memref<1536x768xbf16, #tpu.memory_space<vmem>>, vector<1536x768xbf16>
    %cst_59 = arith.constant dense<0.000000e+00> : vector<256x768xf32>
    %60 = tpu.matmul %58, %59, %cst_59 {dimension_numbers = #tpu.dot_dimension_numbers<[1], [0], [0], [1], [0, 0, 1, 1], [], []>} : vector<256x1536xbf16>, vector<1536x768xbf16>, vector<256x768xf32> -> vector<256x768xf32>
    %61 = vector.extract_strided_slice %60 {offsets = [0, 256], sizes = [256, 256], strides = [1, 1]} : vector<256x768xf32> to vector<256x256xf32>
    %c0_60 = arith.constant 0 : index
    %c0_61 = arith.constant 0 : index
    %62 = vector.load %arg6[%c0_60, %c0_61] : memref<256x256xf32, #tpu.memory_space<vmem>>, vector<256x256xf32>
    %63 = vector.extract_strided_slice %60 {offsets = [0, 0], sizes = [256, 256], strides = [1, 1]} : vector<256x768xf32> to vector<256x256xf32>
    %cst_62 = arith.constant dense<0.000000e+00> : vector<256x256xf32>
    %64 = tpu.matmul %62, %63, %cst_62 {dimension_numbers = #tpu.dot_dimension_numbers<[1], [0], [0], [1], [0, 0, 1, 1], [], []>} : vector<256x256xf32>, vector<256x256xf32>, vector<256x256xf32> -> vector<256x256xf32>
    %65 = arith.addf %61, %64 : vector<256x256xf32>
    %c0_63 = arith.constant 0 : index
    %c0_64 = arith.constant 0 : index
    %66 = vector.load %arg7[%c0_63, %c0_64] : memref<256x256xf32, #tpu.memory_space<vmem>>, vector<256x256xf32>
    %67 = vector.extract_strided_slice %60 {offsets = [0, 512], sizes = [256, 256], strides = [1, 1]} : vector<256x768xf32> to vector<256x256xf32>
    %cst_65 = arith.constant dense<0.000000e+00> : vector<256x256xf32>
    %68 = tpu.matmul %66, %67, %cst_65 {dimension_numbers = #tpu.dot_dimension_numbers<[1], [0], [0], [1], [0, 0, 1, 1], [], []>} : vector<256x256xf32>, vector<256x256xf32>, vector<256x256xf32> -> vector<256x256xf32>
    %69 = arith.addf %65, %68 : vector<256x256xf32>
    %c0_66 = arith.constant 0 : index
    %c0_67 = arith.constant 0 : index
    %70 = vector.load %arg17[%c0_66, %c0_67] : memref<1x256xf32, #tpu.memory_space<vmem>>, vector<1x256xf32>
    %71 = vector.broadcast %70 : vector<1x256xf32> to vector<256x256xf32>
    %72 = arith.addf %69, %71 : vector<256x256xf32>
    %cst_68 = arith.constant 0.000000e+00 : f32
    %73 = vector.broadcast %cst_68 : f32 to vector<256x256xf32>
    %74 = arith.maximumf %72, %73 : vector<256x256xf32>
    %c0_69 = arith.constant 0 : index
    %c0_70 = arith.constant 0 : index
    %75 = vector.load %arg18[%c0_69, %c0_70] : memref<256x128xf32, #tpu.memory_space<vmem>>, vector<256x128xf32>
    %cst_71 = arith.constant dense<0.000000e+00> : vector<256x128xf32>
    %76 = tpu.matmul %74, %75, %cst_71 {dimension_numbers = #tpu.dot_dimension_numbers<[1], [0], [0], [1], [0, 0, 1, 1], [], []>} : vector<256x256xf32>, vector<256x128xf32>, vector<256x128xf32> -> vector<256x128xf32>
    %c0_72 = arith.constant 0 : index
    %c0_73 = arith.constant 0 : index
    %77 = vector.load %arg19[%c0_72, %c0_73] : memref<1x128xf32, #tpu.memory_space<vmem>>, vector<1x128xf32>
    %78 = vector.broadcast %77 : vector<1x128xf32> to vector<256x128xf32>
    %79 = arith.addf %76, %78 : vector<256x128xf32>
    %cst_74 = arith.constant 0.000000e+00 : f32
    %80 = vector.broadcast %cst_74 : f32 to vector<256x128xf32>
    %81 = arith.maximumf %79, %80 : vector<256x128xf32>
    %82 = vector.shape_cast %81 : vector<256x128xf32> to vector<1x16x16x128xf32>
    %c0_75 = arith.constant 0 : index
    %c0_76 = arith.constant 0 : index
    %c0_77 = arith.constant 0 : index
    %c0_78 = arith.constant 0 : index
    %83 = vector.load %arg20[%c0_75, %c0_76, %c0_77, %c0_78] : memref<1x16x16x128xf32, #tpu.memory_space<vmem>>, vector<1x16x16x128xf32>
    tpu.vector_store %arg20[%c0_75, %c0_76, %c0_77, %c0_78], %82 {strides = array<i32>} : memref<1x16x16x128xf32, #tpu.memory_space<vmem>>, vector<1x16x16x128xf32>,
    return
  }
  func.func @transform_0(%arg0: i32) -> (i32, i32, i32) {
    %c0_i32 = arith.constant 0 : i32
    %c0_i32_0 = arith.constant 0 : i32
    %c0_i32_1 = arith.constant 0 : i32
    return %arg0, %c0_i32, %c0_i32_0 : i32, i32, i32
  }
  func.func @transform_1(%arg0: i32) -> (i32, i32, i32) {
    %c0_i32 = arith.constant 0 : i32
    %c0_i32_0 = arith.constant 0 : i32
    %c0_i32_1 = arith.constant 0 : i32
    return %arg0, %c0_i32, %c0_i32_0 : i32, i32, i32
  }
  func.func @transform_2(%arg0: i32) -> (i32, i32, i32) {
    %c0_i32 = arith.constant 0 : i32
    %c0_i32_0 = arith.constant 0 : i32
    %c0_i32_1 = arith.constant 0 : i32
    return %arg0, %c0_i32, %c0_i32_0 : i32, i32, i32
  }
  func.func @transform_3(%arg0: i32) -> (i32, i32, i32) {
    %c0_i32 = arith.constant 0 : i32
    %c0_i32_0 = arith.constant 0 : i32
    %c0_i32_1 = arith.constant 0 : i32
    return %arg0, %c0_i32, %c0_i32_0 : i32, i32, i32
  }
  func.func @transform_4(%arg0: i32) -> (i32, i32) {
    %c0_i32 = arith.constant 0 : i32
    %c0_i32_0 = arith.constant 0 : i32
    %c0_i32_1 = arith.constant 0 : i32
    return %c0_i32, %c0_i32_0 : i32, i32
  }
  func.func @transform_5(%arg0: i32) -> (i32, i32) {
    %c0_i32 = arith.constant 0 : i32
    %c0_i32_0 = arith.constant 0 : i32
    %c0_i32_1 = arith.constant 0 : i32
    return %c0_i32, %c0_i32_0 : i32, i32
  }
  func.func @transform_6(%arg0: i32) -> (i32, i32) {
    %c0_i32 = arith.constant 0 : i32
    %c0_i32_0 = arith.constant 0 : i32
    %c0_i32_1 = arith.constant 0 : i32
    return %c0_i32, %c0_i32_0 : i32, i32
  }
  func.func @transform_7(%arg0: i32) -> (i32, i32) {
    %c0_i32 = arith.constant 0 : i32
    %c0_i32_0 = arith.constant 0 : i32
    %c0_i32_1 = arith.constant 0 : i32
    return %c0_i32, %c0_i32_0 : i32, i32
  }
  func.func @transform_8(%arg0: i32) -> (i32, i32) {
    %c0_i32 = arith.constant 0 : i32
    %c0_i32_0 = arith.constant 0 : i32
    %c0_i32_1 = arith.constant 0 : i32
    return %c0_i32, %c0_i32_0 : i32, i32
  }
  func.func @transform_9(%arg0: i32) -> (i32, i32) {
    %c0_i32 = arith.constant 0 : i32
    %c0_i32_0 = arith.constant 0 : i32
    %c0_i32_1 = arith.constant 0 : i32
    return %c0_i32, %c0_i32_0 : i32, i32
  }
  func.func @transform_10(%arg0: i32) -> (i32, i32) {
    %c0_i32 = arith.constant 0 : i32
    %c0_i32_0 = arith.constant 0 : i32
    %c0_i32_1 = arith.constant 0 : i32
    return %c0_i32, %c0_i32_0 : i32, i32
  }
  func.func @transform_11(%arg0: i32) -> (i32, i32) {
    %c0_i32 = arith.constant 0 : i32
    %c0_i32_0 = arith.constant 0 : i32
    %c0_i32_1 = arith.constant 0 : i32
    return %c0_i32, %c0_i32_0 : i32, i32
  }
  func.func @transform_12(%arg0: i32) -> (i32, i32) {
    %c0_i32 = arith.constant 0 : i32
    %c0_i32_0 = arith.constant 0 : i32
    %c0_i32_1 = arith.constant 0 : i32
    return %c0_i32, %c0_i32_0 : i32, i32
  }
  func.func @transform_13(%arg0: i32) -> (i32, i32) {
    %c0_i32 = arith.constant 0 : i32
    %c0_i32_0 = arith.constant 0 : i32
    %c0_i32_1 = arith.constant 0 : i32
    return %c0_i32, %c0_i32_0 : i32, i32
  }
  func.func @transform_14(%arg0: i32) -> (i32, i32) {
    %c0_i32 = arith.constant 0 : i32
    %c0_i32_0 = arith.constant 0 : i32
    %c0_i32_1 = arith.constant 0 : i32
    return %c0_i32, %c0_i32_0 : i32, i32
  }
  func.func @transform_15(%arg0: i32) -> (i32, i32) {
    %c0_i32 = arith.constant 0 : i32
    %c0_i32_0 = arith.constant 0 : i32
    %c0_i32_1 = arith.constant 0 : i32
    return %c0_i32, %c0_i32_0 : i32, i32
  }
  func.func @transform_16(%arg0: i32) -> (i32, i32) {
    %c0_i32 = arith.constant 0 : i32
    %c0_i32_0 = arith.constant 0 : i32
    %c0_i32_1 = arith.constant 0 : i32
    return %c0_i32, %c0_i32_0 : i32, i32
  }
  func.func @transform_17(%arg0: i32) -> (i32, i32) {
    %c0_i32 = arith.constant 0 : i32
    %c0_i32_0 = arith.constant 0 : i32
    %c0_i32_1 = arith.constant 0 : i32
    return %c0_i32, %c0_i32_0 : i32, i32
  }
  func.func @transform_18(%arg0: i32) -> (i32, i32) {
    %c0_i32 = arith.constant 0 : i32
    %c0_i32_0 = arith.constant 0 : i32
    %c0_i32_1 = arith.constant 0 : i32
    return %c0_i32, %c0_i32_0 : i32, i32
  }
  func.func @transform_19(%arg0: i32) -> (i32, i32, i32, i32) {
    %c0_i32 = arith.constant 0 : i32
    %c0_i32_0 = arith.constant 0 : i32
    %c0_i32_1 = arith.constant 0 : i32
    %c0_i32_2 = arith.constant 0 : i32
    return %arg0, %c0_i32, %c0_i32_0, %c0_i32_1 : i32, i32, i32, i32
  }
}

module attributes {stable_mosaic.version = 11 : i64} {
  func.func @_decoder_kernel(%arg0: i32, %arg1: memref<1x256x16xf32, #tpu.memory_space<vmem>>, %arg2: memref<1x64x32xf32, #tpu.memory_space<vmem>>, %arg3: memref<1x16x64xf32, #tpu.memory_space<vmem>>, %arg4: memref<1x16x64xf32, #tpu.memory_space<vmem>>, %arg5: memref<256x96xbf16, #tpu.memory_space<vmem>>, %arg6: memref<256x256xf32, #tpu.memory_space<vmem>>, %arg7: memref<256x256xf32, #tpu.memory_space<vmem>>, %arg8: memref<16x128xf32, #tpu.memory_space<vmem>>, %arg9: memref<1x128xf32, #tpu.memory_space<vmem>>, %arg10: memref<32x128xf32, #tpu.memory_space<vmem>>, %arg11: memref<1x128xf32, #tpu.memory_space<vmem>>, %arg12: memref<64x128xf32, #tpu.memory_space<vmem>>, %arg13: memref<1x128xf32, #tpu.memory_space<vmem>>, %arg14: memref<64x128xf32, #tpu.memory_space<vmem>>, %arg15: memref<1x128xf32, #tpu.memory_space<vmem>>, %arg16: memref<1536x768xbf16, #tpu.memory_space<vmem>>, %arg17: memref<1x256xf32, #tpu.memory_space<vmem>>, %arg18: memref<256x128xf32, #tpu.memory_space<vmem>>, %arg19: memref<1x128xf32, #tpu.memory_space<vmem>>, %arg20: memref<1x16x16x128xf32, #tpu.memory_space<vmem>>, %arg21: memref<96x512xbf16, #tpu.memory_space<vmem>>, %arg22: memref<288x512xbf16, #tpu.memory_space<vmem>>) attributes {dimension_semantics = [#tpu.dimension_semantics<parallel>], iteration_bounds = array<i64: 2>, scalar_prefetch = 0 : i64, scratch_operands = 2 : i64, tpu.core_type = #tpu.core_type<tc>, window_params = [{transform_indices = @transform_0, window_bounds = array<i64: 1, 256, 16>}, {transform_indices = @transform_1, window_bounds = array<i64: 1, 64, 32>}, {transform_indices = @transform_2, window_bounds = array<i64: 1, 16, 64>}, {transform_indices = @transform_3, window_bounds = array<i64: 1, 16, 64>}, {pipeline_mode = #tpu.pipeline_mode<synchronous>, transform_indices = @transform_4, window_bounds = array<i64: 256, 96>}, {pipeline_mode = #tpu.pipeline_mode<synchronous>, transform_indices = @transform_5, window_bounds = array<i64: 256, 256>}, {pipeline_mode = #tpu.pipeline_mode<synchronous>, transform_indices = @transform_6, window_bounds = array<i64: 256, 256>}, {pipeline_mode = #tpu.pipeline_mode<synchronous>, transform_indices = @transform_7, window_bounds = array<i64: 16, 128>}, {pipeline_mode = #tpu.pipeline_mode<synchronous>, transform_indices = @transform_8, window_bounds = array<i64: 1, 128>}, {pipeline_mode = #tpu.pipeline_mode<synchronous>, transform_indices = @transform_9, window_bounds = array<i64: 32, 128>}, {pipeline_mode = #tpu.pipeline_mode<synchronous>, transform_indices = @transform_10, window_bounds = array<i64: 1, 128>}, {pipeline_mode = #tpu.pipeline_mode<synchronous>, transform_indices = @transform_11, window_bounds = array<i64: 64, 128>}, {pipeline_mode = #tpu.pipeline_mode<synchronous>, transform_indices = @transform_12, window_bounds = array<i64: 1, 128>}, {pipeline_mode = #tpu.pipeline_mode<synchronous>, transform_indices = @transform_13, window_bounds = array<i64: 64, 128>}, {pipeline_mode = #tpu.pipeline_mode<synchronous>, transform_indices = @transform_14, window_bounds = array<i64: 1, 128>}, {pipeline_mode = #tpu.pipeline_mode<synchronous>, transform_indices = @transform_15, window_bounds = array<i64: 1536, 768>}, {pipeline_mode = #tpu.pipeline_mode<synchronous>, transform_indices = @transform_16, window_bounds = array<i64: 1, 256>}, {pipeline_mode = #tpu.pipeline_mode<synchronous>, transform_indices = @transform_17, window_bounds = array<i64: 256, 128>}, {pipeline_mode = #tpu.pipeline_mode<synchronous>, transform_indices = @transform_18, window_bounds = array<i64: 1, 128>}, {transform_indices = @transform_19, window_bounds = array<i64: 1, 16, 16, 128>}]} {
    %c0 = arith.constant 0 : index
    %c0_0 = arith.constant 0 : index
    %c0_1 = arith.constant 0 : index
    %0 = vector.load %arg1[%c0, %c0_0, %c0_1] : memref<1x256x16xf32, #tpu.memory_space<vmem>>, vector<1x256x16xf32>
    %1 = vector.shape_cast %0 : vector<1x256x16xf32> to vector<256x16xf32>
    %c0_2 = arith.constant 0 : index
    %c0_3 = arith.constant 0 : index
    %2 = vector.load %arg8[%c0_2, %c0_3] : memref<16x128xf32, #tpu.memory_space<vmem>>, vector<16x128xf32>
    %cst = arith.constant dense<0.000000e+00> : vector<256x128xf32>
    %3 = tpu.matmul %1, %2, %cst {dimension_numbers = #tpu.dot_dimension_numbers<[1], [0], [0], [1], [0, 0, 1, 1], [], []>} : vector<256x16xf32>, vector<16x128xf32>, vector<256x128xf32> -> vector<256x128xf32>
    %c0_4 = arith.constant 0 : index
    %c0_5 = arith.constant 0 : index
    %4 = vector.load %arg9[%c0_4, %c0_5] : memref<1x128xf32, #tpu.memory_space<vmem>>, vector<1x128xf32>
    %5 = vector.broadcast %4 : vector<1x128xf32> to vector<256x128xf32>
    %6 = arith.addf %3, %5 : vector<256x128xf32>
    %cst_6 = arith.constant 0.000000e+00 : f32
    %7 = vector.broadcast %cst_6 : f32 to vector<256x128xf32>
    %8 = arith.maximumf %6, %7 : vector<256x128xf32>
    %c0_7 = arith.constant 0 : index
    %c0_8 = arith.constant 0 : index
    %c0_9 = arith.constant 0 : index
    %9 = vector.load %arg2[%c0_7, %c0_8, %c0_9] : memref<1x64x32xf32, #tpu.memory_space<vmem>>, vector<1x64x32xf32>
    %10 = vector.shape_cast %9 : vector<1x64x32xf32> to vector<64x32xf32>
    %c0_10 = arith.constant 0 : index
    %c0_11 = arith.constant 0 : index
    %11 = vector.load %arg10[%c0_10, %c0_11] : memref<32x128xf32, #tpu.memory_space<vmem>>, vector<32x128xf32>
    %cst_12 = arith.constant dense<0.000000e+00> : vector<64x128xf32>
    %12 = tpu.matmul %10, %11, %cst_12 {dimension_numbers = #tpu.dot_dimension_numbers<[1], [0], [0], [1], [0, 0, 1, 1], [], []>} : vector<64x32xf32>, vector<32x128xf32>, vector<64x128xf32> -> vector<64x128xf32>
    %c0_13 = arith.constant 0 : index
    %c0_14 = arith.constant 0 : index
    %13 = vector.load %arg11[%c0_13, %c0_14] : memref<1x128xf32, #tpu.memory_space<vmem>>, vector<1x128xf32>
    %14 = vector.broadcast %13 : vector<1x128xf32> to vector<64x128xf32>
    %15 = arith.addf %12, %14 : vector<64x128xf32>
    %cst_15 = arith.constant 0.000000e+00 : f32
    %16 = vector.broadcast %cst_15 : f32 to vector<64x128xf32>
    %17 = arith.maximumf %15, %16 : vector<64x128xf32>
    %c0_16 = arith.constant 0 : index
    %c0_17 = arith.constant 0 : index
    %c0_18 = arith.constant 0 : index
    %18 = vector.load %arg3[%c0_16, %c0_17, %c0_18] : memref<1x16x64xf32, #tpu.memory_space<vmem>>, vector<1x16x64xf32>
    %19 = vector.shape_cast %18 : vector<1x16x64xf32> to vector<16x64xf32>
    %c0_19 = arith.constant 0 : index
    %c0_20 = arith.constant 0 : index
    %20 = vector.load %arg12[%c0_19, %c0_20] : memref<64x128xf32, #tpu.memory_space<vmem>>, vector<64x128xf32>
    %cst_21 = arith.constant dense<0.000000e+00> : vector<16x128xf32>
    %21 = tpu.matmul %19, %20, %cst_21 {dimension_numbers = #tpu.dot_dimension_numbers<[1], [0], [0], [1], [0, 0, 1, 1], [], []>} : vector<16x64xf32>, vector<64x128xf32>, vector<16x128xf32> -> vector<16x128xf32>
    %c0_22 = arith.constant 0 : index
    %c0_23 = arith.constant 0 : index
    %22 = vector.load %arg13[%c0_22, %c0_23] : memref<1x128xf32, #tpu.memory_space<vmem>>, vector<1x128xf32>
    %23 = vector.broadcast %22 : vector<1x128xf32> to vector<16x128xf32>
    %24 = arith.addf %21, %23 : vector<16x128xf32>
    %cst_24 = arith.constant 0.000000e+00 : f32
    %25 = vector.broadcast %cst_24 : f32 to vector<16x128xf32>
    %26 = arith.maximumf %24, %25 : vector<16x128xf32>
    %c0_25 = arith.constant 0 : index
    %c0_26 = arith.constant 0 : index
    %c0_27 = arith.constant 0 : index
    %27 = vector.load %arg4[%c0_25, %c0_26, %c0_27] : memref<1x16x64xf32, #tpu.memory_space<vmem>>, vector<1x16x64xf32>
    %28 = vector.shape_cast %27 : vector<1x16x64xf32> to vector<16x64xf32>
    %c0_28 = arith.constant 0 : index
    %c0_29 = arith.constant 0 : index
    %29 = vector.load %arg14[%c0_28, %c0_29] : memref<64x128xf32, #tpu.memory_space<vmem>>, vector<64x128xf32>
    %cst_30 = arith.constant dense<0.000000e+00> : vector<16x128xf32>
    %30 = tpu.matmul %28, %29, %cst_30 {dimension_numbers = #tpu.dot_dimension_numbers<[1], [0], [0], [1], [0, 0, 1, 1], [], []>} : vector<16x64xf32>, vector<64x128xf32>, vector<16x128xf32> -> vector<16x128xf32>
    %c0_31 = arith.constant 0 : index
    %c0_32 = arith.constant 0 : index
    %31 = vector.load %arg15[%c0_31, %c0_32] : memref<1x128xf32, #tpu.memory_space<vmem>>, vector<1x128xf32>
    %32 = vector.broadcast %31 : vector<1x128xf32> to vector<16x128xf32>
    %33 = arith.addf %30, %32 : vector<16x128xf32>
    %cst_33 = arith.constant 0.000000e+00 : f32
    %34 = vector.broadcast %cst_33 : f32 to vector<16x128xf32>
    %35 = arith.maximumf %33, %34 : vector<16x128xf32>
    %cst_34 = arith.constant 0.000000e+00 : bf16
    %36 = vector.broadcast %cst_34 : bf16 to vector<96x512xbf16>
    %c0_35 = arith.constant 0 : index
    %c0_36 = arith.constant 0 : index
    %37 = vector.load %arg21[%c0_35, %c0_36] : memref<96x512xbf16, #tpu.memory_space<vmem>>, vector<96x512xbf16>
    tpu.vector_store %arg21[%c0_35, %c0_36], %36 {strides = array<i32>} : memref<96x512xbf16, #tpu.memory_space<vmem>>, vector<96x512xbf16>,
    %38 = arith.truncf %35 : vector<16x128xf32> to vector<16x128xbf16>
    %c0_37 = arith.constant 0 : index
    %c0_38 = arith.constant 0 : index
    %39 = vector.load %arg21[%c0_37, %c0_38] : memref<96x512xbf16, #tpu.memory_space<vmem>>, vector<16x128xbf16>
    tpu.vector_store %arg21[%c0_37, %c0_38], %38 {strides = array<i32>} : memref<96x512xbf16, #tpu.memory_space<vmem>>, vector<16x128xbf16>,
    %40 = arith.truncf %17 : vector<64x128xf32> to vector<64x128xbf16>
    %c16 = arith.constant 16 : index
    %c256 = arith.constant 256 : index
    %41 = vector.load %arg21[%c16, %c256] : memref<96x512xbf16, #tpu.memory_space<vmem>>, vector<64x128xbf16>
    tpu.vector_store %arg21[%c16, %c256], %40 {strides = array<i32>} : memref<96x512xbf16, #tpu.memory_space<vmem>>, vector<64x128xbf16>,
    %42 = arith.truncf %26 : vector<16x128xf32> to vector<16x128xbf16>
    %c80 = arith.constant 80 : index
    %c384 = arith.constant 384 : index
    %43 = vector.load %arg21[%c80, %c384] : memref<96x512xbf16, #tpu.memory_space<vmem>>, vector<16x128xbf16>
    tpu.vector_store %arg21[%c80, %c384], %42 {strides = array<i32>} : memref<96x512xbf16, #tpu.memory_space<vmem>>, vector<16x128xbf16>,
    %c0_39 = arith.constant 0 : index
    %c0_40 = arith.constant 0 : index
    %44 = vector.load %arg5[%c0_39, %c0_40] : memref<256x96xbf16, #tpu.memory_space<vmem>>, vector<256x96xbf16>
    %c0_41 = arith.constant 0 : index
    %c0_42 = arith.constant 0 : index
    %45 = vector.load %arg21[%c0_41, %c0_42] : memref<96x512xbf16, #tpu.memory_space<vmem>>, vector<96x512xbf16>
    %cst_43 = arith.constant dense<0.000000e+00> : vector<256x512xf32>
    %46 = tpu.matmul %44, %45, %cst_43 {dimension_numbers = #tpu.dot_dimension_numbers<[1], [0], [0], [1], [0, 0, 1, 1], [], []>} : vector<256x96xbf16>, vector<96x512xbf16>, vector<256x512xf32> -> vector<256x512xf32>
    %cst_44 = arith.constant 0.000000e+00 : bf16
    %47 = vector.broadcast %cst_44 : bf16 to vector<16x512xbf16>
    %c0_45 = arith.constant 0 : index
    %c0_46 = arith.constant 0 : index
    %48 = vector.load %arg22[%c0_45, %c0_46] : memref<288x512xbf16, #tpu.memory_space<vmem>>, vector<16x512xbf16>
    tpu.vector_store %arg22[%c0_45, %c0_46], %47 {strides = array<i32>} : memref<288x512xbf16, #tpu.memory_space<vmem>>, vector<16x512xbf16>,
    %cst_47 = arith.constant 0.000000e+00 : bf16
    %49 = vector.broadcast %cst_47 : bf16 to vector<16x512xbf16>
    %c272 = arith.constant 272 : index
    %c0_48 = arith.constant 0 : index
    %50 = vector.load %arg22[%c272, %c0_48] : memref<288x512xbf16, #tpu.memory_space<vmem>>, vector<16x512xbf16>
    tpu.vector_store %arg22[%c272, %c0_48], %49 {strides = array<i32>} : memref<288x512xbf16, #tpu.memory_space<vmem>>, vector<16x512xbf16>,
    %51 = arith.truncf %46 : vector<256x512xf32> to vector<256x512xbf16>
    %c16_49 = arith.constant 16 : index
    %c0_50 = arith.constant 0 : index
    %52 = vector.load %arg22[%c16_49, %c0_50] : memref<288x512xbf16, #tpu.memory_space<vmem>>, vector<256x512xbf16>
    tpu.vector_store %arg22[%c16_49, %c0_50], %51 {strides = array<i32>} : memref<288x512xbf16, #tpu.memory_space<vmem>>, vector<256x512xbf16>,
    %53 = arith.truncf %8 : vector<256x128xf32> to vector<256x128xbf16>
    %c16_51 = arith.constant 16 : index
    %c128 = arith.constant 128 : index
    %54 = vector.load %arg22[%c16_51, %c128] : memref<288x512xbf16, #tpu.memory_space<vmem>>, vector<256x128xbf16>
    tpu.vector_store %arg22[%c16_51, %c128], %53 {strides = array<i32>} : memref<288x512xbf16, #tpu.memory_space<vmem>>, vector<256x128xbf16>,
    %c0_52 = arith.constant 0 : index
    %c0_53 = arith.constant 0 : index
    %55 = vector.load %arg22[%c0_52, %c0_53] : memref<288x512xbf16, #tpu.memory_space<vmem>>, vector<256x512xbf16>
    %c16_54 = arith.constant 16 : index
    %c0_55 = arith.constant 0 : index
    %56 = vector.load %arg22[%c16_54, %c0_55] : memref<288x512xbf16, #tpu.memory_space<vmem>>, vector<256x512xbf16>
    %c32 = arith.constant 32 : index
    %c0_56 = arith.constant 0 : index
    %57 = vector.load %arg22[%c32, %c0_56] : memref<288x512xbf16, #tpu.memory_space<vmem>>, vector<256x512xbf16>
    %58 = tpu.concatenate %55, %56, %57 in 1 : vector<256x512xbf16>, vector<256x512xbf16>, vector<256x512xbf16> -> vector<256x1536xbf16>
    %c0_57 = arith.constant 0 : index
    %c0_58 = arith.constant 0 : index
    %59 = vector.load %arg16[%c0_57, %c0_58] : memref<1536x768xbf16, #tpu.memory_space<vmem>>, vector<1536x768xbf16>
    %cst_59 = arith.constant dense<0.000000e+00> : vector<256x768xf32>
    %60 = tpu.matmul %58, %59, %cst_59 {dimension_numbers = #tpu.dot_dimension_numbers<[1], [0], [0], [1], [0, 0, 1, 1], [], []>} : vector<256x1536xbf16>, vector<1536x768xbf16>, vector<256x768xf32> -> vector<256x768xf32>
    %61 = vector.extract_strided_slice %60 {offsets = [0, 256], sizes = [256, 256], strides = [1, 1]} : vector<256x768xf32> to vector<256x256xf32>
    %c0_60 = arith.constant 0 : index
    %c0_61 = arith.constant 0 : index
    %62 = vector.load %arg6[%c0_60, %c0_61] : memref<256x256xf32, #tpu.memory_space<vmem>>, vector<256x256xf32>
    %63 = vector.extract_strided_slice %60 {offsets = [0, 0], sizes = [256, 256], strides = [1, 1]} : vector<256x768xf32> to vector<256x256xf32>
    %cst_62 = arith.constant dense<0.000000e+00> : vector<256x256xf32>
    %64 = tpu.matmul %62, %63, %cst_62 {dimension_numbers = #tpu.dot_dimension_numbers<[1], [0], [0], [1], [0, 0, 1, 1], [], []>} : vector<256x256xf32>, vector<256x256xf32>, vector<256x256xf32> -> vector<256x256xf32>
    %65 = arith.addf %61, %64 : vector<256x256xf32>
    %c0_63 = arith.constant 0 : index
    %c0_64 = arith.constant 0 : index
    %66 = vector.load %arg7[%c0_63, %c0_64] : memref<256x256xf32, #tpu.memory_space<vmem>>, vector<256x256xf32>
    %67 = vector.extract_strided_slice %60 {offsets = [0, 512], sizes = [256, 256], strides = [1, 1]} : vector<256x768xf32> to vector<256x256xf32>
    %cst_65 = arith.constant dense<0.000000e+00> : vector<256x256xf32>
    %68 = tpu.matmul %66, %67, %cst_65 {dimension_numbers = #tpu.dot_dimension_numbers<[1], [0], [0], [1], [0, 0, 1, 1], [], []>} : vector<256x256xf32>, vector<256x256xf32>, vector<256x256xf32> -> vector<256x256xf32>
    %69 = arith.addf %65, %68 : vector<256x256xf32>
    %c0_66 = arith.constant 0 : index
    %c0_67 = arith.constant 0 : index
    %70 = vector.load %arg17[%c0_66, %c0_67] : memref<1x256xf32, #tpu.memory_space<vmem>>, vector<1x256xf32>
    %71 = vector.broadcast %70 : vector<1x256xf32> to vector<256x256xf32>
    %72 = arith.addf %69, %71 : vector<256x256xf32>
    %cst_68 = arith.constant 0.000000e+00 : f32
    %73 = vector.broadcast %cst_68 : f32 to vector<256x256xf32>
    %74 = arith.maximumf %72, %73 : vector<256x256xf32>
    %c0_69 = arith.constant 0 : index
    %c0_70 = arith.constant 0 : index
    %75 = vector.load %arg18[%c0_69, %c0_70] : memref<256x128xf32, #tpu.memory_space<vmem>>, vector<256x128xf32>
    %cst_71 = arith.constant dense<0.000000e+00> : vector<256x128xf32>
    %76 = tpu.matmul %74, %75, %cst_71 {dimension_numbers = #tpu.dot_dimension_numbers<[1], [0], [0], [1], [0, 0, 1, 1], [], []>} : vector<256x256xf32>, vector<256x128xf32>, vector<256x128xf32> -> vector<256x128xf32>
    %c0_72 = arith.constant 0 : index
    %c0_73 = arith.constant 0 : index
    %77 = vector.load %arg19[%c0_72, %c0_73] : memref<1x128xf32, #tpu.memory_space<vmem>>, vector<1x128xf32>
    %78 = vector.broadcast %77 : vector<1x128xf32> to vector<256x128xf32>
    %79 = arith.addf %76, %78 : vector<256x128xf32>
    %cst_74 = arith.constant 0.000000e+00 : f32
    %80 = vector.broadcast %cst_74 : f32 to vector<256x128xf32>
    %81 = arith.maximumf %79, %80 : vector<256x128xf32>
    %82 = vector.shape_cast %81 : vector<256x128xf32> to vector<1x16x16x128xf32>
    %c0_75 = arith.constant 0 : index
    %c0_76 = arith.constant 0 : index
    %c0_77 = arith.constant 0 : index
    %c0_78 = arith.constant 0 : index
    %83 = vector.load %arg20[%c0_75, %c0_76, %c0_77, %c0_78] : memref<1x16x16x128xf32, #tpu.memory_space<vmem>>, vector<1x16x16x128xf32>
    tpu.vector_store %arg20[%c0_75, %c0_76, %c0_77, %c0_78], %82 {strides = array<i32>} : memref<1x16x16x128xf32, #tpu.memory_space<vmem>>, vector<1x16x16x128xf32>,
    return
  }
  func.func @transform_0(%arg0: i32) -> (i32, i32, i32) {
    %c0_i32 = arith.constant 0 : i32
    %c0_i32_0 = arith.constant 0 : i32
    %c0_i32_1 = arith.constant 0 : i32
    return %arg0, %c0_i32, %c0_i32_0 : i32, i32, i32
  }
  func.func @transform_1(%arg0: i32) -> (i32, i32, i32) {
    %c0_i32 = arith.constant 0 : i32
    %c0_i32_0 = arith.constant 0 : i32
    %c0_i32_1 = arith.constant 0 : i32
    return %arg0, %c0_i32, %c0_i32_0 : i32, i32, i32
  }
  func.func @transform_2(%arg0: i32) -> (i32, i32, i32) {
    %c0_i32 = arith.constant 0 : i32
    %c0_i32_0 = arith.constant 0 : i32
    %c0_i32_1 = arith.constant 0 : i32
    return %arg0, %c0_i32, %c0_i32_0 : i32, i32, i32
  }
  func.func @transform_3(%arg0: i32) -> (i32, i32, i32) {
    %c0_i32 = arith.constant 0 : i32
    %c0_i32_0 = arith.constant 0 : i32
    %c0_i32_1 = arith.constant 0 : i32
    return %arg0, %c0_i32, %c0_i32_0 : i32, i32, i32
  }
  func.func @transform_4(%arg0: i32) -> (i32, i32) {
    %c0_i32 = arith.constant 0 : i32
    %c0_i32_0 = arith.constant 0 : i32
    %c0_i32_1 = arith.constant 0 : i32
    return %c0_i32, %c0_i32_0 : i32, i32
  }
  func.func @transform_5(%arg0: i32) -> (i32, i32) {
    %c0_i32 = arith.constant 0 : i32
    %c0_i32_0 = arith.constant 0 : i32
    %c0_i32_1 = arith.constant 0 : i32
    return %c0_i32, %c0_i32_0 : i32, i32
  }
  func.func @transform_6(%arg0: i32) -> (i32, i32) {
    %c0_i32 = arith.constant 0 : i32
    %c0_i32_0 = arith.constant 0 : i32
    %c0_i32_1 = arith.constant 0 : i32
    return %c0_i32, %c0_i32_0 : i32, i32
  }
  func.func @transform_7(%arg0: i32) -> (i32, i32) {
    %c0_i32 = arith.constant 0 : i32
    %c0_i32_0 = arith.constant 0 : i32
    %c0_i32_1 = arith.constant 0 : i32
    return %c0_i32, %c0_i32_0 : i32, i32
  }
  func.func @transform_8(%arg0: i32) -> (i32, i32) {
    %c0_i32 = arith.constant 0 : i32
    %c0_i32_0 = arith.constant 0 : i32
    %c0_i32_1 = arith.constant 0 : i32
    return %c0_i32, %c0_i32_0 : i32, i32
  }
  func.func @transform_9(%arg0: i32) -> (i32, i32) {
    %c0_i32 = arith.constant 0 : i32
    %c0_i32_0 = arith.constant 0 : i32
    %c0_i32_1 = arith.constant 0 : i32
    return %c0_i32, %c0_i32_0 : i32, i32
  }
  func.func @transform_10(%arg0: i32) -> (i32, i32) {
    %c0_i32 = arith.constant 0 : i32
    %c0_i32_0 = arith.constant 0 : i32
    %c0_i32_1 = arith.constant 0 : i32
    return %c0_i32, %c0_i32_0 : i32, i32
  }
  func.func @transform_11(%arg0: i32) -> (i32, i32) {
    %c0_i32 = arith.constant 0 : i32
    %c0_i32_0 = arith.constant 0 : i32
    %c0_i32_1 = arith.constant 0 : i32
    return %c0_i32, %c0_i32_0 : i32, i32
  }
  func.func @transform_12(%arg0: i32) -> (i32, i32) {
    %c0_i32 = arith.constant 0 : i32
    %c0_i32_0 = arith.constant 0 : i32
    %c0_i32_1 = arith.constant 0 : i32
    return %c0_i32, %c0_i32_0 : i32, i32
  }
  func.func @transform_13(%arg0: i32) -> (i32, i32) {
    %c0_i32 = arith.constant 0 : i32
    %c0_i32_0 = arith.constant 0 : i32
    %c0_i32_1 = arith.constant 0 : i32
    return %c0_i32, %c0_i32_0 : i32, i32
  }
  func.func @transform_14(%arg0: i32) -> (i32, i32) {
    %c0_i32 = arith.constant 0 : i32
    %c0_i32_0 = arith.constant 0 : i32
    %c0_i32_1 = arith.constant 0 : i32
    return %c0_i32, %c0_i32_0 : i32, i32
  }
  func.func @transform_15(%arg0: i32) -> (i32, i32) {
    %c0_i32 = arith.constant 0 : i32
    %c0_i32_0 = arith.constant 0 : i32
    %c0_i32_1 = arith.constant 0 : i32
    return %c0_i32, %c0_i32_0 : i32, i32
  }
  func.func @transform_16(%arg0: i32) -> (i32, i32) {
    %c0_i32 = arith.constant 0 : i32
    %c0_i32_0 = arith.constant 0 : i32
    %c0_i32_1 = arith.constant 0 : i32
    return %c0_i32, %c0_i32_0 : i32, i32
  }
  func.func @transform_17(%arg0: i32) -> (i32, i32) {
    %c0_i32 = arith.constant 0 : i32
    %c0_i32_0 = arith.constant 0 : i32
    %c0_i32_1 = arith.constant 0 : i32
    return %c0_i32, %c0_i32_0 : i32, i32
  }
  func.func @transform_18(%arg0: i32) -> (i32, i32) {
    %c0_i32 = arith.constant 0 : i32
    %c0_i32_0 = arith.constant 0 : i32
    %c0_i32_1 = arith.constant 0 : i32
    return %c0_i32, %c0_i32_0 : i32, i32
  }
  func.func @transform_19(%arg0: i32) -> (i32, i32, i32, i32) {
    %c0_i32 = arith.constant 0 : i32
    %c0_i32_0 = arith.constant 0 : i32
    %c0_i32_1 = arith.constant 0 : i32
    %c0_i32_2 = arith.constant 0 : i32
    return %arg0, %c0_i32, %c0_i32_0, %c0_i32_1 : i32, i32, i32, i32
  }
}

</mosaic_0001>

<bundles_post_ra>
// kernel: backbone_decoder_forward.1
= control target key start
LH: loop header
LB: loop body
LE: loop exit
PB: predicated region body
PF: predicated region fallthrough
CT: control target
= control target key end

     0   :  { %s17737_s0 = inlined_call_operand.vmem [shape: f32[2,256,16], index: 0, kind: input, shape index: {}]   ;;  %s17738_s1 = inlined_call_operand.vmem [shape: f32[2,64,32], index: 1, kind: input, shape index: {}]   ;;  %s17739_s2 = inlined_call_operand.vmem [shape: f32[2,16,64], index: 2, kind: input, shape index: {}]   ;;  %s17740_s3 = inlined_call_operand.vmem [shape: f32[2,16,64], index: 3, kind: input, shape index: {}]   ;;  %s17741_s4 = inlined_call_operand.vmem [shape: bf16[256,96], index: 4, kind: input, shape index: {}]   ;;  %s17742_s5 = inlined_call_operand.vmem [shape: f32[256,256], index: 5, kind: input, shape index: {}]   ;;  %s17743_s6 = inlined_call_operand.vmem [shape: f32[256,256], index: 6, kind: input, shape index: {}]   ;;  %s17744_s7 = inlined_call_operand.vmem [shape: f32[16,128], index: 7, kind: input, shape index: {}]   ;;  %s17745_s8 = inlined_call_operand.vmem [shape: f32[1,128], index: 8, kind: input, shape index: {}, may-alias: {8,10,12,14,18}]   ;;  %s17746_s9 = inlined_call_operand.vmem [shape: f32[32,128], index: 9, kind: input, shape index: {}]   ;;  %s17747_s10 = inlined_call_operand.vmem [shape: f32[1,128], index: 10, kind: input, shape index: {}, may-alias: {8,10,12,14,18}]   ;;  %s17748_s11 = inlined_call_operand.vmem [shape: f32[64,128], index: 11, kind: input, shape index: {}]   ;;  %s17749_s12 = inlined_call_operand.vmem [shape: f32[1,128], index: 12, kind: input, shape index: {}, may-alias: {8,10,12,14,18}]   ;;  %s17750_s13 = inlined_call_operand.vmem [shape: f32[64,128], index: 13, kind: input, shape index: {}]   ;;  %s17751_s14 = inlined_call_operand.vmem [shape: f32[1,128], index: 14, kind: input, shape index: {}, may-alias: {8,10,12,14,18}]   ;;  %s17752_s15 = inlined_call_operand.vmem [shape: bf16[1536,768], index: 15, kind: input, shape index: {}]   ;;  %s17753_s16 = inlined_call_operand.vmem [shape: f32[1,256], index: 16, kind: input, shape index: {}]   ;;  %s17754_s17 = inlined_call_operand.vmem [shape: f32[256,128], index: 17, kind: input, shape index: {}]   ;;  %s17755_s18 = inlined_call_operand.vmem [shape: f32[1,128], index: 18, kind: input, shape index: {}, may-alias: {8,10,12,14,18}]   ;;  %s17756_s19 = inlined_call_operand.vmem [shape: f32[2,16,16,128], index: 19, kind: output, shape index: {}]  }
   0x1   :  { %17864 = sst [smem:[#allocation125_spill]] %s17737_s0  ;;  %s13686_s0 = smov 0  }
   0x2   :  { %17865 = sst [smem:[#allocation126_spill]] %s17738_s1 }
   0x3   :  { %17866 = sst [smem:[#allocation127_spill]] %s17739_s2 }
   0x4   :  { %17867 = sst [smem:[#allocation128_spill]] %s17740_s3 }
   0x5 LB: > { %s10583_s30 = sadd.s32 4294967295, %s13582_s0   ;;  %p10587_p0 = scmp.ge.s32.totalorder %s13582_s0, 1  ;;  %s13582_s0 = sphi %s13686_s0, %s29_s0  }
   0x6   : > { %p567_p1 = scmp.lt.s32.totalorder %s13582_s0, 3 }
   0x8   : > { %p568_p2 = pnand %p10587_p0, %p567_p1 }
   0xa   : > { %571 = sbr.rel (%p568_p2) target bundleno = 2706 (0xa92), region = 96 }
  0x11   : > { %v1067_v0 = vld [vmem:[%s17746_s9] sm:$0xff]  ;;  %v1068_v1 = vld [vmem:[%s17746_s9 + $0x8] sm:$0xff]  ;;  %p638_p3 = scmp.lt.s32.totalorder %s10583_s30, 1  ;;  %v1069_v5 = vld [vmem:[%s17746_s9 + $0x10] sm:$0xff]  ;;  %vm705_vm0 = vcmask 130048   ;;  %vm1078_vm1 = vcmask 261120  }
  0x12   : > { %v696_v2 = vld [vmem:[%s17744_s7] sm:$0xff]  ;;  %v11509_v3 = vpack.c.bf16 %v1068_v1, %v1067_v0  ;;  %v697_v4 = vld [vmem:[%s17744_s7 + $0x8] sm:$0xff]  ;;  %v1070_v6 = vld [vmem:[%s17746_s9 + $0x18] sm:$0xff]  ;;  %s17868_s28 = sld [smem:[#allocation125_spill]]  ;;  %s17869_s1 = sld [smem:[#allocation126_spill]]  ;;  %vm1233_vm2 = vcmask 523264  }
  0x13   : > { %v11505_v7 = vpack.c.bf16 %v697_v4, %v696_v2  ;;  %s18254_s30 = smov (!%p638_p3, %s10583_s30), 1  ;;  %v11513_v8 = vpack.c.bf16 %v1070_v6, %v1069_v5  ;;  %v1319_v9 = vld [vmem:[%s17750_s13] sm:$0xff]  ;;  %v1320_v10 = vld [vmem:[%s17750_s13 + $0x8] sm:$0xff]  ;;  %v1220_v15 = vld [vmem:[%s17748_s11 + $0x10] sm:$0xff]  ;;  %s17870_s26 = sld [smem:[#allocation128_spill]]  ;;  %vm1589_vm3 = vcmask 785408  }
  0x14   : > { %v1218_v11 = vld [vmem:[%s17748_s11] sm:$0xff]  ;;  %11510 = vmatprep.subr.bf16.mxu1 %v11509_v3  ;;  %v1219_v12 = vld [vmem:[%s17748_s11 + $0x8] sm:$0xff]  ;;  %s11273_s25 = sshll.u32 %s18254_s30, 8  ;;  %s11274_s3 = sshll.u32 %s18254_s30, 6  ;;  %v11533_v14 = vpack.c.bf16 %v1320_v10, %v1319_v9  ;;  %v1221_v16 = vld [vmem:[%s17748_s11 + $0x18] sm:$0xff] }
  0x15   : > { %11506 = vmatprep.subr.bf16.mxu0 %v11505_v7  ;;  %11512 = vmatpush3.bf16.msra.mxu1 %v11509_v3  ;;  %v11517_v13 = vpack.c.bf16 %v1219_v12, %v1218_v11  ;;  %v1321_v21 = vld [vmem:[%s17750_s13 + $0x10] sm:$0xff]  ;;  %v1322_v22 = vld [vmem:[%s17750_s13 + $0x18] sm:$0xff]  ;;  %v11521_v23 = vpack.c.bf16 %v1221_v16, %v1220_v15  ;;  %v1323_v29 = vld [vmem:[%s17750_s13 + $0x20] sm:$0xff]  ;;  %s17871_s23 = sld [smem:[#allocation127_spill]] }
  0x16   : > { %11508 = vmatpush3.bf16.msra.mxu0 %v11505_v7  ;;  %11514 = vmatprep.subr.bf16.mxu1 %v11513_v8  ;;  %v11537_v28 = vpack.c.bf16 %v1322_v22, %v1321_v21  ;;  %v1324_v30 = vld [vmem:[%s17750_s13 + $0x28] sm:$0xff]  ;;  %v1325_v36 = vld [vmem:[%s17750_s13 + $0x30] sm:$0xff]  ;;  %v1326_v37 = vld [vmem:[%s17750_s13 + $0x38] sm:$0xff] }
  0x17   : > { %11518 = vmatprep.subr.bf16.mxu0 %v11517_v13  ;;  %v11541_v35 = vpack.c.bf16 %v1324_v30, %v1323_v29  ;;  %v1222_v39 = vld [vmem:[%s17748_s11 + $0x20] sm:$0xff]  ;;  %v1223_v40 = vld [vmem:[%s17748_s11 + $0x28] sm:$0xff]  ;;  %v11545_v45 = vpack.c.bf16 %v1326_v37, %v1325_v36  ;;  %v1224_v46 = vld [vmem:[%s17748_s11 + $0x30] sm:$0xff] }
  0x18   : > { %s13733_s29 = scalar_lea.vmem %s17868_s28, %s11273_s25  ;;  %s13738_s22 = scalar_lea.vmem %s17869_s1, %s11274_s3  ;;  %v11525_v42 = vpack.c.bf16 %v1223_v40, %v1222_v39  ;;  %v1225_v47 = vld [vmem:[%s17748_s11 + $0x38] sm:$0xff]  ;;  %v13882_v15 = vld [vmem:[%s17745_s8] ss:$0 sm:$0xff] }
  0x19   : > { %v664_v17 = vld [vmem:[%s13733_s29] sm:$0xff]  ;;  %v665_v18 = vld [vmem:[%s13733_s29 + $0x8] sm:$0xff]  ;;  %v666_v20 = vld [vmem:[%s13733_s29 + $0x10] sm:$0xff]  ;;  %11516 = vmatpush3.bf16.msra.mxu1 %v11513_v8  ;;  %s11275_s28 = sshll.u32 %s18254_s30, 4  ;;  %v11529_v49 = vpack.c.bf16 %v1225_v47, %v1224_v46 }
  0x1a   : > { %v1059_v19 = vld [vmem:[%s13738_s22] sm:$0xff]  ;;  %11365 = vmatprep.mubr.msk.f32.mxu0 %vm705_vm0, %v664_v17  ;;  %v1060_v24 = vld [vmem:[%s13738_s22 + $0x8] sm:$0xff]  ;;  %11534 = vmatprep.subr.bf16.mxu1 %v11533_v14  ;;  %v667_v25 = vld [vmem:[%s13733_s29 + $0x18] sm:$0xff]  ;;  %s657_s3 = scalar_lea.vmem %s17870_s26, %s11275_s28 }
  0x1b   : > { %11421 = vmatprep.mubr.msk.f32.mxu1 %vm1078_vm1, %v1059_v19  ;;  %11366 = vmatmul.mubr.msk.f32.vlgmr.msra.gmra.mrb[0].mxu0 %vm705_vm0, %v665_v18  ;;  %v1061_v26 = vld [vmem:[%s13738_s22 + $0x10] sm:$0xff]  ;;  %v668_v27 = vld [vmem:[%s13733_s29 + $0x20] sm:$0xff]  ;;  %v1062_v31 = vld [vmem:[%s13738_s22 + $0x18] sm:$0xff]  ;;  %s652_s24 = scalar_lea.vmem %s17871_s23, %s11275_s28 }
  0x1c   : > { %11368 = vmatprep.mubr.msk.f32.mxu0 %vm705_vm0, %v666_v20  ;;  %11520 = vmatpush3.bf16.msra.mxu0 %v11517_v13  ;;  %v669_v32 = vld [vmem:[%s13733_s29 + $0x28] sm:$0xff]  ;;  %v1063_v33 = vld [vmem:[%s13738_s22 + $0x20] sm:$0xff]  ;;  %v670_v34 = vld [vmem:[%s13733_s29 + $0x30] sm:$0xff] }
  0x1d   : > { %11422 = vmatmul.mubr.msk.f32.vlgmr.msra.gmra.mrb[0].mxu1 %vm1078_vm1, %v1060_v24  ;;  %11522 = vmatprep.subr.bf16.mxu0 %v11521_v23  ;;  %v1064_v38 = vld [vmem:[%s13738_s22 + $0x28] sm:$0xff]  ;;  %v671_v41 = vld [vmem:[%s13733_s29 + $0x38] sm:$0xff]  ;;  %v1065_v43 = vld [vmem:[%s13738_s22 + $0x30] sm:$0xff] }
  0x1e   : > { %11536 = vmatpush3.bf16.msra.mxu1 %v11533_v14  ;;  %11424 = vmatprep.mubr.msk.f32.mxu1 %vm1078_vm1, %v1061_v26  ;;  %v672_v44 = vld [vmem:[%s13733_s29 + $0x40] sm:$0xff]  ;;  %v1066_v48 = vld [vmem:[%s13738_s22 + $0x38] sm:$0xff]  ;;  %v673_v50 = vld [vmem:[%s13733_s29 + $0x48] sm:$0xff]  ;;  %v17757_v14 = vmov 0   ;;  %s17669_s22 = scalar_lea.vmem %s17756_s19, %s11273_s25 }
  0x1f   : > { %11369 = vmatmul.mubr.msk.f32.gmra.mrb[2].mxu0 %vm705_vm0, %v667_v25  ;;  %11538 = vmatprep.subr.bf16.mxu1 %v11537_v28  ;;  %v1317_v51 = vld [vmem:[%s657_s3] sm:$0xff]  ;;  %v674_v52 = vld [vmem:[%s13733_s29 + $0x50] sm:$0xff]  ;;  %v1318_v53 = vld [vmem:[%s657_s3 + $0x8] sm:$0xff] }
  0x20   : > { %11371 = vmatprep.mubr.msk.f32.mxu0 %vm705_vm0, %v668_v27  ;;  %11524 = vmatpush3.bf16.msra.mxu0 %v11521_v23  ;;  %v675_v54 = vld [vmem:[%s13733_s29 + $0x58] sm:$0xff]  ;;  %v676_v55 = vld [vmem:[%s13733_s29 + $0x60] sm:$0xff]  ;;  %v677_v56 = vld [vmem:[%s13733_s29 + $0x68] sm:$0xff] }
  0x21   : > { %11425 = vmatmul.mubr.msk.f32.gmra.mrb[2].mxu1 %vm1078_vm1, %v1062_v31  ;;  %11526 = vmatprep.subr.bf16.mxu0 %v11525_v42  ;;  %v678_v57 = vld [vmem:[%s13733_s29 + $0x70] sm:$0xff]  ;;  %v679_v58 = vld [vmem:[%s13733_s29 + $0x78] sm:$0xff]  ;;  %v680_v59 = vld [vmem:[%s13733_s29 + $0x80] sm:$0xff] }
  0x22   : > { %11540 = vmatpush3.bf16.msra.mxu1 %v11537_v28  ;;  %11427 = vmatprep.mubr.msk.f32.mxu1 %vm1078_vm1, %v1063_v33  ;;  %v681_v60 = vld [vmem:[%s13733_s29 + $0x88] sm:$0xff]  ;;  %v682_v61 = vld [vmem:[%s13733_s29 + $0x90] sm:$0xff]  ;;  %v683_v62 = vld [vmem:[%s13733_s29 + $0x98] sm:$0xff] }
  0x23   : > { %11372 = vmatmul.mubr.msk.f32.gmra.mrb[4].mxu0 %vm705_vm0, %v669_v32  ;;  %11542 = vmatprep.subr.bf16.mxu1 %v11541_v35  ;;  %v684_v63 = vld [vmem:[%s13733_s29 + $0xa0] sm:$0xff]  ;;  %v685_v0 = vld [vmem:[%s13733_s29 + $0xa8] sm:$0xff]  ;;  %v686_v1 = vld [vmem:[%s13733_s29 + $0xb0] sm:$0xff] }
  0x24   : > { %11374 = vmatprep.mubr.msk.f32.mxu0 %vm705_vm0, %v670_v34  ;;  %11528 = vmatpush3.bf16.msra.mxu0 %v11525_v42  ;;  %v687_v2 = vld [vmem:[%s13733_s29 + $0xb8] sm:$0xff]  ;;  %v688_v3 = vld [vmem:[%s13733_s29 + $0xc0] sm:$0xff]  ;;  %v689_v4 = vld [vmem:[%s13733_s29 + $0xc8] sm:$0xff] }
  0x25   : > { %11428 = vmatmul.mubr.msk.f32.gmra.mrb[4].mxu1 %vm1078_vm1, %v1064_v38  ;;  %11530 = vmatprep.subr.bf16.mxu0 %v11529_v49  ;;  %v690_v5 = vld [vmem:[%s13733_s29 + $0xd0] sm:$0xff]  ;;  %v691_v6 = vld [vmem:[%s13733_s29 + $0xd8] sm:$0xff]  ;;  %v692_v7 = vld [vmem:[%s13733_s29 + $0xe0] sm:$0xff] }
  0x26   : > { %11544 = vmatpush3.bf16.msra.mxu1 %v11541_v35  ;;  %11430 = vmatprep.mubr.msk.f32.mxu1 %vm1078_vm1, %v1065_v43  ;;  %v693_v8 = vld [vmem:[%s13733_s29 + $0xe8] sm:$0xff]  ;;  %v694_v9 = vld [vmem:[%s13733_s29 + $0xf0] sm:$0xff]  ;;  %v695_v10 = vld [vmem:[%s13733_s29 + $0xf8] sm:$0xff] }
  0x27   : > { %11375 = vmatmul.mubr.msk.f32.gmra.mrb[6].mxu0 %vm705_vm0, %v671_v41  ;;  %11546 = vmatprep.subr.bf16.mxu1 %v11545_v45  ;;  %v1216_v11 = vld [vmem:[%s652_s24] sm:$0xff]  ;;  %v1217_v12 = vld [vmem:[%s652_s24 + $0x8] sm:$0xff] }
  0x28   : > { %11377 = vmatprep.mubr.msk.f32.mxu0 %vm705_vm0, %v672_v44  ;;  %11532 = vmatpush3.bf16.msra.mxu0 %v11529_v49  ;;  %v12695_v13 = vld [vmem:[%s17741_s4] sm:$0xff]  }
  0x29   : > { %11431 = vmatmul.mubr.msk.f32.gmra.mrb[6].mxu1 %vm1078_vm1, %v1066_v48  ;;  %1831 = vmatprep.subr.bf16.mxu0 %v17757_v14  ;;  %v10631_v16 = vld [vmem:[%s17747_s10] ss:$0 sm:$0xff] }
  0x2a   : > { %11548 = vmatpush3.bf16.msra.mxu1 %v11545_v45  ;;  %11468 = vmatprep.mubr.msk.f32.mxu1 %vm1233_vm2, %v1317_v51 }
  0x2b   : > { %11378 = vmatmul.mubr.msk.f32.gmra.mrb[8].mxu0 %vm705_vm0, %v673_v50 }
  0x2c   : > { %11380 = vmatprep.mubr.msk.f32.mxu0 %vm705_vm0, %v674_v52 }
  0x2d   : > { %11469 = vmatmul.mubr.msk.f32.vlgmr.msra.gmra.mrb[8].mxu1 %vm1233_vm2, %v1318_v53 }
  0x2e   : > { %11473 = vmatprep.mubr.msk.bf16.mxu1 %vm1589_vm3, %v12695_v13 }
  0x2f   : > { %11381 = vmatmul.mubr.msk.f32.gmra.mrb[10].mxu0 %vm705_vm0, %v675_v54 }
  0x30   : > { %11383 = vmatprep.mubr.msk.f32.mxu0 %vm705_vm0, %v676_v55 }
  0x33   : > { %11384 = vmatmul.mubr.msk.f32.gmra.mrb[12].mxu0 %vm705_vm0, %v677_v56 }
  0x34   : > { %11386 = vmatprep.mubr.msk.f32.mxu0 %vm705_vm0, %v678_v57 }
  0x37   : > { %11387 = vmatmul.mubr.msk.f32.gmra.mrb[14].mxu0 %vm705_vm0, %v679_v58 }
  0x38   : > { %11389 = vmatprep.mubr.msk.f32.mxu0 %vm705_vm0, %v680_v59 }
  0x3b   : > { %11390 = vmatmul.mubr.msk.f32.gmra.mrb[16].mxu0 %vm705_vm0, %v681_v60 }
  0x3c   : > { %11392 = vmatprep.mubr.msk.f32.mxu0 %vm705_vm0, %v682_v61 }
  0x3f   : > { %11393 = vmatmul.mubr.msk.f32.gmra.mrb[18].mxu0 %vm705_vm0, %v683_v62 }
  0x40   : > { %11395 = vmatprep.mubr.msk.f32.mxu0 %vm705_vm0, %v684_v63 }
  0x43   : > { %11396 = vmatmul.mubr.msk.f32.gmra.mrb[20].mxu0 %vm705_vm0, %v685_v0 }
  0x44   : > { %11398 = vmatprep.mubr.msk.f32.mxu0 %vm705_vm0, %v686_v1 }
  0x47   : > { %11399 = vmatmul.mubr.msk.f32.gmra.mrb[22].mxu0 %vm705_vm0, %v687_v2 }
  0x48   : > { %11401 = vmatprep.mubr.msk.f32.mxu0 %vm705_vm0, %v688_v3 }
  0x4b   : > { %11402 = vmatmul.mubr.msk.f32.gmra.mrb[24].mxu0 %vm705_vm0, %v689_v4 }
  0x4c   : > { %11404 = vmatprep.mubr.msk.f32.mxu0 %vm705_vm0, %v690_v5 }
  0x4f   : > { %11405 = vmatmul.mubr.msk.f32.gmra.mrb[26].mxu0 %vm705_vm0, %v691_v6 }
  0x50   : > { %11407 = vmatprep.mubr.msk.f32.mxu0 %vm705_vm0, %v692_v7 }
  0x53   : > { %11408 = vmatmul.mubr.msk.f32.gmra.mrb[28].mxu0 %vm705_vm0, %v693_v8  ;;  %v10643_v8 = vld [vmem:[%s17751_s14] ss:$0 sm:$0xff] }
  0x54   : > { %11410 = vmatprep.mubr.msk.f32.mxu0 %vm705_vm0, %v694_v9 }
  0x57   : > { %11411 = vmatmul.mubr.msk.f32.gmra.mrb[30].mxu0 %vm705_vm0, %v695_v10 }
  0x58   : > { %11449 = vmatprep.mubr.msk.f32.mxu0 %vm1233_vm2, %v1216_v11 }
  0x5b   : > { %11450 = vmatmul.mubr.msk.f32.vlgmr.msra.gmra.mrb[32].mxu0 %vm1233_vm2, %v1217_v12 }
  0x5c   : > { %1863 = vmatprep.mubr.bf16.mxu0 %v17757_v14  ;;  %1832 = vmatpush1.bf16.msra.mxu0 %v17757_v14 }
  0x5d   : > { %1833 = vmatprep.subr.bf16.mxu0 %v17757_v14 }
  0xee   : > { %v11367_v17 = vpop.f32.mrb[0].mxu0 }
  0xef   : > { %v874_v18 = vadd.f32 %v11367_v17, %v13882_v15  ;;  %v868_v19 = vpop.f32.mrb[1].mxu0 }
  0xf0   : > { %v869_v20 = vadd.f32 %v13882_v15, %v868_v19  ;;  %v11423_v22 = vpop.f32.mrb[0].mxu1 }
  0xf1   : > { %v1028_v21 = vmax.f32 %v874_v18, 0.0  ;;  %v1175_v25 = vadd.f32 %v11423_v22, %v10631_v16  ;;  %v1169_v26 = vpop.f32.mrb[1].mxu1 }
  0xf2   : > { %v1027_v23 = vmax.f32 %v869_v20, 0.0  ;;  %v11370_v24 = vpop.f32.mrb[2].mxu0  ;;  %v1170_v29 = vadd.f32 %v10631_v16, %v1169_v26 }
  0xf3   : > { %v884_v27 = vadd.f32 %v11370_v24, %v13882_v15  ;;  %v878_v28 = vpop.f32.mrb[3].mxu0  ;;  %v1209_v32 = vmax.f32 %v1175_v25, 0.0 }
  0xf4   : > { %v13890_v30 = vpack.c.bf16 %v1028_v21, %v1027_v23  ;;  %v879_v31 = vadd.f32 %v13882_v15, %v878_v28  ;;  %v1208_v34 = vmax.f32 %v1170_v29, 0.0  ;;  %v11426_v35 = vpop.f32.mrb[2].mxu1 }
  0xf5   : > { %v1030_v33 = vmax.f32 %v884_v27, 0.0  ;;  %v1185_v38 = vadd.f32 %v11426_v35, %v10631_v16  ;;  %v1179_v39 = vpop.f32.mrb[3].mxu1 }
  0xf6   : > { %17872 = vst [vmem:[#allocation4_spill] sm:$0xff] %v13890_v30  ;;  %v1029_v36 = vmax.f32 %v879_v31, 0.0  ;;  %v11373_v37 = vpop.f32.mrb[4].mxu0  ;;  %v1443_v42 = vpack.c.bf16 %v1209_v32, %v1208_v34  ;;  %v1180_v43 = vadd.f32 %v10631_v16, %v1179_v39  ;;  %v13922_v39 = vld [vmem:[%s17741_s4 + $0x8] sm:$0xff]  }
  0xf7   : > { %v894_v40 = vadd.f32 %v11373_v37, %v13882_v15  ;;  %v888_v41 = vpop.f32.mrb[5].mxu0  ;;  %v1211_v46 = vmax.f32 %v1185_v38, 0.0 }
  0xf8   : > { %v13894_v44 = vpack.c.bf16 %v1030_v33, %v1029_v36  ;;  %v889_v45 = vadd.f32 %v13882_v15, %v888_v41  ;;  %v1210_v48 = vmax.f32 %v1180_v43, 0.0  ;;  %v11429_v49 = vpop.f32.mrb[4].mxu1  ;;  %1834 = vmatpush1.bf16.msra.mxu0 %v1443_v42  ;;  %v13927_v42 = vld [vmem:[%s17741_s4 + $0x10] sm:$0xff]  }
  0xf9   : > { %v1032_v47 = vmax.f32 %v894_v40, 0.0  ;;  %v1195_v52 = vadd.f32 %v11429_v49, %v10631_v16  ;;  %v1189_v53 = vpop.f32.mrb[5].mxu1  ;;  %1835 = vmatprep.subr.bf16.mxu0 %v17757_v14 }
  0xfa   : > { %17873 = vst [vmem:[#allocation5_spill] sm:$0xff] %v13894_v44  ;;  %v1031_v50 = vmax.f32 %v889_v45, 0.0  ;;  %v11376_v51 = vpop.f32.mrb[6].mxu0  ;;  %v1444_v56 = vpack.c.bf16 %v1211_v46, %v1210_v48  ;;  %v1190_v57 = vadd.f32 %v10631_v16, %v1189_v53 }
  0xfb   : > { %v904_v54 = vadd.f32 %v11376_v51, %v13882_v15  ;;  %v898_v55 = vpop.f32.mrb[7].mxu0  ;;  %v1213_v60 = vmax.f32 %v1195_v52, 0.0 }
  0xfc   : > { %v13899_v58 = vpack.c.bf16 %v1032_v47, %v1031_v50  ;;  %v899_v59 = vadd.f32 %v13882_v15, %v898_v55  ;;  %v1212_v62 = vmax.f32 %v1190_v57, 0.0  ;;  %v11432_v63 = vpop.f32.mrb[6].mxu1  ;;  %1836 = vmatpush1.bf16.msra.mxu0 %v1444_v56  ;;  %v13944_v56 = vld [vmem:[%s17741_s4 + $0x18] sm:$0xff]  }
  0xfd   : > { %v1034_v61 = vmax.f32 %v904_v54, 0.0  ;;  %v1205_v2 = vadd.f32 %v11432_v63, %v10631_v16  ;;  %v1199_v3 = vpop.f32.mrb[7].mxu1  ;;  %1837 = vmatprep.subr.bf16.mxu0 %v17757_v14 }
  0xfe   : > { %17874 = vst [vmem:[#allocation6_spill] sm:$0xff] %v13899_v58  ;;  %v1033_v0 = vmax.f32 %v899_v59, 0.0  ;;  %v11379_v1 = vpop.f32.mrb[8].mxu0  ;;  %v1445_v5 = vpack.c.bf16 %v1213_v60, %v1212_v62  ;;  %v1200_v7 = vadd.f32 %v10631_v16, %v1199_v3  ;;  %v13949_v60 = vld [vmem:[%s17741_s4 + $0x20] sm:$0xff]  }
  0xff   : > { %v914_v4 = vadd.f32 %v11379_v1, %v13882_v15  ;;  %v908_v6 = vpop.f32.mrb[9].mxu0  ;;  %v1215_v11 = vmax.f32 %v1205_v2, 0.0 }
 0x100   : > { %v13907_v9 = vpack.c.bf16 %v1034_v61, %v1033_v0  ;;  %v909_v10 = vadd.f32 %v13882_v15, %v908_v6  ;;  %v1214_v13 = vmax.f32 %v1200_v7, 0.0  ;;  %v11470_v17 = vpop.f32.mrb[8].mxu1  ;;  %1838 = vmatpush1.bf16.msra.mxu0 %v1445_v5 }
 0x101   : > { %v1036_v12 = vmax.f32 %v914_v4, 0.0  ;;  %v1412_v19 = vadd.f32 %v11470_v17, %v10643_v8  ;;  %v1406_v21 = vpop.f32.mrb[9].mxu1  ;;  %1839 = vmatprep.subr.bf16.mxu0 %v17757_v14 }
 0x102   : > { %17875 = vst [vmem:[#allocation7_spill] sm:$0xff] %v13907_v9  ;;  %v1035_v18 = vmax.f32 %v909_v10, 0.0  ;;  %v11382_v20 = vpop.f32.mrb[10].mxu0  ;;  %v1446_v16 = vpack.c.bf16 %v1215_v11, %v1214_v13  ;;  %v1407_v23 = vadd.f32 %v10643_v8, %v1406_v21  ;;  %v13966_v10 = vld [vmem:[%s17741_s4 + $0x28] sm:$0xff]   ;;  %v13971_v13 = vld [vmem:[%s17741_s4 + $0x30] sm:$0xff]  }
 0x103   : > { %v924_v22 = vadd.f32 %v11382_v20, %v13882_v15  ;;  %v918_v24 = vpop.f32.mrb[11].mxu0  ;;  %v1416_v26 = vmax.f32 %v1412_v19, 0.0 }
 0x104   : > { %v13912_v25 = vpack.c.bf16 %v1036_v12, %v1035_v18  ;;  %v919_v27 = vadd.f32 %v13882_v15, %v918_v24  ;;  %v1415_v29 = vmax.f32 %v1407_v23, 0.0  ;;  %1840 = vmatpush1.bf16.msra.mxu0 %v1446_v16 }
 0x105   : > { %v1038_v28 = vmax.f32 %v924_v22, 0.0 }
 0x106   : > { %17876 = vst [vmem:[#allocation8_spill] sm:$0xff] %v13912_v25  ;;  %v1037_v31 = vmax.f32 %v919_v27, 0.0  ;;  %v11385_v32 = vpop.f32.mrb[12].mxu0  ;;  %v1441_v33 = vpack.c.bf16 %v1416_v26, %v1415_v29  ;;  %v13988_v29 = vld [vmem:[%s17741_s4 + $0x38] sm:$0xff]  }
 0x107   : > { %v934_v34 = vadd.f32 %v11385_v32, %v13882_v15  ;;  %v928_v35 = vpop.f32.mrb[13].mxu0 }
 0x108   : > { %v13916_v36 = vpack.c.bf16 %v1038_v28, %v1037_v31  ;;  %v929_v37 = vadd.f32 %v13882_v15, %v928_v35  ;;  %11471 = vmatprep.subr.bf16.mxu1 %v1441_v33 }
 0x109   : > { %v1040_v38 = vmax.f32 %v934_v34, 0.0  ;;  %11472 = vmatpush3.bf16.msra.mxu1 %v1441_v33  ;;  %v13993_v33 = vld [vmem:[%s17741_s4 + $0x40] sm:$0xff]  }
 0x10a   : > { %17877 = vst [vmem:[#allocation9_spill] sm:$0xff] %v13916_v36  ;;  %v1039_v40 = vmax.f32 %v929_v37, 0.0  ;;  %v11388_v41 = vpop.f32.mrb[14].mxu0 }
 0x10b   : > { %v944_v43 = vadd.f32 %v11388_v41, %v13882_v15  ;;  %v938_v45 = vpop.f32.mrb[15].mxu0 }
 0x10c   : > { %v13930_v46 = vpack.c.bf16 %v1040_v38, %v1039_v40  ;;  %v939_v47 = vadd.f32 %v13882_v15, %v938_v45  ;;  %11474 = vmatmul.mubr.msk.bf16.vlgmr.msra.gmra.mrb[12].mxu1 %vm1589_vm3, %v13922_v39 }
 0x10d   : > { %v1042_v48 = vmax.f32 %v944_v43, 0.0  ;;  %11477 = vmatprep.mubr.msk.bf16.mxu1 %vm1589_vm3, %v13927_v42 }
 0x10e   : > { %17878 = vst [vmem:[#allocation10_spill] sm:$0xff] %v13930_v46  ;;  %v1041_v49 = vmax.f32 %v939_v47, 0.0  ;;  %v11391_v50 = vpop.f32.mrb[16].mxu0 }
 0x10f   : > { %v954_v51 = vadd.f32 %v11391_v50, %v13882_v15  ;;  %v948_v52 = vpop.f32.mrb[17].mxu0 }
 0x110   : > { %v13938_v53 = vpack.c.bf16 %v1042_v48, %v1041_v49  ;;  %v949_v54 = vadd.f32 %v13882_v15, %v948_v52 }
 0x111   : > { %v1044_v55 = vmax.f32 %v954_v51, 0.0  ;;  %v14010_v51 = vld [vmem:[%s17741_s4 + $0x48] sm:$0xff]  }
 0x112   : > { %17879 = vst [vmem:[#allocation11_spill] sm:$0xff] %v13938_v53  ;;  %v1043_v57 = vmax.f32 %v949_v54, 0.0  ;;  %v11394_v59 = vpop.f32.mrb[18].mxu0 }
 0x113   : > { %v964_v61 = vadd.f32 %v11394_v59, %v13882_v15  ;;  %v958_v62 = vpop.f32.mrb[19].mxu0 }
 0x114   : > { %v13952_v63 = vpack.c.bf16 %v1044_v55, %v1043_v57  ;;  %v959_v0 = vadd.f32 %v13882_v15, %v958_v62  ;;  %11478 = vmatmul.mubr.msk.bf16.gmra.mrb[16].mxu1 %vm1589_vm3, %v13944_v56  ;;  %v14015_v55 = vld [vmem:[%s17741_s4 + $0x50] sm:$0xff]  }
 0x115   : > { %v1046_v1 = vmax.f32 %v964_v61, 0.0  ;;  %11481 = vmatprep.mubr.msk.bf16.mxu1 %vm1589_vm3, %v13949_v60 }
 0x116   : > { %17880 = vst [vmem:[#allocation12_spill] sm:$0xff] %v13952_v63  ;;  %v1045_v2 = vmax.f32 %v959_v0, 0.0  ;;  %v11397_v3 = vpop.f32.mrb[20].mxu0  ;;  %v10640_v0 = vld [vmem:[%s17749_s12] ss:$0 sm:$0xff] }
 0x117   : > { %v974_v4 = vadd.f32 %v11397_v3, %v13882_v15  ;;  %v968_v5 = vpop.f32.mrb[21].mxu0 }
 0x118   : > { %v13960_v6 = vpack.c.bf16 %v1046_v1, %v1045_v2  ;;  %v969_v7 = vadd.f32 %v13882_v15, %v968_v5 }
 0x119   : > { %v1048_v8 = vmax.f32 %v974_v4, 0.0 }
 0x11a   : > { %17881 = vst [vmem:[#allocation13_spill] sm:$0xff] %v13960_v6  ;;  %v1047_v11 = vmax.f32 %v969_v7, 0.0  ;;  %v11400_v12 = vpop.f32.mrb[22].mxu0 }
 0x11b   : > { %v984_v17 = vadd.f32 %v11400_v12, %v13882_v15  ;;  %v978_v18 = vpop.f32.mrb[23].mxu0 }
 0x11c   : > { %v13974_v19 = vpack.c.bf16 %v1048_v8, %v1047_v11  ;;  %v979_v20 = vadd.f32 %v13882_v15, %v978_v18  ;;  %11482 = vmatmul.mubr.msk.bf16.gmra.mrb[20].mxu1 %vm1589_vm3, %v13966_v10 }
 0x11d   : > { %v1050_v21 = vmax.f32 %v984_v17, 0.0  ;;  %11485 = vmatprep.mubr.msk.bf16.mxu1 %vm1589_vm3, %v13971_v13  ;;  %v14038_v17 = vld [vmem:[%s17741_s4 + $0x60] sm:$0xff]  }
 0x11e   : > { %17882 = vst [vmem:[#allocation14_spill] sm:$0xff] %v13974_v19  ;;  %v1049_v16 = vmax.f32 %v979_v20, 0.0  ;;  %v11403_v22 = vpop.f32.mrb[24].mxu0  ;;  %v12711_v20 = vld [vmem:[%s17752_s15 + $0x4] ss:$24 sps:$4 sm:$0xff]  }
 0x11f   : > { %v994_v23 = vadd.f32 %v11403_v22, %v13882_v15  ;;  %v988_v24 = vpop.f32.mrb[25].mxu0  ;;  %v14057_v22 = vld [vmem:[%s17741_s4 + $0x68] sm:$0xff]  }
 0x120   : > { %v13982_v26 = vpack.c.bf16 %v1050_v21, %v1049_v16  ;;  %v989_v27 = vadd.f32 %v13882_v15, %v988_v24  ;;  %v12709_v21 = vld [vmem:[%s17752_s15] ss:$24 sps:$4 sm:$0xff]   ;;  %v12716_v16 = vld [vmem:[%s17752_s15 + $0x34] ss:$24 sps:$4 sm:$0xff]  }
 0x121   : > { %v1052_v28 = vmax.f32 %v994_v23, 0.0  ;;  %v13575_v23 = vld [vmem:[%s17741_s4] sm:$0xff]   ;;  %v14066_v24 = vld [vmem:[%s17741_s4 + $0x70] sm:$0xff]  }
 0x122   : > { %17883 = vst [vmem:[#allocation15_spill] sm:$0xff] %v13982_v26  ;;  %v1051_v31 = vmax.f32 %v989_v27, 0.0  ;;  %v11406_v32 = vpop.f32.mrb[26].mxu0  ;;  %v12714_v27 = vld [vmem:[%s17752_s15 + $0x30] ss:$24 sps:$4 sm:$0xff]  }
 0x123   : > { %v1004_v34 = vadd.f32 %v11406_v32, %v13882_v15  ;;  %v998_v35 = vpop.f32.mrb[27].mxu0  ;;  %v12719_v32 = vld [vmem:[%s17752_s15 + $0x64] ss:$24 sps:$4 sm:$0xff]  }
 0x124   : > { %v13996_v37 = vpack.c.bf16 %v1052_v28, %v1051_v31  ;;  %v999_v38 = vadd.f32 %v13882_v15, %v998_v35  ;;  %11486 = vmatmul.mubr.msk.bf16.gmra.mrb[24].mxu1 %vm1589_vm3, %v13988_v29  ;;  %v12759_v28 = vld [vmem:[%s17752_s15 + $0x300] ss:$24 sps:$4 sm:$0xff]   ;;  %v12761_v31 = vld [vmem:[%s17752_s15 + $0x304] ss:$24 sps:$4 sm:$0xff]   ;;  %v12762_v35 = vld [vmem:[%s17752_s15 + $0x330] ss:$24 sps:$4 sm:$0xff]  }
 0x125   : > { %v1054_v40 = vmax.f32 %v1004_v34, 0.0  ;;  %11489 = vmatprep.mubr.msk.bf16.mxu1 %vm1589_vm3, %v13993_v33  ;;  %v12764_v34 = vld [vmem:[%s17752_s15 + $0x334] ss:$24 sps:$4 sm:$0xff]   ;;  %5973 = vmatprep.subr.bf16.mxu1 %v12761_v31  ;;  %v12785_v31 = vld [vmem:[%s17752_s15 + $0x484] ss:$24 sps:$4 sm:$0xff]  }
 0x126   : > { %17884 = vst [vmem:[#allocation16_spill] sm:$0xff] %v13996_v37  ;;  %v1053_v41 = vmax.f32 %v999_v38, 0.0  ;;  %v11409_v43 = vpop.f32.mrb[28].mxu0  ;;  %5974 = vmatpush1.bf16.msra.mxu1 %v12759_v28  ;;  %v12717_v38 = vld [vmem:[%s17752_s15 + $0x60] ss:$24 sps:$4 sm:$0xff]  }
 0x127   : > { %v1014_v45 = vadd.f32 %v11409_v43, %v13882_v15  ;;  %v1008_v47 = vpop.f32.mrb[29].mxu0  ;;  %5975 = vmatprep.subr.bf16.mxu1 %v12764_v34  ;;  %v14103_v43 = vld [vmem:[%s17741_s4 + $0x78] sm:$0xff]   ;;  %v12780_v28 = vld [vmem:[%s17752_s15 + $0x450] ss:$24 sps:$4 sm:$0xff]  }
 0x128   : > { %v14004_v48 = vpack.c.bf16 %v1054_v40, %v1053_v41  ;;  %v1009_v49 = vadd.f32 %v13882_v15, %v1008_v47  ;;  %v12722_v40 = vld [vmem:[%s17752_s15 + $0x94] ss:$24 sps:$4 sm:$0xff]   ;;  %v12767_v41 = vld [vmem:[%s17752_s15 + $0x364] ss:$24 sps:$4 sm:$0xff]   ;;  %v12720_v47 = vld [vmem:[%s17752_s15 + $0x90] ss:$24 sps:$4 sm:$0xff]  }
 0x129   : > { %v1056_v50 = vmax.f32 %v1014_v45, 0.0  ;;  %v12765_v45 = vld [vmem:[%s17752_s15 + $0x360] ss:$24 sps:$4 sm:$0xff]  }
 0x12a   : > { %17885 = vst [vmem:[#allocation17_spill] sm:$0xff] %v14004_v48  ;;  %v1055_v52 = vmax.f32 %v1009_v49, 0.0  ;;  %v11412_v54 = vpop.f32.mrb[30].mxu0  ;;  %5976 = vmatpush1.bf16.msra.mxu1 %v12762_v35  ;;  %v12770_v49 = vld [vmem:[%s17752_s15 + $0x394] ss:$24 sps:$4 sm:$0xff]  }
 0x12b   : > { %v1024_v57 = vadd.f32 %v11412_v54, %v13882_v15  ;;  %v1018_v59 = vpop.f32.mrb[31].mxu0  ;;  %5977 = vmatprep.subr.bf16.mxu1 %v12767_v41  ;;  %v12728_v54 = vld [vmem:[%s17752_s15 + $0xf4] ss:$24 sps:$4 sm:$0xff]   ;;  %v12783_v34 = vld [vmem:[%s17752_s15 + $0x480] ss:$24 sps:$4 sm:$0xff]  }
 0x12c   : > { %v14018_v61 = vpack.c.bf16 %v1056_v50, %v1055_v52  ;;  %v1019_v62 = vadd.f32 %v13882_v15, %v1018_v59  ;;  %11490 = vmatmul.mubr.msk.bf16.gmra.mrb[28].mxu1 %vm1589_vm3, %v14010_v51  ;;  %v14033_v15 = vld [vmem:[%s17741_s4 + $0x58] sm:$0xff]   ;;  %v12768_v50 = vld [vmem:[%s17752_s15 + $0x390] ss:$24 sps:$4 sm:$0xff]  }
 0x12d   : > { %v1058_v1 = vmax.f32 %v1024_v57, 0.0  ;;  %11493 = vmatprep.mubr.msk.bf16.mxu1 %vm1589_vm3, %v14015_v55  ;;  %v12723_v52 = vld [vmem:[%s17752_s15 + $0xc0] ss:$24 sps:$4 sm:$0xff]   ;;  %v12773_v57 = vld [vmem:[%s17752_s15 + $0x3c4] ss:$24 sps:$4 sm:$0xff]  }
 0x12e   : > { %17886 = vst [vmem:[#allocation18_spill] sm:$0xff] %v14018_v61  ;;  %v1057_v2 = vmax.f32 %v1019_v62, 0.0  ;;  %v11451_v3 = vpop.f32.mrb[32].mxu0  ;;  %5978 = vmatpush1.bf16.msra.mxu1 %v12765_v45  ;;  %v12771_v59 = vld [vmem:[%s17752_s15 + $0x3c0] ss:$24 sps:$4 sm:$0xff]  }
 0x12f   : > { %v1312_v4 = vadd.f32 %v11451_v3, %v10640_v0  ;;  %v1306_v5 = vpop.f32.mrb[33].mxu0  ;;  %5979 = vmatprep.subr.bf16.mxu1 %v12770_v49  ;;  %v12726_v62 = vld [vmem:[%s17752_s15 + $0xf0] ss:$24 sps:$4 sm:$0xff]   ;;  %v12737_v3 = vld [vmem:[%s17752_s15 + $0x184] ss:$24 sps:$4 sm:$0xff]  }
 0x130   : > { %v14028_v7 = vpack.c.bf16 %v1058_v1, %v1057_v2  ;;  %v1307_v8 = vadd.f32 %v10640_v0, %v1306_v5  ;;  %v12731_v0 = vld [vmem:[%s17752_s15 + $0x124] ss:$24 sps:$4 sm:$0xff]   ;;  %v12734_v1 = vld [vmem:[%s17752_s15 + $0x154] ss:$24 sps:$4 sm:$0xff]   ;;  %v12732_v2 = vld [vmem:[%s17752_s15 + $0x150] ss:$24 sps:$4 sm:$0xff]  }
 0x131   : > { %v1316_v11 = vmax.f32 %v1312_v4, 0.0  ;;  %v12735_v4 = vld [vmem:[%s17752_s15 + $0x180] ss:$24 sps:$4 sm:$0xff]   ;;  %v12738_v5 = vld [vmem:[%s17752_s15 + $0x1b0] ss:$24 sps:$4 sm:$0xff]  }
 0x132   : > { %17887 = vst [vmem:[#allocation19_spill] sm:$0xff] %v14028_v7  ;;  %v1315_v12 = vmax.f32 %v1307_v8, 0.0  ;;  %5980 = vmatpush1.bf16.msra.mxu1 %v12768_v50  ;;  %v12743_v8 = vld [vmem:[%s17752_s15 + $0x1e4] ss:$24 sps:$4 sm:$0xff]   ;;  %v12750_v35 = vld [vmem:[%s17752_s15 + $0x270] ss:$24 sps:$4 sm:$0xff]  }
 0x133   : > { %5981 = vmatprep.subr.bf16.mxu1 %v12773_v57  ;;  %v12786_v41 = vld [vmem:[%s17752_s15 + $0x4b0] ss:$24 sps:$4 sm:$0xff]   ;;  %v12791_v45 = vld [vmem:[%s17752_s15 + $0x4e4] ss:$24 sps:$4 sm:$0xff]   ;;  %v12789_v49 = vld [vmem:[%s17752_s15 + $0x4e0] ss:$24 sps:$4 sm:$0xff]  }
 0x134   : > { %v1451_v18 = vpack.c.bf16 %v1316_v11, %v1315_v12  ;;  %11494 = vmatmul.mubr.msk.bf16.gmra.mrb[32].mxu1 %vm1589_vm3, %v14033_v15  ;;  %v12776_v11 = vld [vmem:[%s17752_s15 + $0x3f4] ss:$24 sps:$4 sm:$0xff]   ;;  %v12774_v12 = vld [vmem:[%s17752_s15 + $0x3f0] ss:$24 sps:$4 sm:$0xff]  }
 0x135   : > { %11497 = vmatprep.mubr.msk.bf16.mxu1 %vm1589_vm3, %v14038_v17  ;;  %v12794_v50 = vld [vmem:[%s17752_s15 + $0x514] ss:$24 sps:$4 sm:$0xff]  }
 0x136   : > { %1841 = vmatprep.subr.bf16.mxu0 %v1451_v18  ;;  %5982 = vmatpush1.bf16.msra.mxu1 %v12771_v59  ;;  %v12746_v18 = vld [vmem:[%s17752_s15 + $0x214] ss:$24 sps:$4 sm:$0xff]   ;;  %v12798_v59 = vld [vmem:[%s17752_s15 + $0x570] ss:$24 sps:$4 sm:$0xff]  }
 0x137   : > { %1842 = vmatpush1.bf16.msra.mxu0 %v17757_v14  ;;  %5983 = vmatprep.subr.bf16.mxu1 %v12776_v11  ;;  %v12800_v57 = vld [vmem:[%s17752_s15 + $0x574] ss:$24 sps:$4 sm:$0xff]   ;;  %v12843_v11 = vld [vmem:[%s17752_s15 + $0x6f0] ss:$24 sps:$4 sm:$0xff]  }
 0x138   : > { %5780 = vmatprep.subr.bf16.mxu0 %v12711_v20  ;;  %v12779_v20 = vld [vmem:[%s17752_s15 + $0x424] ss:$24 sps:$4 sm:$0xff]  }
 0x13a   : > { %10678 = vmatmul.mubr.msk.bf16.vlgmr.msra.gmra.mrb[36].mxu0 %vm1589_vm3, %v13575_v23  ;;  %5984 = vmatpush1.bf16.msra.mxu1 %v12774_v12  ;;  %v12782_v23 = vld [vmem:[%s17752_s15 + $0x454] ss:$24 sps:$4 sm:$0xff]  }
 0x13b   : > { %1873 = vmatprep.mubr.bf16.mxu0 %v17757_v14  ;;  %5781 = vmatpush1.bf16.msra.mxu0 %v12709_v21  ;;  %v12744_v21 = vld [vmem:[%s17752_s15 + $0x210] ss:$24 sps:$4 sm:$0xff]   ;;  %v12824_v12 = vld [vmem:[%s17752_s15 + $0x6c] ss:$24 sps:$4 sm:$0xff]  }
 0x13c   : > { %5782 = vmatprep.subr.bf16.mxu0 %v12716_v16  ;;  %11498 = vmatmul.mubr.msk.bf16.gmra.mrb[36].mxu1 %vm1589_vm3, %v14057_v22  ;;  %v12777_v16 = vld [vmem:[%s17752_s15 + $0x420] ss:$24 sps:$4 sm:$0xff]  }
 0x13d   : > { %11501 = vmatprep.mubr.msk.bf16.mxu1 %vm1589_vm3, %v14066_v24  ;;  %5985 = vmatprep.subr.bf16.mxu1 %v12779_v20  ;;  %v12830_v20 = vld [vmem:[%s17752_s15 + $0x9c] ss:$24 sps:$4 sm:$0xff]  }
 0x13e   : > { %5986 = vmatpush1.bf16.msra.mxu1 %v12777_v16  ;;  %v12854_v16 = vld [vmem:[%s17752_s15 + $0x724] ss:$24 sps:$4 sm:$0xff]  }
 0x13f   : > { %5783 = vmatpush1.bf16.msra.mxu0 %v12714_v27  ;;  %v12747_v27 = vld [vmem:[%s17752_s15 + $0x240] ss:$24 sps:$4 sm:$0xff]   ;;  %5987 = vmatprep.subr.bf16.mxu1 %v12782_v23  ;;  %v12833_v23 = vld [vmem:[%s17752_s15 + $0xcc] ss:$24 sps:$4 sm:$0xff]  }
 0x140   : > { %5784 = vmatprep.subr.bf16.mxu0 %v12719_v32  ;;  %v12752_v32 = vld [vmem:[%s17752_s15 + $0x274] ss:$24 sps:$4 sm:$0xff]  }
 0x142   : > { %10679 = vmatmul.mubr.msk.bf16.gmra.mrb[40].mxu0 %vm1589_vm3, %v13922_v39  ;;  %v12725_v39 = vld [vmem:[%s17752_s15 + $0xc4] ss:$24 sps:$4 sm:$0xff]   ;;  %5988 = vmatpush1.bf16.msra.mxu1 %v12780_v28 }
 0x143   : > { %1883 = vmatprep.mubr.bf16.mxu0 %v17757_v14  ;;  %5785 = vmatpush1.bf16.msra.mxu0 %v12717_v38  ;;  %v12755_v38 = vld [vmem:[%s17752_s15 + $0x2a4] ss:$24 sps:$4 sm:$0xff]  }
 0x144   : > { %5786 = vmatprep.subr.bf16.mxu0 %v12722_v40  ;;  %11502 = vmatmul.mubr.msk.bf16.gmra.mrb[40].mxu1 %vm1589_vm3, %v14103_v43  ;;  %v12788_v40 = vld [vmem:[%s17752_s15 + $0x4b4] ss:$24 sps:$4 sm:$0xff]  }
 0x145   : > { %6005 = vmatprep.mubr.bf16.mxu1 %v17757_v14  ;;  %5989 = vmatprep.subr.bf16.mxu1 %v12785_v31  ;;  %v12839_v28 = vld [vmem:[%s17752_s15 + $0xfc] ss:$24 sps:$4 sm:$0xff]   ;;  %v12861_v31 = vld [vmem:[%s17752_s15 + $0x750] ss:$24 sps:$4 sm:$0xff]  }
 0x146   : > { %5990 = vmatpush1.bf16.msra.mxu1 %v12783_v34  ;;  %v12837_v34 = vld [vmem:[%s17752_s15 + $0xf8] ss:$24 sps:$4 sm:$0xff]  }
 0x147   : > { %5787 = vmatpush1.bf16.msra.mxu0 %v12720_v47  ;;  %v12758_v47 = vld [vmem:[%s17752_s15 + $0x2d4] ss:$24 sps:$4 sm:$0xff]   ;;  %5991 = vmatprep.subr.bf16.mxu1 %v12788_v40 }
 0x148   : > { %5788 = vmatprep.subr.bf16.mxu0 %v12725_v39  ;;  %v12756_v39 = vld [vmem:[%s17752_s15 + $0x2d0] ss:$24 sps:$4 sm:$0xff]   ;;  %v12848_v40 = vld [vmem:[%s17752_s15 + $0x15c] ss:$24 sps:$4 sm:$0xff]  }
 0x14a   : > { %10680 = vmatmul.mubr.msk.bf16.gmra.mrb[44].mxu0 %vm1589_vm3, %v13927_v42  ;;  %v12729_v42 = vld [vmem:[%s17752_s15 + $0x120] ss:$24 sps:$4 sm:$0xff]   ;;  %5992 = vmatpush1.bf16.msra.mxu1 %v12786_v41  ;;  %v12872_v41 = vld [vmem:[%s17752_s15 + $0x784] ss:$24 sps:$4 sm:$0xff]  }
 0x14b   : > { %1893 = vmatprep.mubr.bf16.mxu0 %v17757_v14  ;;  %5789 = vmatpush1.bf16.msra.mxu0 %v12723_v52  ;;  %v12792_v52 = vld [vmem:[%s17752_s15 + $0x510] ss:$24 sps:$4 sm:$0xff]  }
 0x14c   : > { %5790 = vmatprep.subr.bf16.mxu0 %v12728_v54  ;;  %5993 = vmatprep.subr.bf16.mxu1 %v12791_v45  ;;  %v12795_v54 = vld [vmem:[%s17752_s15 + $0x540] ss:$24 sps:$4 sm:$0xff]  }
 0x14d   : > { %v12846_v45 = vld [vmem:[%s17752_s15 + $0x158] ss:$24 sps:$4 sm:$0xff]  }
 0x14e   : > { %5994 = vmatpush1.bf16.msra.mxu1 %v12789_v49  ;;  %v12849_v49 = vld [vmem:[%s17752_s15 + $0x188] ss:$24 sps:$4 sm:$0xff]  }
 0x14f   : > { %5791 = vmatpush1.bf16.msra.mxu0 %v12726_v62  ;;  %5995 = vmatprep.subr.bf16.mxu1 %v12794_v50  ;;  %v12803_v62 = vld [vmem:[%s17752_s15 + $0x5a4] ss:$24 sps:$4 sm:$0xff]   ;;  %v12879_v50 = vld [vmem:[%s17752_s15 + $0x7b0] ss:$24 sps:$4 sm:$0xff]  }
 0x150   : > { %5792 = vmatprep.subr.bf16.mxu0 %v12731_v0  ;;  %v12806_v0 = vld [vmem:[%s17752_s15 + $0x5d4] ss:$24 sps:$4 sm:$0xff]  }
 0x152   : > { %10681 = vmatmul.mubr.msk.bf16.gmra.mrb[48].mxu0 %vm1589_vm3, %v13944_v56  ;;  %v12740_v56 = vld [vmem:[%s17752_s15 + $0x1b4] ss:$24 sps:$4 sm:$0xff]   ;;  %5996 = vmatpush1.bf16.msra.mxu1 %v12792_v52 }
 0x153   : > { %1903 = vmatprep.mubr.bf16.mxu0 %v17757_v14  ;;  %5793 = vmatpush1.bf16.msra.mxu0 %v12729_v42  ;;  %v12804_v42 = vld [vmem:[%s17752_s15 + $0x5d0] ss:$24 sps:$4 sm:$0xff]   ;;  %v12881_v52 = vld [vmem:[%s17752_s15 + $0x7b4] ss:$24 sps:$4 sm:$0xff]  }
 0x154   : > { %5794 = vmatprep.subr.bf16.mxu0 %v12734_v1  ;;  %v12809_v1 = vld [vmem:[%s17752_s15 + $0x604] ss:$24 sps:$4 sm:$0xff]  }
 0x157   : > { %5795 = vmatpush1.bf16.msra.mxu0 %v12732_v2  ;;  %v12812_v2 = vld [vmem:[%s17752_s15 + $0x634] ss:$24 sps:$4 sm:$0xff]  }
 0x158   : > { %5796 = vmatprep.subr.bf16.mxu0 %v12737_v3  ;;  %v12816_v3 = vld [vmem:[%s17752_s15 + $0x660] ss:$24 sps:$4 sm:$0xff]  }
 0x15a   : > { %10682 = vmatmul.mubr.msk.bf16.gmra.mrb[52].mxu0 %vm1589_vm3, %v13949_v60  ;;  %v12741_v60 = vld [vmem:[%s17752_s15 + $0x1e0] ss:$24 sps:$4 sm:$0xff]  }
 0x15b   : > { %1913 = vmatprep.mubr.bf16.mxu0 %v17757_v14  ;;  %5797 = vmatpush1.bf16.msra.mxu0 %v12735_v4  ;;  %v12818_v4 = vld [vmem:[%s17752_s15 + $0x664] ss:$24 sps:$4 sm:$0xff]  }
 0x15c   : > { %5798 = vmatprep.subr.bf16.mxu0 %v12740_v56  ;;  %v12827_v56 = vld [vmem:[%s17752_s15 + $0x694] ss:$24 sps:$4 sm:$0xff]  }
 0x15f   : > { %5799 = vmatpush1.bf16.msra.mxu0 %v12738_v5  ;;  %v12836_v5 = vld [vmem:[%s17752_s15 + $0x6c4] ss:$24 sps:$4 sm:$0xff]  }
 0x160   : > { %5800 = vmatprep.subr.bf16.mxu0 %v12743_v8  ;;  %v12821_v8 = vld [vmem:[%s17752_s15 + $0x3c] ss:$24 sps:$4 sm:$0xff]  }
 0x162   : > { %10683 = vmatmul.mubr.msk.bf16.gmra.mrb[56].mxu0 %vm1589_vm3, %v13966_v10  ;;  %v12749_v10 = vld [vmem:[%s17752_s15 + $0x244] ss:$24 sps:$4 sm:$0xff]  }
 0x163   : > { %1923 = vmatprep.mubr.bf16.mxu0 %v17757_v14  ;;  %5801 = vmatpush1.bf16.msra.mxu0 %v12741_v60  ;;  %v12819_v60 = vld [vmem:[%s17752_s15 + $0x38] ss:$24 sps:$4 sm:$0xff]  }
 0x164   : > { %5802 = vmatprep.subr.bf16.mxu0 %v12746_v18  ;;  %v12822_v18 = vld [vmem:[%s17752_s15 + $0x68] ss:$24 sps:$4 sm:$0xff]  }
 0x167   : > { %5803 = vmatpush1.bf16.msra.mxu0 %v12744_v21  ;;  %v12852_v21 = vld [vmem:[%s17752_s15 + $0x720] ss:$24 sps:$4 sm:$0xff]  }
 0x168   : > { %5804 = vmatprep.subr.bf16.mxu0 %v12749_v10  ;;  %v12828_v10 = vld [vmem:[%s17752_s15 + $0x98] ss:$24 sps:$4 sm:$0xff]  }
 0x16a   : > { %10684 = vmatmul.mubr.msk.bf16.gmra.mrb[60].mxu0 %vm1589_vm3, %v13971_v13  ;;  %v12753_v13 = vld [vmem:[%s17752_s15 + $0x2a0] ss:$24 sps:$4 sm:$0xff]  }
 0x16b   : > { %1933 = vmatprep.mubr.bf16.mxu0 %v17757_v14  ;;  %5805 = vmatpush1.bf16.msra.mxu0 %v12747_v27  ;;  %v12831_v27 = vld [vmem:[%s17752_s15 + $0xc8] ss:$24 sps:$4 sm:$0xff]  }
 0x16c   : > { %5806 = vmatprep.subr.bf16.mxu0 %v12752_v32  ;;  %v12863_v32 = vld [vmem:[%s17752_s15 + $0x754] ss:$24 sps:$4 sm:$0xff]  }
 0x16f   : > { %5807 = vmatpush1.bf16.msra.mxu0 %v12750_v35  ;;  %v12842_v35 = vld [vmem:[%s17752_s15 + $0x12c] ss:$24 sps:$4 sm:$0xff]  }
 0x170   : > { %5808 = vmatprep.subr.bf16.mxu0 %v12755_v38  ;;  %v12840_v38 = vld [vmem:[%s17752_s15 + $0x128] ss:$24 sps:$4 sm:$0xff]  }
 0x172   : > { %10685 = vmatmul.mubr.msk.bf16.gmra.mrb[64].mxu0 %vm1589_vm3, %v13988_v29  ;;  %v12797_v29 = vld [vmem:[%s17752_s15 + $0x544] ss:$24 sps:$4 sm:$0xff]  }
 0x173   : > { %1943 = vmatprep.mubr.bf16.mxu0 %v17757_v14  ;;  %5809 = vmatpush1.bf16.msra.mxu0 %v12753_v13  ;;  %v12870_v13 = vld [vmem:[%s17752_s15 + $0x780] ss:$24 sps:$4 sm:$0xff]  }
 0x174   : > { %5810 = vmatprep.subr.bf16.mxu0 %v12758_v47  ;;  %5997 = vmatprep.subr.bf16.mxu1 %v12797_v29  ;;  %v12851_v47 = vld [vmem:[%s17752_s15 + $0x18c] ss:$24 sps:$4 sm:$0xff]   ;;  %v12855_v29 = vld [vmem:[%s17752_s15 + $0x1b8] ss:$24 sps:$4 sm:$0xff]  }
 0x175   : > { %5998 = vmatpush1.bf16.msra.mxu1 %v12795_v54  ;;  %v12860_v54 = vld [vmem:[%s17752_s15 + $0x1ec] ss:$24 sps:$4 sm:$0xff]  }
 0x176   : > { %5999 = vmatprep.subr.bf16.mxu1 %v12800_v57  ;;  %v12858_v57 = vld [vmem:[%s17752_s15 + $0x1e8] ss:$24 sps:$4 sm:$0xff]  }
 0x177   : > { %5811 = vmatpush1.bf16.msra.mxu0 %v12756_v39  ;;  %v12857_v39 = vld [vmem:[%s17752_s15 + $0x1bc] ss:$24 sps:$4 sm:$0xff]  }
 0x179   : > { %6000 = vmatpush1.bf16.msra.mxu1 %v12798_v59 }
 0x17a   : > { %10686 = vmatmul.mubr.msk.bf16.gmra.mrb[68].mxu0 %vm1589_vm3, %v13993_v33  ;;  %v12801_v33 = vld [vmem:[%s17752_s15 + $0x5a0] ss:$24 sps:$4 sm:$0xff]   ;;  %6001 = vmatprep.subr.bf16.mxu1 %v12803_v62  ;;  %v12866_v62 = vld [vmem:[%s17752_s15 + $0x21c] ss:$24 sps:$4 sm:$0xff]  }
 0x17b   : > { %1953 = vmatprep.mubr.bf16.mxu0 %v17757_v14 }
 0x17d   : > { %6002 = vmatpush1.bf16.msra.mxu1 %v12801_v33 }
 0x17e   : > { %6003 = vmatprep.subr.bf16.mxu1 %v12806_v0  ;;  %v12885_v0 = vld [vmem:[%s17752_s15 + $0x7e0] ss:$24 sps:$4 sm:$0xff]  }
 0x181   : > { %6004 = vmatpush1.bf16.msra.mxu1 %v12804_v42  ;;  %v12887_v42 = vld [vmem:[%s17752_s15 + $0x7e4] ss:$24 sps:$4 sm:$0xff]  }
 0x182   : > { %10687 = vmatmul.mubr.msk.bf16.gmra.mrb[72].mxu0 %vm1589_vm3, %v14010_v51  ;;  %v12807_v51 = vld [vmem:[%s17752_s15 + $0x600] ss:$24 sps:$4 sm:$0xff]   ;;  %6166 = vmatprep.subr.bf16.mxu1 %v12809_v1 }
 0x183   : > { %1963 = vmatprep.mubr.bf16.mxu0 %v17757_v14 }
 0x184   : > { %6006 = vmatmul.mubr.bf16.vlgmr.msra.gmra.mrb[44].mxu1 %v17757_v14 }
 0x185   : > { %6167 = vmatpush1.bf16.msra.mxu1 %v12807_v51 }
 0x186   : > { %6168 = vmatprep.subr.bf16.mxu1 %v12812_v2  ;;  %v12864_v2 = vld [vmem:[%s17752_s15 + $0x218] ss:$24 sps:$4 sm:$0xff]  }
 0x18a   : > { %10688 = vmatmul.mubr.msk.bf16.gmra.mrb[76].mxu0 %vm1589_vm3, %v14015_v55  ;;  %v12810_v55 = vld [vmem:[%s17752_s15 + $0x630] ss:$24 sps:$4 sm:$0xff]  }
 0x18b   : > { %1973 = vmatprep.mubr.bf16.mxu0 %v17757_v14  ;;  %6169 = vmatpush1.bf16.msra.mxu1 %v12810_v55 }
 0x18c   : > { %6170 = vmatprep.subr.bf16.mxu1 %v12818_v4  ;;  %v12867_v4 = vld [vmem:[%s17752_s15 + $0x248] ss:$24 sps:$4 sm:$0xff]  }
 0x18f   : > { %6171 = vmatpush1.bf16.msra.mxu1 %v12816_v3  ;;  %v12869_v3 = vld [vmem:[%s17752_s15 + $0x24c] ss:$24 sps:$4 sm:$0xff]  }
 0x190   : > { %6172 = vmatprep.subr.bf16.mxu1 %v12827_v56  ;;  %v12875_v56 = vld [vmem:[%s17752_s15 + $0x27c] ss:$24 sps:$4 sm:$0xff]  }
 0x192   : > { %10689 = vmatmul.mubr.msk.bf16.gmra.mrb[80].mxu0 %vm1589_vm3, %v14033_v15  ;;  %v12815_v15 = vld [vmem:[%s17752_s15 + $0xc] ss:$24 sps:$4 sm:$0xff]  }
 0x193   : > { %1983 = vmatprep.mubr.bf16.mxu0 %v17757_v14  ;;  %6938 = vmatprep.subr.bf16.mxu0 %v12815_v15 }
 0x19a   : > { %10690 = vmatmul.mubr.msk.bf16.gmra.mrb[84].mxu0 %vm1589_vm3, %v14038_v17  ;;  %v12825_v17 = vld [vmem:[%s17752_s15 + $0x690] ss:$24 sps:$4 sm:$0xff]  }
 0x19b   : > { %1993 = vmatprep.mubr.bf16.mxu0 %v17757_v14  ;;  %6173 = vmatpush1.bf16.msra.mxu1 %v12825_v17 }
 0x19c   : > { %6174 = vmatprep.subr.bf16.mxu1 %v12836_v5  ;;  %v12888_v5 = vld [vmem:[%s17752_s15 + $0x810] ss:$24 sps:$4 sm:$0xff]  }
 0x1a2   : > { %10691 = vmatmul.mubr.msk.bf16.gmra.mrb[88].mxu0 %vm1589_vm3, %v14057_v22  ;;  %v12834_v22 = vld [vmem:[%s17752_s15 + $0x6c0] ss:$24 sps:$4 sm:$0xff]  }
 0x1a3   : > { %2003 = vmatprep.mubr.bf16.mxu0 %v17757_v14  ;;  %6175 = vmatpush1.bf16.msra.mxu1 %v12834_v22 }
 0x1aa   : > { %10692 = vmatmul.mubr.msk.bf16.gmra.mrb[92].mxu0 %vm1589_vm3, %v14066_v24  ;;  %v12813_v24 = vld [vmem:[%s17752_s15 + $0x8] ss:$24 sps:$4 sm:$0xff]  }
 0x1ab   : > { %2013 = vmatprep.mubr.bf16.mxu0 %v17757_v14 }
 0x1b2   : > { %10693 = vmatmul.mubr.msk.bf16.gmra.mrb[96].mxu0 %vm1589_vm3, %v14103_v43  ;;  %v12845_v43 = vld [vmem:[%s17752_s15 + $0x6f4] ss:$24 sps:$4 sm:$0xff]  }
 0x1b3   : > { %5812 = vmatprep.mubr.bf16.mxu0 %v17757_v14  ;;  %6176 = vmatprep.subr.bf16.mxu1 %v12845_v43 }
 0x1b4   : > { %6177 = vmatpush1.bf16.msra.mxu1 %v12843_v11 }
 0x1b5   : > { %6178 = vmatprep.subr.bf16.mxu1 %v12854_v16  ;;  %v12884_v16 = vld [vmem:[%s17752_s15 + $0x2dc] ss:$24 sps:$4 sm:$0xff]  }
 0x1b8   : > { %6179 = vmatpush1.bf16.msra.mxu1 %v12852_v21 }
 0x1b9   : > { %6180 = vmatprep.subr.bf16.mxu1 %v12863_v32 }
 0x1ba   : > { %5813 = vmatmul.mubr.bf16.vlgmr.msra.gmra.mrb[100].mxu0 %v17757_v14 }
 0x1bb   : > { %5822 = vmatprep.mubr.bf16.mxu0 %v13890_v30  ;;  %6939 = vmatpush1.bf16.msra.mxu0 %v12813_v24  ;;  %v12890_v24 = vld [vmem:[%s17752_s15 + $0x814] ss:$24 sps:$4 sm:$0xff]  }
 0x1bc   : > { %6940 = vmatprep.subr.bf16.mxu0 %v12821_v8  ;;  %6181 = vmatpush1.bf16.msra.mxu1 %v12861_v31 }
 0x1bd   : > { %6182 = vmatprep.subr.bf16.mxu1 %v12872_v41  ;;  %v12896_v41 = vld [vmem:[%s17752_s15 + $0x874] ss:$24 sps:$4 sm:$0xff]  }
 0x1bf   : > { %6941 = vmatpush1.bf16.msra.mxu0 %v12819_v60  ;;  %v12873_v60 = vld [vmem:[%s17752_s15 + $0x278] ss:$24 sps:$4 sm:$0xff]  }
 0x1c0   : > { %6942 = vmatprep.subr.bf16.mxu0 %v12824_v12  ;;  %6183 = vmatpush1.bf16.msra.mxu1 %v12870_v13  ;;  %v12894_v13 = vld [vmem:[%s17752_s15 + $0x870] ss:$24 sps:$4 sm:$0xff]  }
 0x1c1   : > { %6184 = vmatprep.subr.bf16.mxu1 %v12881_v52 }
 0x1c3   : > { %6943 = vmatpush1.bf16.msra.mxu0 %v12822_v18  ;;  %v12878_v18 = vld [vmem:[%s17752_s15 + $0x2ac] ss:$24 sps:$4 sm:$0xff]  }
 0x1c4   : > { %6944 = vmatprep.subr.bf16.mxu0 %v12830_v20  ;;  %6185 = vmatpush1.bf16.msra.mxu1 %v12879_v50  ;;  %v12876_v20 = vld [vmem:[%s17752_s15 + $0x2a8] ss:$24 sps:$4 sm:$0xff]  }
 0x1c5   : > { %6186 = vmatprep.subr.bf16.mxu1 %v12887_v42  ;;  %v12900_v42 = vld [vmem:[%s17752_s15 + $0x8d0] ss:$24 sps:$4 sm:$0xff]  }
 0x1c7   : > { %6945 = vmatpush1.bf16.msra.mxu0 %v12828_v10 }
 0x1c8   : > { %6946 = vmatprep.subr.bf16.mxu0 %v12833_v23  ;;  %6187 = vmatpush1.bf16.msra.mxu1 %v12885_v0  ;;  %v12891_v23 = vld [vmem:[%s17752_s15 + $0x840] ss:$24 sps:$4 sm:$0xff]   ;;  %v12902_v0 = vld [vmem:[%s17752_s15 + $0x8d4] ss:$24 sps:$4 sm:$0xff]  }
 0x1c9   : > { %6188 = vmatprep.subr.bf16.mxu1 %v12890_v24  ;;  %v12905_v24 = vld [vmem:[%s17752_s15 + $0x904] ss:$24 sps:$4 sm:$0xff]  }
 0x1cb   : > { %6947 = vmatpush1.bf16.msra.mxu0 %v12831_v27  ;;  %v12893_v27 = vld [vmem:[%s17752_s15 + $0x844] ss:$24 sps:$4 sm:$0xff]  }
 0x1cc   : > { %6948 = vmatprep.subr.bf16.mxu0 %v12839_v28  ;;  %6189 = vmatpush1.bf16.msra.mxu1 %v12888_v5 }
 0x1cd   : > { %6190 = vmatprep.subr.bf16.mxu1 %v12893_v27 }
 0x1cf   : > { %6949 = vmatpush1.bf16.msra.mxu0 %v12837_v34  ;;  %v12882_v34 = vld [vmem:[%s17752_s15 + $0x2d8] ss:$24 sps:$4 sm:$0xff]  }
 0x1d0   : > { %6950 = vmatprep.subr.bf16.mxu0 %v12842_v35  ;;  %6191 = vmatpush1.bf16.msra.mxu1 %v12891_v23 }
 0x1d1   : > { %6192 = vmatprep.subr.bf16.mxu1 %v12896_v41 }
 0x1d3   : > { %6951 = vmatpush1.bf16.msra.mxu0 %v12840_v38 }
 0x1d4   : > { %6952 = vmatprep.subr.bf16.mxu0 %v12848_v40  ;;  %6193 = vmatpush1.bf16.msra.mxu1 %v12894_v13 }
 0x1d7   : > { %6953 = vmatpush1.bf16.msra.mxu0 %v12846_v45 }
 0x1d8   : > { %6954 = vmatprep.subr.bf16.mxu0 %v12851_v47 }
 0x1db   : > { %6955 = vmatpush1.bf16.msra.mxu0 %v12849_v49 }
 0x1dc   : > { %6956 = vmatprep.subr.bf16.mxu0 %v12857_v39 }
 0x1df   : > { %6957 = vmatpush1.bf16.msra.mxu0 %v12855_v29  ;;  %v11475_v59 = vpop.f32.mrb[12].mxu1  ;;  %v12897_v29 = vld [vmem:[%s17752_s15 + $0x8a0] ss:$24 sps:$4 sm:$0xff]  }
 0x1e0   : > { %6958 = vmatprep.subr.bf16.mxu0 %v12860_v54  ;;  %v1672_v33 = vpop.f32.mrb[13].mxu1  ;;  %v12899_v54 = vld [vmem:[%s17752_s15 + $0x8a4] ss:$24 sps:$4 sm:$0xff]  }
 0x1e1   : > { %v11476_v51 = vpop.f32.mrb[14].mxu1  ;;  %6194 = vmatprep.subr.bf16.mxu1 %v12899_v54 }
 0x1e2   : > { %v14447_v1 = vpack.c.bf16 %v11476_v51, %v11475_v59  ;;  %v1676_v55 = vpop.f32.mrb[15].mxu1  ;;  %6195 = vmatpush1.bf16.msra.mxu1 %v12897_v29  ;;  %v12911_v29 = vld [vmem:[%s17752_s15 + $0x30c] ss:$24 sps:$4 sm:$0xff]  }
 0x1e3   : > { %6959 = vmatpush1.bf16.msra.mxu0 %v12858_v57  ;;  %v14452_v15 = vpack.c.bf16 %v1676_v55, %v1672_v33  ;;  %6196 = vmatprep.subr.bf16.mxu1 %v12902_v0 }
 0x1e4   : > { %17888 = vst [vmem:[#allocation20_spill] sm:$0xff] %v14447_v1  ;;  %6960 = vmatprep.subr.bf16.mxu0 %v12866_v62 }
 0x1e5   : > { %17889 = vst [vmem:[#allocation21_spill] sm:$0xff] %v14452_v15  ;;  %5823 = vmatmul.mubr.bf16.gmra.mrb[104].mxu0 %v14452_v15 }
 0x1e6   : > { %5832 = vmatprep.mubr.bf16.mxu0 %v13894_v44  ;;  %6197 = vmatpush1.bf16.msra.mxu1 %v12900_v42 }
 0x1e7   : > { %6961 = vmatpush1.bf16.msra.mxu0 %v12864_v2  ;;  %v11479_v17 = vpop.f32.mrb[16].mxu1  ;;  %6359 = vmatprep.subr.bf16.mxu1 %v12905_v24 }
 0x1e8   : > { %6962 = vmatprep.subr.bf16.mxu0 %v12869_v3  ;;  %v1692_v22 = vpop.f32.mrb[17].mxu1 }
 0x1e9   : > { %v11480_v8 = vpop.f32.mrb[18].mxu1 }
 0x1ea   : > { %v14471_v11 = vpack.c.bf16 %v11480_v8, %v11479_v17  ;;  %v1696_v43 = vpop.f32.mrb[19].mxu1 }
 0x1eb   : > { %6963 = vmatpush1.bf16.msra.mxu0 %v12867_v4  ;;  %v14476_v12 = vpack.c.bf16 %v1696_v43, %v1692_v22 }
 0x1ec   : > { %17890 = vst [vmem:[#allocation22_spill] sm:$0xff] %v14471_v11  ;;  %6964 = vmatprep.subr.bf16.mxu0 %v12875_v56 }
 0x1ed   : > { %17891 = vst [vmem:[#allocation23_spill] sm:$0xff] %v14476_v12  ;;  %5833 = vmatmul.mubr.bf16.gmra.mrb[108].mxu0 %v14447_v1 }
 0x1ee   : > { %5842 = vmatprep.mubr.bf16.mxu0 %v13899_v58 }
 0x1ef   : > { %6965 = vmatpush1.bf16.msra.mxu0 %v12873_v60  ;;  %v11483_v21 = vpop.f32.mrb[20].mxu1 }
 0x1f0   : > { %6966 = vmatprep.subr.bf16.mxu0 %v12878_v18  ;;  %v1712_v10 = vpop.f32.mrb[21].mxu1 }
 0x1f1   : > { %v11484_v28 = vpop.f32.mrb[22].mxu1 }
 0x1f2   : > { %v14495_v31 = vpack.c.bf16 %v11484_v28, %v11483_v21  ;;  %v1716_v32 = vpop.f32.mrb[23].mxu1 }
 0x1f3   : > { %6967 = vmatpush1.bf16.msra.mxu0 %v12876_v20  ;;  %v14500_v35 = vpack.c.bf16 %v1716_v32, %v1712_v10 }
 0x1f4   : > { %17892 = vst [vmem:[#allocation24_spill] sm:$0xff] %v14495_v31  ;;  %6968 = vmatprep.subr.bf16.mxu0 %v12884_v16 }
 0x1f5   : > { %17893 = vst [vmem:[#allocation25_spill] sm:$0xff] %v14500_v35  ;;  %5843 = vmatmul.mubr.bf16.gmra.mrb[112].mxu0 %v14476_v12 }
 0x1f6   : > { %5852 = vmatprep.mubr.bf16.mxu0 %v13907_v9 }
 0x1f7   : > { %6969 = vmatpush1.bf16.msra.mxu0 %v12882_v34  ;;  %v11487_v38 = vpop.f32.mrb[24].mxu1 }
 0x1f8   : > { %v1732_v40 = vpop.f32.mrb[25].mxu1  ;;  %7131 = vmatprep.subr.bf16.mxu0 %v12911_v29 }
 0x1f9   : > { %v11488_v45 = vpop.f32.mrb[26].mxu1 }
 0x1fa   : > { %v14510_v47 = vpack.c.bf16 %v11488_v45, %v11487_v38  ;;  %v1736_v49 = vpop.f32.mrb[27].mxu1 }
 0x1fb   : > { %v14512_v39 = vpack.c.bf16 %v1736_v49, %v1732_v40 }
 0x1fc   : > { %17894 = vst [vmem:[#allocation26_spill] sm:$0xff] %v14510_v47 }
 0x1fd   : > { %17895 = vst [vmem:[#allocation27_spill] sm:$0xff] %v14512_v39  ;;  %5853 = vmatmul.mubr.bf16.gmra.mrb[116].mxu0 %v14471_v11 }
 0x1fe   : > { %5862 = vmatprep.mubr.bf16.mxu0 %v13912_v25 }
 0x1ff   : > { %v11491_v50 = vpop.f32.mrb[28].mxu1 }
 0x200   : > { %v1752_v52 = vpop.f32.mrb[29].mxu1 }
 0x201   : > { %v11492_v57 = vpop.f32.mrb[30].mxu1 }
 0x202   : > { %v14522_v59 = vpack.c.bf16 %v11492_v57, %v11491_v50  ;;  %v1756_v62 = vpop.f32.mrb[31].mxu1 }
 0x203   : > { %v14524_v33 = vpack.c.bf16 %v1756_v62, %v1752_v52 }
 0x204   : > { %17896 = vst [vmem:[#allocation28_spill] sm:$0xff] %v14522_v59 }
 0x205   : > { %17897 = vst [vmem:[#allocation29_spill] sm:$0xff] %v14524_v33  ;;  %5863 = vmatmul.mubr.bf16.gmra.mrb[120].mxu0 %v14500_v35 }
 0x206   : > { %5872 = vmatprep.mubr.bf16.mxu0 %v13916_v36 }
 0x207   : > { %v11495_v51 = vpop.f32.mrb[32].mxu1 }
 0x208   : > { %v1772_v55 = vpop.f32.mrb[33].mxu1 }
 0x209   : > { %v11496_v2 = vpop.f32.mrb[34].mxu1 }
 0x20a   : > { %v14534_v3 = vpack.c.bf16 %v11496_v2, %v11495_v51  ;;  %v1776_v4 = vpop.f32.mrb[35].mxu1 }
 0x20b   : > { %v14536_v17 = vpack.c.bf16 %v1776_v4, %v1772_v55 }
 0x20c   : > { %17898 = vst [vmem:[#allocation30_spill] sm:$0xff] %v14534_v3 }
 0x20d   : > { %17899 = vst [vmem:[#allocation31_spill] sm:$0xff] %v14536_v17  ;;  %v1865_v56 = vpop.f32.mrb[36].mxu0  ;;  %5873 = vmatmul.mubr.bf16.gmra.mrb[124].mxu0 %v14495_v31 }
 0x20e   : > { %v1867_v22 = vpop.f32.mrb[37].mxu0  ;;  %5882 = vmatprep.mubr.bf16.mxu0 %v13930_v46 }
 0x20f   : > { %v1869_v5 = vpop.f32.mrb[38].mxu0  ;;  %v11499_v60 = vpop.f32.mrb[36].mxu1 }
 0x210   : > { %v14543_v8 = vpack.c.bf16 %v1869_v5, %v1865_v56  ;;  %v1871_v43 = vpop.f32.mrb[39].mxu0  ;;  %v1792_v20 = vpop.f32.mrb[37].mxu1 }
 0x211   : > { %v14545_v18 = vpack.c.bf16 %v1871_v43, %v1867_v22  ;;  %v11500_v21 = vpop.f32.mrb[38].mxu1 }
 0x212   : > { %17900 = vst [vmem:[#allocation32_spill] sm:$0xff] %v14543_v8  ;;  %v14548_v16 = vpack.c.bf16 %v11500_v21, %v11499_v60  ;;  %v1796_v10 = vpop.f32.mrb[39].mxu1 }
 0x213   : > { %17901 = vst [vmem:[#allocation33_spill] sm:$0xff] %v14545_v18  ;;  %6015 = vmatprep.mubr.bf16.mxu1 %v14545_v18  ;;  %v14551_v23 = vpack.c.bf16 %v1796_v10, %v1792_v20 }
 0x214   : > { %17902 = vst [vmem:[#allocation34_spill] sm:$0xff] %v14548_v16  ;;  %6016 = vmatmul.mubr.bf16.gmra.mrb[48].mxu1 %v14543_v8 }
 0x215   : > { %17903 = vst [vmem:[#allocation35_spill] sm:$0xff] %v14551_v23  ;;  %v1875_v27 = vpop.f32.mrb[40].mxu0  ;;  %5883 = vmatmul.mubr.bf16.gmra.mrb[128].mxu0 %v14512_v39 }
 0x216   : > { %v1877_v28 = vpop.f32.mrb[41].mxu0  ;;  %5892 = vmatprep.mubr.bf16.mxu0 %v13938_v53 }
 0x217   : > { %v1879_v32 = vpop.f32.mrb[42].mxu0  ;;  %v11503_v40 = vpop.f32.mrb[40].mxu1 }
 0x218   : > { %v14555_v34 = vpack.c.bf16 %v1879_v32, %v1875_v27  ;;  %v1881_v38 = vpop.f32.mrb[43].mxu0  ;;  %v1812_v41 = vpop.f32.mrb[41].mxu1 }
 0x219   : > { %v14557_v13 = vpack.c.bf16 %v1881_v38, %v1877_v28  ;;  %v11504_v45 = vpop.f32.mrb[42].mxu1 }
 0x21a   : > { %17904 = vst [vmem:[#allocation36_spill] sm:$0xff] %v14555_v34  ;;  %v14560_v49 = vpack.c.bf16 %v11504_v45, %v11503_v40  ;;  %v1816_v50 = vpop.f32.mrb[43].mxu1 }
 0x21b   : > { %17905 = vst [vmem:[#allocation37_spill] sm:$0xff] %v14557_v13  ;;  %6025 = vmatprep.mubr.bf16.mxu1 %v14557_v13  ;;  %v14563_v52 = vpack.c.bf16 %v1816_v50, %v1812_v41 }
 0x21c   : > { %17906 = vst [vmem:[#allocation38_spill] sm:$0xff] %v14560_v49  ;;  %6026 = vmatmul.mubr.bf16.gmra.mrb[52].mxu1 %v14555_v34 }
 0x21d   : > { %17907 = vst [vmem:[#allocation39_spill] sm:$0xff] %v14563_v52  ;;  %v1885_v54 = vpop.f32.mrb[44].mxu0  ;;  %5893 = vmatmul.mubr.bf16.gmra.mrb[132].mxu0 %v14510_v47 }
 0x21e   : > { %v1887_v57 = vpop.f32.mrb[45].mxu0  ;;  %5902 = vmatprep.mubr.bf16.mxu0 %v13952_v63 }
 0x21f   : > { %v1889_v62 = vpop.f32.mrb[46].mxu0 }
 0x220   : > { %v14570_v0 = vpack.c.bf16 %v1889_v62, %v1885_v54  ;;  %v1891_v42 = vpop.f32.mrb[47].mxu0 }
 0x221   : > { %v14572_v51 = vpack.c.bf16 %v1891_v42, %v1887_v57 }
 0x222   : > { %17908 = vst [vmem:[#allocation40_spill] sm:$0xff] %v14570_v0 }
 0x223   : > { %17909 = vst [vmem:[#allocation41_spill] sm:$0xff] %v14572_v51  ;;  %6035 = vmatprep.mubr.bf16.mxu1 %v14572_v51 }
 0x224   : > { %6036 = vmatmul.mubr.bf16.gmra.mrb[56].mxu1 %v14570_v0 }
 0x225   : > { %v1895_v55 = vpop.f32.mrb[48].mxu0  ;;  %5903 = vmatmul.mubr.bf16.gmra.mrb[136].mxu0 %v14524_v33 }
 0x226   : > { %v1897_v2 = vpop.f32.mrb[49].mxu0  ;;  %5912 = vmatprep.mubr.bf16.mxu0 %v13960_v6 }
 0x227   : > { %v1899_v4 = vpop.f32.mrb[50].mxu0 }
 0x228   : > { %v14578_v56 = vpack.c.bf16 %v1899_v4, %v1895_v55  ;;  %v1901_v22 = vpop.f32.mrb[51].mxu0 }
 0x229   : > { %v14580_v5 = vpack.c.bf16 %v1901_v22, %v1897_v2 }
 0x22a   : > { %17910 = vst [vmem:[#allocation42_spill] sm:$0xff] %v14578_v56 }
 0x22b   : > { %17911 = vst [vmem:[#allocation43_spill] sm:$0xff] %v14580_v5  ;;  %6045 = vmatprep.mubr.bf16.mxu1 %v14580_v5 }
 0x22c   : > { %6046 = vmatmul.mubr.bf16.gmra.mrb[60].mxu1 %v14578_v56 }
 0x22d   : > { %v1905_v24 = vpop.f32.mrb[52].mxu0  ;;  %5913 = vmatmul.mubr.bf16.gmra.mrb[140].mxu0 %v14522_v59 }
 0x22e   : > { %v1907_v43 = vpop.f32.mrb[53].mxu0  ;;  %5922 = vmatprep.mubr.bf16.mxu0 %v13974_v19 }
 0x22f   : > { %v1909_v60 = vpop.f32.mrb[54].mxu0 }
 0x230   : > { %v14586_v20 = vpack.c.bf16 %v1909_v60, %v1905_v24  ;;  %v1911_v21 = vpop.f32.mrb[55].mxu0 }
 0x231   : > { %v14588_v10 = vpack.c.bf16 %v1911_v21, %v1907_v43 }
 0x232   : > { %17912 = vst [vmem:[#allocation44_spill] sm:$0xff] %v14586_v20 }
 0x233   : > { %17913 = vst [vmem:[#allocation45_spill] sm:$0xff] %v14588_v10  ;;  %6055 = vmatprep.mubr.bf16.mxu1 %v14588_v10 }
 0x234   : > { %6056 = vmatmul.mubr.bf16.gmra.mrb[64].mxu1 %v14586_v20 }
 0x235   : > { %v1915_v27 = vpop.f32.mrb[56].mxu0  ;;  %5923 = vmatmul.mubr.bf16.gmra.mrb[144].mxu0 %v14536_v17 }
 0x236   : > { %v1917_v28 = vpop.f32.mrb[57].mxu0  ;;  %5932 = vmatprep.mubr.bf16.mxu0 %v13982_v26 }
 0x237   : > { %v1919_v32 = vpop.f32.mrb[58].mxu0 }
 0x238   : > { %v14594_v38 = vpack.c.bf16 %v1919_v32, %v1915_v27  ;;  %v1921_v40 = vpop.f32.mrb[59].mxu0 }
 0x239   : > { %v14596_v41 = vpack.c.bf16 %v1921_v40, %v1917_v28 }
 0x23a   : > { %17914 = vst [vmem:[#allocation46_spill] sm:$0xff] %v14594_v38 }
 0x23b   : > { %17915 = vst [vmem:[#allocation47_spill] sm:$0xff] %v14596_v41  ;;  %6065 = vmatprep.mubr.bf16.mxu1 %v14596_v41 }
 0x23c   : > { %6066 = vmatmul.mubr.bf16.gmra.mrb[68].mxu1 %v14594_v38 }
 0x23d   : > { %v1925_v45 = vpop.f32.mrb[60].mxu0  ;;  %5933 = vmatmul.mubr.bf16.gmra.mrb[148].mxu0 %v14534_v3 }
 0x23e   : > { %v1927_v50 = vpop.f32.mrb[61].mxu0  ;;  %5942 = vmatprep.mubr.bf16.mxu0 %v13996_v37 }
 0x23f   : > { %v1929_v29 = vpop.f32.mrb[62].mxu0 }
 0x240   : > { %v14602_v54 = vpack.c.bf16 %v1929_v29, %v1925_v45  ;;  %v1931_v57 = vpop.f32.mrb[63].mxu0 }
 0x241   : > { %v14604_v62 = vpack.c.bf16 %v1931_v57, %v1927_v50 }
 0x242   : > { %17916 = vst [vmem:[#allocation48_spill] sm:$0xff] %v14602_v54 }
 0x243   : > { %17917 = vst [vmem:[#allocation49_spill] sm:$0xff] %v14604_v62  ;;  %6075 = vmatprep.mubr.bf16.mxu1 %v14604_v62 }
 0x244   : > { %6076 = vmatmul.mubr.bf16.gmra.mrb[72].mxu1 %v14602_v54 }
 0x245   : > { %v1935_v42 = vpop.f32.mrb[64].mxu0  ;;  %5943 = vmatmul.mubr.bf16.gmra.mrb[152].mxu0 %v14551_v23 }
 0x246   : > { %v1937_v55 = vpop.f32.mrb[65].mxu0  ;;  %5952 = vmatprep.mubr.bf16.mxu0 %v14004_v48 }
 0x247   : > { %v1939_v2 = vpop.f32.mrb[66].mxu0 }
 0x248   : > { %v14610_v4 = vpack.c.bf16 %v1939_v2, %v1935_v42  ;;  %v1941_v22 = vpop.f32.mrb[67].mxu0  ;;  %v12917_v2 = vld [vmem:[%s17752_s15 + $0x33c] ss:$24 sps:$4 sm:$0xff]  }
 0x249   : > { %v14612_v24 = vpack.c.bf16 %v1941_v22, %v1937_v55  ;;  %v12909_v55 = vld [vmem:[%s17752_s15 + $0x308] ss:$24 sps:$4 sm:$0xff]  }
 0x24b   : > { %17918 = vst [vmem:[#allocation50_spill] sm:$0xff] %v14612_v24  ;;  %6085 = vmatprep.mubr.bf16.mxu1 %v14612_v24 }
 0x24c   : > { %6086 = vmatmul.mubr.bf16.gmra.mrb[76].mxu1 %v14610_v4 }
 0x24d   : > { %v1945_v43 = vpop.f32.mrb[68].mxu0  ;;  %5953 = vmatmul.mubr.bf16.gmra.mrb[156].mxu0 %v14548_v16 }
 0x24e   : > { %v1947_v60 = vpop.f32.mrb[69].mxu0  ;;  %5962 = vmatprep.mubr.bf16.mxu0 %v14018_v61 }
 0x24f   : > { %v1949_v21 = vpop.f32.mrb[70].mxu0 }
 0x250   : > { %v14618_v27 = vpack.c.bf16 %v1949_v21, %v1945_v43  ;;  %v1951_v28 = vpop.f32.mrb[71].mxu0  ;;  %v12915_v21 = vld [vmem:[%s17752_s15 + $0x338] ss:$24 sps:$4 sm:$0xff]  }
 0x251   : > { %v14620_v32 = vpack.c.bf16 %v1951_v28, %v1947_v60 }
 0x253   : > { %6095 = vmatprep.mubr.bf16.mxu1 %v14620_v32 }
 0x254   : > { %6096 = vmatmul.mubr.bf16.gmra.mrb[80].mxu1 %v14618_v27 }
 0x255   : > { %v1955_v40 = vpop.f32.mrb[72].mxu0  ;;  %5963 = vmatmul.mubr.bf16.gmra.mrb[160].mxu0 %v14563_v52 }
 0x256   : > { %v1957_v45 = vpop.f32.mrb[73].mxu0  ;;  %6970 = vmatprep.mubr.bf16.mxu0 %v17757_v14 }
 0x257   : > { %v1959_v50 = vpop.f32.mrb[74].mxu0 }
 0x258   : > { %v14626_v29 = vpack.c.bf16 %v1959_v50, %v1955_v40  ;;  %v1961_v57 = vpop.f32.mrb[75].mxu0 }
 0x259   : > { %v14628_v42 = vpack.c.bf16 %v1961_v57, %v1957_v45  ;;  %v12920_v45 = vld [vmem:[%s17752_s15 + $0x36c] ss:$24 sps:$4 sm:$0xff]   ;;  %v12918_v57 = vld [vmem:[%s17752_s15 + $0x368] ss:$24 sps:$4 sm:$0xff]  }
 0x25b   : > { %6105 = vmatprep.mubr.bf16.mxu1 %v14628_v42 }
 0x25c   : > { %6106 = vmatmul.mubr.bf16.gmra.mrb[84].mxu1 %v14626_v29 }
 0x25d   : > { %v1965_v22 = vpop.f32.mrb[76].mxu0  ;;  %6971 = vmatmul.mubr.bf16.vlgmr.msra.gmra.mrb[164].mxu0 %v17757_v14 }
 0x25e   : > { %v1967_v43 = vpop.f32.mrb[77].mxu0  ;;  %6980 = vmatprep.mubr.bf16.mxu0 %v13890_v30  ;;  %7132 = vmatpush1.bf16.msra.mxu0 %v12909_v55  ;;  %v12926_v55 = vld [vmem:[%s17752_s15 + $0x39c] ss:$24 sps:$4 sm:$0xff]  }
 0x25f   : > { %v1969_v60 = vpop.f32.mrb[78].mxu0  ;;  %7133 = vmatprep.subr.bf16.mxu0 %v12917_v2 }
 0x260   : > { %v14643_v28 = vpack.c.bf16 %v1969_v60, %v1965_v22  ;;  %v1971_v40 = vpop.f32.mrb[79].mxu0  ;;  %v12924_v60 = vld [vmem:[%s17752_s15 + $0x398] ss:$24 sps:$4 sm:$0xff]  }
 0x261   : > { %v14648_v50 = vpack.c.bf16 %v1971_v40, %v1967_v43 }
 0x262   : > { %7134 = vmatpush1.bf16.msra.mxu0 %v12915_v21 }
 0x263   : > { %6115 = vmatprep.mubr.bf16.mxu1 %v14648_v50  ;;  %7135 = vmatprep.subr.bf16.mxu0 %v12920_v45  ;;  %v12929_v45 = vld [vmem:[%s17752_s15 + $0x3cc] ss:$24 sps:$4 sm:$0xff]  }
 0x264   : > { %6116 = vmatmul.mubr.bf16.gmra.mrb[88].mxu1 %v14643_v28 }
 0x265   : > { %v1975_v2 = vpop.f32.mrb[80].mxu0  ;;  %6981 = vmatmul.mubr.bf16.gmra.mrb[168].mxu0 %v14452_v15 }
 0x266   : > { %v1977_v22 = vpop.f32.mrb[81].mxu0  ;;  %6990 = vmatprep.mubr.bf16.mxu0 %v13894_v44  ;;  %7136 = vmatpush1.bf16.msra.mxu0 %v12918_v57  ;;  %v12927_v57 = vld [vmem:[%s17752_s15 + $0x3c8] ss:$24 sps:$4 sm:$0xff]  }
 0x267   : > { %v1979_v43 = vpop.f32.mrb[82].mxu0  ;;  %7137 = vmatprep.subr.bf16.mxu0 %v12926_v55  ;;  %v12935_v55 = vld [vmem:[%s17752_s15 + $0x3fc] ss:$24 sps:$4 sm:$0xff]  }
 0x268   : > { %v14663_v21 = vpack.c.bf16 %v1979_v43, %v1975_v2  ;;  %v1981_v40 = vpop.f32.mrb[83].mxu0 }
 0x269   : > { %v14668_v14 = vpack.c.bf16 %v1981_v40, %v1977_v22 }
 0x26a   : > { %17919 = vst [vmem:[#allocation51_spill] sm:$0xff] %v14663_v21  ;;  %7138 = vmatpush1.bf16.msra.mxu0 %v12924_v60  ;;  %v12933_v60 = vld [vmem:[%s17752_s15 + $0x3f8] ss:$24 sps:$4 sm:$0xff]  }
 0x26b   : > { %17920 = vst [vmem:[#allocation52_spill] sm:$0xff] %v14668_v14  ;;  %6125 = vmatprep.mubr.bf16.mxu1 %v14668_v14  ;;  %7139 = vmatprep.subr.bf16.mxu0 %v12929_v45  ;;  %v12938_v45 = vld [vmem:[%s17752_s15 + $0x42c] ss:$24 sps:$4 sm:$0xff]  }
 0x26c   : > { %6126 = vmatmul.mubr.bf16.gmra.mrb[92].mxu1 %v14663_v21 }
 0x26d   : > { %v1985_v2 = vpop.f32.mrb[84].mxu0  ;;  %6991 = vmatmul.mubr.bf16.gmra.mrb[172].mxu0 %v14447_v1 }
 0x26e   : > { %v1987_v43 = vpop.f32.mrb[85].mxu0  ;;  %7000 = vmatprep.mubr.bf16.mxu0 %v13899_v58  ;;  %7140 = vmatpush1.bf16.msra.mxu0 %v12927_v57  ;;  %v12936_v57 = vld [vmem:[%s17752_s15 + $0x428] ss:$24 sps:$4 sm:$0xff]  }
 0x26f   : > { %v1989_v22 = vpop.f32.mrb[86].mxu0  ;;  %7141 = vmatprep.subr.bf16.mxu0 %v12935_v55  ;;  %v12944_v55 = vld [vmem:[%s17752_s15 + $0x45c] ss:$24 sps:$4 sm:$0xff]  }
 0x270   : > { %v14683_v40 = vpack.c.bf16 %v1989_v22, %v1985_v2  ;;  %v1991_v21 = vpop.f32.mrb[87].mxu0 }
 0x271   : > { %v14688_v14 = vpack.c.bf16 %v1991_v21, %v1987_v43  ;;  %v12942_v43 = vld [vmem:[%s17752_s15 + $0x458] ss:$24 sps:$4 sm:$0xff]  }
 0x272   : > { %17921 = vst [vmem:[#allocation53_spill] sm:$0xff] %v14683_v40  ;;  %7142 = vmatpush1.bf16.msra.mxu0 %v12933_v60 }
 0x273   : > { %17922 = vst [vmem:[#allocation54_spill] sm:$0xff] %v14688_v14  ;;  %6135 = vmatprep.mubr.bf16.mxu1 %v14688_v14  ;;  %7143 = vmatprep.subr.bf16.mxu0 %v12938_v45  ;;  %v12947_v45 = vld [vmem:[%s17752_s15 + $0x48c] ss:$24 sps:$4 sm:$0xff]  }
 0x274   : > { %6136 = vmatmul.mubr.bf16.gmra.mrb[96].mxu1 %v14683_v40 }
 0x275   : > { %v1995_v2 = vpop.f32.mrb[88].mxu0  ;;  %7001 = vmatmul.mubr.bf16.gmra.mrb[176].mxu0 %v14476_v12 }
 0x276   : > { %v1997_v22 = vpop.f32.mrb[89].mxu0  ;;  %7010 = vmatprep.mubr.bf16.mxu0 %v13907_v9  ;;  %7144 = vmatpush1.bf16.msra.mxu0 %v12936_v57  ;;  %v12945_v57 = vld [vmem:[%s17752_s15 + $0x488] ss:$24 sps:$4 sm:$0xff]  }
 0x277   : > { %v1999_v21 = vpop.f32.mrb[90].mxu0  ;;  %7145 = vmatprep.subr.bf16.mxu0 %v12944_v55  ;;  %v12953_v55 = vld [vmem:[%s17752_s15 + $0x4bc] ss:$24 sps:$4 sm:$0xff]  }
 0x278   : > { %v14703_v60 = vpack.c.bf16 %v1999_v21, %v1995_v2  ;;  %v2001_v40 = vpop.f32.mrb[91].mxu0 }
 0x279   : > { %v14708_v14 = vpack.c.bf16 %v2001_v40, %v1997_v22  ;;  %v12951_v22 = vld [vmem:[%s17752_s15 + $0x4b8] ss:$24 sps:$4 sm:$0xff]  }
 0x27a   : > { %17923 = vst [vmem:[#allocation55_spill] sm:$0xff] %v14703_v60  ;;  %7146 = vmatpush1.bf16.msra.mxu0 %v12942_v43 }
 0x27b   : > { %17924 = vst [vmem:[#allocation56_spill] sm:$0xff] %v14708_v14  ;;  %6145 = vmatprep.mubr.bf16.mxu1 %v14708_v14  ;;  %7147 = vmatprep.subr.bf16.mxu0 %v12947_v45  ;;  %v12956_v45 = vld [vmem:[%s17752_s15 + $0x4ec] ss:$24 sps:$4 sm:$0xff]  }
 0x27c   : > { %6146 = vmatmul.mubr.bf16.gmra.mrb[100].mxu1 %v14703_v60 }
 0x27d   : > { %v2005_v2 = vpop.f32.mrb[92].mxu0  ;;  %7011 = vmatmul.mubr.bf16.gmra.mrb[180].mxu0 %v14471_v11 }
 0x27e   : > { %v2007_v21 = vpop.f32.mrb[93].mxu0  ;;  %7020 = vmatprep.mubr.bf16.mxu0 %v13912_v25  ;;  %7148 = vmatpush1.bf16.msra.mxu0 %v12945_v57  ;;  %v12954_v57 = vld [vmem:[%s17752_s15 + $0x4e8] ss:$24 sps:$4 sm:$0xff]  }
 0x27f   : > { %v2009_v40 = vpop.f32.mrb[94].mxu0  ;;  %7149 = vmatprep.subr.bf16.mxu0 %v12953_v55  ;;  %v12962_v55 = vld [vmem:[%s17752_s15 + $0x51c] ss:$24 sps:$4 sm:$0xff]  }
 0x280   : > { %v14723_v43 = vpack.c.bf16 %v2009_v40, %v2005_v2  ;;  %v2011_v60 = vpop.f32.mrb[95].mxu0  ;;  %v12965_v2 = vld [vmem:[%s17752_s15 + $0x54c] ss:$24 sps:$4 sm:$0xff]  }
 0x281   : > { %v14728_v14 = vpack.c.bf16 %v2011_v60, %v2007_v21  ;;  %v12960_v60 = vld [vmem:[%s17752_s15 + $0x518] ss:$24 sps:$4 sm:$0xff]   ;;  %v12908_v40 = vld [vmem:[%s17752_s15 + $0x934] ss:$24 sps:$4 sm:$0xff]  }
 0x282   : > { %17925 = vst [vmem:[#allocation57_spill] sm:$0xff] %v14723_v43  ;;  %7150 = vmatpush1.bf16.msra.mxu0 %v12951_v22  ;;  %v12903_v21 = vld [vmem:[%s17752_s15 + $0x900] ss:$24 sps:$4 sm:$0xff]  }
 0x283   : > { %17926 = vst [vmem:[#allocation58_spill] sm:$0xff] %v14728_v14  ;;  %6155 = vmatprep.mubr.bf16.mxu1 %v14728_v14  ;;  %7151 = vmatprep.subr.bf16.mxu0 %v12956_v45  ;;  %v12963_v22 = vld [vmem:[%s17752_s15 + $0x548] ss:$24 sps:$4 sm:$0xff]   ;;  %v12971_v45 = vld [vmem:[%s17752_s15 + $0x57c] ss:$24 sps:$4 sm:$0xff]  }
 0x284   : > { %6156 = vmatmul.mubr.bf16.gmra.mrb[104].mxu1 %v14723_v43 }
 0x285   : > { %6198 = vmatprep.mubr.bf16.mxu1 %v13890_v30  ;;  %7021 = vmatmul.mubr.bf16.gmra.mrb[184].mxu0 %v14500_v35 }
 0x286   : > { %7030 = vmatprep.mubr.bf16.mxu0 %v13916_v36  ;;  %7152 = vmatpush1.bf16.msra.mxu0 %v12954_v57  ;;  %v12906_v57 = vld [vmem:[%s17752_s15 + $0x930] ss:$24 sps:$4 sm:$0xff]  }
 0x287   : > { %7153 = vmatprep.subr.bf16.mxu0 %v12962_v55  ;;  %v12914_v55 = vld [vmem:[%s17752_s15 + $0x964] ss:$24 sps:$4 sm:$0xff]  }
 0x28a   : > { %7154 = vmatpush1.bf16.msra.mxu0 %v12960_v60  ;;  %v12969_v60 = vld [vmem:[%s17752_s15 + $0x578] ss:$24 sps:$4 sm:$0xff]  }
 0x28b   : > { %7155 = vmatprep.subr.bf16.mxu0 %v12965_v2  ;;  %v12974_v2 = vld [vmem:[%s17752_s15 + $0x5ac] ss:$24 sps:$4 sm:$0xff]  }
 0x28c   : > { %6199 = vmatmul.mubr.bf16.vlgmr.msra.gmra.mrb[44].mxu1 %v14452_v15 }
 0x28d   : > { %6208 = vmatprep.mubr.bf16.mxu1 %v13894_v44  ;;  %6360 = vmatpush1.bf16.msra.mxu1 %v12903_v21  ;;  %v12912_v21 = vld [vmem:[%s17752_s15 + $0x960] ss:$24 sps:$4 sm:$0xff]  }
 0x28e   : > { %7031 = vmatmul.mubr.bf16.gmra.mrb[188].mxu0 %v14495_v31  ;;  %6361 = vmatprep.subr.bf16.mxu1 %v12908_v40  ;;  %v12923_v40 = vld [vmem:[%s17752_s15 + $0x994] ss:$24 sps:$4 sm:$0xff]  }
 0x28f   : > { %7040 = vmatprep.mubr.bf16.mxu0 %v13930_v46  ;;  %7156 = vmatpush1.bf16.msra.mxu0 %v12963_v22  ;;  %v12972_v22 = vld [vmem:[%s17752_s15 + $0x5a8] ss:$24 sps:$4 sm:$0xff]  }
 0x290   : > { %7157 = vmatprep.subr.bf16.mxu0 %v12971_v45  ;;  %v12980_v45 = vld [vmem:[%s17752_s15 + $0x5dc] ss:$24 sps:$4 sm:$0xff]  }
 0x291   : > { %6362 = vmatpush1.bf16.msra.mxu1 %v12906_v57  ;;  %v12921_v57 = vld [vmem:[%s17752_s15 + $0x990] ss:$24 sps:$4 sm:$0xff]  }
 0x292   : > { %6363 = vmatprep.subr.bf16.mxu1 %v12914_v55  ;;  %v12932_v55 = vld [vmem:[%s17752_s15 + $0x9c4] ss:$24 sps:$4 sm:$0xff]  }
 0x293   : > { %7158 = vmatpush1.bf16.msra.mxu0 %v12969_v60  ;;  %v12978_v60 = vld [vmem:[%s17752_s15 + $0x5d8] ss:$24 sps:$4 sm:$0xff]  }
 0x294   : > { %6209 = vmatmul.mubr.bf16.gmra.mrb[48].mxu1 %v14447_v1  ;;  %7159 = vmatprep.subr.bf16.mxu0 %v12974_v2  ;;  %v12930_v2 = vld [vmem:[%s17752_s15 + $0x9c0] ss:$24 sps:$4 sm:$0xff]  }
 0x295   : > { %6218 = vmatprep.mubr.bf16.mxu1 %v13899_v58  ;;  %6364 = vmatpush1.bf16.msra.mxu1 %v12912_v21  ;;  %v12941_v21 = vld [vmem:[%s17752_s15 + $0x9f4] ss:$24 sps:$4 sm:$0xff]  }
 0x296   : > { %7041 = vmatmul.mubr.bf16.gmra.mrb[192].mxu0 %v14512_v39  ;;  %6365 = vmatprep.subr.bf16.mxu1 %v12923_v40  ;;  %v13007_v40 = vld [vmem:[%s17752_s15 + $0x60c] ss:$24 sps:$4 sm:$0xff]  }
 0x297   : > { %7050 = vmatprep.mubr.bf16.mxu0 %v13938_v53  ;;  %7160 = vmatpush1.bf16.msra.mxu0 %v12972_v22  ;;  %v12939_v22 = vld [vmem:[%s17752_s15 + $0x9f0] ss:$24 sps:$4 sm:$0xff]  }
 0x298   : > { %7161 = vmatprep.subr.bf16.mxu0 %v12980_v45  ;;  %v12950_v45 = vld [vmem:[%s17752_s15 + $0xa24] ss:$24 sps:$4 sm:$0xff]  }
 0x299   : > { %6366 = vmatpush1.bf16.msra.mxu1 %v12921_v57  ;;  %v12948_v57 = vld [vmem:[%s17752_s15 + $0xa20] ss:$24 sps:$4 sm:$0xff]  }
 0x29a   : > { %6367 = vmatprep.subr.bf16.mxu1 %v12932_v55  ;;  %v12959_v55 = vld [vmem:[%s17752_s15 + $0xa54] ss:$24 sps:$4 sm:$0xff]  }
 0x29b   : > { %7162 = vmatpush1.bf16.msra.mxu0 %v12978_v60  ;;  %v12957_v60 = vld [vmem:[%s17752_s15 + $0xa50] ss:$24 sps:$4 sm:$0xff]  }
 0x29c   : > { %6219 = vmatmul.mubr.bf16.gmra.mrb[52].mxu1 %v14476_v12  ;;  %7324 = vmatprep.subr.bf16.mxu0 %v13007_v40  ;;  %v12977_v40 = vld [vmem:[%s17752_s15 + $0xab4] ss:$24 sps:$4 sm:$0xff]  }
 0x29d   : > { %6228 = vmatprep.mubr.bf16.mxu1 %v13907_v9  ;;  %6368 = vmatpush1.bf16.msra.mxu1 %v12930_v2  ;;  %v12968_v2 = vld [vmem:[%s17752_s15 + $0xa84] ss:$24 sps:$4 sm:$0xff]  }
 0x29e   : > { %7051 = vmatmul.mubr.bf16.gmra.mrb[196].mxu0 %v14510_v47  ;;  %6369 = vmatprep.subr.bf16.mxu1 %v12941_v21  ;;  %v12966_v21 = vld [vmem:[%s17752_s15 + $0xa80] ss:$24 sps:$4 sm:$0xff]  }
 0x29f   : > { %7060 = vmatprep.mubr.bf16.mxu0 %v13952_v63 }
 0x2a1   : > { %6370 = vmatpush1.bf16.msra.mxu1 %v12939_v22  ;;  %v12975_v22 = vld [vmem:[%s17752_s15 + $0xab0] ss:$24 sps:$4 sm:$0xff]  }
 0x2a2   : > { %6371 = vmatprep.subr.bf16.mxu1 %v12950_v45  ;;  %v12983_v45 = vld [vmem:[%s17752_s15 + $0xae4] ss:$24 sps:$4 sm:$0xff]  }
 0x2a4   : > { %6229 = vmatmul.mubr.bf16.gmra.mrb[56].mxu1 %v14471_v11 }
 0x2a5   : > { %6238 = vmatprep.mubr.bf16.mxu1 %v13912_v25  ;;  %6372 = vmatpush1.bf16.msra.mxu1 %v12948_v57  ;;  %v12981_v57 = vld [vmem:[%s17752_s15 + $0xae0] ss:$24 sps:$4 sm:$0xff]  }
 0x2a6   : > { %7061 = vmatmul.mubr.bf16.gmra.mrb[200].mxu0 %v14524_v33  ;;  %6373 = vmatprep.subr.bf16.mxu1 %v12959_v55  ;;  %v12986_v55 = vld [vmem:[%s17752_s15 + $0xb14] ss:$24 sps:$4 sm:$0xff]  }
 0x2a7   : > { %7070 = vmatprep.mubr.bf16.mxu0 %v13960_v6 }
 0x2a9   : > { %6374 = vmatpush1.bf16.msra.mxu1 %v12957_v60  ;;  %v12984_v60 = vld [vmem:[%s17752_s15 + $0xb10] ss:$24 sps:$4 sm:$0xff]  }
 0x2aa   : > { %6375 = vmatprep.subr.bf16.mxu1 %v12968_v2  ;;  %v12989_v2 = vld [vmem:[%s17752_s15 + $0xb44] ss:$24 sps:$4 sm:$0xff]  }
 0x2ac   : > { %6239 = vmatmul.mubr.bf16.gmra.mrb[60].mxu1 %v14500_v35 }
 0x2ad   : > { %6248 = vmatprep.mubr.bf16.mxu1 %v13916_v36  ;;  %6376 = vmatpush1.bf16.msra.mxu1 %v12966_v21  ;;  %v12987_v21 = vld [vmem:[%s17752_s15 + $0xb40] ss:$24 sps:$4 sm:$0xff]  }
 0x2ae   : > { %7071 = vmatmul.mubr.bf16.gmra.mrb[204].mxu0 %v14522_v59  ;;  %6377 = vmatprep.subr.bf16.mxu1 %v12977_v40  ;;  %v12992_v40 = vld [vmem:[%s17752_s15 + $0xb74] ss:$24 sps:$4 sm:$0xff]  }
 0x2af   : > { %7080 = vmatprep.mubr.bf16.mxu0 %v13974_v19 }
 0x2b1   : > { %6378 = vmatpush1.bf16.msra.mxu1 %v12975_v22  ;;  %v12990_v22 = vld [vmem:[%s17752_s15 + $0xb70] ss:$24 sps:$4 sm:$0xff]  }
 0x2b2   : > { %6379 = vmatprep.subr.bf16.mxu1 %v12983_v45  ;;  %v12995_v45 = vld [vmem:[%s17752_s15 + $0xba4] ss:$24 sps:$4 sm:$0xff]  }
 0x2b4   : > { %6249 = vmatmul.mubr.bf16.gmra.mrb[64].mxu1 %v14495_v31 }
 0x2b5   : > { %6258 = vmatprep.mubr.bf16.mxu1 %v13930_v46  ;;  %6380 = vmatpush1.bf16.msra.mxu1 %v12981_v57  ;;  %v12993_v57 = vld [vmem:[%s17752_s15 + $0xba0] ss:$24 sps:$4 sm:$0xff]  }
 0x2b6   : > { %7081 = vmatmul.mubr.bf16.gmra.mrb[208].mxu0 %v14536_v17  ;;  %6381 = vmatprep.subr.bf16.mxu1 %v12986_v55  ;;  %v12998_v55 = vld [vmem:[%s17752_s15 + $0xbd4] ss:$24 sps:$4 sm:$0xff]  }
 0x2b7   : > { %7090 = vmatprep.mubr.bf16.mxu0 %v13982_v26 }
 0x2b9   : > { %6382 = vmatpush1.bf16.msra.mxu1 %v12984_v60  ;;  %v12996_v60 = vld [vmem:[%s17752_s15 + $0xbd0] ss:$24 sps:$4 sm:$0xff]  }
 0x2ba   : > { %6383 = vmatprep.subr.bf16.mxu1 %v12989_v2  ;;  %v13001_v2 = vld [vmem:[%s17752_s15 + $0xc04] ss:$24 sps:$4 sm:$0xff]  }
 0x2bc   : > { %6259 = vmatmul.mubr.bf16.gmra.mrb[68].mxu1 %v14512_v39 }
 0x2bd   : > { %6268 = vmatprep.mubr.bf16.mxu1 %v13938_v53  ;;  %6384 = vmatpush1.bf16.msra.mxu1 %v12987_v21  ;;  %v2015_v21 = vpop.f32.mrb[96].mxu0 }
 0x2be   : > { %7091 = vmatmul.mubr.bf16.gmra.mrb[212].mxu0 %v14534_v3  ;;  %6385 = vmatprep.subr.bf16.mxu1 %v12992_v40  ;;  %v2017_v40 = vpop.f32.mrb[97].mxu0 }
 0x2bf   : > { %7100 = vmatprep.mubr.bf16.mxu0 %v13996_v37 }
 0x2c1   : > { %6386 = vmatpush1.bf16.msra.mxu1 %v12990_v22  ;;  %v2019_v22 = vpop.f32.mrb[98].mxu0 }
 0x2c2   : > { %6387 = vmatprep.subr.bf16.mxu1 %v12995_v45  ;;  %v14903_v45 = vpack.c.bf16 %v2019_v22, %v2015_v21 }
 0x2c4   : > { %6269 = vmatmul.mubr.bf16.gmra.mrb[72].mxu1 %v14510_v47  ;;  %17927 = vst [vmem:[#allocation59_spill] sm:$0xff] %v14903_v45 }
 0x2c5   : > { %6278 = vmatprep.mubr.bf16.mxu1 %v13952_v63  ;;  %6388 = vmatpush1.bf16.msra.mxu1 %v12993_v57  ;;  %v2021_v57 = vpop.f32.mrb[99].mxu0 }
 0x2c6   : > { %7101 = vmatmul.mubr.bf16.gmra.mrb[216].mxu0 %v14551_v23  ;;  %6389 = vmatprep.subr.bf16.mxu1 %v12998_v55  ;;  %v14905_v55 = vpack.c.bf16 %v2021_v57, %v2017_v40  ;;  %v14907_v63 = vpop.f32.mrb[100].mxu0  ;;  %v17936_v40 = vmov 0  }
 0x2c7   : > { %7110 = vmatprep.mubr.bf16.mxu0 %v14004_v48  ;;  %17929 = vst [vmem:[#allocation61_spill] sm:$0xff] %v14907_v63 }
 0x2c8   : > { %17928 = vst [vmem:[#allocation60_spill] sm:$0xff] %v14905_v55 }
 0x2c9   : > { %6390 = vmatpush1.bf16.msra.mxu1 %v12996_v60  ;;  %v14909_v60 = vpop.f32.mrb[101].mxu0 }
 0x2ca   : > { %6552 = vmatprep.subr.bf16.mxu1 %v13001_v2  ;;  %17930 = vst [vmem:[#allocation62_spill] sm:$0xff] %v14909_v60  ;;  %v14911_v2 = vpop.f32.mrb[102].mxu0 }
 0x2cb   : > { %17931 = vst [vmem:[#allocation63_spill] sm:$0xff] %v14911_v2 }
 0x2cc   : > { %6279 = vmatmul.mubr.bf16.gmra.mrb[76].mxu1 %v14524_v33  ;;  %v14913_v33 = vpop.f32.mrb[103].mxu0 }
 0x2cd   : > { %6288 = vmatprep.mubr.bf16.mxu1 %v13960_v6  ;;  %17932 = vst [vmem:[#allocation64_spill] sm:$0xff] %v14913_v33  ;;  %v14916_v6 = vpop.f32.mrb[104].mxu0 }
 0x2ce   : > { %7111 = vmatmul.mubr.bf16.gmra.mrb[220].mxu0 %v14548_v16  ;;  %17933 = vst [vmem:[#allocation65_spill] sm:$0xff] %v14916_v6  ;;  %v14919_v47 = vpop.f32.mrb[105].mxu0  ;;  %v13005_v6 = vld [vmem:[%s17752_s15 + $0x608] ss:$24 sps:$4 sm:$0xff]  }
 0x2cf   : > { %7120 = vmatprep.mubr.bf16.mxu0 %v14018_v61  ;;  %17934 = vst [vmem:[#allocation66_spill] sm:$0xff] %v14919_v47  ;;  %v14922_v21 = vpop.f32.mrb[106].mxu0 }
 0x2d0   : > { %17935 = vst [vmem:[#allocation67_spill] sm:$0xff] %v14922_v21  ;;  %v14925_v22 = vpop.f32.mrb[107].mxu0  ;;  %v13013_v21 = vld [vmem:[%s17752_s15 + $0x63c] ss:$24 sps:$4 sm:$0xff]  }
 0x2d1   : > { %17937 = vst [vmem:[#allocation68_spill] sm:$0xff] %v14925_v22  ;;  %v14927_v57 = vpop.f32.mrb[108].mxu0 }
 0x2d2   : > { %17938 = vst [vmem:[#allocation69_spill] sm:$0xff] %v14927_v57  ;;  %v14929_v2 = vpop.f32.mrb[109].mxu0 }
 0x2d3   : > { %17939 = vst [vmem:[#allocation70_spill] sm:$0xff] %v14929_v2  ;;  %v14931_v33 = vpop.f32.mrb[110].mxu0  ;;  %v13014_v2 = vld [vmem:[%s17752_s15 + $0x668] ss:$24 sps:$4 sm:$0xff]  }
 0x2d4   : > { %6289 = vmatmul.mubr.bf16.gmra.mrb[80].mxu1 %v14522_v59  ;;  %17940 = vst [vmem:[#allocation71_spill] sm:$0xff] %v14931_v33  ;;  %v14936_v60 = vpop.f32.mrb[111].mxu0  ;;  %v13011_v33 = vld [vmem:[%s17752_s15 + $0x638] ss:$24 sps:$4 sm:$0xff]  }
 0x2d5   : > { %6298 = vmatprep.mubr.bf16.mxu1 %v13974_v19  ;;  %17941 = vst [vmem:[#allocation72_spill] sm:$0xff] %v14936_v60  ;;  %v13016_v60 = vld [vmem:[%s17752_s15 + $0x66c] ss:$24 sps:$4 sm:$0xff]   ;;  %v14958_v57 = vpop.f32.mrb[112].mxu0 }
 0x2d6   : > { %7121 = vmatmul.mubr.bf16.gmra.mrb[224].mxu0 %v14563_v52  ;;  %17942 = vst [vmem:[#allocation73_spill] sm:$0xff] %v14958_v57  ;;  %v13025_v57 = vld [vmem:[%s17752_s15 + $0x6cc] ss:$24 sps:$4 sm:$0xff]  }
 0x2d7   : > { %7163 = vmatprep.mubr.bf16.mxu0 %v17936_v40 }
 0x2dc   : > { %6299 = vmatmul.mubr.bf16.gmra.mrb[84].mxu1 %v14536_v17 }
 0x2dd   : > { %6308 = vmatprep.mubr.bf16.mxu1 %v13982_v26 }
 0x2de   : > { %7164 = vmatmul.mubr.bf16.vlgmr.msra.gmra.mrb[164].mxu0 %v17936_v40 }
 0x2df   : > { %7173 = vmatprep.mubr.bf16.mxu0 %v14545_v18  ;;  %7325 = vmatpush1.bf16.msra.mxu0 %v13005_v6  ;;  %v13022_v6 = vld [vmem:[%s17752_s15 + $0x69c] ss:$24 sps:$4 sm:$0xff]  }
 0x2e0   : > { %7326 = vmatprep.subr.bf16.mxu0 %v13013_v21  ;;  %v14961_v21 = vpop.f32.mrb[113].mxu0 }
 0x2e1   : > { %17943 = vst [vmem:[#allocation74_spill] sm:$0xff] %v14961_v21 }
 0x2e3   : > { %7327 = vmatpush1.bf16.msra.mxu0 %v13011_v33  ;;  %v14964_v33 = vpop.f32.mrb[114].mxu0 }
 0x2e4   : > { %6309 = vmatmul.mubr.bf16.gmra.mrb[88].mxu1 %v14534_v3  ;;  %7328 = vmatprep.subr.bf16.mxu0 %v13016_v60  ;;  %17944 = vst [vmem:[#allocation75_spill] sm:$0xff] %v14964_v33  ;;  %v13020_v60 = vld [vmem:[%s17752_s15 + $0x698] ss:$24 sps:$4 sm:$0xff]   ;;  %v14970_v22 = vpop.f32.mrb[115].mxu0 }
 0x2e5   : > { %6318 = vmatprep.mubr.bf16.mxu1 %v13996_v37  ;;  %17945 = vst [vmem:[#allocation76_spill] sm:$0xff] %v14970_v22  ;;  %v14975_v47 = vpop.f32.mrb[116].mxu0 }
 0x2e6   : > { %7174 = vmatmul.mubr.bf16.gmra.mrb[168].mxu0 %v14543_v8  ;;  %17946 = vst [vmem:[#allocation77_spill] sm:$0xff] %v14975_v47  ;;  %v14977_v21 = vpop.f32.mrb[117].mxu0 }
 0x2e7   : > { %7183 = vmatprep.mubr.bf16.mxu0 %v14557_v13  ;;  %7329 = vmatpush1.bf16.msra.mxu0 %v13014_v2  ;;  %17947 = vst [vmem:[#allocation78_spill] sm:$0xff] %v14977_v21  ;;  %v14979_v63 = vpop.f32.mrb[118].mxu0  ;;  %v13023_v2 = vld [vmem:[%s17752_s15 + $0x6c8] ss:$24 sps:$4 sm:$0xff]  }
 0x2e8   : > { %7330 = vmatprep.subr.bf16.mxu0 %v13022_v6  ;;  %17948 = vst [vmem:[#allocation79_spill] sm:$0xff] %v14979_v63  ;;  %v14984_v33 = vpop.f32.mrb[119].mxu0  ;;  %v13031_v6 = vld [vmem:[%s17752_s15 + $0x6fc] ss:$24 sps:$4 sm:$0xff]  }
 0x2e9   : > { %17949 = vst [vmem:[#allocation80_spill] sm:$0xff] %v14984_v33  ;;  %v13032_v33 = vld [vmem:[%s17752_s15 + $0x728] ss:$24 sps:$4 sm:$0xff]   ;;  %v15006_v63 = vpop.f32.mrb[120].mxu0 }
 0x2ea   : > { %17950 = vst [vmem:[#allocation81_spill] sm:$0xff] %v15006_v63  ;;  %v13043_v63 = vld [vmem:[%s17752_s15 + $0x78c] ss:$24 sps:$4 sm:$0xff]  }
 0x2eb   : > { %7331 = vmatpush1.bf16.msra.mxu0 %v13020_v60  ;;  %v13029_v60 = vld [vmem:[%s17752_s15 + $0x6f8] ss:$24 sps:$4 sm:$0xff]  }
 0x2ec   : > { %6319 = vmatmul.mubr.bf16.gmra.mrb[92].mxu1 %v14551_v23  ;;  %7332 = vmatprep.subr.bf16.mxu0 %v13025_v57  ;;  %v13034_v57 = vld [vmem:[%s17752_s15 + $0x72c] ss:$24 sps:$4 sm:$0xff]  }
 0x2ed   : > { %6328 = vmatprep.mubr.bf16.mxu1 %v14004_v48 }
 0x2ee   : > { %7184 = vmatmul.mubr.bf16.gmra.mrb[172].mxu0 %v14555_v34 }
 0x2ef   : > { %7193 = vmatprep.mubr.bf16.mxu0 %v14572_v51  ;;  %7333 = vmatpush1.bf16.msra.mxu0 %v13023_v2  ;;  %v13040_v2 = vld [vmem:[%s17752_s15 + $0x75c] ss:$24 sps:$4 sm:$0xff]  }
 0x2f0   : > { %7334 = vmatprep.subr.bf16.mxu0 %v13031_v6  ;;  %v15009_v6 = vpop.f32.mrb[121].mxu0 }
 0x2f1   : > { %17951 = vst [vmem:[#allocation82_spill] sm:$0xff] %v15009_v6 }
 0x2f3   : > { %7335 = vmatpush1.bf16.msra.mxu0 %v13029_v60  ;;  %v15012_v60 = vpop.f32.mrb[122].mxu0 }
 0x2f4   : > { %6329 = vmatmul.mubr.bf16.gmra.mrb[96].mxu1 %v14548_v16  ;;  %7336 = vmatprep.subr.bf16.mxu0 %v13034_v57  ;;  %17952 = vst [vmem:[#allocation83_spill] sm:$0xff] %v15012_v60  ;;  %v13038_v57 = vld [vmem:[%s17752_s15 + $0x758] ss:$24 sps:$4 sm:$0xff]   ;;  %v15018_v21 = vpop.f32.mrb[123].mxu0 }
 0x2f5   : > { %6338 = vmatprep.mubr.bf16.mxu1 %v14018_v61  ;;  %17953 = vst [vmem:[#allocation84_spill] sm:$0xff] %v15018_v21  ;;  %v15023_v47 = vpop.f32.mrb[124].mxu0 }
 0x2f6   : > { %7194 = vmatmul.mubr.bf16.gmra.mrb[176].mxu0 %v14570_v0  ;;  %17954 = vst [vmem:[#allocation85_spill] sm:$0xff] %v15023_v47  ;;  %v15025_v6 = vpop.f32.mrb[125].mxu0 }
 0x2f7   : > { %7203 = vmatprep.mubr.bf16.mxu0 %v14580_v5  ;;  %7337 = vmatpush1.bf16.msra.mxu0 %v13032_v33  ;;  %17955 = vst [vmem:[#allocation86_spill] sm:$0xff] %v15025_v6  ;;  %v15027_v22 = vpop.f32.mrb[126].mxu0  ;;  %v13041_v33 = vld [vmem:[%s17752_s15 + $0x788] ss:$24 sps:$4 sm:$0xff]  }
 0x2f8   : > { %7338 = vmatprep.subr.bf16.mxu0 %v13040_v2  ;;  %17956 = vst [vmem:[#allocation87_spill] sm:$0xff] %v15027_v22  ;;  %v15032_v60 = vpop.f32.mrb[127].mxu0  ;;  %v13049_v2 = vld [vmem:[%s17752_s15 + $0x7bc] ss:$24 sps:$4 sm:$0xff]  }
 0x2f9   : > { %17957 = vst [vmem:[#allocation88_spill] sm:$0xff] %v15032_v60  ;;  %v13050_v60 = vld [vmem:[%s17752_s15 + $0x7e8] ss:$24 sps:$4 sm:$0xff]   ;;  %v15054_v22 = vpop.f32.mrb[128].mxu0 }
 0x2fa   : > { %17958 = vst [vmem:[#allocation89_spill] sm:$0xff] %v15054_v22  ;;  %v13061_v22 = vld [vmem:[%s17752_s15 + $0x84c] ss:$24 sps:$4 sm:$0xff]  }
 0x2fb   : > { %7339 = vmatpush1.bf16.msra.mxu0 %v13038_v57  ;;  %v13047_v57 = vld [vmem:[%s17752_s15 + $0x7b8] ss:$24 sps:$4 sm:$0xff]  }
 0x2fc   : > { %6339 = vmatmul.mubr.bf16.gmra.mrb[100].mxu1 %v14563_v52  ;;  %7340 = vmatprep.subr.bf16.mxu0 %v13043_v63  ;;  %v13052_v63 = vld [vmem:[%s17752_s15 + $0x7ec] ss:$24 sps:$4 sm:$0xff]  }
 0x2fd   : > { %6348 = vmatprep.mubr.bf16.mxu1 %v14028_v7 }
 0x2fe   : > { %7204 = vmatmul.mubr.bf16.gmra.mrb[180].mxu0 %v14578_v56 }
 0x2ff   : > { %7213 = vmatprep.mubr.bf16.mxu0 %v14588_v10  ;;  %7341 = vmatpush1.bf16.msra.mxu0 %v13041_v33  ;;  %v13058_v33 = vld [vmem:[%s17752_s15 + $0x81c] ss:$24 sps:$4 sm:$0xff]  }
 0x300   : > { %7342 = vmatprep.subr.bf16.mxu0 %v13049_v2  ;;  %v15057_v2 = vpop.f32.mrb[129].mxu0 }
 0x301   : > { %17959 = vst [vmem:[#allocation90_spill] sm:$0xff] %v15057_v2 }
 0x303   : > { %7343 = vmatpush1.bf16.msra.mxu0 %v13047_v57  ;;  %v15060_v57 = vpop.f32.mrb[130].mxu0 }
 0x304   : > { %6349 = vmatmul.mubr.bf16.gmra.mrb[104].mxu1 %v14560_v49  ;;  %7344 = vmatprep.subr.bf16.mxu0 %v13052_v63  ;;  %17960 = vst [vmem:[#allocation91_spill] sm:$0xff] %v15060_v57  ;;  %v13056_v63 = vld [vmem:[%s17752_s15 + $0x818] ss:$24 sps:$4 sm:$0xff]   ;;  %v15066_v6 = vpop.f32.mrb[131].mxu0 }
 0x305   : > { %6391 = vmatprep.mubr.bf16.mxu1 %v14545_v18  ;;  %17961 = vst [vmem:[#allocation92_spill] sm:$0xff] %v15066_v6  ;;  %v15071_v47 = vpop.f32.mrb[132].mxu0  ;;  %v12999_v57 = vld [vmem:[%s17752_s15 + $0xc00] ss:$24 sps:$4 sm:$0xff]  }
 0x306   : > { %7214 = vmatmul.mubr.bf16.gmra.mrb[184].mxu0 %v14586_v20  ;;  %17962 = vst [vmem:[#allocation93_spill] sm:$0xff] %v15071_v47  ;;  %v15076_v2 = vpop.f32.mrb[133].mxu0 }
 0x307   : > { %7223 = vmatprep.mubr.bf16.mxu0 %v14596_v41  ;;  %7345 = vmatpush1.bf16.msra.mxu0 %v13050_v60  ;;  %17963 = vst [vmem:[#allocation94_spill] sm:$0xff] %v15076_v2  ;;  %v13004_v60 = vld [vmem:[%s17752_s15 + $0xc34] ss:$24 sps:$4 sm:$0xff]   ;;  %v15081_v21 = vpop.f32.mrb[134].mxu0 }
 0x308   : > { %7346 = vmatprep.subr.bf16.mxu0 %v13058_v33  ;;  %17964 = vst [vmem:[#allocation95_spill] sm:$0xff] %v15081_v21  ;;  %v13059_v33 = vld [vmem:[%s17752_s15 + $0x848] ss:$24 sps:$4 sm:$0xff]   ;;  %v15086_v6 = vpop.f32.mrb[135].mxu0  ;;  %v13067_v2 = vld [vmem:[%s17752_s15 + $0x87c] ss:$24 sps:$4 sm:$0xff]  }
 0x309   : > { %17965 = vst [vmem:[#allocation96_spill] sm:$0xff] %v15086_v6  ;;  %v15096_v21 = vpop.f32.mrb[136].mxu0 }
 0x30a   : > { %17966 = vst [vmem:[#allocation97_spill] sm:$0xff] %v15096_v21  ;;  %v15102_v6 = vpop.f32.mrb[137].mxu0 }
 0x30b   : > { %7347 = vmatpush1.bf16.msra.mxu0 %v13056_v63  ;;  %v13002_v63 = vld [vmem:[%s17752_s15 + $0xc30] ss:$24 sps:$4 sm:$0xff]   ;;  %17967 = vst [vmem:[#allocation98_spill] sm:$0xff] %v15102_v6  ;;  %v15108_v47 = vpop.f32.mrb[138].mxu0  ;;  %v13008_v6 = vld [vmem:[%s17752_s15 + $0xc60] ss:$24 sps:$4 sm:$0xff]  }
 0x30c   : > { %6392 = vmatmul.mubr.bf16.vlgmr.msra.gmra.mrb[44].mxu1 %v14543_v8  ;;  %7348 = vmatprep.subr.bf16.mxu0 %v13061_v22  ;;  %v13010_v22 = vld [vmem:[%s17752_s15 + $0xc64] ss:$24 sps:$4 sm:$0xff]   ;;  %17968 = vst [vmem:[#allocation99_spill] sm:$0xff] %v15108_v47  ;;  %v15113_v21 = vpop.f32.mrb[139].mxu0 }
 0x30d   : > { %6401 = vmatprep.mubr.bf16.mxu1 %v14557_v13  ;;  %6553 = vmatpush1.bf16.msra.mxu1 %v12999_v57  ;;  %v13065_v57 = vld [vmem:[%s17752_s15 + $0x878] ss:$24 sps:$4 sm:$0xff]   ;;  %17969 = vst [vmem:[#allocation100_spill] sm:$0xff] %v15113_v21  ;;  %v15118_v40 = vpop.f32.mrb[140].mxu0 }
 0x30e   : > { %7224 = vmatmul.mubr.bf16.gmra.mrb[188].mxu0 %v14594_v38  ;;  %6554 = vmatprep.subr.bf16.mxu1 %v13004_v60  ;;  %v13070_v60 = vld [vmem:[%s17752_s15 + $0x8ac] ss:$24 sps:$4 sm:$0xff]   ;;  %17970 = vst [vmem:[#allocation101_spill] sm:$0xff] %v15118_v40  ;;  %v15123_v47 = vpop.f32.mrb[141].mxu0 }
 0x30f   : > { %7233 = vmatprep.mubr.bf16.mxu0 %v14604_v62  ;;  %7349 = vmatpush1.bf16.msra.mxu0 %v13059_v33  ;;  %v13019_v33 = vld [vmem:[%s17752_s15 + $0xc94] ss:$24 sps:$4 sm:$0xff]   ;;  %17971 = vst [vmem:[#allocation102_spill] sm:$0xff] %v15123_v47  ;;  %v15128_v21 = vpop.f32.mrb[142].mxu0 }
 0x310   : > { %7350 = vmatprep.subr.bf16.mxu0 %v13067_v2  ;;  %v13068_v2 = vld [vmem:[%s17752_s15 + $0x8a8] ss:$24 sps:$4 sm:$0xff]   ;;  %17972 = vst [vmem:[#allocation103_spill] sm:$0xff] %v15128_v21 }
 0x311   : > { %6555 = vmatpush1.bf16.msra.mxu1 %v13002_v63  ;;  %v13076_v63 = vld [vmem:[%s17752_s15 + $0x8dc] ss:$24 sps:$4 sm:$0xff]  }
 0x312   : > { %6556 = vmatprep.subr.bf16.mxu1 %v13010_v22  ;;  %v15134_v22 = vpop.f32.mrb[143].mxu0 }
 0x313   : > { %7351 = vmatpush1.bf16.msra.mxu0 %v13065_v57  ;;  %17973 = vst [vmem:[#allocation104_spill] sm:$0xff] %v15134_v22  ;;  %v13017_v57 = vld [vmem:[%s17752_s15 + $0xc90] ss:$24 sps:$4 sm:$0xff]   ;;  %v15140_v47 = vpop.f32.mrb[144].mxu0 }
 0x314   : > { %6402 = vmatmul.mubr.bf16.gmra.mrb[48].mxu1 %v14555_v34  ;;  %7352 = vmatprep.subr.bf16.mxu0 %v13070_v60  ;;  %17974 = vst [vmem:[#allocation105_spill] sm:$0xff] %v15140_v47  ;;  %v13028_v60 = vld [vmem:[%s17752_s15 + $0xcc4] ss:$24 sps:$4 sm:$0xff]   ;;  %v15146_v21 = vpop.f32.mrb[145].mxu0 }
 0x315   : > { %6411 = vmatprep.mubr.bf16.mxu1 %v14572_v51  ;;  %6557 = vmatpush1.bf16.msra.mxu1 %v13008_v6  ;;  %17975 = vst [vmem:[#allocation106_spill] sm:$0xff] %v15146_v21  ;;  %v13074_v6 = vld [vmem:[%s17752_s15 + $0x8d8] ss:$24 sps:$4 sm:$0xff]   ;;  %v15152_v22 = vpop.f32.mrb[146].mxu0 }
 0x316   : > { %7234 = vmatmul.mubr.bf16.gmra.mrb[192].mxu0 %v14602_v54  ;;  %6558 = vmatprep.subr.bf16.mxu1 %v13019_v33  ;;  %17976 = vst [vmem:[#allocation107_spill] sm:$0xff] %v15152_v22  ;;  %v15154_v47 = vpop.f32.mrb[147].mxu0  ;;  %v13026_v33 = vld [vmem:[%s17752_s15 + $0xcc0] ss:$24 sps:$4 sm:$0xff]  }
 0x317   : > { %7243 = vmatprep.mubr.bf16.mxu0 %v14612_v24  ;;  %7353 = vmatpush1.bf16.msra.mxu0 %v13068_v2  ;;  %17977 = vst [vmem:[#allocation108_spill] sm:$0xff] %v15154_v47  ;;  %v15159_v40 = vpop.f32.mrb[148].mxu0  ;;  %v13037_v2 = vld [vmem:[%s17752_s15 + $0xcf4] ss:$24 sps:$4 sm:$0xff]   ;;  %v13110_v22 = vld [vmem:[%s17752_s15 + $0x968] ss:$24 sps:$4 sm:$0xff]  }
 0x318   : > { %7354 = vmatprep.subr.bf16.mxu0 %v13076_v63  ;;  %17978 = vst [vmem:[#allocation109_spill] sm:$0xff] %v15159_v40  ;;  %v15164_v21 = vpop.f32.mrb[149].mxu0 }
 0x319   : > { %6559 = vmatpush1.bf16.msra.mxu1 %v13017_v57  ;;  %17979 = vst [vmem:[#allocation110_spill] sm:$0xff] %v15164_v21  ;;  %v15166_v51 = vpop.f32.mrb[150].mxu0  ;;  %v13103_v57 = vld [vmem:[%s17752_s15 + $0x90c] ss:$24 sps:$4 sm:$0xff]  }
 0x31a   : > { %6560 = vmatprep.subr.bf16.mxu1 %v13028_v60  ;;  %17980 = vst [vmem:[#allocation111_spill] sm:$0xff] %v15166_v51  ;;  %v15169_v63 = vpop.f32.mrb[151].mxu0  ;;  %v13035_v60 = vld [vmem:[%s17752_s15 + $0xcf0] ss:$24 sps:$4 sm:$0xff]  }
 0x31b   : > { %7355 = vmatpush1.bf16.msra.mxu0 %v13074_v6  ;;  %17981 = vst [vmem:[#allocation112_spill] sm:$0xff] %v15169_v63  ;;  %v15178_v40 = vpop.f32.mrb[152].mxu0  ;;  %v13046_v6 = vld [vmem:[%s17752_s15 + $0xd24] ss:$24 sps:$4 sm:$0xff]  }
 0x31c   : > { %6412 = vmatmul.mubr.bf16.gmra.mrb[52].mxu1 %v14570_v0  ;;  %17982 = vst [vmem:[#allocation113_spill] sm:$0xff] %v15178_v40  ;;  %v15184_v63 = vpop.f32.mrb[153].mxu0  ;;  %7517 = vmatprep.subr.bf16.mxu0 %v13103_v57  ;;  %v13044_v40 = vld [vmem:[%s17752_s15 + $0xd20] ss:$24 sps:$4 sm:$0xff]  }
 0x31d   : > { %6421 = vmatprep.mubr.bf16.mxu1 %v14580_v5  ;;  %6561 = vmatpush1.bf16.msra.mxu1 %v13026_v33  ;;  %17983 = vst [vmem:[#allocation114_spill] sm:$0xff] %v15184_v63  ;;  %v15187_v51 = vpop.f32.mrb[154].mxu0 }
 0x31e   : > { %7244 = vmatmul.mubr.bf16.gmra.mrb[196].mxu0 %v14610_v4  ;;  %6562 = vmatprep.subr.bf16.mxu1 %v13037_v2  ;;  %17984 = vst [vmem:[#allocation115_spill] sm:$0xff] %v15187_v51  ;;  %v15189_v33 = vpop.f32.mrb[155].mxu0  ;;  %v13055_v2 = vld [vmem:[%s17752_s15 + $0xd54] ss:$24 sps:$4 sm:$0xff]  }
 0x31f   : > { %7253 = vmatprep.mubr.bf16.mxu0 %v14620_v32  ;;  %17985 = vst [vmem:[#allocation116_spill] sm:$0xff] %v15189_v33  ;;  %v17997_v33 = vld [vmem:[#allocation53_spill] sm:$0xff] }
 0x320   : > { %v15194_v21 = vpop.f32.mrb[156].mxu0  ;;  %v13112_v51 = vld [vmem:[%s17752_s15 + $0x96c] ss:$24 sps:$4 sm:$0xff]  }
 0x321   : > { %6563 = vmatpush1.bf16.msra.mxu1 %v13035_v60  ;;  %17986 = vst [vmem:[#allocation117_spill] sm:$0xff] %v15194_v21  ;;  %v15199_v63 = vpop.f32.mrb[157].mxu0  ;;  %v13053_v60 = vld [vmem:[%s17752_s15 + $0xd50] ss:$24 sps:$4 sm:$0xff]  }
 0x322   : > { %6564 = vmatprep.subr.bf16.mxu1 %v13046_v6  ;;  %17987 = vst [vmem:[#allocation118_spill] sm:$0xff] %v15199_v63  ;;  %v15201_v47 = vpop.f32.mrb[158].mxu0  ;;  %v13064_v6 = vld [vmem:[%s17752_s15 + $0xd84] ss:$24 sps:$4 sm:$0xff]  }
 0x323   : > { %17988 = vst [vmem:[#allocation119_spill] sm:$0xff] %v15201_v47  ;;  %v15204_v57 = vpop.f32.mrb[159].mxu0 }
 0x324   : > { %6422 = vmatmul.mubr.bf16.gmra.mrb[56].mxu1 %v14578_v56  ;;  %17989 = vst [vmem:[#allocation120_spill] sm:$0xff] %v15204_v57  ;;  %v13062_v57 = vld [vmem:[%s17752_s15 + $0xd80] ss:$24 sps:$4 sm:$0xff]  }
 0x325   : > { %6431 = vmatprep.mubr.bf16.mxu1 %v14588_v10  ;;  %6565 = vmatpush1.bf16.msra.mxu1 %v13044_v40  ;;  %v13073_v40 = vld [vmem:[%s17752_s15 + $0xdb4] ss:$24 sps:$4 sm:$0xff]  }
 0x326   : > { %7254 = vmatmul.mubr.bf16.gmra.mrb[200].mxu0 %v14618_v27  ;;  %6566 = vmatprep.subr.bf16.mxu1 %v13055_v2 }
 0x327   : > { %7263 = vmatprep.mubr.bf16.mxu0 %v14628_v42 }
 0x328   : > { %v15218_v47 = vpop.f32.mrb[160].mxu0 }
 0x329   : > { %6567 = vmatpush1.bf16.msra.mxu1 %v13053_v60  ;;  %17990 = vst [vmem:[#allocation121_spill] sm:$0xff] %v15218_v47  ;;  %v15223_v63 = vpop.f32.mrb[161].mxu0  ;;  %v13071_v60 = vld [vmem:[%s17752_s15 + $0xdb0] ss:$24 sps:$4 sm:$0xff]   ;;  %v13089_v47 = vld [vmem:[%s17752_s15 + $0xea0] ss:$24 sps:$4 sm:$0xff]  }
 0x32a   : > { %6568 = vmatprep.subr.bf16.mxu1 %v13064_v6  ;;  %17991 = vst [vmem:[#allocation122_spill] sm:$0xff] %v15223_v63  ;;  %v15225_v2 = vpop.f32.mrb[162].mxu0  ;;  %v13079_v6 = vld [vmem:[%s17752_s15 + $0xde4] ss:$24 sps:$4 sm:$0xff]  }
 0x32b   : > { %17992 = vst [vmem:[#allocation123_spill] sm:$0xff] %v15225_v2  ;;  %v15228_v21 = vpop.f32.mrb[163].mxu0  ;;  %v13083_v2 = vld [vmem:[%s17752_s15 + $0xe40] ss:$24 sps:$4 sm:$0xff]  }
 0x32c   : > { %6432 = vmatmul.mubr.bf16.gmra.mrb[60].mxu1 %v14586_v20  ;;  %17993 = vst [vmem:[#allocation124_spill] sm:$0xff] %v15228_v21  ;;  %v13077_v21 = vld [vmem:[%s17752_s15 + $0xde0] ss:$24 sps:$4 sm:$0xff]  }
 0x32d   : > { %6441 = vmatprep.mubr.bf16.mxu1 %v14596_v41  ;;  %6569 = vmatpush1.bf16.msra.mxu1 %v13062_v57  ;;  %v13082_v57 = vld [vmem:[%s17752_s15 + $0xe14] ss:$24 sps:$4 sm:$0xff]   ;;  %v17995_v63 = vld [vmem:[#allocation51_spill] sm:$0xff] }
 0x32e   : > { %7264 = vmatmul.mubr.bf16.gmra.mrb[204].mxu0 %v14626_v29  ;;  %6570 = vmatprep.subr.bf16.mxu1 %v13073_v40  ;;  %v13080_v40 = vld [vmem:[%s17752_s15 + $0xe10] ss:$24 sps:$4 sm:$0xff]  }
 0x32f   : > { %7273 = vmatprep.mubr.bf16.mxu0 %v14648_v50 }
 0x331   : > { %6571 = vmatpush1.bf16.msra.mxu1 %v13071_v60  ;;  %v13085_v60 = vld [vmem:[%s17752_s15 + $0xe44] ss:$24 sps:$4 sm:$0xff]  }
 0x332   : > { %6572 = vmatprep.subr.bf16.mxu1 %v13079_v6  ;;  %v17994_v6 = vld [vmem:[#allocation52_spill] sm:$0xff] }
 0x334   : > { %6442 = vmatmul.mubr.bf16.gmra.mrb[64].mxu1 %v14594_v38 }
 0x335   : > { %6451 = vmatprep.mubr.bf16.mxu1 %v14604_v62  ;;  %6573 = vmatpush1.bf16.msra.mxu1 %v13077_v21  ;;  %v13088_v21 = vld [vmem:[%s17752_s15 + $0xe74] ss:$24 sps:$4 sm:$0xff]  }
 0x336   : > { %7274 = vmatmul.mubr.bf16.gmra.mrb[208].mxu0 %v14643_v28  ;;  %6574 = vmatprep.subr.bf16.mxu1 %v13082_v57  ;;  %v13086_v57 = vld [vmem:[%s17752_s15 + $0xe70] ss:$24 sps:$4 sm:$0xff]  }
 0x337   : > { %7283 = vmatprep.mubr.bf16.mxu0 %v17994_v6 }
 0x339   : > { %6575 = vmatpush1.bf16.msra.mxu1 %v13080_v40  ;;  %v13091_v40 = vld [vmem:[%s17752_s15 + $0xea4] ss:$24 sps:$4 sm:$0xff]  }
 0x33a   : > { %6576 = vmatprep.subr.bf16.mxu1 %v13085_v60  ;;  %v17996_v60 = vld [vmem:[#allocation54_spill] sm:$0xff] }
 0x33c   : > { %6452 = vmatmul.mubr.bf16.gmra.mrb[68].mxu1 %v14602_v54 }
 0x33d   : > { %6461 = vmatprep.mubr.bf16.mxu1 %v14612_v24  ;;  %6577 = vmatpush1.bf16.msra.mxu1 %v13083_v2  ;;  %v13094_v2 = vld [vmem:[%s17752_s15 + $0xed4] ss:$24 sps:$4 sm:$0xff]  }
 0x33e   : > { %7284 = vmatmul.mubr.bf16.gmra.mrb[212].mxu0 %v17995_v63  ;;  %6578 = vmatprep.subr.bf16.mxu1 %v13088_v21  ;;  %v13092_v21 = vld [vmem:[%s17752_s15 + $0xed0] ss:$24 sps:$4 sm:$0xff]  }
 0x33f   : > { %7293 = vmatprep.mubr.bf16.mxu0 %v17996_v60 }
 0x341   : > { %6579 = vmatpush1.bf16.msra.mxu1 %v13086_v57  ;;  %v13097_v57 = vld [vmem:[%s17752_s15 + $0xf04] ss:$24 sps:$4 sm:$0xff]  }
 0x342   : > { %6580 = vmatprep.subr.bf16.mxu1 %v13091_v40  ;;  %v17998_v40 = vld [vmem:[#allocation56_spill] sm:$0xff] }
 0x344   : > { %6462 = vmatmul.mubr.bf16.gmra.mrb[72].mxu1 %v14610_v4 }
 0x345   : > { %6471 = vmatprep.mubr.bf16.mxu1 %v14620_v32  ;;  %6581 = vmatpush1.bf16.msra.mxu1 %v13089_v47  ;;  %v17999_v47 = vld [vmem:[#allocation55_spill] sm:$0xff] }
 0x346   : > { %7294 = vmatmul.mubr.bf16.gmra.mrb[216].mxu0 %v17997_v33  ;;  %6582 = vmatprep.subr.bf16.mxu1 %v13094_v2  ;;  %v13101_v2 = vld [vmem:[%s17752_s15 + $0x908] ss:$24 sps:$4 sm:$0xff]  }
 0x347   : > { %7303 = vmatprep.mubr.bf16.mxu0 %v17998_v40 }
 0x349   : > { %6583 = vmatpush1.bf16.msra.mxu1 %v13092_v21  ;;  %v13109_v21 = vld [vmem:[%s17752_s15 + $0x93c] ss:$24 sps:$4 sm:$0xff]  }
 0x34a   : > { %6745 = vmatprep.subr.bf16.mxu1 %v13097_v57  ;;  %v13107_v57 = vld [vmem:[%s17752_s15 + $0x938] ss:$24 sps:$4 sm:$0xff]  }
 0x34c   : > { %6472 = vmatmul.mubr.bf16.gmra.mrb[76].mxu1 %v14618_v27 }
 0x34d   : > { %6481 = vmatprep.mubr.bf16.mxu1 %v14628_v42 }
 0x34e   : > { %7304 = vmatmul.mubr.bf16.gmra.mrb[220].mxu0 %v17999_v47 }
 0x34f   : > { %7313 = vmatprep.mubr.bf16.mxu0 %v14728_v14 }
 0x354   : > { %6482 = vmatmul.mubr.bf16.gmra.mrb[80].mxu1 %v14626_v29 }
 0x355   : > { %6491 = vmatprep.mubr.bf16.mxu1 %v14648_v50 }
 0x356   : > { %7314 = vmatmul.mubr.bf16.gmra.mrb[224].mxu0 %v14723_v43 }
 0x357   : > { %7356 = vmatprep.mubr.bf16.mxu0 %v13890_v30  ;;  %v13098_v30 = vld [vmem:[%s17752_s15 + $0xf30] ss:$24 sps:$4 sm:$0xff]  }
 0x35c   : > { %6492 = vmatmul.mubr.bf16.gmra.mrb[84].mxu1 %v14643_v28 }
 0x35d   : > { %6501 = vmatprep.mubr.bf16.mxu1 %v17994_v6 }
 0x35e   : > { %7357 = vmatmul.mubr.bf16.vlgmr.msra.gmra.mrb[164].mxu0 %v14452_v15  ;;  %v13100_v15 = vld [vmem:[%s17752_s15 + $0xf34] ss:$24 sps:$4 sm:$0xff]  }
 0x35f   : > { %7366 = vmatprep.mubr.bf16.mxu0 %v13894_v44  ;;  %7518 = vmatpush1.bf16.msra.mxu0 %v13101_v2  ;;  %v13118_v2 = vld [vmem:[%s17752_s15 + $0x99c] ss:$24 sps:$4 sm:$0xff]  }
 0x360   : > { %7519 = vmatprep.subr.bf16.mxu0 %v13109_v21  ;;  %v13116_v21 = vld [vmem:[%s17752_s15 + $0x998] ss:$24 sps:$4 sm:$0xff]  }
 0x363   : > { %7520 = vmatpush1.bf16.msra.mxu0 %v13107_v57  ;;  %v13119_v57 = vld [vmem:[%s17752_s15 + $0x9c8] ss:$24 sps:$4 sm:$0xff]  }
 0x364   : > { %6502 = vmatmul.mubr.bf16.gmra.mrb[88].mxu1 %v17995_v63  ;;  %7521 = vmatprep.subr.bf16.mxu0 %v13112_v51  ;;  %v13121_v51 = vld [vmem:[%s17752_s15 + $0x9cc] ss:$24 sps:$4 sm:$0xff]  }
 0x365   : > { %6511 = vmatprep.mubr.bf16.mxu1 %v17996_v60 }
 0x366   : > { %7367 = vmatmul.mubr.bf16.gmra.mrb[168].mxu0 %v14447_v1 }
 0x367   : > { %7376 = vmatprep.mubr.bf16.mxu0 %v13899_v58  ;;  %7522 = vmatpush1.bf16.msra.mxu0 %v13110_v22  ;;  %v13127_v22 = vld [vmem:[%s17752_s15 + $0x9fc] ss:$24 sps:$4 sm:$0xff]  }
 0x368   : > { %7523 = vmatprep.subr.bf16.mxu0 %v13118_v2  ;;  %v13125_v2 = vld [vmem:[%s17752_s15 + $0x9f8] ss:$24 sps:$4 sm:$0xff]  }
 0x36b   : > { %7524 = vmatpush1.bf16.msra.mxu0 %v13116_v21  ;;  %v13130_v21 = vld [vmem:[%s17752_s15 + $0xa2c] ss:$24 sps:$4 sm:$0xff]  }
 0x36c   : > { %6512 = vmatmul.mubr.bf16.gmra.mrb[92].mxu1 %v17997_v33  ;;  %7525 = vmatprep.subr.bf16.mxu0 %v13121_v51  ;;  %v13128_v51 = vld [vmem:[%s17752_s15 + $0xa28] ss:$24 sps:$4 sm:$0xff]  }
 0x36d   : > { %6521 = vmatprep.mubr.bf16.mxu1 %v17998_v40 }
 0x36e   : > { %7377 = vmatmul.mubr.bf16.gmra.mrb[172].mxu0 %v14476_v12 }
 0x36f   : > { %7386 = vmatprep.mubr.bf16.mxu0 %v13907_v9  ;;  %7526 = vmatpush1.bf16.msra.mxu0 %v13119_v57  ;;  %v13136_v57 = vld [vmem:[%s17752_s15 + $0xa5c] ss:$24 sps:$4 sm:$0xff]  }
 0x370   : > { %7527 = vmatprep.subr.bf16.mxu0 %v13127_v22  ;;  %v13134_v22 = vld [vmem:[%s17752_s15 + $0xa58] ss:$24 sps:$4 sm:$0xff]  }
 0x373   : > { %7528 = vmatpush1.bf16.msra.mxu0 %v13125_v2  ;;  %v13139_v2 = vld [vmem:[%s17752_s15 + $0xa8c] ss:$24 sps:$4 sm:$0xff]  }
 0x374   : > { %6522 = vmatmul.mubr.bf16.gmra.mrb[96].mxu1 %v17999_v47  ;;  %7529 = vmatprep.subr.bf16.mxu0 %v13130_v21  ;;  %v13137_v21 = vld [vmem:[%s17752_s15 + $0xa88] ss:$24 sps:$4 sm:$0xff]  }
 0x375   : > { %6531 = vmatprep.mubr.bf16.mxu1 %v14728_v14 }
 0x376   : > { %7387 = vmatmul.mubr.bf16.gmra.mrb[176].mxu0 %v14471_v11 }
 0x377   : > { %7396 = vmatprep.mubr.bf16.mxu0 %v13912_v25  ;;  %7530 = vmatpush1.bf16.msra.mxu0 %v13128_v51  ;;  %v13145_v51 = vld [vmem:[%s17752_s15 + $0xabc] ss:$24 sps:$4 sm:$0xff]  }
 0x378   : > { %7531 = vmatprep.subr.bf16.mxu0 %v13136_v57  ;;  %v13143_v57 = vld [vmem:[%s17752_s15 + $0xab8] ss:$24 sps:$4 sm:$0xff]  }
 0x37b   : > { %7532 = vmatpush1.bf16.msra.mxu0 %v13134_v22  ;;  %v13148_v22 = vld [vmem:[%s17752_s15 + $0xaec] ss:$24 sps:$4 sm:$0xff]  }
 0x37c   : > { %6532 = vmatmul.mubr.bf16.gmra.mrb[100].mxu1 %v14723_v43  ;;  %7533 = vmatprep.subr.bf16.mxu0 %v13139_v2  ;;  %v13146_v2 = vld [vmem:[%s17752_s15 + $0xae8] ss:$24 sps:$4 sm:$0xff]  }
 0x37d   : > { %6541 = vmatprep.mubr.bf16.mxu1 %v14905_v55 }
 0x37e   : > { %7397 = vmatmul.mubr.bf16.gmra.mrb[180].mxu0 %v14500_v35 }
 0x37f   : > { %7406 = vmatprep.mubr.bf16.mxu0 %v13916_v36  ;;  %7534 = vmatpush1.bf16.msra.mxu0 %v13137_v21  ;;  %v13154_v21 = vld [vmem:[%s17752_s15 + $0xb1c] ss:$24 sps:$4 sm:$0xff]  }
 0x380   : > { %7535 = vmatprep.subr.bf16.mxu0 %v13145_v51  ;;  %v13152_v51 = vld [vmem:[%s17752_s15 + $0xb18] ss:$24 sps:$4 sm:$0xff]  }
 0x383   : > { %7536 = vmatpush1.bf16.msra.mxu0 %v13143_v57  ;;  %v13157_v57 = vld [vmem:[%s17752_s15 + $0xb4c] ss:$24 sps:$4 sm:$0xff]  }
 0x384   : > { %6542 = vmatmul.mubr.bf16.gmra.mrb[104].mxu1 %v14903_v45  ;;  %7537 = vmatprep.subr.bf16.mxu0 %v13148_v22  ;;  %v13095_v22 = vld [vmem:[%s17752_s15 + $0xf00] ss:$24 sps:$4 sm:$0xff]  }
 0x385   : > { %6584 = vmatprep.mubr.bf16.mxu1 %v13894_v44 }
 0x386   : > { %7407 = vmatmul.mubr.bf16.gmra.mrb[184].mxu0 %v14495_v31 }
 0x387   : > { %7416 = vmatprep.mubr.bf16.mxu0 %v13930_v46  ;;  %7538 = vmatpush1.bf16.msra.mxu0 %v13146_v2  ;;  %v13155_v2 = vld [vmem:[%s17752_s15 + $0xb48] ss:$24 sps:$4 sm:$0xff]  }
 0x388   : > { %7539 = vmatprep.subr.bf16.mxu0 %v13154_v21  ;;  %v13163_v21 = vld [vmem:[%s17752_s15 + $0xb7c] ss:$24 sps:$4 sm:$0xff]  }
 0x38b   : > { %7540 = vmatpush1.bf16.msra.mxu0 %v13152_v51  ;;  %v13106_v51 = vld [vmem:[%s17752_s15 + $0xf64] ss:$24 sps:$4 sm:$0xff]  }
 0x38c   : > { %6585 = vmatmul.mubr.bf16.vlgmr.msra.gmra.mrb[44].mxu1 %v14447_v1  ;;  %7541 = vmatprep.subr.bf16.mxu0 %v13157_v57  ;;  %v13161_v57 = vld [vmem:[%s17752_s15 + $0xb78] ss:$24 sps:$4 sm:$0xff]  }
 0x38d   : > { %6594 = vmatprep.mubr.bf16.mxu1 %v13899_v58  ;;  %6746 = vmatpush1.bf16.msra.mxu1 %v13095_v22  ;;  %v13166_v22 = vld [vmem:[%s17752_s15 + $0xbac] ss:$24 sps:$4 sm:$0xff]  }
 0x38e   : > { %7417 = vmatmul.mubr.bf16.gmra.mrb[188].mxu0 %v14512_v39  ;;  %6747 = vmatprep.subr.bf16.mxu1 %v13100_v15  ;;  %v13104_v15 = vld [vmem:[%s17752_s15 + $0xf60] ss:$24 sps:$4 sm:$0xff]   ;;  %v13115_v58 = vld [vmem:[%s17752_s15 + $0xf94] ss:$24 sps:$4 sm:$0xff]  }
 0x38f   : > { %7426 = vmatprep.mubr.bf16.mxu0 %v13938_v53  ;;  %7542 = vmatpush1.bf16.msra.mxu0 %v13155_v2  ;;  %v13164_v2 = vld [vmem:[%s17752_s15 + $0xba8] ss:$24 sps:$4 sm:$0xff]  }
 0x390   : > { %7543 = vmatprep.subr.bf16.mxu0 %v13163_v21  ;;  %v13113_v21 = vld [vmem:[%s17752_s15 + $0xf90] ss:$24 sps:$4 sm:$0xff]  }
 0x391   : > { %6748 = vmatpush1.bf16.msra.mxu1 %v13098_v30  ;;  %v13172_v30 = vld [vmem:[%s17752_s15 + $0xbdc] ss:$24 sps:$4 sm:$0xff]  }
 0x392   : > { %6749 = vmatprep.subr.bf16.mxu1 %v13106_v51  ;;  %v18000_v51 = vld [vmem:[#allocation26_spill] sm:$0xff] }
 0x393   : > { %7544 = vmatpush1.bf16.msra.mxu0 %v13161_v57  ;;  %v13124_v57 = vld [vmem:[%s17752_s15 + $0xfc4] ss:$24 sps:$4 sm:$0xff]  }
 0x394   : > { %6595 = vmatmul.mubr.bf16.gmra.mrb[48].mxu1 %v14476_v12  ;;  %7545 = vmatprep.subr.bf16.mxu0 %v13166_v22  ;;  %v18001_v12 = vld [vmem:[#allocation12_spill] sm:$0xff]  ;;  %v13170_v22 = vld [vmem:[%s17752_s15 + $0xbd8] ss:$24 sps:$4 sm:$0xff]  }
 0x395   : > { %6604 = vmatprep.mubr.bf16.mxu1 %v13907_v9  ;;  %6750 = vmatpush1.bf16.msra.mxu1 %v13104_v15  ;;  %v13122_v15 = vld [vmem:[%s17752_s15 + $0xfc0] ss:$24 sps:$4 sm:$0xff]  }
 0x396   : > { %7427 = vmatmul.mubr.bf16.gmra.mrb[192].mxu0 %v18000_v51  ;;  %6751 = vmatprep.subr.bf16.mxu1 %v13115_v58  ;;  %v13133_v58 = vld [vmem:[%s17752_s15 + $0xff4] ss:$24 sps:$4 sm:$0xff]  }
 0x397   : > { %7436 = vmatprep.mubr.bf16.mxu0 %v18001_v12  ;;  %7546 = vmatpush1.bf16.msra.mxu0 %v13164_v2  ;;  %v13199_v2 = vld [vmem:[%s17752_s15 + $0xc0c] ss:$24 sps:$4 sm:$0xff]  }
 0x398   : > { %7547 = vmatprep.subr.bf16.mxu0 %v13172_v30  ;;  %v13131_v30 = vld [vmem:[%s17752_s15 + $0xff0] ss:$24 sps:$4 sm:$0xff]  }
 0x399   : > { %6752 = vmatpush1.bf16.msra.mxu1 %v13113_v21  ;;  %v18002_v21 = vld [vmem:[#allocation29_spill] sm:$0xff] }
 0x39a   : > { %6753 = vmatprep.subr.bf16.mxu1 %v13124_v57  ;;  %v13142_v57 = vld [vmem:[%s17752_s15 + $0x1024] ss:$24 sps:$4 sm:$0xff]  }
 0x39b   : > { %7548 = vmatpush1.bf16.msra.mxu0 %v13170_v22  ;;  %v18003_v22 = vld [vmem:[#allocation13_spill] sm:$0xff] }
 0x39c   : > { %6605 = vmatmul.mubr.bf16.gmra.mrb[52].mxu1 %v14471_v11  ;;  %7710 = vmatprep.subr.bf16.mxu0 %v13199_v2  ;;  %v13160_v2 = vld [vmem:[%s17752_s15 + $0x1084] ss:$24 sps:$4 sm:$0xff]  }
 0x39d   : > { %6614 = vmatprep.mubr.bf16.mxu1 %v13912_v25  ;;  %6754 = vmatpush1.bf16.msra.mxu1 %v13122_v15  ;;  %v13140_v25 = vld [vmem:[%s17752_s15 + $0x1020] ss:$24 sps:$4 sm:$0xff]   ;;  %v13151_v15 = vld [vmem:[%s17752_s15 + $0x1054] ss:$24 sps:$4 sm:$0xff]  }
 0x39e   : > { %7437 = vmatmul.mubr.bf16.gmra.mrb[196].mxu0 %v18002_v21  ;;  %6755 = vmatprep.subr.bf16.mxu1 %v13133_v58  ;;  %v13149_v58 = vld [vmem:[%s17752_s15 + $0x1050] ss:$24 sps:$4 sm:$0xff]  }
 0x39f   : > { %7446 = vmatprep.mubr.bf16.mxu0 %v18003_v22 }
 0x3a1   : > { %6756 = vmatpush1.bf16.msra.mxu1 %v13131_v30  ;;  %v13158_v30 = vld [vmem:[%s17752_s15 + $0x1080] ss:$24 sps:$4 sm:$0xff]  }
 0x3a2   : > { %6757 = vmatprep.subr.bf16.mxu1 %v13142_v57  ;;  %v13167_v57 = vld [vmem:[%s17752_s15 + $0x10b0] ss:$24 sps:$4 sm:$0xff]  }
 0x3a4   : > { %6615 = vmatmul.mubr.bf16.gmra.mrb[56].mxu1 %v14500_v35 }
 0x3a5   : > { %6624 = vmatprep.mubr.bf16.mxu1 %v13916_v36  ;;  %6758 = vmatpush1.bf16.msra.mxu1 %v13140_v25  ;;  %v13169_v25 = vld [vmem:[%s17752_s15 + $0x10b4] ss:$24 sps:$4 sm:$0xff]  }
 0x3a6   : > { %7447 = vmatmul.mubr.bf16.gmra.mrb[200].mxu0 %v14522_v59  ;;  %6759 = vmatprep.subr.bf16.mxu1 %v13151_v15  ;;  %v13175_v15 = vld [vmem:[%s17752_s15 + $0x10e4] ss:$24 sps:$4 sm:$0xff]  }
 0x3a7   : > { %7456 = vmatprep.mubr.bf16.mxu0 %v13974_v19 }
 0x3a9   : > { %6760 = vmatpush1.bf16.msra.mxu1 %v13149_v58  ;;  %v13173_v58 = vld [vmem:[%s17752_s15 + $0x10e0] ss:$24 sps:$4 sm:$0xff]  }
 0x3aa   : > { %6761 = vmatprep.subr.bf16.mxu1 %v13160_v2  ;;  %v13178_v2 = vld [vmem:[%s17752_s15 + $0x1114] ss:$24 sps:$4 sm:$0xff]  }
 0x3ac   : > { %6625 = vmatmul.mubr.bf16.gmra.mrb[60].mxu1 %v14495_v31 }
 0x3ad   : > { %6634 = vmatprep.mubr.bf16.mxu1 %v13930_v46  ;;  %6762 = vmatpush1.bf16.msra.mxu1 %v13158_v30  ;;  %v13176_v30 = vld [vmem:[%s17752_s15 + $0x1110] ss:$24 sps:$4 sm:$0xff]  }
 0x3ae   : > { %7457 = vmatmul.mubr.bf16.gmra.mrb[204].mxu0 %v14536_v17  ;;  %6763 = vmatprep.subr.bf16.mxu1 %v13169_v25  ;;  %v13181_v25 = vld [vmem:[%s17752_s15 + $0x1144] ss:$24 sps:$4 sm:$0xff]  }
 0x3af   : > { %7466 = vmatprep.mubr.bf16.mxu0 %v13982_v26 }
 0x3b1   : > { %6764 = vmatpush1.bf16.msra.mxu1 %v13167_v57  ;;  %v13179_v57 = vld [vmem:[%s17752_s15 + $0x1140] ss:$24 sps:$4 sm:$0xff]  }
 0x3b2   : > { %6765 = vmatprep.subr.bf16.mxu1 %v13175_v15  ;;  %v13184_v15 = vld [vmem:[%s17752_s15 + $0x1174] ss:$24 sps:$4 sm:$0xff]  }
 0x3b4   : > { %6635 = vmatmul.mubr.bf16.gmra.mrb[64].mxu1 %v14512_v39 }
 0x3b5   : > { %6644 = vmatprep.mubr.bf16.mxu1 %v13938_v53  ;;  %6766 = vmatpush1.bf16.msra.mxu1 %v13173_v58  ;;  %v13182_v58 = vld [vmem:[%s17752_s15 + $0x1170] ss:$24 sps:$4 sm:$0xff]  }
 0x3b6   : > { %7467 = vmatmul.mubr.bf16.gmra.mrb[208].mxu0 %v14534_v3  ;;  %6767 = vmatprep.subr.bf16.mxu1 %v13178_v2  ;;  %v13187_v2 = vld [vmem:[%s17752_s15 + $0x11a4] ss:$24 sps:$4 sm:$0xff]  }
 0x3b7   : > { %7476 = vmatprep.mubr.bf16.mxu0 %v13996_v37 }
 0x3b9   : > { %6768 = vmatpush1.bf16.msra.mxu1 %v13176_v30  ;;  %v13185_v30 = vld [vmem:[%s17752_s15 + $0x11a0] ss:$24 sps:$4 sm:$0xff]  }
 0x3ba   : > { %6769 = vmatprep.subr.bf16.mxu1 %v13181_v25  ;;  %v13190_v25 = vld [vmem:[%s17752_s15 + $0x11d4] ss:$24 sps:$4 sm:$0xff]  }
 0x3bc   : > { %6645 = vmatmul.mubr.bf16.gmra.mrb[68].mxu1 %v18000_v51 }
 0x3bd   : > { %6654 = vmatprep.mubr.bf16.mxu1 %v18001_v12  ;;  %6770 = vmatpush1.bf16.msra.mxu1 %v13179_v57  ;;  %v13188_v57 = vld [vmem:[%s17752_s15 + $0x11d0] ss:$24 sps:$4 sm:$0xff]  }
 0x3be   : > { %7477 = vmatmul.mubr.bf16.gmra.mrb[212].mxu0 %v14551_v23  ;;  %6771 = vmatprep.subr.bf16.mxu1 %v13184_v15  ;;  %v13193_v15 = vld [vmem:[%s17752_s15 + $0x14] ss:$24 sps:$4 sm:$0xff]  }
 0x3bf   : > { %7486 = vmatprep.mubr.bf16.mxu0 %v14004_v48 }
 0x3c1   : > { %6772 = vmatpush1.bf16.msra.mxu1 %v13182_v58  ;;  %v13197_v58 = vld [vmem:[%s17752_s15 + $0xc08] ss:$24 sps:$4 sm:$0xff]  }
 0x3c2   : > { %6773 = vmatprep.subr.bf16.mxu1 %v13187_v2  ;;  %v13205_v2 = vld [vmem:[%s17752_s15 + $0xc3c] ss:$24 sps:$4 sm:$0xff]  }
 0x3c4   : > { %6655 = vmatmul.mubr.bf16.gmra.mrb[72].mxu1 %v18002_v21 }
 0x3c5   : > { %6664 = vmatprep.mubr.bf16.mxu1 %v18003_v22  ;;  %6774 = vmatpush1.bf16.msra.mxu1 %v13185_v30  ;;  %v13203_v30 = vld [vmem:[%s17752_s15 + $0xc38] ss:$24 sps:$4 sm:$0xff]  }
 0x3c6   : > { %7487 = vmatmul.mubr.bf16.gmra.mrb[216].mxu0 %v14548_v16  ;;  %6775 = vmatprep.subr.bf16.mxu1 %v13190_v25  ;;  %v13208_v25 = vld [vmem:[%s17752_s15 + $0xc6c] ss:$24 sps:$4 sm:$0xff]  }
 0x3c7   : > { %7496 = vmatprep.mubr.bf16.mxu0 %v14018_v61 }
 0x3c9   : > { %6776 = vmatpush1.bf16.msra.mxu1 %v13188_v57  ;;  %v13206_v57 = vld [vmem:[%s17752_s15 + $0xc68] ss:$24 sps:$4 sm:$0xff]  }
 0x3ca   : > { %8096 = vmatprep.subr.bf16.mxu1 %v13193_v15  ;;  %v13214_v15 = vld [vmem:[%s17752_s15 + $0xc9c] ss:$24 sps:$4 sm:$0xff]  }
 0x3cc   : > { %6665 = vmatmul.mubr.bf16.gmra.mrb[76].mxu1 %v14522_v59 }
 0x3cd   : > { %6674 = vmatprep.mubr.bf16.mxu1 %v13974_v19 }
 0x3ce   : > { %7497 = vmatmul.mubr.bf16.gmra.mrb[220].mxu0 %v14563_v52 }
 0x3cf   : > { %7506 = vmatprep.mubr.bf16.mxu0 %v14028_v7 }
 0x3d4   : > { %6675 = vmatmul.mubr.bf16.gmra.mrb[80].mxu1 %v14536_v17 }
 0x3d5   : > { %6684 = vmatprep.mubr.bf16.mxu1 %v13982_v26 }
 0x3d6   : > { %7507 = vmatmul.mubr.bf16.gmra.mrb[224].mxu0 %v14560_v49 }
 0x3d7   : > { %7549 = vmatprep.mubr.bf16.mxu0 %v14545_v18  ;;  %v13196_v18 = vld [vmem:[%s17752_s15 + $0x44] ss:$24 sps:$4 sm:$0xff]  }
 0x3dc   : > { %6685 = vmatmul.mubr.bf16.gmra.mrb[84].mxu1 %v14534_v3 }
 0x3dd   : > { %6694 = vmatprep.mubr.bf16.mxu1 %v13996_v37 }
 0x3de   : > { %7550 = vmatmul.mubr.bf16.vlgmr.msra.gmra.mrb[164].mxu0 %v14543_v8  ;;  %v18005_v8 = vmov 0  }
 0x3df   : > { %7559 = vmatprep.mubr.bf16.mxu0 %v14557_v13  ;;  %7711 = vmatpush1.bf16.msra.mxu0 %v13197_v58  ;;  %v18004_v58 = vld [vmem:[#allocation41_spill] sm:$0xff] }
 0x3e0   : > { %7712 = vmatprep.subr.bf16.mxu0 %v13205_v2  ;;  %v13212_v2 = vld [vmem:[%s17752_s15 + $0xc98] ss:$24 sps:$4 sm:$0xff]  }
 0x3e3   : > { %7713 = vmatpush1.bf16.msra.mxu0 %v13203_v30  ;;  %v13217_v30 = vld [vmem:[%s17752_s15 + $0xccc] ss:$24 sps:$4 sm:$0xff]  }
 0x3e4   : > { %6695 = vmatmul.mubr.bf16.gmra.mrb[88].mxu1 %v14551_v23  ;;  %7714 = vmatprep.subr.bf16.mxu0 %v13208_v25  ;;  %v13215_v25 = vld [vmem:[%s17752_s15 + $0xcc8] ss:$24 sps:$4 sm:$0xff]  }
 0x3e5   : > { %6704 = vmatprep.mubr.bf16.mxu1 %v14004_v48 }
 0x3e6   : > { %7560 = vmatmul.mubr.bf16.gmra.mrb[168].mxu0 %v14555_v34 }
 0x3e7   : > { %7569 = vmatprep.mubr.bf16.mxu0 %v18004_v58  ;;  %7715 = vmatpush1.bf16.msra.mxu0 %v13206_v57  ;;  %v13223_v57 = vld [vmem:[%s17752_s15 + $0xcfc] ss:$24 sps:$4 sm:$0xff]  }
 0x3e8   : > { %7716 = vmatprep.subr.bf16.mxu0 %v13214_v15  ;;  %v13221_v15 = vld [vmem:[%s17752_s15 + $0xcf8] ss:$24 sps:$4 sm:$0xff]  }
 0x3eb   : > { %7717 = vmatpush1.bf16.msra.mxu0 %v13212_v2  ;;  %v13226_v2 = vld [vmem:[%s17752_s15 + $0xd2c] ss:$24 sps:$4 sm:$0xff]  }
 0x3ec   : > { %6705 = vmatmul.mubr.bf16.gmra.mrb[92].mxu1 %v14548_v16  ;;  %7718 = vmatprep.subr.bf16.mxu0 %v13217_v30  ;;  %v13224_v30 = vld [vmem:[%s17752_s15 + $0xd28] ss:$24 sps:$4 sm:$0xff]  }
 0x3ed   : > { %6714 = vmatprep.mubr.bf16.mxu1 %v14018_v61 }
 0x3ee   : > { %7570 = vmatmul.mubr.bf16.gmra.mrb[172].mxu0 %v14570_v0 }
 0x3ef   : > { %7579 = vmatprep.mubr.bf16.mxu0 %v14580_v5  ;;  %7719 = vmatpush1.bf16.msra.mxu0 %v13215_v25  ;;  %v13232_v25 = vld [vmem:[%s17752_s15 + $0xd5c] ss:$24 sps:$4 sm:$0xff]  }
 0x3f0   : > { %7720 = vmatprep.subr.bf16.mxu0 %v13223_v57  ;;  %v13230_v57 = vld [vmem:[%s17752_s15 + $0xd58] ss:$24 sps:$4 sm:$0xff]  }
 0x3f3   : > { %7721 = vmatpush1.bf16.msra.mxu0 %v13221_v15  ;;  %v13235_v15 = vld [vmem:[%s17752_s15 + $0xd8c] ss:$24 sps:$4 sm:$0xff]  }
 0x3f4   : > { %6715 = vmatmul.mubr.bf16.gmra.mrb[96].mxu1 %v14563_v52  ;;  %7722 = vmatprep.subr.bf16.mxu0 %v13226_v2  ;;  %v13233_v2 = vld [vmem:[%s17752_s15 + $0xd88] ss:$24 sps:$4 sm:$0xff]  }
 0x3f5   : > { %6724 = vmatprep.mubr.bf16.mxu1 %v14028_v7 }
 0x3f6   : > { %7580 = vmatmul.mubr.bf16.gmra.mrb[176].mxu0 %v14578_v56 }
 0x3f7   : > { %7589 = vmatprep.mubr.bf16.mxu0 %v14588_v10  ;;  %7723 = vmatpush1.bf16.msra.mxu0 %v13224_v30  ;;  %v13241_v30 = vld [vmem:[%s17752_s15 + $0xdbc] ss:$24 sps:$4 sm:$0xff]  }
 0x3f8   : > { %7724 = vmatprep.subr.bf16.mxu0 %v13232_v25  ;;  %v13239_v25 = vld [vmem:[%s17752_s15 + $0xdb8] ss:$24 sps:$4 sm:$0xff]  }
 0x3fb   : > { %7725 = vmatpush1.bf16.msra.mxu0 %v13230_v57  ;;  %v13244_v57 = vld [vmem:[%s17752_s15 + $0xdec] ss:$24 sps:$4 sm:$0xff]  }
 0x3fc   : > { %6725 = vmatmul.mubr.bf16.gmra.mrb[100].mxu1 %v14560_v49  ;;  %7726 = vmatprep.subr.bf16.mxu0 %v13235_v15  ;;  %v13242_v15 = vld [vmem:[%s17752_s15 + $0xde8] ss:$24 sps:$4 sm:$0xff]  }
 0x3fd   : > { %6734 = vmatprep.mubr.bf16.mxu1 %v18005_v8 }
 0x3fe   : > { %7590 = vmatmul.mubr.bf16.gmra.mrb[180].mxu0 %v14586_v20 }
 0x3ff   : > { %7599 = vmatprep.mubr.bf16.mxu0 %v14596_v41  ;;  %7727 = vmatpush1.bf16.msra.mxu0 %v13233_v2  ;;  %v13250_v2 = vld [vmem:[%s17752_s15 + $0xe1c] ss:$24 sps:$4 sm:$0xff]  }
 0x400   : > { %7728 = vmatprep.subr.bf16.mxu0 %v13241_v30  ;;  %v13248_v30 = vld [vmem:[%s17752_s15 + $0xe18] ss:$24 sps:$4 sm:$0xff]  }
 0x403   : > { %7729 = vmatpush1.bf16.msra.mxu0 %v13239_v25  ;;  %v13253_v25 = vld [vmem:[%s17752_s15 + $0xe4c] ss:$24 sps:$4 sm:$0xff]  }
 0x404   : > { %6735 = vmatmul.mubr.bf16.gmra.mrb[104].mxu1 %v18005_v8  ;;  %7730 = vmatprep.subr.bf16.mxu0 %v13244_v57  ;;  %v13191_v57 = vld [vmem:[%s17752_s15 + $0x10] ss:$24 sps:$4 sm:$0xff]  }
 0x405   : > { %6777 = vmatprep.mubr.bf16.mxu1 %v14557_v13  ;;  %v13194_v13 = vld [vmem:[%s17752_s15 + $0x40] ss:$24 sps:$4 sm:$0xff]  }
 0x406   : > { %7600 = vmatmul.mubr.bf16.gmra.mrb[184].mxu0 %v14594_v38 }
 0x407   : > { %7609 = vmatprep.mubr.bf16.mxu0 %v14604_v62  ;;  %7731 = vmatpush1.bf16.msra.mxu0 %v13242_v15  ;;  %v13251_v15 = vld [vmem:[%s17752_s15 + $0xe48] ss:$24 sps:$4 sm:$0xff]  }
 0x408   : > { %7732 = vmatprep.subr.bf16.mxu0 %v13250_v2  ;;  %v13259_v2 = vld [vmem:[%s17752_s15 + $0xe7c] ss:$24 sps:$4 sm:$0xff]  }
 0x40b   : > { %7733 = vmatpush1.bf16.msra.mxu0 %v13248_v30  ;;  %v13202_v30 = vld [vmem:[%s17752_s15 + $0x74] ss:$24 sps:$4 sm:$0xff]  }
 0x40c   : > { %6778 = vmatmul.mubr.bf16.vlgmr.msra.gmra.mrb[44].mxu1 %v14555_v34  ;;  %7734 = vmatprep.subr.bf16.mxu0 %v13253_v25  ;;  %v13257_v25 = vld [vmem:[%s17752_s15 + $0xe78] ss:$24 sps:$4 sm:$0xff]  }
 0x40d   : > { %6787 = vmatprep.mubr.bf16.mxu1 %v18004_v58  ;;  %8097 = vmatpush1.bf16.msra.mxu1 %v13191_v57  ;;  %v13262_v57 = vld [vmem:[%s17752_s15 + $0xeac] ss:$24 sps:$4 sm:$0xff]  }
 0x40e   : > { %7610 = vmatmul.mubr.bf16.gmra.mrb[188].mxu0 %v14602_v54  ;;  %8098 = vmatprep.subr.bf16.mxu1 %v13196_v18  ;;  %v13200_v18 = vld [vmem:[%s17752_s15 + $0x70] ss:$24 sps:$4 sm:$0xff]   ;;  %v13211_v58 = vld [vmem:[%s17752_s15 + $0xa4] ss:$24 sps:$4 sm:$0xff]  }
 0x40f   : > { %7619 = vmatprep.mubr.bf16.mxu0 %v14612_v24  ;;  %7735 = vmatpush1.bf16.msra.mxu0 %v13251_v15  ;;  %v13260_v15 = vld [vmem:[%s17752_s15 + $0xea8] ss:$24 sps:$4 sm:$0xff]  }
 0x410   : > { %7736 = vmatprep.subr.bf16.mxu0 %v13259_v2  ;;  %v13209_v2 = vld [vmem:[%s17752_s15 + $0xa0] ss:$24 sps:$4 sm:$0xff]  }
 0x411   : > { %8099 = vmatpush1.bf16.msra.mxu1 %v13194_v13  ;;  %v13268_v13 = vld [vmem:[%s17752_s15 + $0xedc] ss:$24 sps:$4 sm:$0xff]  }
 0x412   : > { %8100 = vmatprep.subr.bf16.mxu1 %v13202_v30  ;;  %v13220_v30 = vld [vmem:[%s17752_s15 + $0xd4] ss:$24 sps:$4 sm:$0xff]  }
 0x413   : > { %7737 = vmatpush1.bf16.msra.mxu0 %v13257_v25  ;;  %v13266_v25 = vld [vmem:[%s17752_s15 + $0xed8] ss:$24 sps:$4 sm:$0xff]  }
 0x414   : > { %6788 = vmatmul.mubr.bf16.gmra.mrb[48].mxu1 %v14570_v0  ;;  %7738 = vmatprep.subr.bf16.mxu0 %v13262_v57  ;;  %v13218_v57 = vld [vmem:[%s17752_s15 + $0xd0] ss:$24 sps:$4 sm:$0xff]  }
 0x415   : > { %6797 = vmatprep.mubr.bf16.mxu1 %v14580_v5  ;;  %8101 = vmatpush1.bf16.msra.mxu1 %v13200_v18  ;;  %v13295_v18 = vld [vmem:[%s17752_s15 + $0xf0c] ss:$24 sps:$4 sm:$0xff]  }
 0x416   : > { %7620 = vmatmul.mubr.bf16.gmra.mrb[192].mxu0 %v14610_v4  ;;  %8102 = vmatprep.subr.bf16.mxu1 %v13211_v58  ;;  %v13229_v58 = vld [vmem:[%s17752_s15 + $0x104] ss:$24 sps:$4 sm:$0xff]  }
 0x417   : > { %7629 = vmatprep.mubr.bf16.mxu0 %v14620_v32  ;;  %7739 = vmatpush1.bf16.msra.mxu0 %v13260_v15  ;;  %v13227_v15 = vld [vmem:[%s17752_s15 + $0x100] ss:$24 sps:$4 sm:$0xff]  }
 0x418   : > { %7740 = vmatprep.subr.bf16.mxu0 %v13268_v13  ;;  %v13238_v13 = vld [vmem:[%s17752_s15 + $0x134] ss:$24 sps:$4 sm:$0xff]  }
 0x419   : > { %8103 = vmatpush1.bf16.msra.mxu1 %v13209_v2  ;;  %v13236_v2 = vld [vmem:[%s17752_s15 + $0x130] ss:$24 sps:$4 sm:$0xff]  }
 0x41a   : > { %8104 = vmatprep.subr.bf16.mxu1 %v13220_v30  ;;  %v13247_v30 = vld [vmem:[%s17752_s15 + $0x164] ss:$24 sps:$4 sm:$0xff]  }
 0x41b   : > { %7741 = vmatpush1.bf16.msra.mxu0 %v13266_v25  ;;  %v13245_v25 = vld [vmem:[%s17752_s15 + $0x160] ss:$24 sps:$4 sm:$0xff]  }
 0x41c   : > { %6798 = vmatmul.mubr.bf16.gmra.mrb[52].mxu1 %v14578_v56  ;;  %7903 = vmatprep.subr.bf16.mxu0 %v13295_v18  ;;  %v13265_v18 = vld [vmem:[%s17752_s15 + $0x1c4] ss:$24 sps:$4 sm:$0xff]  }
 0x41d   : > { %6807 = vmatprep.mubr.bf16.mxu1 %v14588_v10  ;;  %8105 = vmatpush1.bf16.msra.mxu1 %v13218_v57  ;;  %v13256_v57 = vld [vmem:[%s17752_s15 + $0x194] ss:$24 sps:$4 sm:$0xff]  }
 0x41e   : > { %7630 = vmatmul.mubr.bf16.gmra.mrb[196].mxu0 %v14618_v27  ;;  %8106 = vmatprep.subr.bf16.mxu1 %v13229_v58  ;;  %v13254_v58 = vld [vmem:[%s17752_s15 + $0x190] ss:$24 sps:$4 sm:$0xff]  }
 0x41f   : > { %7639 = vmatprep.mubr.bf16.mxu0 %v14628_v42 }
 0x421   : > { %8107 = vmatpush1.bf16.msra.mxu1 %v13227_v15  ;;  %v13263_v15 = vld [vmem:[%s17752_s15 + $0x1c0] ss:$24 sps:$4 sm:$0xff]  }
 0x422   : > { %8108 = vmatprep.subr.bf16.mxu1 %v13238_v13  ;;  %v13271_v13 = vld [vmem:[%s17752_s15 + $0x1f4] ss:$24 sps:$4 sm:$0xff]  }
 0x424   : > { %6808 = vmatmul.mubr.bf16.gmra.mrb[56].mxu1 %v14586_v20 }
 0x425   : > { %6817 = vmatprep.mubr.bf16.mxu1 %v14596_v41  ;;  %8109 = vmatpush1.bf16.msra.mxu1 %v13236_v2  ;;  %v13269_v2 = vld [vmem:[%s17752_s15 + $0x1f0] ss:$24 sps:$4 sm:$0xff]  }
 0x426   : > { %7640 = vmatmul.mubr.bf16.gmra.mrb[200].mxu0 %v14626_v29  ;;  %8110 = vmatprep.subr.bf16.mxu1 %v13247_v30  ;;  %v13274_v30 = vld [vmem:[%s17752_s15 + $0x224] ss:$24 sps:$4 sm:$0xff]  }
 0x427   : > { %7649 = vmatprep.mubr.bf16.mxu0 %v14648_v50 }
 0x429   : > { %8111 = vmatpush1.bf16.msra.mxu1 %v13245_v25  ;;  %v13272_v25 = vld [vmem:[%s17752_s15 + $0x220] ss:$24 sps:$4 sm:$0xff]  }
 0x42a   : > { %8112 = vmatprep.subr.bf16.mxu1 %v13256_v57  ;;  %v13277_v57 = vld [vmem:[%s17752_s15 + $0x254] ss:$24 sps:$4 sm:$0xff]  }
 0x42c   : > { %6818 = vmatmul.mubr.bf16.gmra.mrb[60].mxu1 %v14594_v38 }
 0x42d   : > { %6827 = vmatprep.mubr.bf16.mxu1 %v14604_v62  ;;  %8113 = vmatpush1.bf16.msra.mxu1 %v13254_v58  ;;  %v13275_v58 = vld [vmem:[%s17752_s15 + $0x250] ss:$24 sps:$4 sm:$0xff]  }
 0x42e   : > { %7650 = vmatmul.mubr.bf16.gmra.mrb[204].mxu0 %v14643_v28  ;;  %8114 = vmatprep.subr.bf16.mxu1 %v13265_v18  ;;  %v13280_v18 = vld [vmem:[%s17752_s15 + $0x284] ss:$24 sps:$4 sm:$0xff]  }
 0x42f   : > { %7659 = vmatprep.mubr.bf16.mxu0 %v17994_v6 }
 0x431   : > { %8115 = vmatpush1.bf16.msra.mxu1 %v13263_v15  ;;  %v13278_v15 = vld [vmem:[%s17752_s15 + $0x280] ss:$24 sps:$4 sm:$0xff]  }
 0x432   : > { %8116 = vmatprep.subr.bf16.mxu1 %v13271_v13  ;;  %v13283_v13 = vld [vmem:[%s17752_s15 + $0x2b4] ss:$24 sps:$4 sm:$0xff]  }
 0x434   : > { %6828 = vmatmul.mubr.bf16.gmra.mrb[64].mxu1 %v14602_v54 }
 0x435   : > { %6837 = vmatprep.mubr.bf16.mxu1 %v14612_v24  ;;  %8117 = vmatpush1.bf16.msra.mxu1 %v13269_v2  ;;  %v13281_v2 = vld [vmem:[%s17752_s15 + $0x2b0] ss:$24 sps:$4 sm:$0xff]  }
 0x436   : > { %7660 = vmatmul.mubr.bf16.gmra.mrb[208].mxu0 %v17995_v63  ;;  %8118 = vmatprep.subr.bf16.mxu1 %v13274_v30  ;;  %v13286_v30 = vld [vmem:[%s17752_s15 + $0x2e4] ss:$24 sps:$4 sm:$0xff]  }
 0x437   : > { %7669 = vmatprep.mubr.bf16.mxu0 %v17996_v60 }
 0x439   : > { %8119 = vmatpush1.bf16.msra.mxu1 %v13272_v25  ;;  %v13284_v25 = vld [vmem:[%s17752_s15 + $0x2e0] ss:$24 sps:$4 sm:$0xff]  }
 0x43a   : > { %8120 = vmatprep.subr.bf16.mxu1 %v13277_v57  ;;  %v13289_v57 = vld [vmem:[%s17752_s15 + $0x314] ss:$24 sps:$4 sm:$0xff]  }
 0x43c   : > { %6838 = vmatmul.mubr.bf16.gmra.mrb[68].mxu1 %v14610_v4 }
 0x43d   : > { %6847 = vmatprep.mubr.bf16.mxu1 %v14620_v32  ;;  %8121 = vmatpush1.bf16.msra.mxu1 %v13275_v58  ;;  %v13293_v58 = vld [vmem:[%s17752_s15 + $0xf08] ss:$24 sps:$4 sm:$0xff]  }
 0x43e   : > { %7670 = vmatmul.mubr.bf16.gmra.mrb[212].mxu0 %v17997_v33  ;;  %8122 = vmatprep.subr.bf16.mxu1 %v13280_v18  ;;  %v13301_v18 = vld [vmem:[%s17752_s15 + $0xf3c] ss:$24 sps:$4 sm:$0xff]  }
 0x43f   : > { %7679 = vmatprep.mubr.bf16.mxu0 %v17998_v40 }
 0x441   : > { %8123 = vmatpush1.bf16.msra.mxu1 %v13278_v15  ;;  %v18006_v15 = vld [vmem:[#allocation6_spill] sm:$0xff] }
 0x442   : > { %8124 = vmatprep.subr.bf16.mxu1 %v13283_v13  ;;  %v13299_v13 = vld [vmem:[%s17752_s15 + $0xf38] ss:$24 sps:$4 sm:$0xff]  }
 0x444   : > { %6848 = vmatmul.mubr.bf16.gmra.mrb[72].mxu1 %v14618_v27 }
 0x445   : > { %6857 = vmatprep.mubr.bf16.mxu1 %v14628_v42  ;;  %8125 = vmatpush1.bf16.msra.mxu1 %v13281_v2  ;;  %v13304_v2 = vld [vmem:[%s17752_s15 + $0xf6c] ss:$24 sps:$4 sm:$0xff]  }
 0x446   : > { %7680 = vmatmul.mubr.bf16.gmra.mrb[216].mxu0 %v17999_v47  ;;  %8126 = vmatprep.subr.bf16.mxu1 %v13286_v30  ;;  %v13302_v30 = vld [vmem:[%s17752_s15 + $0xf68] ss:$24 sps:$4 sm:$0xff]  }
 0x447   : > { %7689 = vmatprep.mubr.bf16.mxu0 %v14728_v14 }
 0x449   : > { %8127 = vmatpush1.bf16.msra.mxu1 %v13284_v25  ;;  %v13310_v25 = vld [vmem:[%s17752_s15 + $0xf9c] ss:$24 sps:$4 sm:$0xff]  }
 0x44a   : > { %8289 = vmatprep.subr.bf16.mxu1 %v13289_v57  ;;  %v18007_v57 = vld [vmem:[#allocation23_spill] sm:$0xff] }
 0x44c   : > { %6858 = vmatmul.mubr.bf16.gmra.mrb[76].mxu1 %v14626_v29 }
 0x44d   : > { %6867 = vmatprep.mubr.bf16.mxu1 %v14648_v50 }
 0x44e   : > { %7690 = vmatmul.mubr.bf16.gmra.mrb[220].mxu0 %v14723_v43 }
 0x44f   : > { %7699 = vmatprep.mubr.bf16.mxu0 %v14905_v55 }
 0x454   : > { %6868 = vmatmul.mubr.bf16.gmra.mrb[80].mxu1 %v14643_v28 }
 0x455   : > { %6877 = vmatprep.mubr.bf16.mxu1 %v17994_v6 }
 0x456   : > { %7700 = vmatmul.mubr.bf16.gmra.mrb[224].mxu0 %v14903_v45 }
 0x457   : > { %7742 = vmatprep.mubr.bf16.mxu0 %v13894_v44 }
 0x45c   : > { %6878 = vmatmul.mubr.bf16.gmra.mrb[84].mxu1 %v17995_v63 }
 0x45d   : > { %6887 = vmatprep.mubr.bf16.mxu1 %v17996_v60 }
 0x45e   : > { %7743 = vmatmul.mubr.bf16.vlgmr.msra.gmra.mrb[164].mxu0 %v14447_v1 }
 0x45f   : > { %7752 = vmatprep.mubr.bf16.mxu0 %v18006_v15  ;;  %7904 = vmatpush1.bf16.msra.mxu0 %v13293_v58  ;;  %v13308_v58 = vld [vmem:[%s17752_s15 + $0xf98] ss:$24 sps:$4 sm:$0xff]  }
 0x460   : > { %7905 = vmatprep.subr.bf16.mxu0 %v13301_v18  ;;  %v13313_v18 = vld [vmem:[%s17752_s15 + $0xfcc] ss:$24 sps:$4 sm:$0xff]  }
 0x463   : > { %7906 = vmatpush1.bf16.msra.mxu0 %v13299_v13  ;;  %v13311_v13 = vld [vmem:[%s17752_s15 + $0xfc8] ss:$24 sps:$4 sm:$0xff]  }
 0x464   : > { %6888 = vmatmul.mubr.bf16.gmra.mrb[88].mxu1 %v17997_v33  ;;  %7907 = vmatprep.subr.bf16.mxu0 %v13304_v2  ;;  %v13319_v2 = vld [vmem:[%s17752_s15 + $0xffc] ss:$24 sps:$4 sm:$0xff]  }
 0x465   : > { %6897 = vmatprep.mubr.bf16.mxu1 %v17998_v40 }
 0x466   : > { %7753 = vmatmul.mubr.bf16.gmra.mrb[168].mxu0 %v18007_v57 }
 0x467   : > { %7762 = vmatprep.mubr.bf16.mxu0 %v13907_v9  ;;  %7908 = vmatpush1.bf16.msra.mxu0 %v13302_v30  ;;  %v18008_v30 = vld [vmem:[#allocation8_spill] sm:$0xff] }
 0x468   : > { %7909 = vmatprep.subr.bf16.mxu0 %v13310_v25  ;;  %v13317_v25 = vld [vmem:[%s17752_s15 + $0xff8] ss:$24 sps:$4 sm:$0xff]  }
 0x46b   : > { %7910 = vmatpush1.bf16.msra.mxu0 %v13308_v58  ;;  %v13322_v58 = vld [vmem:[%s17752_s15 + $0x102c] ss:$24 sps:$4 sm:$0xff]  }
 0x46c   : > { %6898 = vmatmul.mubr.bf16.gmra.mrb[92].mxu1 %v17999_v47  ;;  %7911 = vmatprep.subr.bf16.mxu0 %v13313_v18  ;;  %v13320_v18 = vld [vmem:[%s17752_s15 + $0x1028] ss:$24 sps:$4 sm:$0xff]  }
 0x46d   : > { %6907 = vmatprep.mubr.bf16.mxu1 %v14728_v14 }
 0x46e   : > { %7763 = vmatmul.mubr.bf16.gmra.mrb[172].mxu0 %v14471_v11 }
 0x46f   : > { %7772 = vmatprep.mubr.bf16.mxu0 %v18008_v30  ;;  %7912 = vmatpush1.bf16.msra.mxu0 %v13311_v13  ;;  %v13328_v13 = vld [vmem:[%s17752_s15 + $0x105c] ss:$24 sps:$4 sm:$0xff]  }
 0x470   : > { %7913 = vmatprep.subr.bf16.mxu0 %v13319_v2  ;;  %v13326_v2 = vld [vmem:[%s17752_s15 + $0x1058] ss:$24 sps:$4 sm:$0xff]  }
 0x473   : > { %7914 = vmatpush1.bf16.msra.mxu0 %v13317_v25  ;;  %v13331_v25 = vld [vmem:[%s17752_s15 + $0x108c] ss:$24 sps:$4 sm:$0xff]  }
 0x474   : > { %6908 = vmatmul.mubr.bf16.gmra.mrb[96].mxu1 %v14723_v43  ;;  %7915 = vmatprep.subr.bf16.mxu0 %v13322_v58  ;;  %v13329_v58 = vld [vmem:[%s17752_s15 + $0x1088] ss:$24 sps:$4 sm:$0xff]  }
 0x475   : > { %6917 = vmatprep.mubr.bf16.mxu1 %v14905_v55  ;;  %v18009_v55 = vld [vmem:[#allocation4_spill] sm:$0xff] }
 0x476   : > { %7773 = vmatmul.mubr.bf16.gmra.mrb[176].mxu0 %v14500_v35  ;;  %v13290_v43 = vld [vmem:[%s17752_s15 + $0x340] ss:$24 sps:$4 sm:$0xff]  }
 0x477   : > { %7782 = vmatprep.mubr.bf16.mxu0 %v13916_v36  ;;  %7916 = vmatpush1.bf16.msra.mxu0 %v13320_v18  ;;  %v13337_v18 = vld [vmem:[%s17752_s15 + $0x10bc] ss:$24 sps:$4 sm:$0xff]  }
 0x478   : > { %7917 = vmatprep.subr.bf16.mxu0 %v13328_v13  ;;  %v13335_v13 = vld [vmem:[%s17752_s15 + $0x10b8] ss:$24 sps:$4 sm:$0xff]  }
 0x47b   : > { %7918 = vmatpush1.bf16.msra.mxu0 %v13326_v2  ;;  %v13340_v2 = vld [vmem:[%s17752_s15 + $0x10ec] ss:$24 sps:$4 sm:$0xff]  }
 0x47c   : > { %6918 = vmatmul.mubr.bf16.gmra.mrb[100].mxu1 %v14903_v45  ;;  %7919 = vmatprep.subr.bf16.mxu0 %v13331_v25  ;;  %v13338_v25 = vld [vmem:[%s17752_s15 + $0x10e8] ss:$24 sps:$4 sm:$0xff]   ;;  %v13292_v45 = vld [vmem:[%s17752_s15 + $0x344] ss:$24 sps:$4 sm:$0xff]  }
 0x47d   : > { %6927 = vmatprep.mubr.bf16.mxu1 %v18005_v8 }
 0x47e   : > { %7783 = vmatmul.mubr.bf16.gmra.mrb[180].mxu0 %v14495_v31 }
 0x47f   : > { %7792 = vmatprep.mubr.bf16.mxu0 %v13930_v46  ;;  %7920 = vmatpush1.bf16.msra.mxu0 %v13329_v58  ;;  %v13346_v58 = vld [vmem:[%s17752_s15 + $0x111c] ss:$24 sps:$4 sm:$0xff]  }
 0x480   : > { %7921 = vmatprep.subr.bf16.mxu0 %v13337_v18  ;;  %v13344_v18 = vld [vmem:[%s17752_s15 + $0x1118] ss:$24 sps:$4 sm:$0xff]  }
 0x483   : > { %7922 = vmatpush1.bf16.msra.mxu0 %v13335_v13  ;;  %v13349_v13 = vld [vmem:[%s17752_s15 + $0x114c] ss:$24 sps:$4 sm:$0xff]  }
 0x484   : > { %6928 = vmatmul.mubr.bf16.gmra.mrb[104].mxu1 %v18005_v8  ;;  %7923 = vmatprep.subr.bf16.mxu0 %v13340_v2  ;;  %v13287_v2 = vld [vmem:[%s17752_s15 + $0x310] ss:$24 sps:$4 sm:$0xff]  }
 0x485   : > { %8128 = vmatprep.mubr.bf16.mxu1 %v18005_v8 }
 0x486   : > { %7793 = vmatmul.mubr.bf16.gmra.mrb[184].mxu0 %v14512_v39 }
 0x487   : > { %7802 = vmatprep.mubr.bf16.mxu0 %v13938_v53  ;;  %7924 = vmatpush1.bf16.msra.mxu0 %v13338_v25  ;;  %v13347_v25 = vld [vmem:[%s17752_s15 + $0x1148] ss:$24 sps:$4 sm:$0xff]  }
 0x488   : > { %7925 = vmatprep.subr.bf16.mxu0 %v13346_v58  ;;  %v13355_v58 = vld [vmem:[%s17752_s15 + $0x117c] ss:$24 sps:$4 sm:$0xff]  }
 0x48b   : > { %7926 = vmatpush1.bf16.msra.mxu0 %v13344_v18  ;;  %v13298_v18 = vld [vmem:[%s17752_s15 + $0x374] ss:$24 sps:$4 sm:$0xff]  }
 0x48c   : > { %8129 = vmatmul.mubr.bf16.vlgmr.msra.gmra.mrb[108].mxu1 %v18005_v8  ;;  %7927 = vmatprep.subr.bf16.mxu0 %v13349_v13  ;;  %v13353_v13 = vld [vmem:[%s17752_s15 + $0x1178] ss:$24 sps:$4 sm:$0xff]  }
 0x48d   : > { %8138 = vmatprep.mubr.bf16.mxu1 %v18009_v55  ;;  %8290 = vmatpush1.bf16.msra.mxu1 %v13287_v2  ;;  %v13358_v2 = vld [vmem:[%s17752_s15 + $0x11ac] ss:$24 sps:$4 sm:$0xff]  }
 0x48e   : > { %7803 = vmatmul.mubr.bf16.gmra.mrb[188].mxu0 %v18000_v51  ;;  %8291 = vmatprep.subr.bf16.mxu1 %v13292_v45  ;;  %v13296_v45 = vld [vmem:[%s17752_s15 + $0x370] ss:$24 sps:$4 sm:$0xff]   ;;  %v13307_v55 = vld [vmem:[%s17752_s15 + $0x3a4] ss:$24 sps:$4 sm:$0xff]  }
 0x48f   : > { %7812 = vmatprep.mubr.bf16.mxu0 %v18001_v12  ;;  %7928 = vmatpush1.bf16.msra.mxu0 %v13347_v25  ;;  %v13356_v25 = vld [vmem:[%s17752_s15 + $0x11a8] ss:$24 sps:$4 sm:$0xff]  }
 0x490   : > { %7929 = vmatprep.subr.bf16.mxu0 %v13355_v58  ;;  %v18010_v58 = vld [vmem:[#allocation21_spill] sm:$0xff] }
 0x491   : > { %8292 = vmatpush1.bf16.msra.mxu1 %v13290_v43  ;;  %v13364_v43 = vld [vmem:[%s17752_s15 + $0x11dc] ss:$24 sps:$4 sm:$0xff]  }
 0x492   : > { %8293 = vmatprep.subr.bf16.mxu1 %v13298_v18  ;;  %v13305_v18 = vld [vmem:[%s17752_s15 + $0x3a0] ss:$24 sps:$4 sm:$0xff]  }
 0x493   : > { %7930 = vmatpush1.bf16.msra.mxu0 %v13353_v13  ;;  %v13316_v13 = vld [vmem:[%s17752_s15 + $0x3d4] ss:$24 sps:$4 sm:$0xff]  }
 0x494   : > { %8139 = vmatmul.mubr.bf16.gmra.mrb[112].mxu1 %v18010_v58  ;;  %7931 = vmatprep.subr.bf16.mxu0 %v13358_v2  ;;  %v13362_v2 = vld [vmem:[%s17752_s15 + $0x11d8] ss:$24 sps:$4 sm:$0xff]  }
 0x495   : > { %8148 = vmatprep.mubr.bf16.mxu1 %v13894_v44  ;;  %8294 = vmatpush1.bf16.msra.mxu1 %v13296_v45  ;;  %v13314_v45 = vld [vmem:[%s17752_s15 + $0x3d0] ss:$24 sps:$4 sm:$0xff]  }
 0x496   : > { %7813 = vmatmul.mubr.bf16.gmra.mrb[192].mxu0 %v18002_v21  ;;  %8295 = vmatprep.subr.bf16.mxu1 %v13307_v55  ;;  %v13325_v55 = vld [vmem:[%s17752_s15 + $0x404] ss:$24 sps:$4 sm:$0xff]  }
 0x497   : > { %7822 = vmatprep.mubr.bf16.mxu0 %v18003_v22  ;;  %7932 = vmatpush1.bf16.msra.mxu0 %v13356_v25  ;;  %v13323_v25 = vld [vmem:[%s17752_s15 + $0x400] ss:$24 sps:$4 sm:$0xff]  }
 0x498   : > { %7933 = vmatprep.subr.bf16.mxu0 %v13364_v43  ;;  %v13334_v43 = vld [vmem:[%s17752_s15 + $0x434] ss:$24 sps:$4 sm:$0xff]  }
 0x499   : > { %8296 = vmatpush1.bf16.msra.mxu1 %v13305_v18  ;;  %v13332_v18 = vld [vmem:[%s17752_s15 + $0x430] ss:$24 sps:$4 sm:$0xff]  }
 0x49a   : > { %8297 = vmatprep.subr.bf16.mxu1 %v13316_v13  ;;  %v13343_v13 = vld [vmem:[%s17752_s15 + $0x464] ss:$24 sps:$4 sm:$0xff]  }
 0x49b   : > { %7934 = vmatpush1.bf16.msra.mxu0 %v13362_v2  ;;  %v13341_v2 = vld [vmem:[%s17752_s15 + $0x460] ss:$24 sps:$4 sm:$0xff]  }
 0x49c   : > { %8149 = vmatmul.mubr.bf16.gmra.mrb[116].mxu1 %v14447_v1 }
 0x49d   : > { %8158 = vmatprep.mubr.bf16.mxu1 %v18006_v15  ;;  %8298 = vmatpush1.bf16.msra.mxu1 %v13314_v45  ;;  %v13352_v45 = vld [vmem:[%s17752_s15 + $0x494] ss:$24 sps:$4 sm:$0xff]  }
 0x49e   : > { %7823 = vmatmul.mubr.bf16.gmra.mrb[196].mxu0 %v14522_v59  ;;  %8299 = vmatprep.subr.bf16.mxu1 %v13325_v55  ;;  %v13350_v55 = vld [vmem:[%s17752_s15 + $0x490] ss:$24 sps:$4 sm:$0xff]  }
 0x49f   : > { %7832 = vmatprep.mubr.bf16.mxu0 %v13974_v19 }
 0x4a1   : > { %8300 = vmatpush1.bf16.msra.mxu1 %v13323_v25  ;;  %v13361_v25 = vld [vmem:[%s17752_s15 + $0x4c4] ss:$24 sps:$4 sm:$0xff]  }
 0x4a2   : > { %8301 = vmatprep.subr.bf16.mxu1 %v13334_v43  ;;  %v13359_v43 = vld [vmem:[%s17752_s15 + $0x4c0] ss:$24 sps:$4 sm:$0xff]  }
 0x4a4   : > { %8159 = vmatmul.mubr.bf16.gmra.mrb[120].mxu1 %v18007_v57 }
 0x4a5   : > { %8168 = vmatprep.mubr.bf16.mxu1 %v13907_v9  ;;  %8302 = vmatpush1.bf16.msra.mxu1 %v13332_v18  ;;  %v13367_v18 = vld [vmem:[%s17752_s15 + $0x4f4] ss:$24 sps:$4 sm:$0xff]  }
 0x4a6   : > { %7833 = vmatmul.mubr.bf16.gmra.mrb[200].mxu0 %v14536_v17  ;;  %8303 = vmatprep.subr.bf16.mxu1 %v13343_v13  ;;  %v13365_v13 = vld [vmem:[%s17752_s15 + $0x4f0] ss:$24 sps:$4 sm:$0xff]  }
 0x4a7   : > { %7842 = vmatprep.mubr.bf16.mxu0 %v13982_v26 }
 0x4a9   : > { %8304 = vmatpush1.bf16.msra.mxu1 %v13341_v2  ;;  %v13370_v2 = vld [vmem:[%s17752_s15 + $0x524] ss:$24 sps:$4 sm:$0xff]  }
 0x4aa   : > { %8305 = vmatprep.subr.bf16.mxu1 %v13352_v45  ;;  %v13368_v45 = vld [vmem:[%s17752_s15 + $0x520] ss:$24 sps:$4 sm:$0xff]  }
 0x4ac   : > { %8169 = vmatmul.mubr.bf16.gmra.mrb[124].mxu1 %v14471_v11 }
 0x4ad   : > { %8178 = vmatprep.mubr.bf16.mxu1 %v18008_v30  ;;  %8306 = vmatpush1.bf16.msra.mxu1 %v13350_v55  ;;  %v13373_v55 = vld [vmem:[%s17752_s15 + $0x554] ss:$24 sps:$4 sm:$0xff]  }
 0x4ae   : > { %7843 = vmatmul.mubr.bf16.gmra.mrb[204].mxu0 %v14534_v3  ;;  %8307 = vmatprep.subr.bf16.mxu1 %v13361_v25  ;;  %v13371_v25 = vld [vmem:[%s17752_s15 + $0x550] ss:$24 sps:$4 sm:$0xff]  }
 0x4af   : > { %7852 = vmatprep.mubr.bf16.mxu0 %v13996_v37 }
 0x4b1   : > { %8308 = vmatpush1.bf16.msra.mxu1 %v13359_v43  ;;  %v13376_v43 = vld [vmem:[%s17752_s15 + $0x584] ss:$24 sps:$4 sm:$0xff]  }
 0x4b2   : > { %8309 = vmatprep.subr.bf16.mxu1 %v13367_v18  ;;  %v13374_v18 = vld [vmem:[%s17752_s15 + $0x580] ss:$24 sps:$4 sm:$0xff]  }
 0x4b4   : > { %8179 = vmatmul.mubr.bf16.gmra.mrb[128].mxu1 %v14500_v35 }
 0x4b5   : > { %8188 = vmatprep.mubr.bf16.mxu1 %v13916_v36  ;;  %8310 = vmatpush1.bf16.msra.mxu1 %v13365_v13  ;;  %v13379_v13 = vld [vmem:[%s17752_s15 + $0x5b4] ss:$24 sps:$4 sm:$0xff]  }
 0x4b6   : > { %7853 = vmatmul.mubr.bf16.gmra.mrb[208].mxu0 %v14551_v23  ;;  %8311 = vmatprep.subr.bf16.mxu1 %v13370_v2  ;;  %v13377_v2 = vld [vmem:[%s17752_s15 + $0x5b0] ss:$24 sps:$4 sm:$0xff]  }
 0x4b7   : > { %7862 = vmatprep.mubr.bf16.mxu0 %v14004_v48 }
 0x4b9   : > { %8312 = vmatpush1.bf16.msra.mxu1 %v13368_v45  ;;  %v13382_v45 = vld [vmem:[%s17752_s15 + $0x5e4] ss:$24 sps:$4 sm:$0xff]  }
 0x4ba   : > { %8313 = vmatprep.subr.bf16.mxu1 %v13373_v55  ;;  %v13380_v55 = vld [vmem:[%s17752_s15 + $0x5e0] ss:$24 sps:$4 sm:$0xff]  }
 0x4bc   : > { %8189 = vmatmul.mubr.bf16.gmra.mrb[132].mxu1 %v14495_v31 }
 0x4bd   : > { %8198 = vmatprep.mubr.bf16.mxu1 %v13930_v46  ;;  %8314 = vmatpush1.bf16.msra.mxu1 %v13371_v25  ;;  %v13385_v25 = vld [vmem:[%s17752_s15 + $0x614] ss:$24 sps:$4 sm:$0xff]  }
 0x4be   : > { %7863 = vmatmul.mubr.bf16.gmra.mrb[212].mxu0 %v14548_v16  ;;  %8315 = vmatprep.subr.bf16.mxu1 %v13376_v43  ;;  %v18011_v43 = vld [vmem:[#allocation37_spill] sm:$0xff] }
 0x4bf   : > { %7872 = vmatprep.mubr.bf16.mxu0 %v14018_v61 }
 0x4c1   : > { %8316 = vmatpush1.bf16.msra.mxu1 %v13374_v18 }
 0x4c2   : > { %8317 = vmatprep.subr.bf16.mxu1 %v13379_v13  ;;  %v18012_v13 = vld [vmem:[#allocation41_spill] sm:$0xff] }
 0x4c4   : > { %8199 = vmatmul.mubr.bf16.gmra.mrb[136].mxu1 %v14512_v39 }
 0x4c5   : > { %8208 = vmatprep.mubr.bf16.mxu1 %v13938_v53  ;;  %8318 = vmatpush1.bf16.msra.mxu1 %v13377_v2  ;;  %v18013_v2 = vld [vmem:[#allocation61_spill] sm:$0xff] }
 0x4c6   : > { %7873 = vmatmul.mubr.bf16.gmra.mrb[216].mxu0 %v14563_v52  ;;  %8319 = vmatprep.subr.bf16.mxu1 %v13382_v45 }
 0x4c7   : > { %7882 = vmatprep.mubr.bf16.mxu0 %v14028_v7 }
 0x4c9   : > { %8320 = vmatpush1.bf16.msra.mxu1 %v13380_v55 }
 0x4ca   : > { %8482 = vmatprep.subr.bf16.mxu1 %v13385_v25  ;;  %v18014_v25 = vld [vmem:[#allocation62_spill] sm:$0xff] }
 0x4cc   : > { %8209 = vmatmul.mubr.bf16.gmra.mrb[140].mxu1 %v18000_v51  ;;  %v18016_v51 = vld [vmem:[#allocation64_spill] sm:$0xff] }
 0x4cd   : > { %8218 = vmatprep.mubr.bf16.mxu1 %v18001_v12 }
 0x4ce   : > { %7883 = vmatmul.mubr.bf16.gmra.mrb[220].mxu0 %v14560_v49 }
 0x4cf   : > { %7892 = vmatprep.mubr.bf16.mxu0 %v18005_v8 }
 0x4d4   : > { %8219 = vmatmul.mubr.bf16.gmra.mrb[144].mxu1 %v18002_v21 }
 0x4d5   : > { %8228 = vmatprep.mubr.bf16.mxu1 %v18003_v22  ;;  %v18015_v22 = vld [vmem:[#allocation63_spill] sm:$0xff] }
 0x4d6   : > { %7893 = vmatmul.mubr.bf16.gmra.mrb[224].mxu0 %v18005_v8 }
 0x4d7   : > { %7935 = vmatprep.mubr.bf16.mxu0 %v18011_v43 }
 0x4dc   : > { %8229 = vmatmul.mubr.bf16.gmra.mrb[148].mxu1 %v14522_v59 }
 0x4dd   : > { %8238 = vmatprep.mubr.bf16.mxu1 %v13974_v19 }
 0x4de   : > { %7936 = vmatmul.mubr.bf16.vlgmr.msra.gmra.mrb[164].mxu0 %v14555_v34 }
 0x4df   : > { %v6779_v18 = vpop.f32.mrb[44].mxu1  ;;  %7945 = vmatprep.mubr.bf16.mxu0 %v18012_v13 }
 0x4e0   : > { %v11725_v45 = vadd.f32 %v6779_v18, %v18013_v2  ;;  %v6781_v55 = vpop.f32.mrb[45].mxu1  ;;  %v18017_v18 = vld [vmem:[#allocation65_spill] sm:$0xff] }
 0x4e1   : > { %v11726_v49 = vadd.f32 %v6781_v55, %v18014_v25  ;;  %v6783_v7 = vpop.f32.mrb[46].mxu1 }
 0x4e2   : > { %v11727_v21 = vadd.f32 %v6783_v7, %v18015_v22  ;;  %v6785_v12 = vpop.f32.mrb[47].mxu1  ;;  %v18018_v7 = vld [vmem:[#allocation66_spill] sm:$0xff] }
 0x4e3   : > { %v11728_v53 = vadd.f32 %v6785_v12, %v18016_v51  ;;  %v18019_v12 = vld [vmem:[#allocation67_spill] sm:$0xff] }
 0x4e4   : > { %v11551_v39 = vpack.c.bf16 %v11727_v21, %v11725_v45  ;;  %8239 = vmatmul.mubr.bf16.gmra.mrb[152].mxu1 %v14536_v17  ;;  %v18020_v45 = vld [vmem:[#allocation68_spill] sm:$0xff] }
 0x4e5   : > { %v11549_v19 = vpack.c.bf16 %v11728_v53, %v11726_v49  ;;  %8248 = vmatprep.mubr.bf16.mxu1 %v13982_v26 }
 0x4e6   : > { %7946 = vmatmul.mubr.bf16.gmra.mrb[168].mxu0 %v14570_v0 }
 0x4e7   : > { %v6789_v59 = vpop.f32.mrb[48].mxu1  ;;  %7955 = vmatprep.mubr.bf16.mxu0 %v14580_v5  ;;  %11550 = vmatprep.subr.bf16.mxu0 %v11549_v19 }
 0x4e8   : > { %v11729_v2 = vadd.f32 %v6789_v59, %v18017_v18  ;;  %v6791_v55 = vpop.f32.mrb[49].mxu1  ;;  %11552 = vmatpush1.bf16.msra.mxu0 %v11551_v39  ;;  %v18021_v39 = vld [vmem:[#allocation69_spill] sm:$0xff] }
 0x4e9   : > { %v11730_v22 = vadd.f32 %v6791_v55, %v18018_v7  ;;  %v6793_v25 = vpop.f32.mrb[50].mxu1  ;;  %v18022_v55 = vld [vmem:[#allocation70_spill] sm:$0xff] }
 0x4ea   : > { %v11731_v51 = vadd.f32 %v6793_v25, %v18019_v12  ;;  %v6795_v21 = vpop.f32.mrb[51].mxu1  ;;  %v18023_v12 = vld [vmem:[#allocation71_spill] sm:$0xff] }
 0x4eb   : > { %v11732_v53 = vadd.f32 %v6795_v21, %v18020_v45  ;;  %v18024_v21 = vld [vmem:[#allocation72_spill] sm:$0xff] }
 0x4ec   : > { %v11555_v49 = vpack.c.bf16 %v11731_v51, %v11729_v2  ;;  %8249 = vmatmul.mubr.bf16.gmra.mrb[156].mxu1 %v14534_v3 }
 0x4ed   : > { %v11553_v26 = vpack.c.bf16 %v11732_v53, %v11730_v22  ;;  %8258 = vmatprep.mubr.bf16.mxu1 %v13996_v37 }
 0x4ee   : > { %7956 = vmatmul.mubr.bf16.gmra.mrb[172].mxu0 %v14578_v56 }
 0x4ef   : > { %v6799_v19 = vpop.f32.mrb[52].mxu1  ;;  %7965 = vmatprep.mubr.bf16.mxu0 %v14588_v10  ;;  %11554 = vmatprep.subr.bf16.mxu0 %v11553_v26 }
 0x4f0   : > { %v11733_v59 = vadd.f32 %v6799_v19, %v18021_v39  ;;  %v6801_v18 = vpop.f32.mrb[53].mxu1  ;;  %11556 = vmatpush1.bf16.msra.mxu0 %v11555_v49  ;;  %v18025_v49 = vld [vmem:[#allocation73_spill] sm:$0xff] }
 0x4f1   : > { %v11734_v7 = vadd.f32 %v6801_v18, %v18022_v55  ;;  %v6803_v25 = vpop.f32.mrb[54].mxu1  ;;  %v18026_v18 = vld [vmem:[#allocation74_spill] sm:$0xff] }
 0x4f2   : > { %v11735_v2 = vadd.f32 %v6803_v25, %v18023_v12  ;;  %v6805_v51 = vpop.f32.mrb[55].mxu1  ;;  %v18027_v12 = vld [vmem:[#allocation75_spill] sm:$0xff] }
 0x4f3   : > { %v11736_v22 = vadd.f32 %v6805_v51, %v18024_v21  ;;  %v18028_v51 = vld [vmem:[#allocation76_spill] sm:$0xff] }
 0x4f4   : > { %v11559_v45 = vpack.c.bf16 %v11735_v2, %v11733_v59  ;;  %8259 = vmatmul.mubr.bf16.gmra.mrb[160].mxu1 %v14551_v23 }
 0x4f5   : > { %v11557_v53 = vpack.c.bf16 %v11736_v22, %v11734_v7  ;;  %8268 = vmatprep.mubr.bf16.mxu1 %v14004_v48 }
 0x4f6   : > { %7966 = vmatmul.mubr.bf16.gmra.mrb[176].mxu0 %v14586_v20 }
 0x4f7   : > { %v6809_v26 = vpop.f32.mrb[56].mxu1  ;;  %7975 = vmatprep.mubr.bf16.mxu0 %v14596_v41  ;;  %11558 = vmatprep.subr.bf16.mxu0 %v11557_v53 }
 0x4f8   : > { %v11737_v19 = vadd.f32 %v6809_v26, %v18025_v49  ;;  %v6811_v39 = vpop.f32.mrb[57].mxu1  ;;  %11560 = vmatpush1.bf16.msra.mxu0 %v11559_v45  ;;  %v18029_v45 = vld [vmem:[#allocation77_spill] sm:$0xff] }
 0x4f9   : > { %v11738_v55 = vadd.f32 %v6811_v39, %v18026_v18  ;;  %v6813_v25 = vpop.f32.mrb[58].mxu1  ;;  %v18030_v39 = vld [vmem:[#allocation78_spill] sm:$0xff] }
 0x4fa   : > { %v11739_v59 = vadd.f32 %v6813_v25, %v18027_v12  ;;  %v6815_v2 = vpop.f32.mrb[59].mxu1  ;;  %v18031_v12 = vld [vmem:[#allocation79_spill] sm:$0xff] }
 0x4fb   : > { %v11740_v7 = vadd.f32 %v6815_v2, %v18028_v51  ;;  %v18032_v2 = vld [vmem:[#allocation80_spill] sm:$0xff] }
 0x4fc   : > { %v11563_v21 = vpack.c.bf16 %v11739_v59, %v11737_v19  ;;  %8269 = vmatmul.mubr.bf16.gmra.mrb[164].mxu1 %v14548_v16 }
 0x4fd   : > { %v11561_v22 = vpack.c.bf16 %v11740_v7, %v11738_v55  ;;  %8278 = vmatprep.mubr.bf16.mxu1 %v14018_v61 }
 0x4fe   : > { %7976 = vmatmul.mubr.bf16.gmra.mrb[180].mxu0 %v14594_v38 }
 0x4ff   : > { %v6819_v53 = vpop.f32.mrb[60].mxu1  ;;  %7985 = vmatprep.mubr.bf16.mxu0 %v14604_v62  ;;  %11562 = vmatprep.subr.bf16.mxu0 %v11561_v22 }
 0x500   : > { %v11741_v26 = vadd.f32 %v6819_v53, %v18029_v45  ;;  %v6821_v49 = vpop.f32.mrb[61].mxu1  ;;  %11564 = vmatpush1.bf16.msra.mxu0 %v11563_v21  ;;  %v18033_v21 = vld [vmem:[#allocation81_spill] sm:$0xff] }
 0x501   : > { %v11742_v18 = vadd.f32 %v6821_v49, %v18030_v39  ;;  %v6823_v25 = vpop.f32.mrb[62].mxu1  ;;  %v18034_v49 = vld [vmem:[#allocation82_spill] sm:$0xff] }
 0x502   : > { %v11743_v19 = vadd.f32 %v6823_v25, %v18031_v12  ;;  %v6825_v59 = vpop.f32.mrb[63].mxu1 }
 0x503   : > { %v11744_v55 = vadd.f32 %v6825_v59, %v18032_v2  ;;  %v13388_v59 = vld [vmem:[%s17752_s15 + $0x644] ss:$24 sps:$4 sm:$0xff]  }
 0x504   : > { %v11567_v51 = vpack.c.bf16 %v11743_v19, %v11741_v26  ;;  %8279 = vmatmul.mubr.bf16.gmra.mrb[168].mxu1 %v14563_v52  ;;  %v13383_v26 = vld [vmem:[%s17752_s15 + $0x610] ss:$24 sps:$4 sm:$0xff]   ;;  %v18036_v2 = vld [vmem:[#allocation84_spill] sm:$0xff] }
 0x505   : > { %v11565_v7 = vpack.c.bf16 %v11744_v55, %v11742_v18  ;;  %8321 = vmatprep.mubr.bf16.mxu1 %v18005_v8  ;;  %v18035_v18 = vld [vmem:[#allocation83_spill] sm:$0xff] }
 0x506   : > { %7986 = vmatmul.mubr.bf16.gmra.mrb[184].mxu0 %v14602_v54 }
 0x507   : > { %v6829_v22 = vpop.f32.mrb[64].mxu1  ;;  %7995 = vmatprep.mubr.bf16.mxu0 %v14612_v24  ;;  %11566 = vmatprep.subr.bf16.mxu0 %v11565_v7 }
 0x508   : > { %v11745_v53 = vadd.f32 %v6829_v22, %v18033_v21  ;;  %v6831_v45 = vpop.f32.mrb[65].mxu1  ;;  %11568 = vmatpush1.bf16.msra.mxu0 %v11567_v51  ;;  %v18037_v22 = vld [vmem:[#allocation33_spill] sm:$0xff]  ;;  %v13386_v21 = vld [vmem:[%s17752_s15 + $0x640] ss:$24 sps:$4 sm:$0xff]  }
 0x509   : > { %v11746_v39 = vadd.f32 %v6831_v45, %v18034_v49  ;;  %v6833_v25 = vpop.f32.mrb[66].mxu1  ;;  %v13391_v45 = vld [vmem:[%s17752_s15 + $0x674] ss:$24 sps:$4 sm:$0xff]  }
 0x50a   : > { %v11747_v12 = vadd.f32 %v6833_v25, %v18035_v18  ;;  %v6835_v19 = vpop.f32.mrb[67].mxu1 }
 0x50b   : > { %v11748_v55 = vadd.f32 %v6835_v19, %v18036_v2  ;;  %v13389_v19 = vld [vmem:[%s17752_s15 + $0x670] ss:$24 sps:$4 sm:$0xff]  }
 0x50c   : > { %v11571_v7 = vpack.c.bf16 %v11747_v12, %v11745_v53  ;;  %8322 = vmatmul.mubr.bf16.vlgmr.msra.gmra.mrb[108].mxu1 %v18005_v8  ;;  %v18038_v53 = vld [vmem:[#allocation85_spill] sm:$0xff] }
 0x50d   : > { %v11569_v51 = vpack.c.bf16 %v11748_v55, %v11746_v39  ;;  %8331 = vmatprep.mubr.bf16.mxu1 %v18037_v22  ;;  %8483 = vmatpush1.bf16.msra.mxu1 %v13383_v26  ;;  %v18039_v26 = vld [vmem:[#allocation86_spill] sm:$0xff]  ;;  %v18041_v22 = vld [vmem:[#allocation88_spill] sm:$0xff] }
 0x50e   : > { %7996 = vmatmul.mubr.bf16.gmra.mrb[188].mxu0 %v14610_v4  ;;  %8484 = vmatprep.subr.bf16.mxu1 %v13388_v59  ;;  %v18040_v59 = vld [vmem:[#allocation87_spill] sm:$0xff] }
 0x50f   : > { %v6839_v49 = vpop.f32.mrb[68].mxu1  ;;  %8005 = vmatprep.mubr.bf16.mxu0 %v14620_v32  ;;  %11570 = vmatprep.subr.bf16.mxu0 %v11569_v51  ;;  %v13394_v51 = vld [vmem:[%s17752_s15 + $0x6a4] ss:$24 sps:$4 sm:$0xff]  }
 0x510   : > { %v11749_v39 = vadd.f32 %v6839_v49, %v18038_v53  ;;  %v6841_v25 = vpop.f32.mrb[69].mxu1  ;;  %11572 = vmatpush1.bf16.msra.mxu0 %v11571_v7  ;;  %v18042_v7 = vld [vmem:[#allocation32_spill] sm:$0xff] }
 0x511   : > { %v11750_v18 = vadd.f32 %v6841_v25, %v18039_v26  ;;  %v6843_v12 = vpop.f32.mrb[70].mxu1  ;;  %8485 = vmatpush1.bf16.msra.mxu1 %v13386_v21  ;;  %v13392_v21 = vld [vmem:[%s17752_s15 + $0x6a0] ss:$24 sps:$4 sm:$0xff]  }
 0x512   : > { %v11751_v2 = vadd.f32 %v6843_v12, %v18040_v59  ;;  %v6845_v55 = vpop.f32.mrb[71].mxu1  ;;  %8486 = vmatprep.subr.bf16.mxu1 %v13391_v45  ;;  %v13397_v45 = vld [vmem:[%s17752_s15 + $0x6d4] ss:$24 sps:$4 sm:$0xff]  }
 0x513   : > { %v11752_v49 = vadd.f32 %v6845_v55, %v18041_v22  ;;  %v18043_v22 = vld [vmem:[#allocation89_spill] sm:$0xff]  ;;  %v18044_v12 = vld [vmem:[#allocation90_spill] sm:$0xff]  ;;  %v18045_v55 = vld [vmem:[#allocation91_spill] sm:$0xff] }
 0x514   : > { %v11575_v53 = vpack.c.bf16 %v11751_v2, %v11749_v39  ;;  %8332 = vmatmul.mubr.bf16.gmra.mrb[112].mxu1 %v18042_v7  ;;  %v13395_v2 = vld [vmem:[%s17752_s15 + $0x6d0] ss:$24 sps:$4 sm:$0xff]  }
 0x515   : > { %v11573_v25 = vpack.c.bf16 %v11752_v49, %v11750_v18  ;;  %8341 = vmatprep.mubr.bf16.mxu1 %v18011_v43  ;;  %8487 = vmatpush1.bf16.msra.mxu1 %v13389_v19  ;;  %v18046_v43 = vld [vmem:[#allocation92_spill] sm:$0xff] }
 0x516   : > { %8006 = vmatmul.mubr.bf16.gmra.mrb[192].mxu0 %v14618_v27  ;;  %8488 = vmatprep.subr.bf16.mxu1 %v13394_v51 }
 0x517   : > { %v6849_v26 = vpop.f32.mrb[72].mxu1  ;;  %8015 = vmatprep.mubr.bf16.mxu0 %v14628_v42  ;;  %11574 = vmatprep.subr.bf16.mxu0 %v11573_v25  ;;  %v13400_v25 = vld [vmem:[%s17752_s15 + $0x704] ss:$24 sps:$4 sm:$0xff]  }
 0x518   : > { %v11753_v39 = vadd.f32 %v6849_v26, %v18043_v22  ;;  %v6851_v18 = vpop.f32.mrb[73].mxu1  ;;  %11576 = vmatpush1.bf16.msra.mxu0 %v11575_v53 }
 0x519   : > { %v11754_v19 = vadd.f32 %v6851_v18, %v18044_v12  ;;  %v6853_v59 = vpop.f32.mrb[74].mxu1  ;;  %8489 = vmatpush1.bf16.msra.mxu1 %v13392_v21  ;;  %v13398_v21 = vld [vmem:[%s17752_s15 + $0x700] ss:$24 sps:$4 sm:$0xff]  }
 0x51a   : > { %v11755_v51 = vadd.f32 %v6853_v59, %v18045_v55  ;;  %v6855_v49 = vpop.f32.mrb[75].mxu1  ;;  %8490 = vmatprep.subr.bf16.mxu1 %v13397_v45  ;;  %v13403_v45 = vld [vmem:[%s17752_s15 + $0x734] ss:$24 sps:$4 sm:$0xff]   ;;  %v13401_v55 = vld [vmem:[%s17752_s15 + $0x730] ss:$24 sps:$4 sm:$0xff]  }
 0x51b   : > { %v11756_v26 = vadd.f32 %v6855_v49, %v18046_v43  ;;  %v18047_v43 = vld [vmem:[#allocation93_spill] sm:$0xff] }
 0x51c   : > { %v11579_v22 = vpack.c.bf16 %v11755_v51, %v11753_v39  ;;  %8342 = vmatmul.mubr.bf16.gmra.mrb[116].mxu1 %v14555_v34  ;;  %v18049_v51 = vld [vmem:[#allocation95_spill] sm:$0xff] }
 0x51d   : > { %v11577_v53 = vpack.c.bf16 %v11756_v26, %v11754_v19  ;;  %8351 = vmatprep.mubr.bf16.mxu1 %v18012_v13  ;;  %8491 = vmatpush1.bf16.msra.mxu1 %v13395_v2  ;;  %v18048_v19 = vld [vmem:[#allocation94_spill] sm:$0xff]  ;;  %v13406_v26 = vld [vmem:[%s17752_s15 + $0x764] ss:$24 sps:$4 sm:$0xff]  }
 0x51e   : > { %8016 = vmatmul.mubr.bf16.gmra.mrb[196].mxu0 %v14626_v29  ;;  %8492 = vmatprep.subr.bf16.mxu1 %v13400_v25 }
 0x51f   : > { %v6859_v18 = vpop.f32.mrb[76].mxu1  ;;  %8025 = vmatprep.mubr.bf16.mxu0 %v14648_v50  ;;  %11578 = vmatprep.subr.bf16.mxu0 %v11577_v53  ;;  %v18050_v53 = vld [vmem:[#allocation96_spill] sm:$0xff] }
 0x520   : > { %v11757_v39 = vadd.f32 %v6859_v18, %v18047_v43  ;;  %v6861_v12 = vpop.f32.mrb[77].mxu1  ;;  %11580 = vmatpush1.bf16.msra.mxu0 %v11579_v22 }
 0x521   : > { %v11758_v59 = vadd.f32 %v6861_v12, %v18048_v19  ;;  %v6863_v2 = vpop.f32.mrb[78].mxu1  ;;  %8493 = vmatpush1.bf16.msra.mxu1 %v13398_v21  ;;  %v13404_v21 = vld [vmem:[%s17752_s15 + $0x760] ss:$24 sps:$4 sm:$0xff]  }
 0x522   : > { %v11759_v49 = vadd.f32 %v6863_v2, %v18049_v51  ;;  %v6865_v25 = vpop.f32.mrb[79].mxu1  ;;  %8494 = vmatprep.subr.bf16.mxu1 %v13403_v45  ;;  %v13409_v45 = vld [vmem:[%s17752_s15 + $0x794] ss:$24 sps:$4 sm:$0xff]  }
 0x523   : > { %v11760_v18 = vadd.f32 %v6865_v25, %v18050_v53  ;;  %v18052_v2 = vld [vmem:[#allocation98_spill] sm:$0xff]  ;;  %v18053_v25 = vld [vmem:[#allocation99_spill] sm:$0xff] }
 0x524   : > { %v11583_v43 = vpack.c.bf16 %v11759_v49, %v11757_v39  ;;  %8352 = vmatmul.mubr.bf16.gmra.mrb[120].mxu1 %v14570_v0  ;;  %v18051_v39 = vld [vmem:[#allocation97_spill] sm:$0xff] }
 0x525   : > { %v11581_v22 = vpack.c.bf16 %v11760_v18, %v11758_v59  ;;  %8361 = vmatprep.mubr.bf16.mxu1 %v14580_v5  ;;  %8495 = vmatpush1.bf16.msra.mxu1 %v13401_v55  ;;  %v13407_v49 = vld [vmem:[%s17752_s15 + $0x790] ss:$24 sps:$4 sm:$0xff]   ;;  %v13412_v18 = vld [vmem:[%s17752_s15 + $0x7c4] ss:$24 sps:$4 sm:$0xff]  }
 0x526   : > { %8026 = vmatmul.mubr.bf16.gmra.mrb[200].mxu0 %v14643_v28  ;;  %8496 = vmatprep.subr.bf16.mxu1 %v13406_v26 }
 0x527   : > { %v6869_v12 = vpop.f32.mrb[80].mxu1  ;;  %8035 = vmatprep.mubr.bf16.mxu0 %v17994_v6  ;;  %11582 = vmatprep.subr.bf16.mxu0 %v11581_v22  ;;  %v18054_v22 = vld [vmem:[#allocation100_spill] sm:$0xff] }
 0x528   : > { %v11761_v19 = vadd.f32 %v6869_v12, %v18051_v39  ;;  %v6871_v59 = vpop.f32.mrb[81].mxu1  ;;  %11584 = vmatpush1.bf16.msra.mxu0 %v11583_v43 }
 0x529   : > { %v11762_v55 = vadd.f32 %v6871_v59, %v18052_v2  ;;  %v6873_v51 = vpop.f32.mrb[82].mxu1  ;;  %8497 = vmatpush1.bf16.msra.mxu1 %v13404_v21  ;;  %v13410_v21 = vld [vmem:[%s17752_s15 + $0x7c0] ss:$24 sps:$4 sm:$0xff]  }
 0x52a   : > { %v11763_v26 = vadd.f32 %v6873_v51, %v18053_v25  ;;  %v6875_v53 = vpop.f32.mrb[83].mxu1  ;;  %8498 = vmatprep.subr.bf16.mxu1 %v13409_v45  ;;  %v13415_v45 = vld [vmem:[%s17752_s15 + $0x7f4] ss:$24 sps:$4 sm:$0xff]  }
 0x52b   : > { %v11764_v12 = vadd.f32 %v6875_v53, %v18054_v22  ;;  %v18056_v51 = vld [vmem:[#allocation102_spill] sm:$0xff]  ;;  %v18057_v53 = vld [vmem:[#allocation103_spill] sm:$0xff] }
 0x52c   : > { %v11587_v39 = vpack.c.bf16 %v11763_v26, %v11761_v19  ;;  %8362 = vmatmul.mubr.bf16.gmra.mrb[124].mxu1 %v14578_v56  ;;  %v18055_v19 = vld [vmem:[#allocation101_spill] sm:$0xff] }
 0x52d   : > { %v11585_v43 = vpack.c.bf16 %v11764_v12, %v11762_v55  ;;  %8371 = vmatprep.mubr.bf16.mxu1 %v14588_v10  ;;  %8499 = vmatpush1.bf16.msra.mxu1 %v13407_v49  ;;  %v13413_v26 = vld [vmem:[%s17752_s15 + $0x7f0] ss:$24 sps:$4 sm:$0xff]   ;;  %v13418_v12 = vld [vmem:[%s17752_s15 + $0x824] ss:$24 sps:$4 sm:$0xff]  }
 0x52e   : > { %8036 = vmatmul.mubr.bf16.gmra.mrb[204].mxu0 %v17995_v63  ;;  %8500 = vmatprep.subr.bf16.mxu1 %v13412_v18 }
 0x52f   : > { %v6879_v59 = vpop.f32.mrb[84].mxu1  ;;  %8045 = vmatprep.mubr.bf16.mxu0 %v17996_v60  ;;  %11586 = vmatprep.subr.bf16.mxu0 %v11585_v43  ;;  %v18058_v43 = vld [vmem:[#allocation104_spill] sm:$0xff] }
 0x530   : > { %v11765_v2 = vadd.f32 %v6879_v59, %v18055_v19  ;;  %v6881_v55 = vpop.f32.mrb[85].mxu1  ;;  %11588 = vmatpush1.bf16.msra.mxu0 %v11587_v39 }
 0x531   : > { %v11766_v49 = vadd.f32 %v6881_v55, %v18056_v51  ;;  %v6883_v25 = vpop.f32.mrb[86].mxu1  ;;  %8501 = vmatpush1.bf16.msra.mxu1 %v13410_v21  ;;  %v13416_v21 = vld [vmem:[%s17752_s15 + $0x820] ss:$24 sps:$4 sm:$0xff]  }
 0x532   : > { %v11767_v18 = vadd.f32 %v6883_v25, %v18057_v53  ;;  %v6885_v22 = vpop.f32.mrb[87].mxu1  ;;  %8502 = vmatprep.subr.bf16.mxu1 %v13415_v45  ;;  %v13421_v45 = vld [vmem:[%s17752_s15 + $0x854] ss:$24 sps:$4 sm:$0xff]  }
 0x533   : > { %v11768_v59 = vadd.f32 %v6885_v22, %v18058_v43  ;;  %v18060_v25 = vld [vmem:[#allocation106_spill] sm:$0xff]  ;;  %v18061_v22 = vld [vmem:[#allocation107_spill] sm:$0xff] }
 0x534   : > { %v11591_v19 = vpack.c.bf16 %v11767_v18, %v11765_v2  ;;  %8372 = vmatmul.mubr.bf16.gmra.mrb[128].mxu1 %v14586_v20  ;;  %v18059_v2 = vld [vmem:[#allocation105_spill] sm:$0xff] }
 0x535   : > { %v11589_v39 = vpack.c.bf16 %v11768_v59, %v11766_v49  ;;  %8381 = vmatprep.mubr.bf16.mxu1 %v14596_v41  ;;  %8503 = vmatpush1.bf16.msra.mxu1 %v13413_v26  ;;  %v13419_v18 = vld [vmem:[%s17752_s15 + $0x850] ss:$24 sps:$4 sm:$0xff]   ;;  %v13424_v59 = vld [vmem:[%s17752_s15 + $0x884] ss:$24 sps:$4 sm:$0xff]  }
 0x536   : > { %8046 = vmatmul.mubr.bf16.gmra.mrb[208].mxu0 %v17997_v33  ;;  %8504 = vmatprep.subr.bf16.mxu1 %v13418_v12 }
 0x537   : > { %v6889_v55 = vpop.f32.mrb[88].mxu1  ;;  %8055 = vmatprep.mubr.bf16.mxu0 %v17998_v40  ;;  %11590 = vmatprep.subr.bf16.mxu0 %v11589_v39  ;;  %v18062_v39 = vld [vmem:[#allocation108_spill] sm:$0xff] }
 0x538   : > { %v11769_v51 = vadd.f32 %v6889_v55, %v18059_v2  ;;  %v6891_v49 = vpop.f32.mrb[89].mxu1  ;;  %11592 = vmatpush1.bf16.msra.mxu0 %v11591_v19 }
 0x539   : > { %v11770_v26 = vadd.f32 %v6891_v49, %v18060_v25  ;;  %v6893_v53 = vpop.f32.mrb[90].mxu1  ;;  %8505 = vmatpush1.bf16.msra.mxu1 %v13416_v21  ;;  %v13422_v21 = vld [vmem:[%s17752_s15 + $0x880] ss:$24 sps:$4 sm:$0xff]  }
 0x53a   : > { %v11771_v12 = vadd.f32 %v6893_v53, %v18061_v22  ;;  %v6895_v43 = vpop.f32.mrb[91].mxu1  ;;  %8506 = vmatprep.subr.bf16.mxu1 %v13421_v45  ;;  %v13427_v45 = vld [vmem:[%s17752_s15 + $0x8b4] ss:$24 sps:$4 sm:$0xff]  }
 0x53b   : > { %v11772_v55 = vadd.f32 %v6895_v43, %v18062_v39  ;;  %v18064_v53 = vld [vmem:[#allocation110_spill] sm:$0xff]  ;;  %v18065_v43 = vld [vmem:[#allocation111_spill] sm:$0xff] }
 0x53c   : > { %v11595_v2 = vpack.c.bf16 %v11771_v12, %v11769_v51  ;;  %8382 = vmatmul.mubr.bf16.gmra.mrb[132].mxu1 %v14594_v38  ;;  %v18063_v51 = vld [vmem:[#allocation109_spill] sm:$0xff] }
 0x53d   : > { %v11593_v19 = vpack.c.bf16 %v11772_v55, %v11770_v26  ;;  %8391 = vmatprep.mubr.bf16.mxu1 %v14604_v62  ;;  %8507 = vmatpush1.bf16.msra.mxu1 %v13419_v18  ;;  %v13425_v12 = vld [vmem:[%s17752_s15 + $0x8b0] ss:$24 sps:$4 sm:$0xff]   ;;  %v13430_v55 = vld [vmem:[%s17752_s15 + $0x8e4] ss:$24 sps:$4 sm:$0xff]  }
 0x53e   : > { %8056 = vmatmul.mubr.bf16.gmra.mrb[212].mxu0 %v17999_v47  ;;  %8508 = vmatprep.subr.bf16.mxu1 %v13424_v59 }
 0x53f   : > { %v6899_v49 = vpop.f32.mrb[92].mxu1  ;;  %8065 = vmatprep.mubr.bf16.mxu0 %v14728_v14  ;;  %11594 = vmatprep.subr.bf16.mxu0 %v11593_v19  ;;  %v18066_v19 = vld [vmem:[#allocation112_spill] sm:$0xff] }
 0x540   : > { %v11773_v25 = vadd.f32 %v6899_v49, %v18063_v51  ;;  %v6901_v26 = vpop.f32.mrb[93].mxu1  ;;  %11596 = vmatpush1.bf16.msra.mxu0 %v11595_v2 }
 0x541   : > { %v11774_v18 = vadd.f32 %v6901_v26, %v18064_v53  ;;  %v6903_v22 = vpop.f32.mrb[94].mxu1  ;;  %8509 = vmatpush1.bf16.msra.mxu1 %v13422_v21  ;;  %v13428_v21 = vld [vmem:[%s17752_s15 + $0x8e0] ss:$24 sps:$4 sm:$0xff]   ;;  %v18067_v26 = vld [vmem:[#allocation57_spill] sm:$0xff] }
 0x542   : > { %v11775_v59 = vadd.f32 %v6903_v22, %v18065_v43  ;;  %v6905_v39 = vpop.f32.mrb[95].mxu1  ;;  %8510 = vmatprep.subr.bf16.mxu1 %v13427_v45  ;;  %v13433_v45 = vld [vmem:[%s17752_s15 + $0x914] ss:$24 sps:$4 sm:$0xff]   ;;  %v18068_v22 = vld [vmem:[#allocation60_spill] sm:$0xff] }
 0x543   : > { %v11776_v49 = vadd.f32 %v6905_v39, %v18066_v19  ;;  %v18071_v19 = vld [vmem:[#allocation115_spill] sm:$0xff] }
 0x544   : > { %v11599_v51 = vpack.c.bf16 %v11775_v59, %v11773_v25  ;;  %8392 = vmatmul.mubr.bf16.gmra.mrb[136].mxu1 %v14602_v54  ;;  %v18069_v25 = vld [vmem:[#allocation113_spill] sm:$0xff] }
 0x545   : > { %v11597_v2 = vpack.c.bf16 %v11776_v49, %v11774_v18  ;;  %8401 = vmatprep.mubr.bf16.mxu1 %v14612_v24  ;;  %8511 = vmatpush1.bf16.msra.mxu1 %v13425_v12  ;;  %v18070_v12 = vld [vmem:[#allocation114_spill] sm:$0xff] }
 0x546   : > { %8066 = vmatmul.mubr.bf16.gmra.mrb[216].mxu0 %v18067_v26  ;;  %8512 = vmatprep.subr.bf16.mxu1 %v13430_v55  ;;  %v18072_v55 = vld [vmem:[#allocation116_spill] sm:$0xff] }
 0x547   : > { %v6909_v53 = vpop.f32.mrb[96].mxu1  ;;  %8075 = vmatprep.mubr.bf16.mxu0 %v18068_v22  ;;  %11598 = vmatprep.subr.bf16.mxu0 %v11597_v2  ;;  %v18073_v2 = vld [vmem:[#allocation59_spill] sm:$0xff] }
 0x548   : > { %v11777_v18 = vadd.f32 %v6909_v53, %v18069_v25  ;;  %v6911_v43 = vpop.f32.mrb[97].mxu1  ;;  %11600 = vmatpush1.bf16.msra.mxu0 %v11599_v51  ;;  %v18074_v51 = vld [vmem:[#allocation117_spill] sm:$0xff] }
 0x549   : > { %v11778_v59 = vadd.f32 %v6911_v43, %v18070_v12  ;;  %v6913_v39 = vpop.f32.mrb[98].mxu1  ;;  %8513 = vmatpush1.bf16.msra.mxu1 %v13428_v21  ;;  %v18075_v43 = vld [vmem:[#allocation118_spill] sm:$0xff] }
 0x54a   : > { %v11779_v49 = vadd.f32 %v6913_v39, %v18071_v19  ;;  %v6915_v24 = vpop.f32.mrb[99].mxu1  ;;  %8675 = vmatprep.subr.bf16.mxu1 %v13433_v45  ;;  %v18077_v19 = vld [vmem:[#allocation120_spill] sm:$0xff] }
 0x54b   : > { %v11780_v54 = vadd.f32 %v6915_v24, %v18072_v55  ;;  %v18076_v24 = vld [vmem:[#allocation119_spill] sm:$0xff]  ;;  %v18078_v55 = vld [vmem:[#allocation121_spill] sm:$0xff] }
 0x54c   : > { %v11603_v62 = vpack.c.bf16 %v11779_v49, %v11777_v18  ;;  %8402 = vmatmul.mubr.bf16.gmra.mrb[140].mxu1 %v14610_v4 }
 0x54d   : > { %v11601_v38 = vpack.c.bf16 %v11780_v54, %v11778_v59  ;;  %8411 = vmatprep.mubr.bf16.mxu1 %v14620_v32 }
 0x54e   : > { %8076 = vmatmul.mubr.bf16.gmra.mrb[220].mxu0 %v18073_v2 }
 0x54f   : > { %v6919_v53 = vpop.f32.mrb[100].mxu1  ;;  %11602 = vmatprep.subr.bf16.mxu0 %v11601_v38  ;;  %8085 = vmatprep.mubr.bf16.mxu0 %v18005_v8  ;;  %v9255_v38 = vld [vmem:[%s17742_s5 + $0x8] sm:$0xff] }
 0x550   : > { %v11781_v21 = vadd.f32 %v6919_v53, %v18074_v51  ;;  %v6921_v25 = vpop.f32.mrb[101].mxu1  ;;  %11604 = vmatpush1.bf16.msra.mxu0 %v11603_v62 }
 0x551   : > { %v11782_v45 = vadd.f32 %v6921_v25, %v18075_v43  ;;  %v6923_v12 = vpop.f32.mrb[102].mxu1  ;;  %v18079_v25 = vld [vmem:[#allocation122_spill] sm:$0xff] }
 0x552   : > { %v11783_v18 = vadd.f32 %v6923_v12, %v18076_v24  ;;  %v6925_v39 = vpop.f32.mrb[103].mxu1  ;;  %v18080_v12 = vld [vmem:[#allocation123_spill] sm:$0xff] }
 0x553   : > { %v11784_v54 = vadd.f32 %v6925_v39, %v18077_v19  ;;  %v18081_v39 = vld [vmem:[#allocation124_spill] sm:$0xff] }
 0x554   : > { %v11607_v59 = vpack.c.bf16 %v11783_v18, %v11781_v21  ;;  %8412 = vmatmul.mubr.bf16.gmra.mrb[144].mxu1 %v14618_v27 }
 0x555   : > { %v11605_v49 = vpack.c.bf16 %v11784_v54, %v11782_v45  ;;  %8421 = vmatprep.mubr.bf16.mxu1 %v14628_v42 }
 0x556   : > { %8086 = vmatmul.mubr.bf16.gmra.mrb[224].mxu0 %v18005_v8 }
 0x557   : > { %v6929_v62 = vpop.f32.mrb[104].mxu1  ;;  %11606 = vmatprep.subr.bf16.mxu0 %v11605_v49  ;;  %9382 = vmatprep.mubr.f32.mxu0 %v9255_v38  ;;  %v9257_v38 = vld [vmem:[%s17742_s5 + $0x18] sm:$0xff]  ;;  %v9256_v49 = vld [vmem:[%s17742_s5 + $0x10] sm:$0xff] }
 0x558   : > { %v11785_v53 = vadd.f32 %v6929_v62, %v18078_v55  ;;  %v6931_v51 = vpop.f32.mrb[105].mxu1  ;;  %11608 = vmatpush1.bf16.msra.mxu0 %v11607_v59  ;;  %v9254_v59 = vld [vmem:[%s17742_s5] sm:$0xff]  ;;  %v9259_v62 = vld [vmem:[%s17742_s5 + $0x28] sm:$0xff] }
 0x559   : > { %v11786_v21 = vadd.f32 %v6931_v51, %v18079_v25  ;;  %v6933_v43 = vpop.f32.mrb[106].mxu1  ;;  %v9258_v55 = vld [vmem:[%s17742_s5 + $0x20] sm:$0xff]  ;;  %v9260_v51 = vld [vmem:[%s17742_s5 + $0x30] sm:$0xff]  ;;  %v9263_v25 = vld [vmem:[%s17742_s5 + $0x48] sm:$0xff] }
 0x55a   : > { %v11787_v24 = vadd.f32 %v6933_v43, %v18080_v12  ;;  %v6935_v18 = vpop.f32.mrb[107].mxu1  ;;  %v9265_v43 = vld [vmem:[%s17742_s5 + $0x58] sm:$0xff]  ;;  %v9264_v12 = vld [vmem:[%s17742_s5 + $0x50] sm:$0xff] }
 0x55b   : > { %v11788_v19 = vadd.f32 %v6935_v18, %v18081_v39  ;;  %v9266_v18 = vld [vmem:[%s17742_s5 + $0x60] sm:$0xff]  ;;  %v9269_v39 = vld [vmem:[%s17742_s5 + $0x78] sm:$0xff] }
 0x55c   : > { %v11611_v45 = vpack.c.bf16 %v11787_v24, %v11785_v53  ;;  %8422 = vmatmul.mubr.bf16.gmra.mrb[148].mxu1 %v14626_v29  ;;  %v9261_v53 = vld [vmem:[%s17742_s5 + $0x38] sm:$0xff]  ;;  %v9267_v24 = vld [vmem:[%s17742_s5 + $0x68] sm:$0xff] }
 0x55d   : > { %v11609_v54 = vpack.c.bf16 %v11788_v19, %v11786_v21  ;;  %8431 = vmatprep.mubr.bf16.mxu1 %v14648_v50  ;;  %v9262_v21 = vld [vmem:[%s17742_s5 + $0x40] sm:$0xff]  ;;  %v9268_v19 = vld [vmem:[%s17742_s5 + $0x70] sm:$0xff] }
 0x55f   : > { %11610 = vmatprep.subr.bf16.mxu0 %v11609_v54  ;;  %v9270_v54 = vld [vmem:[%s17742_s5 + $0x80] sm:$0xff] }
 0x560   : > { %11612 = vmatpush1.bf16.msra.mxu0 %v11611_v45  ;;  %v9271_v45 = vld [vmem:[%s17742_s5 + $0x88] sm:$0xff] }
 0x563   : > { %9383 = vmatmul.mubr.f32.vlgmr.msra.gmra.mrb[34].mxu0 %v9254_v59  ;;  %v9273_v59 = vld [vmem:[%s17742_s5 + $0x98] sm:$0xff] }
 0x564   : > { %8432 = vmatmul.mubr.bf16.gmra.mrb[152].mxu1 %v14643_v28  ;;  %9388 = vmatprep.mubr.f32.mxu0 %v9257_v38  ;;  %v9272_v38 = vld [vmem:[%s17742_s5 + $0x90] sm:$0xff] }
 0x565   : > { %8441 = vmatprep.mubr.bf16.mxu1 %v17994_v6 }
 0x567   : > { %9389 = vmatmul.mubr.f32.gmra.mrb[228].mxu0 %v9256_v49  ;;  %v18082_v49 = vld [vmem:[#allocation4_spill] sm:$0xff] }
 0x568   : > { %9394 = vmatprep.mubr.f32.mxu0 %v9259_v62  ;;  %v9275_v62 = vld [vmem:[%s17742_s5 + $0xa8] sm:$0xff] }
 0x56b   : > { %9395 = vmatmul.mubr.f32.gmra.mrb[230].mxu0 %v9258_v55  ;;  %v9274_v55 = vld [vmem:[%s17742_s5 + $0xa0] sm:$0xff] }
 0x56c   : > { %8442 = vmatmul.mubr.bf16.gmra.mrb[156].mxu1 %v17995_v63  ;;  %9400 = vmatprep.mubr.f32.mxu0 %v9261_v53  ;;  %v9277_v53 = vld [vmem:[%s17742_s5 + $0xb8] sm:$0xff] }
 0x56d   : > { %8451 = vmatprep.mubr.bf16.mxu1 %v17996_v60 }
 0x56f   : > { %9401 = vmatmul.mubr.f32.gmra.mrb[232].mxu0 %v9260_v51  ;;  %v13431_v51 = vld [vmem:[%s17752_s15 + $0x910] ss:$24 sps:$4 sm:$0xff]  }
 0x570   : > { %9406 = vmatprep.mubr.f32.mxu0 %v9263_v25  ;;  %v13436_v25 = vld [vmem:[%s17752_s15 + $0x944] ss:$24 sps:$4 sm:$0xff]  }
 0x573   : > { %9407 = vmatmul.mubr.f32.gmra.mrb[234].mxu0 %v9262_v21  ;;  %v9276_v21 = vld [vmem:[%s17742_s5 + $0xb0] sm:$0xff] }
 0x574   : > { %8452 = vmatmul.mubr.bf16.gmra.mrb[160].mxu1 %v17997_v33  ;;  %9412 = vmatprep.mubr.f32.mxu0 %v9265_v43  ;;  %v9279_v43 = vld [vmem:[%s17742_s5 + $0xc8] sm:$0xff] }
 0x575   : > { %8461 = vmatprep.mubr.bf16.mxu1 %v17998_v40 }
 0x577   : > { %9413 = vmatmul.mubr.f32.gmra.mrb[236].mxu0 %v9264_v12  ;;  %v13434_v12 = vld [vmem:[%s17752_s15 + $0x940] ss:$24 sps:$4 sm:$0xff]  }
 0x578   : > { %9418 = vmatprep.mubr.f32.mxu0 %v9267_v24  ;;  %v9278_v24 = vld [vmem:[%s17742_s5 + $0xc0] sm:$0xff] }
 0x57b   : > { %9419 = vmatmul.mubr.f32.gmra.mrb[238].mxu0 %v9266_v18  ;;  %v9281_v18 = vld [vmem:[%s17742_s5 + $0xd8] sm:$0xff] }
 0x57c   : > { %8462 = vmatmul.mubr.bf16.gmra.mrb[164].mxu1 %v17999_v47  ;;  %9424 = vmatprep.mubr.f32.mxu0 %v9269_v39  ;;  %v13437_v39 = vld [vmem:[%s17752_s15 + $0x970] ss:$24 sps:$4 sm:$0xff]  }
 0x57d   : > { %8471 = vmatprep.mubr.bf16.mxu1 %v14728_v14 }
 0x57f   : > { %9425 = vmatmul.mubr.f32.gmra.mrb[240].mxu0 %v9268_v19  ;;  %v13442_v19 = vld [vmem:[%s17752_s15 + $0x9a4] ss:$24 sps:$4 sm:$0xff]  }
 0x580   : > { %9430 = vmatprep.mubr.f32.mxu0 %v9271_v45  ;;  %v9280_v45 = vld [vmem:[%s17742_s5 + $0xd0] sm:$0xff] }
 0x583   : > { %9431 = vmatmul.mubr.f32.gmra.mrb[242].mxu0 %v9270_v54  ;;  %v9283_v54 = vld [vmem:[%s17742_s5 + $0xe8] sm:$0xff] }
 0x584   : > { %8472 = vmatmul.mubr.bf16.gmra.mrb[168].mxu1 %v18067_v26  ;;  %9436 = vmatprep.mubr.f32.mxu0 %v9273_v59  ;;  %v13440_v59 = vld [vmem:[%s17752_s15 + $0x9a0] ss:$24 sps:$4 sm:$0xff]  }
 0x585   : > { %8514 = vmatprep.mubr.bf16.mxu1 %v18082_v49  ;;  %v9282_v49 = vld [vmem:[%s17742_s5 + $0xe0] sm:$0xff] }
 0x587   : > { %9437 = vmatmul.mubr.f32.gmra.mrb[244].mxu0 %v9272_v38  ;;  %v13445_v38 = vld [vmem:[%s17752_s15 + $0x9d4] ss:$24 sps:$4 sm:$0xff]  }
 0x588   : > { %9442 = vmatprep.mubr.f32.mxu0 %v9275_v62  ;;  %v9285_v62 = vld [vmem:[%s17742_s5 + $0xf8] sm:$0xff] }
 0x58b   : > { %9443 = vmatmul.mubr.f32.gmra.mrb[246].mxu0 %v9274_v55  ;;  %v13443_v55 = vld [vmem:[%s17752_s15 + $0x9d0] ss:$24 sps:$4 sm:$0xff]  }
 0x58c   : > { %8515 = vmatmul.mubr.bf16.vlgmr.msra.gmra.mrb[108].mxu1 %v18010_v58  ;;  %9448 = vmatprep.mubr.f32.mxu0 %v9277_v53  ;;  %v13439_v58 = vld [vmem:[%s17752_s15 + $0x974] ss:$24 sps:$4 sm:$0xff]   ;;  %v13448_v53 = vld [vmem:[%s17752_s15 + $0xa04] ss:$24 sps:$4 sm:$0xff]  }
 0x58d   : > { %8524 = vmatprep.mubr.bf16.mxu1 %v13894_v44  ;;  %8676 = vmatpush1.bf16.msra.mxu1 %v13431_v51  ;;  %v9284_v51 = vld [vmem:[%s17742_s5 + $0xf0] sm:$0xff] }
 0x58e   : > { %8677 = vmatprep.subr.bf16.mxu1 %v13436_v25  ;;  %v9287_v25 = vld [vmem:[%s17742_s5 + $0x108] sm:$0xff] }
 0x58f   : > { %9449 = vmatmul.mubr.f32.gmra.mrb[248].mxu0 %v9276_v21  ;;  %v13446_v21 = vld [vmem:[%s17752_s15 + $0xa00] ss:$24 sps:$4 sm:$0xff]  }
 0x590   : > { %9454 = vmatprep.mubr.f32.mxu0 %v9279_v43  ;;  %v13451_v43 = vld [vmem:[%s17752_s15 + $0xa34] ss:$24 sps:$4 sm:$0xff]  }
 0x591   : > { %8678 = vmatpush1.bf16.msra.mxu1 %v13434_v12  ;;  %v9286_v12 = vld [vmem:[%s17742_s5 + $0x100] sm:$0xff] }
 0x592   : > { %8679 = vmatprep.subr.bf16.mxu1 %v13439_v58  ;;  %v9289_v58 = vld [vmem:[%s17742_s5 + $0x118] sm:$0xff] }
 0x593   : > { %9455 = vmatmul.mubr.f32.gmra.mrb[250].mxu0 %v9278_v24  ;;  %v13449_v24 = vld [vmem:[%s17752_s15 + $0xa30] ss:$24 sps:$4 sm:$0xff]  }
 0x594   : > { %8525 = vmatmul.mubr.bf16.gmra.mrb[112].mxu1 %v14447_v1  ;;  %9460 = vmatprep.mubr.f32.mxu0 %v9281_v18  ;;  %v13454_v18 = vld [vmem:[%s17752_s15 + $0xa64] ss:$24 sps:$4 sm:$0xff]  }
 0x595   : > { %8534 = vmatprep.mubr.bf16.mxu1 %v18006_v15  ;;  %8680 = vmatpush1.bf16.msra.mxu1 %v13437_v39  ;;  %v9288_v39 = vld [vmem:[%s17742_s5 + $0x110] sm:$0xff] }
 0x596   : > { %8681 = vmatprep.subr.bf16.mxu1 %v13442_v19  ;;  %v9291_v19 = vld [vmem:[%s17742_s5 + $0x128] sm:$0xff] }
 0x597   : > { %9461 = vmatmul.mubr.f32.gmra.mrb[252].mxu0 %v9280_v45  ;;  %v13452_v45 = vld [vmem:[%s17752_s15 + $0xa60] ss:$24 sps:$4 sm:$0xff]  }
 0x598   : > { %9466 = vmatprep.mubr.f32.mxu0 %v9283_v54  ;;  %v13457_v54 = vld [vmem:[%s17752_s15 + $0xa94] ss:$24 sps:$4 sm:$0xff]  }
 0x599   : > { %8682 = vmatpush1.bf16.msra.mxu1 %v13440_v59  ;;  %v9290_v59 = vld [vmem:[%s17742_s5 + $0x120] sm:$0xff] }
 0x59a   : > { %8683 = vmatprep.subr.bf16.mxu1 %v13445_v38  ;;  %v9293_v38 = vld [vmem:[%s17742_s5 + $0x138] sm:$0xff] }
 0x59b   : > { %9467 = vmatmul.mubr.f32.gmra.mrb[254].mxu0 %v9282_v49  ;;  %v13455_v49 = vld [vmem:[%s17752_s15 + $0xa90] ss:$24 sps:$4 sm:$0xff]  }
 0x59c   : > { %8535 = vmatmul.mubr.bf16.gmra.mrb[116].mxu1 %v18007_v57  ;;  %9472 = vmatprep.mubr.f32.mxu0 %v9285_v62  ;;  %v13460_v62 = vld [vmem:[%s17752_s15 + $0xac4] ss:$24 sps:$4 sm:$0xff]  }
 0x59d   : > { %8544 = vmatprep.mubr.bf16.mxu1 %v13907_v9  ;;  %8684 = vmatpush1.bf16.msra.mxu1 %v13443_v55  ;;  %v9292_v55 = vld [vmem:[%s17742_s5 + $0x130] sm:$0xff]  ;;  %v9315_v9 = vld [vmem:[%s17742_s5 + $0x1e8] sm:$0xff] }
 0x59e   : > { %8685 = vmatprep.subr.bf16.mxu1 %v13448_v53  ;;  %v9295_v53 = vld [vmem:[%s17742_s5 + $0x148] sm:$0xff] }
 0x59f   : > { %9473 = vmatmul.mubr.f32.gmra.mrb[0].mxu0 %v9284_v51  ;;  %v13458_v51 = vld [vmem:[%s17752_s15 + $0xac0] ss:$24 sps:$4 sm:$0xff]  }
 0x5a0   : > { %9478 = vmatprep.mubr.f32.mxu0 %v9287_v25  ;;  %v13463_v25 = vld [vmem:[%s17752_s15 + $0xaf4] ss:$24 sps:$4 sm:$0xff]  }
 0x5a1   : > { %8686 = vmatpush1.bf16.msra.mxu1 %v13446_v21  ;;  %v9294_v21 = vld [vmem:[%s17742_s5 + $0x140] sm:$0xff] }
 0x5a2   : > { %8687 = vmatprep.subr.bf16.mxu1 %v13451_v43 }
 0x5a3   : > { %9479 = vmatmul.mubr.f32.gmra.mrb[2].mxu0 %v9286_v12  ;;  %v9297_v12 = vld [vmem:[%s17742_s5 + $0x158] sm:$0xff] }
 0x5a4   : > { %8545 = vmatmul.mubr.bf16.gmra.mrb[120].mxu1 %v14471_v11  ;;  %9484 = vmatprep.mubr.f32.mxu0 %v9289_v58  ;;  %v13461_v58 = vld [vmem:[%s17752_s15 + $0xaf0] ss:$24 sps:$4 sm:$0xff]   ;;  %v18089_v11 = vld [vmem:[#allocation28_spill] sm:$0xff] }
 0x5a5   : > { %8554 = vmatprep.mubr.bf16.mxu1 %v18008_v30  ;;  %8688 = vmatpush1.bf16.msra.mxu1 %v13449_v24 }
 0x5a6   : > { %8689 = vmatprep.subr.bf16.mxu1 %v13454_v18  ;;  %v13466_v18 = vld [vmem:[%s17752_s15 + $0xb24] ss:$24 sps:$4 sm:$0xff]  }
 0x5a7   : > { %9485 = vmatmul.mubr.f32.gmra.mrb[4].mxu0 %v9288_v39 }
 0x5a8   : > { %9490 = vmatprep.mubr.f32.mxu0 %v9291_v19 }
 0x5a9   : > { %8690 = vmatpush1.bf16.msra.mxu1 %v13452_v45  ;;  %v9296_v45 = vld [vmem:[%s17742_s5 + $0x150] sm:$0xff] }
 0x5aa   : > { %8691 = vmatprep.subr.bf16.mxu1 %v13457_v54  ;;  %v9299_v54 = vld [vmem:[%s17742_s5 + $0x168] sm:$0xff] }
 0x5ab   : > { %9491 = vmatmul.mubr.f32.gmra.mrb[6].mxu0 %v9290_v59  ;;  %v13464_v59 = vld [vmem:[%s17752_s15 + $0xb20] ss:$24 sps:$4 sm:$0xff]  }
 0x5ac   : > { %8555 = vmatmul.mubr.bf16.gmra.mrb[124].mxu1 %v14500_v35  ;;  %9496 = vmatprep.mubr.f32.mxu0 %v9293_v38  ;;  %v13469_v38 = vld [vmem:[%s17752_s15 + $0xb54] ss:$24 sps:$4 sm:$0xff]  }
 0x5ad   : > { %8564 = vmatprep.mubr.bf16.mxu1 %v13916_v36  ;;  %8692 = vmatpush1.bf16.msra.mxu1 %v13455_v49  ;;  %v9298_v49 = vld [vmem:[%s17742_s5 + $0x160] sm:$0xff]  ;;  %v18088_v35 = vld [vmem:[#allocation13_spill] sm:$0xff] }
 0x5ae   : > { %8693 = vmatprep.subr.bf16.mxu1 %v13460_v62 }
 0x5af   : > { %9497 = vmatmul.mubr.f32.gmra.mrb[8].mxu0 %v9292_v55  ;;  %v9301_v55 = vld [vmem:[%s17742_s5 + $0x178] sm:$0xff] }
 0x5b0   : > { %9502 = vmatprep.mubr.f32.mxu0 %v9295_v53  ;;  %v13467_v53 = vld [vmem:[%s17752_s15 + $0xb50] ss:$24 sps:$4 sm:$0xff]  }
 0x5b1   : > { %v16491_v43 = vpop.f32.mrb[164].mxu0  ;;  %8694 = vmatpush1.bf16.msra.mxu1 %v13458_v51 }
 0x5b2   : > { %v16499_v24 = vpop.f32.mrb[165].mxu0  ;;  %8695 = vmatprep.subr.bf16.mxu1 %v13463_v25  ;;  %v13472_v25 = vld [vmem:[%s17752_s15 + $0xb84] ss:$24 sps:$4 sm:$0xff]  }
 0x5b3   : > { %v16504_v39 = vpop.f32.mrb[166].mxu0  ;;  %9503 = vmatmul.mubr.f32.gmra.mrb[10].mxu0 %v9294_v21 }
 0x5b4   : > { %v16506_v19 = vpop.f32.mrb[167].mxu0  ;;  %8565 = vmatmul.mubr.bf16.gmra.mrb[128].mxu1 %v14495_v31  ;;  %9508 = vmatprep.mubr.f32.mxu0 %v9297_v12 }
 0x5b5   : > { %8574 = vmatprep.mubr.bf16.mxu1 %v13930_v46  ;;  %8696 = vmatpush1.bf16.msra.mxu1 %v13461_v58  ;;  %v18083_v58 = vld [vmem:[#allocation27_spill] sm:$0xff]  ;;  %v18086_v46 = vld [vmem:[#allocation12_spill] sm:$0xff] }
 0x5b6   : > { %8697 = vmatprep.subr.bf16.mxu1 %v13466_v18  ;;  %v9300_v18 = vld [vmem:[%s17742_s5 + $0x170] sm:$0xff] }
 0x5b7   : > { %9509 = vmatmul.mubr.f32.gmra.mrb[12].mxu0 %v9296_v45  ;;  %v18084_v45 = vld [vmem:[#allocation11_spill] sm:$0xff] }
 0x5b8   : > { %9514 = vmatprep.mubr.f32.mxu0 %v9299_v54  ;;  %v9303_v54 = vld [vmem:[%s17742_s5 + $0x188] sm:$0xff] }
 0x5b9   : > { %v16525_v62 = vpop.f32.mrb[168].mxu0  ;;  %8698 = vmatpush1.bf16.msra.mxu1 %v13464_v59  ;;  %v13470_v59 = vld [vmem:[%s17752_s15 + $0xb80] ss:$24 sps:$4 sm:$0xff]  }
 0x5ba   : > { %v16533_v51 = vpop.f32.mrb[169].mxu0  ;;  %8699 = vmatprep.subr.bf16.mxu1 %v13469_v38  ;;  %v13475_v38 = vld [vmem:[%s17752_s15 + $0xbb4] ss:$24 sps:$4 sm:$0xff]  }
 0x5bb   : > { %v16538_v21 = vpop.f32.mrb[170].mxu0  ;;  %9515 = vmatmul.mubr.f32.gmra.mrb[14].mxu0 %v9298_v49  ;;  %v9302_v49 = vld [vmem:[%s17742_s5 + $0x180] sm:$0xff] }
 0x5bc   : > { %v16540_v12 = vpop.f32.mrb[171].mxu0  ;;  %8575 = vmatmul.mubr.bf16.gmra.mrb[132].mxu1 %v18083_v58  ;;  %9520 = vmatprep.mubr.f32.mxu0 %v9301_v55  ;;  %v18085_v58 = vld [vmem:[#allocation26_spill] sm:$0xff] }
 0x5bd   : > { %8584 = vmatprep.mubr.bf16.mxu1 %v18084_v45  ;;  %8700 = vmatpush1.bf16.msra.mxu1 %v13467_v53  ;;  %v9305_v53 = vld [vmem:[%s17742_s5 + $0x198] sm:$0xff] }
 0x5be   : > { %8701 = vmatprep.subr.bf16.mxu1 %v13472_v25  ;;  %v13473_v25 = vld [vmem:[%s17752_s15 + $0xbb0] ss:$24 sps:$4 sm:$0xff]  }
 0x5bf   : > { %9521 = vmatmul.mubr.f32.gmra.mrb[16].mxu0 %v9300_v18  ;;  %v13478_v18 = vld [vmem:[%s17752_s15 + $0xbe4] ss:$24 sps:$4 sm:$0xff]  }
 0x5c0   : > { %9526 = vmatprep.mubr.f32.mxu0 %v9303_v54 }
 0x5c1   : > { %v16559_v55 = vpop.f32.mrb[172].mxu0  ;;  %8702 = vmatpush1.bf16.msra.mxu1 %v13470_v59  ;;  %v9304_v59 = vld [vmem:[%s17742_s5 + $0x190] sm:$0xff] }
 0x5c2   : > { %v16567_v8 = vpop.f32.mrb[173].mxu0  ;;  %8703 = vmatprep.subr.bf16.mxu1 %v13475_v38  ;;  %v9307_v38 = vld [vmem:[%s17742_s5 + $0x1a8] sm:$0xff] }
 0x5c3   : > { %v16572_v54 = vpop.f32.mrb[174].mxu0  ;;  %9527 = vmatmul.mubr.f32.gmra.mrb[18].mxu0 %v9302_v49  ;;  %v13476_v49 = vld [vmem:[%s17752_s15 + $0xbe0] ss:$24 sps:$4 sm:$0xff]  }
 0x5c4   : > { %v16574_v45 = vpop.f32.mrb[175].mxu0  ;;  %8585 = vmatmul.mubr.bf16.gmra.mrb[136].mxu1 %v18085_v58  ;;  %9532 = vmatprep.mubr.f32.mxu0 %v9305_v53  ;;  %v13481_v53 = vld [vmem:[%s17752_s15 + $0xc14] ss:$24 sps:$4 sm:$0xff]  }
 0x5c5   : > { %8594 = vmatprep.mubr.bf16.mxu1 %v18086_v46  ;;  %8704 = vmatpush1.bf16.msra.mxu1 %v13473_v25  ;;  %v9306_v46 = vld [vmem:[%s17742_s5 + $0x1a0] sm:$0xff]  ;;  %v9309_v25 = vld [vmem:[%s17742_s5 + $0x1b8] sm:$0xff] }
 0x5c6   : > { %8705 = vmatprep.subr.bf16.mxu1 %v13478_v18 }
 0x5c7   : > { %9533 = vmatmul.mubr.f32.gmra.mrb[20].mxu0 %v9304_v59  ;;  %v18087_v59 = vld [vmem:[#allocation29_spill] sm:$0xff] }
 0x5c8   : > { %9538 = vmatprep.mubr.f32.mxu0 %v9307_v38  ;;  %v9308_v38 = vld [vmem:[%s17742_s5 + $0x1b0] sm:$0xff] }
 0x5c9   : > { %v16593_v58 = vpop.f32.mrb[176].mxu0  ;;  %8706 = vmatpush1.bf16.msra.mxu1 %v13476_v49  ;;  %v9311_v49 = vld [vmem:[%s17742_s5 + $0x1c8] sm:$0xff] }
 0x5ca   : > { %v16598_v31 = vpop.f32.mrb[177].mxu0  ;;  %8868 = vmatprep.subr.bf16.mxu1 %v13481_v53 }
 0x5cb   : > { %v16600_v18 = vpop.f32.mrb[178].mxu0  ;;  %9539 = vmatmul.mubr.f32.gmra.mrb[22].mxu0 %v9306_v46  ;;  %v9310_v46 = vld [vmem:[%s17742_s5 + $0x1c0] sm:$0xff] }
 0x5cc   : > { %v16602_v36 = vpop.f32.mrb[179].mxu0  ;;  %8595 = vmatmul.mubr.bf16.gmra.mrb[140].mxu1 %v18087_v59  ;;  %9544 = vmatprep.mubr.f32.mxu0 %v9309_v25  ;;  %v9313_v25 = vld [vmem:[%s17742_s5 + $0x1d8] sm:$0xff] }
 0x5cd   : > { %8604 = vmatprep.mubr.bf16.mxu1 %v18088_v35 }
 0x5cf   : > { %9545 = vmatmul.mubr.f32.gmra.mrb[24].mxu0 %v9308_v38  ;;  %v9312_v38 = vld [vmem:[%s17742_s5 + $0x1d0] sm:$0xff] }
 0x5d0   : > { %9550 = vmatprep.mubr.f32.mxu0 %v9311_v49  ;;  %v18090_v49 = vld [vmem:[#allocation14_spill] sm:$0xff] }
 0x5d1   : > { %v16615_v53 = vpop.f32.mrb[180].mxu0 }
 0x5d2   : > { %v16620_v59 = vpop.f32.mrb[181].mxu0 }
 0x5d3   : > { %v16622_v30 = vpop.f32.mrb[182].mxu0  ;;  %9551 = vmatmul.mubr.f32.gmra.mrb[26].mxu0 %v9310_v46  ;;  %v9314_v46 = vld [vmem:[%s17742_s5 + $0x1e0] sm:$0xff] }
 0x5d4   : > { %v16624_v35 = vpop.f32.mrb[183].mxu0  ;;  %8605 = vmatmul.mubr.bf16.gmra.mrb[144].mxu1 %v18089_v11  ;;  %9556 = vmatprep.mubr.f32.mxu0 %v9313_v25  ;;  %v9317_v25 = vld [vmem:[%s17742_s5 + $0x1f8] sm:$0xff] }
 0x5d5   : > { %8614 = vmatprep.mubr.bf16.mxu1 %v18090_v49 }
 0x5d7   : > { %9557 = vmatmul.mubr.f32.gmra.mrb[28].mxu0 %v9312_v38  ;;  %v18091_v38 = vld [vmem:[#allocation15_spill] sm:$0xff] }
 0x5d8   : > { %9562 = vmatprep.mubr.f32.mxu0 %v9315_v9  ;;  %v9316_v9 = vld [vmem:[%s17742_s5 + $0x1f0] sm:$0xff] }
 0x5d9   : > { %v16637_v57 = vpop.f32.mrb[184].mxu0 }
 0x5da   : > { %v16642_v11 = vpop.f32.mrb[185].mxu0 }
 0x5db   : > { %v16644_v15 = vpop.f32.mrb[186].mxu0  ;;  %9563 = vmatmul.mubr.f32.gmra.mrb[30].mxu0 %v9314_v46 }
 0x5dc   : > { %v16646_v49 = vpop.f32.mrb[187].mxu0  ;;  %8615 = vmatmul.mubr.bf16.gmra.mrb[148].mxu1 %v14536_v17  ;;  %9568 = vmatprep.mubr.f32.mxu0 %v9317_v25 }
 0x5dd   : > { %8624 = vmatprep.mubr.bf16.mxu1 %v18091_v38 }
 0x5df   : > { %9569 = vmatmul.mubr.f32.gmra.mrb[32].mxu0 %v9316_v9 }
 0x5e1   : > { %v16653_v1 = vpop.f32.mrb[188].mxu0 }
 0x5e2   : > { %v16655_v44 = vpop.f32.mrb[189].mxu0 }
 0x5e3   : > { %v16657_v2 = vpop.f32.mrb[190].mxu0 }
 0x5e4   : > { %v16659_v22 = vpop.f32.mrb[191].mxu0  ;;  %8625 = vmatmul.mubr.bf16.gmra.mrb[152].mxu1 %v14534_v3 }
 0x5e5   : > { %8634 = vmatprep.mubr.bf16.mxu1 %v13996_v37 }
 0x5e9   : > { %v16663_v46 = vpop.f32.mrb[192].mxu0 }
 0x5ea   : > { %v16665_v25 = vpop.f32.mrb[193].mxu0 }
 0x5eb   : > { %v16667_v17 = vpop.f32.mrb[194].mxu0 }
 0x5ec   : > { %v16669_v38 = vpop.f32.mrb[195].mxu0  ;;  %8635 = vmatmul.mubr.bf16.gmra.mrb[156].mxu1 %v14551_v23 }
 0x5ed   : > { %18092 = vst [vmem:[#allocation52_spill] sm:$0xff] %v16669_v38  ;;  %8644 = vmatprep.mubr.bf16.mxu1 %v14004_v48  ;;  %v18099_v48 = vld [vmem:[#allocation19_spill] sm:$0xff] }
 0x5f1   : > { %v16673_v9 = vpop.f32.mrb[196].mxu0 }
 0x5f2   : > { %v16675_v26 = vpop.f32.mrb[197].mxu0 }
 0x5f3   : > { %18093 = vst [vmem:[#allocation51_spill] sm:$0xff] %v16675_v26  ;;  %v16677_v14 = vpop.f32.mrb[198].mxu0 }
 0x5f4   : > { %18094 = vst [vmem:[#allocation54_spill] sm:$0xff] %v16677_v14  ;;  %v16679_v3 = vpop.f32.mrb[199].mxu0  ;;  %8645 = vmatmul.mubr.bf16.gmra.mrb[160].mxu1 %v14548_v16 }
 0x5f5   : > { %18095 = vst [vmem:[#allocation53_spill] sm:$0xff] %v16679_v3  ;;  %8654 = vmatprep.mubr.bf16.mxu1 %v14018_v61  ;;  %v18102_v61 = vld [vmem:[#allocation38_spill] sm:$0xff] }
 0x5f9   : > { %v16683_v37 = vpop.f32.mrb[200].mxu0 }
 0x5fa   : > { %18096 = vst [vmem:[#allocation56_spill] sm:$0xff] %v16683_v37  ;;  %v16685_v47 = vpop.f32.mrb[201].mxu0  ;;  %v18103_v37 = vld [vmem:[#allocation33_spill] sm:$0xff] }
 0x5fb   : > { %18097 = vst [vmem:[#allocation21_spill] sm:$0xff] %v16685_v47  ;;  %v16687_v38 = vpop.f32.mrb[202].mxu0 }
 0x5fc   : > { %v16689_v23 = vpop.f32.mrb[203].mxu0  ;;  %8655 = vmatmul.mubr.bf16.gmra.mrb[164].mxu1 %v14563_v52  ;;  %v13479_v52 = vld [vmem:[%s17752_s15 + $0xc10] ss:$24 sps:$4 sm:$0xff]  }
 0x5fd   : > { %18098 = vst [vmem:[#allocation61_spill] sm:$0xff] %v16689_v23  ;;  %8664 = vmatprep.mubr.bf16.mxu1 %v18099_v48  ;;  %v13484_v48 = vld [vmem:[%s17752_s15 + $0xc44] ss:$24 sps:$4 sm:$0xff]  }
 0x601   : > { %v16693_v26 = vpop.f32.mrb[204].mxu0 }
 0x602   : > { %v16695_v14 = vpop.f32.mrb[205].mxu0 }
 0x603   : > { %18100 = vst [vmem:[#allocation62_spill] sm:$0xff] %v16695_v14  ;;  %v16697_v3 = vpop.f32.mrb[206].mxu0 }
 0x604   : > { %18101 = vst [vmem:[#allocation63_spill] sm:$0xff] %v16697_v3  ;;  %v16699_v16 = vpop.f32.mrb[207].mxu0  ;;  %8665 = vmatmul.mubr.bf16.gmra.mrb[168].mxu1 %v18102_v61  ;;  %v18107_v61 = vld [vmem:[#allocation37_spill] sm:$0xff] }
 0x605   : > { %8707 = vmatprep.mubr.bf16.mxu1 %v18103_v37  ;;  %v13482_v37 = vld [vmem:[%s17752_s15 + $0xc40] ss:$24 sps:$4 sm:$0xff]  }
 0x609   : > { %v16703_v47 = vpop.f32.mrb[208].mxu0 }
 0x60a   : > { %18104 = vst [vmem:[#allocation64_spill] sm:$0xff] %v16703_v47  ;;  %v16708_v23 = vpop.f32.mrb[209].mxu0 }
 0x60b   : > { %18105 = vst [vmem:[#allocation65_spill] sm:$0xff] %v16708_v23  ;;  %v16713_v14 = vpop.f32.mrb[210].mxu0  ;;  %v13487_v23 = vld [vmem:[%s17752_s15 + $0xc74] ss:$24 sps:$4 sm:$0xff]  }
 0x60c   : > { %v16715_v3 = vpop.f32.mrb[211].mxu0  ;;  %8708 = vmatmul.mubr.bf16.vlgmr.msra.gmra.mrb[108].mxu1 %v18042_v7 }
 0x60d   : > { %18106 = vst [vmem:[#allocation66_spill] sm:$0xff] %v16715_v3  ;;  %8717 = vmatprep.mubr.bf16.mxu1 %v18107_v61  ;;  %8869 = vmatpush1.bf16.msra.mxu1 %v13479_v52  ;;  %v13485_v3 = vld [vmem:[%s17752_s15 + $0xc70] ss:$24 sps:$4 sm:$0xff]   ;;  %v13490_v52 = vld [vmem:[%s17752_s15 + $0xca4] ss:$24 sps:$4 sm:$0xff]  }
 0x60e   : > { %8870 = vmatprep.subr.bf16.mxu1 %v13484_v48 }
 0x611   : > { %v16725_v47 = vpop.f32.mrb[212].mxu0  ;;  %8871 = vmatpush1.bf16.msra.mxu1 %v13482_v37  ;;  %v13488_v37 = vld [vmem:[%s17752_s15 + $0xca0] ss:$24 sps:$4 sm:$0xff]  }
 0x612   : > { %v16730_v7 = vpop.f32.mrb[213].mxu0  ;;  %8872 = vmatprep.subr.bf16.mxu1 %v13487_v23  ;;  %v13493_v23 = vld [vmem:[%s17752_s15 + $0xcd4] ss:$24 sps:$4 sm:$0xff]  }
 0x613   : > { %18108 = vst [vmem:[#allocation67_spill] sm:$0xff] %v16730_v7  ;;  %v16735_v61 = vpop.f32.mrb[214].mxu0 }
 0x614   : > { %v16737_v48 = vpop.f32.mrb[215].mxu0  ;;  %8718 = vmatmul.mubr.bf16.gmra.mrb[112].mxu1 %v14555_v34 }
 0x615   : > { %18109 = vst [vmem:[#allocation68_spill] sm:$0xff] %v16737_v48  ;;  %8727 = vmatprep.mubr.bf16.mxu1 %v18012_v13  ;;  %8873 = vmatpush1.bf16.msra.mxu1 %v13485_v3  ;;  %v13491_v48 = vld [vmem:[%s17752_s15 + $0xcd0] ss:$24 sps:$4 sm:$0xff]   ;;  %v13496_v3 = vld [vmem:[%s17752_s15 + $0xd04] ss:$24 sps:$4 sm:$0xff]  }
 0x616   : > { %8874 = vmatprep.subr.bf16.mxu1 %v13490_v52 }
 0x619   : > { %v16747_v7 = vpop.f32.mrb[216].mxu0  ;;  %8875 = vmatpush1.bf16.msra.mxu1 %v13488_v37  ;;  %v13494_v37 = vld [vmem:[%s17752_s15 + $0xd00] ss:$24 sps:$4 sm:$0xff]  }
 0x61a   : > { %v16752_v34 = vpop.f32.mrb[217].mxu0  ;;  %8876 = vmatprep.subr.bf16.mxu1 %v13493_v23  ;;  %v13499_v23 = vld [vmem:[%s17752_s15 + $0xd34] ss:$24 sps:$4 sm:$0xff]  }
 0x61b   : > { %18110 = vst [vmem:[#allocation69_spill] sm:$0xff] %v16752_v34  ;;  %v16757_v13 = vpop.f32.mrb[218].mxu0 }
 0x61c   : > { %v16759_v52 = vpop.f32.mrb[219].mxu0  ;;  %8728 = vmatmul.mubr.bf16.gmra.mrb[116].mxu1 %v14570_v0 }
 0x61d   : > { %18111 = vst [vmem:[#allocation70_spill] sm:$0xff] %v16759_v52  ;;  %8737 = vmatprep.mubr.bf16.mxu1 %v14580_v5  ;;  %8877 = vmatpush1.bf16.msra.mxu1 %v13491_v48  ;;  %v13497_v52 = vld [vmem:[%s17752_s15 + $0xd30] ss:$24 sps:$4 sm:$0xff]   ;;  %v13502_v48 = vld [vmem:[%s17752_s15 + $0xd64] ss:$24 sps:$4 sm:$0xff]  }
 0x61e   : > { %8878 = vmatprep.subr.bf16.mxu1 %v13496_v3 }
 0x621   : > { %v16769_v34 = vpop.f32.mrb[220].mxu0  ;;  %8879 = vmatpush1.bf16.msra.mxu1 %v13494_v37  ;;  %v13500_v37 = vld [vmem:[%s17752_s15 + $0xd60] ss:$24 sps:$4 sm:$0xff]  }
 0x622   : > { %v16774_v0 = vpop.f32.mrb[221].mxu0  ;;  %8880 = vmatprep.subr.bf16.mxu1 %v13499_v23  ;;  %v13505_v23 = vld [vmem:[%s17752_s15 + $0xd94] ss:$24 sps:$4 sm:$0xff]  }
 0x623   : > { %18112 = vst [vmem:[#allocation71_spill] sm:$0xff] %v16774_v0  ;;  %v16779_v5 = vpop.f32.mrb[222].mxu0 }
 0x624   : > { %v16781_v3 = vpop.f32.mrb[223].mxu0  ;;  %8738 = vmatmul.mubr.bf16.gmra.mrb[120].mxu1 %v14578_v56 }
 0x625   : > { %18113 = vst [vmem:[#allocation72_spill] sm:$0xff] %v16781_v3  ;;  %8747 = vmatprep.mubr.bf16.mxu1 %v14588_v10  ;;  %8881 = vmatpush1.bf16.msra.mxu1 %v13497_v52  ;;  %v13503_v3 = vld [vmem:[%s17752_s15 + $0xd90] ss:$24 sps:$4 sm:$0xff]   ;;  %v13508_v52 = vld [vmem:[%s17752_s15 + $0xdc4] ss:$24 sps:$4 sm:$0xff]  }
 0x626   : > { %8882 = vmatprep.subr.bf16.mxu1 %v13502_v48 }
 0x629   : > { %v16791_v0 = vpop.f32.mrb[224].mxu0  ;;  %8883 = vmatpush1.bf16.msra.mxu1 %v13500_v37  ;;  %v13506_v37 = vld [vmem:[%s17752_s15 + $0xdc0] ss:$24 sps:$4 sm:$0xff]  }
 0x62a   : > { %18114 = vst [vmem:[#allocation73_spill] sm:$0xff] %v16791_v0  ;;  %v16796_v56 = vpop.f32.mrb[225].mxu0  ;;  %8884 = vmatprep.subr.bf16.mxu1 %v13505_v23  ;;  %v13511_v23 = vld [vmem:[%s17752_s15 + $0xdf4] ss:$24 sps:$4 sm:$0xff]  }
 0x62b   : > { %18115 = vst [vmem:[#allocation74_spill] sm:$0xff] %v16796_v56  ;;  %v16801_v10 = vpop.f32.mrb[226].mxu0 }
 0x62c   : > { %18116 = vst [vmem:[#allocation75_spill] sm:$0xff] %v16801_v10  ;;  %v16803_v48 = vpop.f32.mrb[227].mxu0  ;;  %8748 = vmatmul.mubr.bf16.gmra.mrb[124].mxu1 %v14586_v20  ;;  %v13509_v10 = vld [vmem:[%s17752_s15 + $0xdf0] ss:$24 sps:$4 sm:$0xff]  }
 0x62d   : > { %18117 = vst [vmem:[#allocation76_spill] sm:$0xff] %v16803_v48  ;;  %8757 = vmatprep.mubr.bf16.mxu1 %v14596_v41  ;;  %8885 = vmatpush1.bf16.msra.mxu1 %v13503_v3  ;;  %v13514_v41 = vld [vmem:[%s17752_s15 + $0xe24] ss:$24 sps:$4 sm:$0xff]   ;;  %v18118_v3 = vld [vmem:[#allocation46_spill] sm:$0xff]  ;;  %v18119_v20 = vld [vmem:[#allocation49_spill] sm:$0xff] }
 0x62e   : > { %8886 = vmatprep.subr.bf16.mxu1 %v13508_v52  ;;  %v13512_v52 = vld [vmem:[%s17752_s15 + $0xe20] ss:$24 sps:$4 sm:$0xff]  }
 0x631   : > { %8887 = vmatpush1.bf16.msra.mxu1 %v13506_v37  ;;  %v13517_v37 = vld [vmem:[%s17752_s15 + $0xe54] ss:$24 sps:$4 sm:$0xff]  }
 0x632   : > { %8888 = vmatprep.subr.bf16.mxu1 %v13511_v23 }
 0x634   : > { %8758 = vmatmul.mubr.bf16.gmra.mrb[128].mxu1 %v18118_v3 }
 0x635   : > { %8767 = vmatprep.mubr.bf16.mxu1 %v18119_v20  ;;  %8889 = vmatpush1.bf16.msra.mxu1 %v13509_v10  ;;  %v13515_v10 = vld [vmem:[%s17752_s15 + $0xe50] ss:$24 sps:$4 sm:$0xff]  }
 0x636   : > { %v9384_v48 = vpop.f32.mrb[34].mxu0  ;;  %8890 = vmatprep.subr.bf16.mxu1 %v13514_v41  ;;  %v13520_v41 = vld [vmem:[%s17752_s15 + $0xe84] ss:$24 sps:$4 sm:$0xff]  }
 0x637   : > { %v16828_v23 = vadd.f32 %v9384_v48, %v16491_v43  ;;  %v9386_v56 = vpop.f32.mrb[35].mxu0 }
 0x638   : > { %v16831_v0 = vadd.f32 %v9386_v56, %v16499_v24  ;;  %v18122_v56 = vld [vmem:[#allocation48_spill] sm:$0xff]  ;;  %v18123_v24 = vld [vmem:[#allocation50_spill] sm:$0xff] }
 0x639   : > { %8891 = vmatpush1.bf16.msra.mxu1 %v13512_v52  ;;  %v13518_v52 = vld [vmem:[%s17752_s15 + $0xe80] ss:$24 sps:$4 sm:$0xff]  }
 0x63a   : > { %v9390_v20 = vpop.f32.mrb[228].mxu0  ;;  %8892 = vmatprep.subr.bf16.mxu1 %v13517_v37 }
 0x63b   : > { %v16840_v3 = vadd.f32 %v9390_v20, %v16504_v39  ;;  %v9392_v43 = vpop.f32.mrb[229].mxu0  ;;  %v13523_v20 = vld [vmem:[%s17752_s15 + $0xeb4] ss:$24 sps:$4 sm:$0xff]  }
 0x63c   : > { %v16843_v48 = vadd.f32 %v9392_v43, %v16506_v19  ;;  %8768 = vmatmul.mubr.bf16.gmra.mrb[132].mxu1 %v18122_v56 }
 0x63d   : > { %18120 = vst [vmem:[#allocation77_spill] sm:$0xff] %v16840_v3  ;;  %8777 = vmatprep.mubr.bf16.mxu1 %v18123_v24  ;;  %8893 = vmatpush1.bf16.msra.mxu1 %v13515_v10  ;;  %v13521_v10 = vld [vmem:[%s17752_s15 + $0xeb0] ss:$24 sps:$4 sm:$0xff]  }
 0x63e   : > { %18121 = vst [vmem:[#allocation78_spill] sm:$0xff] %v16843_v48  ;;  %v9396_v37 = vpop.f32.mrb[230].mxu0  ;;  %8894 = vmatprep.subr.bf16.mxu1 %v13520_v41  ;;  %v13526_v41 = vld [vmem:[%s17752_s15 + $0xee4] ss:$24 sps:$4 sm:$0xff]  }
 0x63f   : > { %v16854_v39 = vadd.f32 %v9396_v37, %v16525_v62  ;;  %v9398_v19 = vpop.f32.mrb[231].mxu0 }
 0x640   : > { %v16857_v43 = vadd.f32 %v9398_v19, %v16533_v51  ;;  %v13524_v51 = vld [vmem:[%s17752_s15 + $0xee0] ss:$24 sps:$4 sm:$0xff]  }
 0x641   : > { %8895 = vmatpush1.bf16.msra.mxu1 %v13518_v52 }
 0x642   : > { %v9402_v48 = vpop.f32.mrb[232].mxu0  ;;  %8896 = vmatprep.subr.bf16.mxu1 %v13523_v20 }
 0x643   : > { %v16866_v3 = vadd.f32 %v9402_v48, %v16538_v21  ;;  %v9404_v62 = vpop.f32.mrb[233].mxu0  ;;  %v13529_v21 = vld [vmem:[%s17752_s15 + $0xf14] ss:$24 sps:$4 sm:$0xff]  }
 0x644   : > { %v16869_v37 = vadd.f32 %v9404_v62, %v16540_v12  ;;  %8778 = vmatmul.mubr.bf16.gmra.mrb[136].mxu1 %v14610_v4 }
 0x645   : > { %8787 = vmatprep.mubr.bf16.mxu1 %v14620_v32  ;;  %8897 = vmatpush1.bf16.msra.mxu1 %v13521_v10 }
 0x646   : > { %v9408_v52 = vpop.f32.mrb[234].mxu0  ;;  %8898 = vmatprep.subr.bf16.mxu1 %v13526_v41 }
 0x647   : > { %v16880_v48 = vadd.f32 %v9408_v52, %v16559_v55  ;;  %v9410_v12 = vpop.f32.mrb[235].mxu0 }
 0x648   : > { %v16883_v20 = vadd.f32 %v9410_v12, %v16567_v8 }
 0x649   : > { %8899 = vmatpush1.bf16.msra.mxu1 %v13524_v51 }
 0x64a   : > { %v9414_v19 = vpop.f32.mrb[236].mxu0  ;;  %9061 = vmatprep.subr.bf16.mxu1 %v13529_v21 }
 0x64b   : > { %v16886_v10 = vadd.f32 %v9414_v19, %v16572_v54  ;;  %v9416_v62 = vpop.f32.mrb[237].mxu0 }
 0x64c   : > { %v16889_v41 = vadd.f32 %v9416_v62, %v16574_v45  ;;  %8788 = vmatmul.mubr.bf16.gmra.mrb[140].mxu1 %v14618_v27 }
 0x64d   : > { %8797 = vmatprep.mubr.bf16.mxu1 %v14628_v42 }
 0x64e   : > { %v9420_v55 = vpop.f32.mrb[238].mxu0 }
 0x64f   : > { %v16894_v52 = vadd.f32 %v9420_v55, %v16593_v58  ;;  %v9422_v8 = vpop.f32.mrb[239].mxu0 }
 0x650   : > { %v16897_v51 = vadd.f32 %v9422_v8, %v16598_v31 }
 0x652   : > { %v9426_v21 = vpop.f32.mrb[240].mxu0 }
 0x653   : > { %v16900_v54 = vadd.f32 %v9426_v21, %v16600_v18  ;;  %v9428_v12 = vpop.f32.mrb[241].mxu0 }
 0x654   : > { %v16903_v45 = vadd.f32 %v9428_v12, %v16602_v36  ;;  %8798 = vmatmul.mubr.bf16.gmra.mrb[144].mxu1 %v14626_v29 }
 0x655   : > { %8807 = vmatprep.mubr.bf16.mxu1 %v14648_v50 }
 0x656   : > { %v9432_v19 = vpop.f32.mrb[242].mxu0 }
 0x657   : > { %v16908_v58 = vadd.f32 %v9432_v19, %v16615_v53  ;;  %v9434_v62 = vpop.f32.mrb[243].mxu0 }
 0x658   : > { %v16911_v31 = vadd.f32 %v9434_v62, %v16620_v59 }
 0x65a   : > { %v9438_v55 = vpop.f32.mrb[244].mxu0 }
 0x65b   : > { %v16914_v18 = vadd.f32 %v9438_v55, %v16622_v30  ;;  %v9440_v8 = vpop.f32.mrb[245].mxu0 }
 0x65c   : > { %v16917_v36 = vadd.f32 %v9440_v8, %v16624_v35  ;;  %8808 = vmatmul.mubr.bf16.gmra.mrb[148].mxu1 %v14643_v28 }
 0x65d   : > { %8817 = vmatprep.mubr.bf16.mxu1 %v17994_v6 }
 0x65e   : > { %v9444_v21 = vpop.f32.mrb[246].mxu0 }
 0x65f   : > { %v16922_v53 = vadd.f32 %v9444_v21, %v16637_v57  ;;  %v9446_v12 = vpop.f32.mrb[247].mxu0 }
 0x660   : > { %v16925_v59 = vadd.f32 %v9446_v12, %v16642_v11 }
 0x662   : > { %v9450_v19 = vpop.f32.mrb[248].mxu0 }
 0x663   : > { %v16928_v30 = vadd.f32 %v9450_v19, %v16644_v15  ;;  %v9452_v62 = vpop.f32.mrb[249].mxu0 }
 0x664   : > { %v16931_v35 = vadd.f32 %v9452_v62, %v16646_v49  ;;  %8818 = vmatmul.mubr.bf16.gmra.mrb[152].mxu1 %v17995_v63 }
 0x665   : > { %8827 = vmatprep.mubr.bf16.mxu1 %v17996_v60 }
 0x666   : > { %v9456_v55 = vpop.f32.mrb[250].mxu0 }
 0x667   : > { %v16936_v57 = vadd.f32 %v9456_v55, %v16653_v1  ;;  %v9458_v8 = vpop.f32.mrb[251].mxu0 }
 0x668   : > { %v16939_v11 = vadd.f32 %v9458_v8, %v16655_v44 }
 0x669   : > { %18124 = vst [vmem:[#allocation79_spill] sm:$0xff] %v16936_v57  ;;  %v18144_v57 = vld [vmem:[#allocation56_spill] sm:$0xff] }
 0x66a   : > { %18125 = vst [vmem:[#allocation80_spill] sm:$0xff] %v16939_v11  ;;  %v9462_v21 = vpop.f32.mrb[252].mxu0 }
 0x66b   : > { %v16942_v15 = vadd.f32 %v9462_v21, %v16657_v2  ;;  %v9464_v12 = vpop.f32.mrb[253].mxu0  ;;  %v18131_v21 = vld [vmem:[#allocation52_spill] sm:$0xff] }
 0x66c   : > { %v16945_v49 = vadd.f32 %v9464_v12, %v16659_v22  ;;  %8828 = vmatmul.mubr.bf16.gmra.mrb[156].mxu1 %v17997_v33  ;;  %v18133_v12 = vld [vmem:[#allocation55_spill] sm:$0xff] }
 0x66d   : > { %18126 = vst [vmem:[#allocation81_spill] sm:$0xff] %v16942_v15  ;;  %8837 = vmatprep.mubr.bf16.mxu1 %v17998_v40 }
 0x66e   : > { %18127 = vst [vmem:[#allocation82_spill] sm:$0xff] %v16945_v49  ;;  %v9468_v19 = vpop.f32.mrb[254].mxu0  ;;  %v18134_v49 = vld [vmem:[#allocation58_spill] sm:$0xff] }
 0x66f   : > { %v16950_v1 = vadd.f32 %v9468_v19, %v16663_v46  ;;  %v9470_v62 = vpop.f32.mrb[255].mxu0 }
 0x670   : > { %v16953_v44 = vadd.f32 %v9470_v62, %v16665_v25 }
 0x671   : > { %18128 = vst [vmem:[#allocation83_spill] sm:$0xff] %v16950_v1  ;;  %v18136_v1 = vld [vmem:[#allocation51_spill] sm:$0xff] }
 0x672   : > { %18129 = vst [vmem:[#allocation84_spill] sm:$0xff] %v16953_v44  ;;  %v9474_v55 = vpop.f32.mrb[0].mxu0  ;;  %v18138_v44 = vld [vmem:[#allocation54_spill] sm:$0xff] }
 0x673   : > { %v16956_v2 = vadd.f32 %v9474_v55, %v16667_v17  ;;  %v9476_v8 = vpop.f32.mrb[1].mxu0 }
 0x674   : > { %v16959_v22 = vadd.f32 %v9476_v8, %v18131_v21  ;;  %8838 = vmatmul.mubr.bf16.gmra.mrb[160].mxu1 %v18133_v12  ;;  %v18142_v21 = vld [vmem:[#allocation57_spill] sm:$0xff] }
 0x675   : > { %18130 = vst [vmem:[#allocation85_spill] sm:$0xff] %v16956_v2  ;;  %8847 = vmatprep.mubr.bf16.mxu1 %v18134_v49  ;;  %v18140_v2 = vld [vmem:[#allocation53_spill] sm:$0xff] }
 0x676   : > { %18132 = vst [vmem:[#allocation86_spill] sm:$0xff] %v16959_v22  ;;  %v9480_v15 = vpop.f32.mrb[2].mxu0  ;;  %v18143_v22 = vld [vmem:[#allocation60_spill] sm:$0xff] }
 0x677   : > { %v16964_v46 = vadd.f32 %v9480_v15, %v16673_v9  ;;  %v9482_v19 = vpop.f32.mrb[3].mxu0 }
 0x678   : > { %v16967_v25 = vadd.f32 %v9482_v19, %v18136_v1 }
 0x679   : > { %18135 = vst [vmem:[#allocation87_spill] sm:$0xff] %v16964_v46  ;;  %v18146_v46 = vld [vmem:[#allocation21_spill] sm:$0xff] }
 0x67a   : > { %18137 = vst [vmem:[#allocation88_spill] sm:$0xff] %v16967_v25  ;;  %v9486_v62 = vpop.f32.mrb[4].mxu0 }
 0x67b   : > { %v16970_v17 = vadd.f32 %v9486_v62, %v18138_v44  ;;  %v9488_v55 = vpop.f32.mrb[5].mxu0 }
 0x67c   : > { %v16973_v8 = vadd.f32 %v9488_v55, %v18140_v2  ;;  %8848 = vmatmul.mubr.bf16.gmra.mrb[164].mxu1 %v18142_v21  ;;  %v18148_v55 = vld [vmem:[#allocation59_spill] sm:$0xff] }
 0x67d   : > { %18139 = vst [vmem:[#allocation32_spill] sm:$0xff] %v16970_v17  ;;  %8857 = vmatprep.mubr.bf16.mxu1 %v18143_v22  ;;  %v18147_v17 = vld [vmem:[#allocation61_spill] sm:$0xff] }
 0x67e   : > { %18141 = vst [vmem:[#allocation89_spill] sm:$0xff] %v16973_v8  ;;  %v9492_v11 = vpop.f32.mrb[6].mxu0  ;;  %v18149_v8 = vld [vmem:[#allocation5_spill] sm:$0xff] }
 0x67f   : > { %v16978_v9 = vadd.f32 %v9492_v11, %v18144_v57  ;;  %v9494_v15 = vpop.f32.mrb[7].mxu0 }
 0x680   : > { %v16981_v1 = vadd.f32 %v9494_v15, %v18146_v46 }
 0x681   : > { %18145 = vst [vmem:[#allocation90_spill] sm:$0xff] %v16978_v9  ;;  %v18150_v9 = vld [vmem:[#allocation62_spill] sm:$0xff] }
 0x682   : > { %v9498_v19 = vpop.f32.mrb[8].mxu0 }
 0x683   : > { %v16984_v44 = vadd.f32 %v9498_v19, %v16687_v38  ;;  %v9500_v62 = vpop.f32.mrb[9].mxu0  ;;  %v13527_v38 = vld [vmem:[%s17752_s15 + $0xf10] ss:$24 sps:$4 sm:$0xff]   ;;  %v18152_v19 = vld [vmem:[#allocation63_spill] sm:$0xff] }
 0x684   : > { %v16987_v2 = vadd.f32 %v9500_v62, %v18147_v17  ;;  %8858 = vmatmul.mubr.bf16.gmra.mrb[168].mxu1 %v18148_v55  ;;  %v13532_v17 = vld [vmem:[%s17752_s15 + $0xf44] ss:$24 sps:$4 sm:$0xff]  }
 0x685   : > { %8900 = vmatprep.mubr.bf16.mxu1 %v18149_v8 }
 0x686   : > { %v9504_v25 = vpop.f32.mrb[10].mxu0 }
 0x687   : > { %v16992_v57 = vadd.f32 %v9504_v25, %v16693_v26  ;;  %v9506_v11 = vpop.f32.mrb[11].mxu0  ;;  %v18155_v25 = vld [vmem:[#allocation20_spill] sm:$0xff] }
 0x688   : > { %v16995_v46 = vadd.f32 %v9506_v11, %v18150_v9  ;;  %v18156_v9 = vld [vmem:[#allocation6_spill] sm:$0xff]  ;;  %v13530_v11 = vld [vmem:[%s17752_s15 + $0xf40] ss:$24 sps:$4 sm:$0xff]  }
 0x68a   : > { %18151 = vst [vmem:[#allocation91_spill] sm:$0xff] %v16995_v46  ;;  %v9510_v15 = vpop.f32.mrb[12].mxu0 }
 0x68b   : > { %v17004_v62 = vadd.f32 %v9510_v15, %v18152_v19  ;;  %v9512_v8 = vpop.f32.mrb[13].mxu0  ;;  %v13535_v15 = vld [vmem:[%s17752_s15 + $0xf74] ss:$24 sps:$4 sm:$0xff]   ;;  %v18157_v19 = vld [vmem:[#allocation64_spill] sm:$0xff] }
 0x68c   : > { %v17007_v26 = vadd.f32 %v9512_v8, %v16699_v16  ;;  %8901 = vmatmul.mubr.bf16.vlgmr.msra.gmra.mrb[108].mxu1 %v18155_v25  ;;  %v18159_v8 = vld [vmem:[#allocation65_spill] sm:$0xff] }
 0x68d   : > { %18153 = vst [vmem:[#allocation92_spill] sm:$0xff] %v17004_v62  ;;  %8910 = vmatprep.mubr.bf16.mxu1 %v18156_v9  ;;  %9062 = vmatpush1.bf16.msra.mxu1 %v13527_v38  ;;  %v13533_v38 = vld [vmem:[%s17752_s15 + $0xf70] ss:$24 sps:$4 sm:$0xff]  }
 0x68e   : > { %18154 = vst [vmem:[#allocation93_spill] sm:$0xff] %v17007_v26  ;;  %v9516_v46 = vpop.f32.mrb[14].mxu0  ;;  %9063 = vmatprep.subr.bf16.mxu1 %v13532_v17  ;;  %v13538_v17 = vld [vmem:[%s17752_s15 + $0xfa4] ss:$24 sps:$4 sm:$0xff]  }
 0x68f   : > { %v17018_v62 = vadd.f32 %v9516_v46, %v18157_v19  ;;  %v9518_v16 = vpop.f32.mrb[15].mxu0  ;;  %v18160_v19 = vld [vmem:[#allocation66_spill] sm:$0xff] }
 0x690   : > { %v17021_v26 = vadd.f32 %v9518_v16, %v18159_v8  ;;  %v18162_v16 = vld [vmem:[#allocation23_spill] sm:$0xff] }
 0x691   : > { %18158 = vst [vmem:[#allocation94_spill] sm:$0xff] %v17018_v62  ;;  %9064 = vmatpush1.bf16.msra.mxu1 %v13530_v11  ;;  %v18163_v11 = vld [vmem:[#allocation7_spill] sm:$0xff] }
 0x692   : > { %v9522_v25 = vpop.f32.mrb[16].mxu0  ;;  %9065 = vmatprep.subr.bf16.mxu1 %v13535_v15  ;;  %v13536_v15 = vld [vmem:[%s17752_s15 + $0xfa0] ss:$24 sps:$4 sm:$0xff]  }
 0x693   : > { %v17030_v9 = vadd.f32 %v9522_v25, %v16713_v14  ;;  %v9524_v46 = vpop.f32.mrb[17].mxu0  ;;  %v13541_v14 = vld [vmem:[%s17752_s15 + $0xfd4] ss:$24 sps:$4 sm:$0xff]  }
 0x694   : > { %v17033_v62 = vadd.f32 %v9524_v46, %v18160_v19  ;;  %8911 = vmatmul.mubr.bf16.gmra.mrb[112].mxu1 %v18162_v16  ;;  %v18165_v19 = vld [vmem:[#allocation67_spill] sm:$0xff] }
 0x695   : > { %8920 = vmatprep.mubr.bf16.mxu1 %v18163_v11  ;;  %9066 = vmatpush1.bf16.msra.mxu1 %v13533_v38  ;;  %v13539_v38 = vld [vmem:[%s17752_s15 + $0xfd0] ss:$24 sps:$4 sm:$0xff]  }
 0x696   : > { %18161 = vst [vmem:[#allocation95_spill] sm:$0xff] %v17033_v62  ;;  %v9528_v8 = vpop.f32.mrb[18].mxu0  ;;  %9067 = vmatprep.subr.bf16.mxu1 %v13538_v17  ;;  %v13544_v17 = vld [vmem:[%s17752_s15 + $0x1004] ss:$24 sps:$4 sm:$0xff]  }
 0x697   : > { %v17044_v25 = vadd.f32 %v9528_v8, %v16725_v47  ;;  %v9530_v46 = vpop.f32.mrb[19].mxu0  ;;  %v18166_v8 = vld [vmem:[#allocation68_spill] sm:$0xff] }
 0x698   : > { %v17047_v62 = vadd.f32 %v9530_v46, %v18165_v19  ;;  %v18168_v46 = vld [vmem:[#allocation22_spill] sm:$0xff] }
 0x699   : > { %18164 = vst [vmem:[#allocation96_spill] sm:$0xff] %v17044_v25  ;;  %9068 = vmatpush1.bf16.msra.mxu1 %v13536_v15  ;;  %v18169_v15 = vld [vmem:[#allocation8_spill] sm:$0xff] }
 0x69a   : > { %v9534_v16 = vpop.f32.mrb[20].mxu0  ;;  %9069 = vmatprep.subr.bf16.mxu1 %v13541_v14  ;;  %v13542_v14 = vld [vmem:[%s17752_s15 + $0x1000] ss:$24 sps:$4 sm:$0xff]  }
 0x69b   : > { %v17056_v11 = vadd.f32 %v9534_v16, %v16735_v61  ;;  %v9536_v47 = vpop.f32.mrb[21].mxu0  ;;  %v13547_v61 = vld [vmem:[%s17752_s15 + $0x1034] ss:$24 sps:$4 sm:$0xff]  }
 0x69c   : > { %v17059_v25 = vadd.f32 %v9536_v47, %v18166_v8  ;;  %8921 = vmatmul.mubr.bf16.gmra.mrb[116].mxu1 %v18168_v46  ;;  %v18171_v8 = vld [vmem:[#allocation69_spill] sm:$0xff] }
 0x69d   : > { %8930 = vmatprep.mubr.bf16.mxu1 %v18169_v15  ;;  %9070 = vmatpush1.bf16.msra.mxu1 %v13539_v38  ;;  %v13545_v38 = vld [vmem:[%s17752_s15 + $0x1030] ss:$24 sps:$4 sm:$0xff]  }
 0x69e   : > { %18167 = vst [vmem:[#allocation97_spill] sm:$0xff] %v17059_v25  ;;  %v9540_v19 = vpop.f32.mrb[22].mxu0  ;;  %9071 = vmatprep.subr.bf16.mxu1 %v13544_v17  ;;  %v13550_v17 = vld [vmem:[%s17752_s15 + $0x1064] ss:$24 sps:$4 sm:$0xff]  }
 0x69f   : > { %v17070_v16 = vadd.f32 %v9540_v19, %v16747_v7  ;;  %v9542_v47 = vpop.f32.mrb[23].mxu0  ;;  %v18172_v19 = vld [vmem:[#allocation70_spill] sm:$0xff] }
 0x6a0   : > { %v17073_v25 = vadd.f32 %v9542_v47, %v18171_v8  ;;  %v18174_v47 = vld [vmem:[#allocation25_spill] sm:$0xff] }
 0x6a1   : > { %18170 = vst [vmem:[#allocation98_spill] sm:$0xff] %v17070_v16  ;;  %9072 = vmatpush1.bf16.msra.mxu1 %v13542_v14  ;;  %v18175_v14 = vld [vmem:[#allocation9_spill] sm:$0xff] }
 0x6a2   : > { %v9546_v46 = vpop.f32.mrb[24].mxu0  ;;  %9073 = vmatprep.subr.bf16.mxu1 %v13547_v61  ;;  %v13548_v61 = vld [vmem:[%s17752_s15 + $0x1060] ss:$24 sps:$4 sm:$0xff]  }
 0x6a3   : > { %v17082_v15 = vadd.f32 %v9546_v46, %v16757_v13  ;;  %v9548_v7 = vpop.f32.mrb[25].mxu0  ;;  %v13553_v13 = vld [vmem:[%s17752_s15 + $0x1094] ss:$24 sps:$4 sm:$0xff]  }
 0x6a4   : > { %v17085_v16 = vadd.f32 %v9548_v7, %v18172_v19  ;;  %8931 = vmatmul.mubr.bf16.gmra.mrb[120].mxu1 %v18174_v47  ;;  %v18177_v19 = vld [vmem:[#allocation71_spill] sm:$0xff] }
 0x6a5   : > { %8940 = vmatprep.mubr.bf16.mxu1 %v18175_v14  ;;  %9074 = vmatpush1.bf16.msra.mxu1 %v13545_v38  ;;  %v13551_v38 = vld [vmem:[%s17752_s15 + $0x1090] ss:$24 sps:$4 sm:$0xff]  }
 0x6a6   : > { %18173 = vst [vmem:[#allocation99_spill] sm:$0xff] %v17085_v16  ;;  %v9552_v8 = vpop.f32.mrb[26].mxu0  ;;  %9075 = vmatprep.subr.bf16.mxu1 %v13550_v17  ;;  %v13556_v17 = vld [vmem:[%s17752_s15 + $0x10c4] ss:$24 sps:$4 sm:$0xff]  }
 0x6a7   : > { %v17096_v46 = vadd.f32 %v9552_v8, %v16769_v34  ;;  %v9554_v7 = vpop.f32.mrb[27].mxu0  ;;  %v18180_v8 = vld [vmem:[#allocation72_spill] sm:$0xff] }
 0x6a8   : > { %v17099_v16 = vadd.f32 %v9554_v7, %v18177_v19  ;;  %v18182_v7 = vld [vmem:[#allocation24_spill] sm:$0xff] }
 0x6a9   : > { %18176 = vst [vmem:[#allocation100_spill] sm:$0xff] %v17096_v46  ;;  %9076 = vmatpush1.bf16.msra.mxu1 %v13548_v61  ;;  %v18183_v61 = vld [vmem:[#allocation10_spill] sm:$0xff] }
 0x6aa   : > { %18178 = vst [vmem:[#allocation101_spill] sm:$0xff] %v17099_v16  ;;  %v9558_v47 = vpop.f32.mrb[28].mxu0  ;;  %9077 = vmatprep.subr.bf16.mxu1 %v13553_v13  ;;  %v13554_v13 = vld [vmem:[%s17752_s15 + $0x10c0] ss:$24 sps:$4 sm:$0xff]  }
 0x6ab   : > { %v17108_v14 = vadd.f32 %v9558_v47, %v16779_v5  ;;  %v9560_v34 = vpop.f32.mrb[29].mxu0  ;;  %v13559_v5 = vld [vmem:[%s17752_s15 + $0x10f4] ss:$24 sps:$4 sm:$0xff]  }
 0x6ac   : > { %v17111_v46 = vadd.f32 %v9560_v34, %v18180_v8  ;;  %8941 = vmatmul.mubr.bf16.gmra.mrb[124].mxu1 %v18182_v7  ;;  %v18184_v47 = vld [vmem:[#allocation73_spill] sm:$0xff]  ;;  %v18186_v8 = vld [vmem:[#allocation74_spill] sm:$0xff] }
 0x6ad   : > { %18179 = vst [vmem:[#allocation102_spill] sm:$0xff] %v17108_v14  ;;  %8950 = vmatprep.mubr.bf16.mxu1 %v18183_v61  ;;  %9078 = vmatpush1.bf16.msra.mxu1 %v13551_v38  ;;  %v13557_v38 = vld [vmem:[%s17752_s15 + $0x10f0] ss:$24 sps:$4 sm:$0xff]   ;;  %v18187_v61 = vld [vmem:[#allocation75_spill] sm:$0xff] }
 0x6ae   : > { %18181 = vst [vmem:[#allocation103_spill] sm:$0xff] %v17111_v46  ;;  %v9564_v19 = vpop.f32.mrb[30].mxu0  ;;  %9079 = vmatprep.subr.bf16.mxu1 %v13556_v17  ;;  %v13562_v17 = vld [vmem:[%s17752_s15 + $0x1124] ss:$24 sps:$4 sm:$0xff]  }
 0x6af   : > { %v17122_v14 = vadd.f32 %v9564_v19, %v18184_v47  ;;  %v9566_v34 = vpop.f32.mrb[31].mxu0  ;;  %v18189_v47 = vld [vmem:[#allocation76_spill] sm:$0xff] }
 0x6b0   : > { %v17125_v46 = vadd.f32 %v9566_v34, %v18186_v8  ;;  %v18191_v34 = vld [vmem:[#allocation27_spill] sm:$0xff]  ;;  %v13565_v8 = vld [vmem:[%s17752_s15 + $0x1154] ss:$24 sps:$4 sm:$0xff]  }
 0x6b1   : > { %18185 = vst [vmem:[#allocation104_spill] sm:$0xff] %v17122_v14  ;;  %9080 = vmatpush1.bf16.msra.mxu1 %v13554_v13  ;;  %v18192_v13 = vld [vmem:[#allocation11_spill] sm:$0xff] }
 0x6b2   : > { %v9570_v7 = vpop.f32.mrb[32].mxu0  ;;  %9081 = vmatprep.subr.bf16.mxu1 %v13559_v5  ;;  %v13560_v5 = vld [vmem:[%s17752_s15 + $0x1120] ss:$24 sps:$4 sm:$0xff]  }
 0x6b3   : > { %v17134_v16 = vadd.f32 %v9570_v7, %v18187_v61  ;;  %v9572_v19 = vpop.f32.mrb[33].mxu0  ;;  %v13563_v7 = vld [vmem:[%s17752_s15 + $0x1150] ss:$24 sps:$4 sm:$0xff]   ;;  %v13568_v61 = vld [vmem:[%s17752_s15 + $0x1184] ss:$24 sps:$4 sm:$0xff]  }
 0x6b4   : > { %v17137_v14 = vadd.f32 %v9572_v19, %v18189_v47  ;;  %8951 = vmatmul.mubr.bf16.gmra.mrb[128].mxu1 %v18191_v34  ;;  %v18194_v19 = vld [vmem:[#allocation12_spill] sm:$0xff]  ;;  %v13571_v47 = vld [vmem:[%s17752_s15 + $0x11b4] ss:$24 sps:$4 sm:$0xff]   ;;  %v13569_v34 = vld [vmem:[%s17752_s15 + $0x11b0] ss:$24 sps:$4 sm:$0xff]  }
 0x6b5   : > { %18188 = vst [vmem:[#allocation105_spill] sm:$0xff] %v17134_v16  ;;  %8960 = vmatprep.mubr.bf16.mxu1 %v18192_v13  ;;  %9082 = vmatpush1.bf16.msra.mxu1 %v13557_v38  ;;  %v18193_v38 = vld [vmem:[#allocation26_spill] sm:$0xff]  ;;  %v13574_v13 = vld [vmem:[%s17752_s15 + $0x11e4] ss:$24 sps:$4 sm:$0xff]   ;;  %v18221_v16 = vld [vmem:[#allocation49_spill] sm:$0xff] }
 0x6b6   : > { %18190 = vst [vmem:[#allocation106_spill] sm:$0xff] %v17137_v14  ;;  %9083 = vmatprep.subr.bf16.mxu1 %v13562_v17  ;;  %v13566_v17 = vld [vmem:[%s17752_s15 + $0x1180] ss:$24 sps:$4 sm:$0xff]   ;;  %v18205_v14 = vld [vmem:[#allocation34_spill] sm:$0xff] }
 0x6b9   : > { %9084 = vmatpush1.bf16.msra.mxu1 %v13560_v5  ;;  %v18195_v5 = vld [vmem:[#allocation29_spill] sm:$0xff] }
 0x6ba   : > { %9085 = vmatprep.subr.bf16.mxu1 %v13565_v8  ;;  %v18196_v8 = vld [vmem:[#allocation13_spill] sm:$0xff] }
 0x6bc   : > { %8961 = vmatmul.mubr.bf16.gmra.mrb[132].mxu1 %v18193_v38  ;;  %v18198_v38 = vld [vmem:[#allocation14_spill] sm:$0xff] }
 0x6bd   : > { %8970 = vmatprep.mubr.bf16.mxu1 %v18194_v19  ;;  %9086 = vmatpush1.bf16.msra.mxu1 %v13563_v7  ;;  %v13572_v7 = vld [vmem:[%s17752_s15 + $0x11e0] ss:$24 sps:$4 sm:$0xff]  }
 0x6be   : > { %9087 = vmatprep.subr.bf16.mxu1 %v13568_v61  ;;  %v18197_v61 = vld [vmem:[#allocation28_spill] sm:$0xff]  ;;  %v18199_v19 = vld [vmem:[#allocation31_spill] sm:$0xff] }
 0x6c1   : > { %9088 = vmatpush1.bf16.msra.mxu1 %v13566_v17  ;;  %v18200_v17 = vld [vmem:[#allocation15_spill] sm:$0xff] }
 0x6c2   : > { %9089 = vmatprep.subr.bf16.mxu1 %v13571_v47  ;;  %v18201_v47 = vld [vmem:[#allocation30_spill] sm:$0xff] }
 0x6c4   : > { %8971 = vmatmul.mubr.bf16.gmra.mrb[136].mxu1 %v18195_v5  ;;  %v18202_v5 = vld [vmem:[#allocation16_spill] sm:$0xff] }
 0x6c5   : > { %8980 = vmatprep.mubr.bf16.mxu1 %v18196_v8  ;;  %9090 = vmatpush1.bf16.msra.mxu1 %v13569_v34  ;;  %v18203_v8 = vld [vmem:[#allocation35_spill] sm:$0xff]  ;;  %v18204_v34 = vld [vmem:[#allocation17_spill] sm:$0xff] }
 0x6c6   : > { %9091 = vmatprep.subr.bf16.mxu1 %v13574_v13  ;;  %v18206_v13 = vld [vmem:[#allocation18_spill] sm:$0xff] }
 0x6c9   : > { %9092 = vmatpush1.bf16.msra.mxu1 %v13572_v7  ;;  %v18207_v7 = vld [vmem:[#allocation39_spill] sm:$0xff] }
 0x6cc   : > { %8981 = vmatmul.mubr.bf16.gmra.mrb[140].mxu1 %v18197_v61  ;;  %v18208_v61 = vld [vmem:[#allocation19_spill] sm:$0xff] }
 0x6cd   : > { %8990 = vmatprep.mubr.bf16.mxu1 %v18198_v38  ;;  %v18209_v38 = vld [vmem:[#allocation38_spill] sm:$0xff] }
 0x6d4   : > { %8991 = vmatmul.mubr.bf16.gmra.mrb[144].mxu1 %v18199_v19  ;;  %v18210_v19 = vmov 0  }
 0x6d5   : > { %9000 = vmatprep.mubr.bf16.mxu1 %v18200_v17  ;;  %v18211_v17 = vld [vmem:[#allocation37_spill] sm:$0xff] }
 0x6dc   : > { %9001 = vmatmul.mubr.bf16.gmra.mrb[148].mxu1 %v18201_v47  ;;  %v18212_v47 = vld [vmem:[#allocation36_spill] sm:$0xff] }
 0x6dd   : > { %9010 = vmatprep.mubr.bf16.mxu1 %v18202_v5  ;;  %v18213_v5 = vld [vmem:[#allocation41_spill] sm:$0xff] }
 0x6e4   : > { %9011 = vmatmul.mubr.bf16.gmra.mrb[152].mxu1 %v18203_v8  ;;  %v18214_v8 = vld [vmem:[#allocation40_spill] sm:$0xff] }
 0x6e5   : > { %9020 = vmatprep.mubr.bf16.mxu1 %v18204_v34  ;;  %v18216_v34 = vld [vmem:[#allocation42_spill] sm:$0xff] }
 0x6ec   : > { %9021 = vmatmul.mubr.bf16.gmra.mrb[156].mxu1 %v18205_v14  ;;  %v18215_v14 = vld [vmem:[#allocation43_spill] sm:$0xff] }
 0x6ed   : > { %9030 = vmatprep.mubr.bf16.mxu1 %v18206_v13  ;;  %v18217_v13 = vld [vmem:[#allocation45_spill] sm:$0xff] }
 0x6f4   : > { %9031 = vmatmul.mubr.bf16.gmra.mrb[160].mxu1 %v18207_v7  ;;  %v18218_v7 = vld [vmem:[#allocation44_spill] sm:$0xff] }
 0x6f5   : > { %9040 = vmatprep.mubr.bf16.mxu1 %v18208_v61  ;;  %v18219_v61 = vld [vmem:[#allocation47_spill] sm:$0xff] }
 0x6fc   : > { %9041 = vmatmul.mubr.bf16.gmra.mrb[164].mxu1 %v18209_v38  ;;  %v18220_v38 = vld [vmem:[#allocation46_spill] sm:$0xff] }
 0x6fd   : > { %9050 = vmatprep.mubr.bf16.mxu1 %v18210_v19 }
 0x704   : > { %9051 = vmatmul.mubr.bf16.gmra.mrb[168].mxu1 %v18210_v19 }
 0x705   : > { %9093 = vmatprep.mubr.bf16.mxu1 %v18211_v17 }
 0x70c   : > { %9094 = vmatmul.mubr.bf16.vlgmr.msra.gmra.mrb[108].mxu1 %v18212_v47 }
 0x70d   : > { %9103 = vmatprep.mubr.bf16.mxu1 %v18213_v5 }
 0x714   : > { %9104 = vmatmul.mubr.bf16.gmra.mrb[112].mxu1 %v18214_v8 }
 0x715   : > { %9113 = vmatprep.mubr.bf16.mxu1 %v18215_v14 }
 0x71c   : > { %9114 = vmatmul.mubr.bf16.gmra.mrb[116].mxu1 %v18216_v34 }
 0x71d   : > { %9123 = vmatprep.mubr.bf16.mxu1 %v18217_v13 }
 0x724   : > { %9124 = vmatmul.mubr.bf16.gmra.mrb[120].mxu1 %v18218_v7 }
 0x725   : > { %9133 = vmatprep.mubr.bf16.mxu1 %v18219_v61 }
 0x72c   : > { %9134 = vmatmul.mubr.bf16.gmra.mrb[124].mxu1 %v18220_v38 }
 0x72d   : > { %9143 = vmatprep.mubr.bf16.mxu1 %v18221_v16 }
 0x734   : > { %9144 = vmatmul.mubr.bf16.gmra.mrb[128].mxu1 %v18122_v56 }
 0x735   : > { %9153 = vmatprep.mubr.bf16.mxu1 %v18123_v24 }
 0x73c   : > { %9154 = vmatmul.mubr.bf16.gmra.mrb[132].mxu1 %v14610_v4  ;;  %v9640_v4 = vld [vmem:[%s17743_s6 + $0x8] sm:$0xff] }
 0x73d   : > { %9163 = vmatprep.mubr.bf16.mxu1 %v14620_v32  ;;  %9767 = vmatprep.mubr.f32.mxu0 %v9640_v4 }
 0x744   : > { %9164 = vmatmul.mubr.bf16.gmra.mrb[136].mxu1 %v14618_v27 }
 0x745   : > { %9173 = vmatprep.mubr.bf16.mxu1 %v14628_v42 }
 0x74c   : > { %9174 = vmatmul.mubr.bf16.gmra.mrb[140].mxu1 %v14626_v29 }
 0x74d   : > { %9183 = vmatprep.mubr.bf16.mxu1 %v14648_v50 }
 0x754   : > { %9184 = vmatmul.mubr.bf16.gmra.mrb[144].mxu1 %v14643_v28 }
 0x755   : > { %9193 = vmatprep.mubr.bf16.mxu1 %v17994_v6 }
 0x75c   : > { %9194 = vmatmul.mubr.bf16.gmra.mrb[148].mxu1 %v17995_v63 }
 0x75d   : > { %9203 = vmatprep.mubr.bf16.mxu1 %v17996_v60 }
 0x764   : > { %9204 = vmatmul.mubr.bf16.gmra.mrb[152].mxu1 %v17997_v33 }
 0x765   : > { %9213 = vmatprep.mubr.bf16.mxu1 %v17998_v40 }
 0x76c   : > { %9214 = vmatmul.mubr.bf16.gmra.mrb[156].mxu1 %v18133_v12 }
 0x76d   : > { %9223 = vmatprep.mubr.bf16.mxu1 %v18134_v49 }
 0x774   : > { %9224 = vmatmul.mubr.bf16.gmra.mrb[160].mxu1 %v18142_v21 }
 0x775   : > { %9233 = vmatprep.mubr.bf16.mxu1 %v18143_v22 }
 0x77c   : > { %9234 = vmatmul.mubr.bf16.gmra.mrb[164].mxu1 %v18148_v55 }
 0x77d   : > { %9243 = vmatprep.mubr.bf16.mxu1 %v18210_v19 }
 0x784   : > { %9244 = vmatmul.mubr.bf16.gmra.mrb[168].mxu1 %v18210_v19 }
 0x7df   : > { %v9095_v27 = vpop.f32.mrb[108].mxu1 }
 0x7e0   : > { %v9097_v32 = vpop.f32.mrb[109].mxu1 }
 0x7e1   : > { %v9099_v29 = vpop.f32.mrb[110].mxu1 }
 0x7e2   : > { %v11615_v42 = vpack.c.bf16 %v9099_v29, %v9095_v27  ;;  %v9101_v28 = vpop.f32.mrb[111].mxu1 }
 0x7e3   : > { %v11613_v50 = vpack.c.bf16 %v9101_v28, %v9097_v32 }
 0x7e5   : > { %11614 = vmatprep.subr.bf16.mxu0 %v11613_v50 }
 0x7e6   : > { %11616 = vmatpush1.bf16.msra.mxu0 %v11615_v42 }
 0x7e7   : > { %v9105_v63 = vpop.f32.mrb[112].mxu1 }
 0x7e8   : > { %v9107_v33 = vpop.f32.mrb[113].mxu1 }
 0x7e9   : > { %v9109_v6 = vpop.f32.mrb[114].mxu1 }
 0x7ea   : > { %v11619_v60 = vpack.c.bf16 %v9109_v6, %v9105_v63  ;;  %v9111_v40 = vpop.f32.mrb[115].mxu1 }
 0x7eb   : > { %v11617_v56 = vpack.c.bf16 %v9111_v40, %v9107_v33 }
 0x7ed   : > { %11618 = vmatprep.subr.bf16.mxu0 %v11617_v56 }
 0x7ee   : > { %11620 = vmatpush1.bf16.msra.mxu0 %v11619_v60 }
 0x7ef   : > { %v9115_v24 = vpop.f32.mrb[116].mxu1 }
 0x7f0   : > { %v9117_v49 = vpop.f32.mrb[117].mxu1 }
 0x7f1   : > { %v9119_v22 = vpop.f32.mrb[118].mxu1 }
 0x7f2   : > { %v11623_v12 = vpack.c.bf16 %v9119_v22, %v9115_v24  ;;  %v9121_v21 = vpop.f32.mrb[119].mxu1 }
 0x7f3   : > { %v11621_v55 = vpack.c.bf16 %v9121_v21, %v9117_v49 }
 0x7f5   : > { %11622 = vmatprep.subr.bf16.mxu0 %v11621_v55 }
 0x7f6   : > { %11624 = vmatpush1.bf16.msra.mxu0 %v11623_v12 }
 0x7f7   : > { %v9125_v16 = vpop.f32.mrb[120].mxu1 }
 0x7f8   : > { %v9127_v19 = vpop.f32.mrb[121].mxu1 }
 0x7f9   : > { %v9129_v17 = vpop.f32.mrb[122].mxu1 }
 0x7fa   : > { %v11627_v47 = vpack.c.bf16 %v9129_v17, %v9125_v16  ;;  %v9131_v5 = vpop.f32.mrb[123].mxu1 }
 0x7fb   : > { %v11625_v8 = vpack.c.bf16 %v9131_v5, %v9127_v19 }
 0x7fd   : > { %11626 = vmatprep.subr.bf16.mxu0 %v11625_v8 }
 0x7fe   : > { %11628 = vmatpush1.bf16.msra.mxu0 %v11627_v47 }
 0x7ff   : > { %v9135_v14 = vpop.f32.mrb[124].mxu1 }
 0x800   : > { %v9137_v34 = vpop.f32.mrb[125].mxu1 }
 0x801   : > { %v9139_v13 = vpop.f32.mrb[126].mxu1 }
 0x802   : > { %v11631_v7 = vpack.c.bf16 %v9139_v13, %v9135_v14  ;;  %v9141_v61 = vpop.f32.mrb[127].mxu1 }
 0x803   : > { %v11629_v38 = vpack.c.bf16 %v9141_v61, %v9137_v34 }
 0x805   : > { %11630 = vmatprep.subr.bf16.mxu0 %v11629_v38 }
 0x806   : > { %11632 = vmatpush1.bf16.msra.mxu0 %v11631_v7 }
 0x807   : > { %v9145_v4 = vpop.f32.mrb[128].mxu1 }
 0x808   : > { %v9147_v27 = vpop.f32.mrb[129].mxu1 }
 0x809   : > { %v9149_v32 = vpop.f32.mrb[130].mxu1 }
 0x80a   : > { %v11635_v29 = vpack.c.bf16 %v9149_v32, %v9145_v4  ;;  %v9151_v42 = vpop.f32.mrb[131].mxu1 }
 0x80b   : > { %v11633_v28 = vpack.c.bf16 %v9151_v42, %v9147_v27 }
 0x80d   : > { %11634 = vmatprep.subr.bf16.mxu0 %v11633_v28 }
 0x80e   : > { %11636 = vmatpush1.bf16.msra.mxu0 %v11635_v29 }
 0x80f   : > { %v9155_v50 = vpop.f32.mrb[132].mxu1 }
 0x810   : > { %v9157_v63 = vpop.f32.mrb[133].mxu1 }
 0x811   : > { %v9159_v33 = vpop.f32.mrb[134].mxu1 }
 0x812   : > { %v11639_v6 = vpack.c.bf16 %v9159_v33, %v9155_v50  ;;  %v9161_v60 = vpop.f32.mrb[135].mxu1 }
 0x813   : > { %v11637_v40 = vpack.c.bf16 %v9161_v60, %v9157_v63 }
 0x815   : > { %11638 = vmatprep.subr.bf16.mxu0 %v11637_v40 }
 0x816   : > { %11640 = vmatpush1.bf16.msra.mxu0 %v11639_v6 }
 0x817   : > { %v9165_v56 = vpop.f32.mrb[136].mxu1 }
 0x818   : > { %v9167_v24 = vpop.f32.mrb[137].mxu1 }
 0x819   : > { %v9169_v49 = vpop.f32.mrb[138].mxu1 }
 0x81a   : > { %v11643_v22 = vpack.c.bf16 %v9169_v49, %v9165_v56  ;;  %v9171_v12 = vpop.f32.mrb[139].mxu1 }
 0x81b   : > { %v11641_v21 = vpack.c.bf16 %v9171_v12, %v9167_v24 }
 0x81d   : > { %11642 = vmatprep.subr.bf16.mxu0 %v11641_v21 }
 0x81e   : > { %11644 = vmatpush1.bf16.msra.mxu0 %v11643_v22 }
 0x81f   : > { %v9175_v55 = vpop.f32.mrb[140].mxu1 }
 0x820   : > { %v9177_v16 = vpop.f32.mrb[141].mxu1 }
 0x821   : > { %v9179_v19 = vpop.f32.mrb[142].mxu1 }
 0x822   : > { %v11647_v17 = vpack.c.bf16 %v9179_v19, %v9175_v55  ;;  %v9181_v47 = vpop.f32.mrb[143].mxu1 }
 0x823   : > { %v11645_v5 = vpack.c.bf16 %v9181_v47, %v9177_v16 }
 0x825   : > { %11646 = vmatprep.subr.bf16.mxu0 %v11645_v5 }
 0x826   : > { %11648 = vmatpush1.bf16.msra.mxu0 %v11647_v17 }
 0x827   : > { %v9185_v8 = vpop.f32.mrb[144].mxu1 }
 0x828   : > { %v9187_v14 = vpop.f32.mrb[145].mxu1 }
 0x829   : > { %v9189_v34 = vpop.f32.mrb[146].mxu1 }
 0x82a   : > { %v11651_v13 = vpack.c.bf16 %v9189_v34, %v9185_v8  ;;  %v9191_v7 = vpop.f32.mrb[147].mxu1 }
 0x82b   : > { %v11649_v61 = vpack.c.bf16 %v9191_v7, %v9187_v14 }
 0x82d   : > { %11650 = vmatprep.subr.bf16.mxu0 %v11649_v61 }
 0x82e   : > { %11652 = vmatpush1.bf16.msra.mxu0 %v11651_v13 }
 0x82f   : > { %v9195_v38 = vpop.f32.mrb[148].mxu1 }
 0x830   : > { %v9197_v4 = vpop.f32.mrb[149].mxu1 }
 0x831   : > { %v9199_v27 = vpop.f32.mrb[150].mxu1 }
 0x832   : > { %v11655_v32 = vpack.c.bf16 %v9199_v27, %v9195_v38  ;;  %v9201_v29 = vpop.f32.mrb[151].mxu1 }
 0x833   : > { %v11653_v42 = vpack.c.bf16 %v9201_v29, %v9197_v4 }
 0x835   : > { %11654 = vmatprep.subr.bf16.mxu0 %v11653_v42  ;;  %v10164_v42 = vld [vmem:[%s17754_s17] sm:$0xff] }
 0x836   : > { %11656 = vmatpush1.bf16.msra.mxu0 %v11655_v32 }
 0x837   : > { %v9205_v28 = vpop.f32.mrb[152].mxu1 }
 0x838   : > { %v9207_v50 = vpop.f32.mrb[153].mxu1 }
 0x839   : > { %v9209_v63 = vpop.f32.mrb[154].mxu1 }
 0x83a   : > { %v11659_v33 = vpack.c.bf16 %v9209_v63, %v9205_v28  ;;  %v9211_v6 = vpop.f32.mrb[155].mxu1  ;;  %v10165_v28 = vld [vmem:[%s17754_s17 + $0x8] sm:$0xff] }
 0x83b   : > { %v11657_v60 = vpack.c.bf16 %v9211_v6, %v9207_v50  ;;  %v9639_v50 = vld [vmem:[%s17743_s6] sm:$0xff]  ;;  %v11678_v63 = vpack.c.bf16 %v10165_v28, %v10164_v42  ;;  %v13585_v6 = vmov 0.0|0.0   ;;  %v10177_v28 = vld [vmem:[%s17754_s17 + $0x68] sm:$0xff] }
 0x83c   : > { %v10176_v42 = vld [vmem:[%s17754_s17 + $0x60] sm:$0xff] }
 0x83d   : > { %11658 = vmatprep.subr.bf16.mxu0 %v11657_v60  ;;  %v10166_v60 = vld [vmem:[%s17754_s17 + $0x10] sm:$0xff] }
 0x83e   : > { %11660 = vmatpush1.bf16.msra.mxu0 %v11659_v33  ;;  %v9642_v33 = vld [vmem:[%s17743_s6 + $0x18] sm:$0xff] }
 0x83f   : > { %v9215_v40 = vpop.f32.mrb[156].mxu1 }
 0x840   : > { %v9217_v56 = vpop.f32.mrb[157].mxu1 }
 0x841   : > { %v9219_v24 = vpop.f32.mrb[158].mxu1 }
 0x842   : > { %v11663_v49 = vpack.c.bf16 %v9219_v24, %v9215_v40  ;;  %v9221_v22 = vpop.f32.mrb[159].mxu1  ;;  %v10167_v40 = vld [vmem:[%s17754_s17 + $0x18] sm:$0xff] }
 0x843   : > { %v11661_v12 = vpack.c.bf16 %v9221_v22, %v9217_v56  ;;  %v9641_v56 = vld [vmem:[%s17743_s6 + $0x10] sm:$0xff]  ;;  %v11681_v24 = vpack.c.bf16 %v10167_v40, %v10166_v60  ;;  %v10168_v22 = vld [vmem:[%s17754_s17 + $0x20] sm:$0xff]  ;;  %v10179_v40 = vld [vmem:[%s17754_s17 + $0x78] sm:$0xff] }
 0x844   : > { %v10178_v60 = vld [vmem:[%s17754_s17 + $0x70] sm:$0xff] }
 0x845   : > { %11662 = vmatprep.subr.bf16.mxu0 %v11661_v12  ;;  %v10169_v12 = vld [vmem:[%s17754_s17 + $0x28] sm:$0xff] }
 0x846   : > { %11664 = vmatpush1.bf16.msra.mxu0 %v11663_v49  ;;  %v9644_v49 = vld [vmem:[%s17743_s6 + $0x28] sm:$0xff] }
 0x847   : > { %v9225_v21 = vpop.f32.mrb[160].mxu1 }
 0x848   : > { %v9227_v55 = vpop.f32.mrb[161].mxu1 }
 0x849   : > { %v9229_v16 = vpop.f32.mrb[162].mxu1 }
 0x84a   : > { %v11667_v19 = vpack.c.bf16 %v9229_v16, %v9225_v21  ;;  %v9231_v17 = vpop.f32.mrb[163].mxu1  ;;  %v9643_v21 = vld [vmem:[%s17743_s6 + $0x20] sm:$0xff]  ;;  %v9646_v16 = vld [vmem:[%s17743_s6 + $0x38] sm:$0xff] }
 0x84b   : > { %v11665_v47 = vpack.c.bf16 %v9231_v17, %v9227_v55  ;;  %v11684_v55 = vpack.c.bf16 %v10169_v12, %v10168_v22  ;;  %v10171_v17 = vld [vmem:[%s17754_s17 + $0x38] sm:$0xff]  ;;  %v10180_v22 = vld [vmem:[%s17754_s17 + $0x80] sm:$0xff]  ;;  %v10181_v12 = vld [vmem:[%s17754_s17 + $0x88] sm:$0xff] }
 0x84d   : > { %11666 = vmatprep.subr.bf16.mxu0 %v11665_v47  ;;  %v9645_v47 = vld [vmem:[%s17743_s6 + $0x30] sm:$0xff] }
 0x84e   : > { %11668 = vmatpush1.bf16.msra.mxu0 %v11667_v19  ;;  %v10170_v19 = vld [vmem:[%s17754_s17 + $0x30] sm:$0xff] }
 0x84f   : > { %v9235_v5 = vpop.f32.mrb[164].mxu1 }
 0x850   : > { %v9237_v8 = vpop.f32.mrb[165].mxu1 }
 0x851   : > { %v9239_v14 = vpop.f32.mrb[166].mxu1 }
 0x852   : > { %v11671_v34 = vpack.c.bf16 %v9239_v14, %v9235_v5  ;;  %v9241_v13 = vpop.f32.mrb[167].mxu1  ;;  %v11687_v5 = vpack.c.bf16 %v10171_v17, %v10170_v19  ;;  %v10172_v14 = vld [vmem:[%s17754_s17 + $0x40] sm:$0xff]  ;;  %v10182_v19 = vld [vmem:[%s17754_s17 + $0x90] sm:$0xff]  ;;  %v10183_v17 = vld [vmem:[%s17754_s17 + $0x98] sm:$0xff] }
 0x853   : > { %v11669_v7 = vpack.c.bf16 %v9241_v13, %v9237_v8  ;;  %v9648_v8 = vld [vmem:[%s17743_s6 + $0x48] sm:$0xff]  ;;  %v9647_v13 = vld [vmem:[%s17743_s6 + $0x40] sm:$0xff] }
 0x855   : > { %11670 = vmatprep.subr.bf16.mxu0 %v11669_v7 }
 0x856   : > { %11672 = vmatpush1.bf16.msra.mxu0 %v11671_v34  ;;  %v10173_v34 = vld [vmem:[%s17754_s17 + $0x48] sm:$0xff] }
 0x857   : > { %v9245_v61 = vpop.f32.mrb[168].mxu1  ;;  %v11690_v7 = vpack.c.bf16 %v10173_v34, %v10172_v14  ;;  %v10184_v14 = vld [vmem:[%s17754_s17 + $0xa0] sm:$0xff]  ;;  %v10185_v34 = vld [vmem:[%s17754_s17 + $0xa8] sm:$0xff] }
 0x858   : > { %v9247_v38 = vpop.f32.mrb[169].mxu1 }
 0x859   : > { %v9249_v4 = vpop.f32.mrb[170].mxu1 }
 0x85a   : > { %v11675_v27 = vpack.c.bf16 %v9249_v4, %v9245_v61  ;;  %v9251_v32 = vpop.f32.mrb[171].mxu1  ;;  %v9650_v61 = vld [vmem:[%s17743_s6 + $0x58] sm:$0xff] }
 0x85b   : > { %v11673_v29 = vpack.c.bf16 %v9251_v32, %v9247_v38  ;;  %v10174_v38 = vld [vmem:[%s17754_s17 + $0x50] sm:$0xff]  ;;  %v10175_v4 = vld [vmem:[%s17754_s17 + $0x58] sm:$0xff] }
 0x85c   : > { %v11693_v32 = vpack.c.bf16 %v10175_v4, %v10174_v38  ;;  %v10186_v38 = vld [vmem:[%s17754_s17 + $0xb0] sm:$0xff]  ;;  %v10187_v4 = vld [vmem:[%s17754_s17 + $0xb8] sm:$0xff] }
 0x85d   : > { %11674 = vmatprep.subr.bf16.mxu0 %v11673_v29  ;;  %v9652_v29 = vld [vmem:[%s17743_s6 + $0x68] sm:$0xff] }
 0x85e   : > { %11676 = vmatpush1.bf16.msra.mxu0 %v11675_v27  ;;  %v9649_v27 = vld [vmem:[%s17743_s6 + $0x50] sm:$0xff] }
 0x85f   : > { %11677 = vmatprep.subr.bf16.mxu0 %v13585_v6 }
 0x861   : > { %9768 = vmatmul.mubr.f32.vlgmr.msra.gmra.mrb[36].mxu0 %v9639_v50  ;;  %v9651_v50 = vld [vmem:[%s17743_s6 + $0x60] sm:$0xff] }
 0x862   : > { %9773 = vmatprep.mubr.f32.mxu0 %v9642_v33  ;;  %11679 = vmatpush1.bf16.msra.mxu0 %v11678_v63  ;;  %v11696_v63 = vpack.c.bf16 %v10177_v28, %v10176_v42  ;;  %v9654_v33 = vld [vmem:[%s17743_s6 + $0x78] sm:$0xff]  ;;  %v10188_v42 = vld [vmem:[%s17754_s17 + $0xc0] sm:$0xff]  ;;  %v10189_v28 = vld [vmem:[%s17754_s17 + $0xc8] sm:$0xff] }
 0x863   : > { %11680 = vmatprep.subr.bf16.mxu0 %v13585_v6 }
 0x865   : > { %9774 = vmatmul.mubr.f32.gmra.mrb[38].mxu0 %v9641_v56  ;;  %v9653_v56 = vld [vmem:[%s17743_s6 + $0x70] sm:$0xff] }
 0x866   : > { %9779 = vmatprep.mubr.f32.mxu0 %v9644_v49  ;;  %11682 = vmatpush1.bf16.msra.mxu0 %v11681_v24  ;;  %v11699_v24 = vpack.c.bf16 %v10179_v40, %v10178_v60  ;;  %v9656_v49 = vld [vmem:[%s17743_s6 + $0x88] sm:$0xff]  ;;  %v10190_v60 = vld [vmem:[%s17754_s17 + $0xd0] sm:$0xff]  ;;  %v10191_v40 = vld [vmem:[%s17754_s17 + $0xd8] sm:$0xff] }
 0x867   : > { %11683 = vmatprep.subr.bf16.mxu0 %v13585_v6 }
 0x869   : > { %9780 = vmatmul.mubr.f32.gmra.mrb[40].mxu0 %v9643_v21  ;;  %v9655_v21 = vld [vmem:[%s17743_s6 + $0x80] sm:$0xff] }
 0x86a   : > { %9785 = vmatprep.mubr.f32.mxu0 %v9646_v16  ;;  %11685 = vmatpush1.bf16.msra.mxu0 %v11684_v55  ;;  %v11702_v55 = vpack.c.bf16 %v10181_v12, %v10180_v22  ;;  %v9658_v16 = vld [vmem:[%s17743_s6 + $0x98] sm:$0xff]  ;;  %v10192_v22 = vld [vmem:[%s17754_s17 + $0xe0] sm:$0xff]  ;;  %v10193_v12 = vld [vmem:[%s17754_s17 + $0xe8] sm:$0xff] }
 0x86b   : > { %11686 = vmatprep.subr.bf16.mxu0 %v13585_v6 }
 0x86d   : > { %9786 = vmatmul.mubr.f32.gmra.mrb[42].mxu0 %v9645_v47  ;;  %v9657_v47 = vld [vmem:[%s17743_s6 + $0x90] sm:$0xff] }
 0x86e   : > { %9791 = vmatprep.mubr.f32.mxu0 %v9648_v8  ;;  %11688 = vmatpush1.bf16.msra.mxu0 %v11687_v5  ;;  %v11705_v5 = vpack.c.bf16 %v10183_v17, %v10182_v19  ;;  %v9660_v8 = vld [vmem:[%s17743_s6 + $0xa8] sm:$0xff]  ;;  %v9669_v19 = vld [vmem:[%s17743_s6 + $0xf0] sm:$0xff] }
 0x86f   : > { %11689 = vmatprep.subr.bf16.mxu0 %v13585_v6  ;;  %v9672_v17 = vld [vmem:[%s17743_s6 + $0x108] sm:$0xff] }
 0x871   : > { %9792 = vmatmul.mubr.f32.gmra.mrb[44].mxu0 %v9647_v13  ;;  %v9659_v13 = vld [vmem:[%s17743_s6 + $0xa0] sm:$0xff] }
 0x872   : > { %9797 = vmatprep.mubr.f32.mxu0 %v9650_v61  ;;  %11691 = vmatpush1.bf16.msra.mxu0 %v11690_v7  ;;  %v11708_v7 = vpack.c.bf16 %v10185_v34, %v10184_v14  ;;  %v9662_v61 = vld [vmem:[%s17743_s6 + $0xb8] sm:$0xff]  ;;  %v9675_v14 = vld [vmem:[%s17743_s6 + $0x120] sm:$0xff] }
 0x873   : > { %11692 = vmatprep.subr.bf16.mxu0 %v13585_v6  ;;  %v9678_v34 = vld [vmem:[%s17743_s6 + $0x138] sm:$0xff] }
 0x875   : > { %9798 = vmatmul.mubr.f32.gmra.mrb[46].mxu0 %v9649_v27  ;;  %v9661_v27 = vld [vmem:[%s17743_s6 + $0xb0] sm:$0xff] }
 0x876   : > { %9803 = vmatprep.mubr.f32.mxu0 %v9652_v29  ;;  %11694 = vmatpush1.bf16.msra.mxu0 %v11693_v32  ;;  %v11711_v32 = vpack.c.bf16 %v10187_v4, %v10186_v38  ;;  %v9664_v29 = vld [vmem:[%s17743_s6 + $0xc8] sm:$0xff]  ;;  %v9682_v38 = vld [vmem:[%s17743_s6 + $0x158] sm:$0xff]  ;;  %v9681_v4 = vld [vmem:[%s17743_s6 + $0x150] sm:$0xff] }
 0x877   : > { %11695 = vmatprep.subr.bf16.mxu0 %v13585_v6 }
 0x879   : > { %9804 = vmatmul.mubr.f32.gmra.mrb[48].mxu0 %v9651_v50  ;;  %v9663_v50 = vld [vmem:[%s17743_s6 + $0xc0] sm:$0xff] }
 0x87a   : > { %9809 = vmatprep.mubr.f32.mxu0 %v9654_v33  ;;  %11697 = vmatpush1.bf16.msra.mxu0 %v11696_v63  ;;  %v11714_v63 = vpack.c.bf16 %v10189_v28, %v10188_v42  ;;  %v9666_v33 = vld [vmem:[%s17743_s6 + $0xd8] sm:$0xff]  ;;  %v10194_v42 = vld [vmem:[%s17754_s17 + $0xf0] sm:$0xff] }
 0x87b   : > { %11698 = vmatprep.subr.bf16.mxu0 %v13585_v6  ;;  %v10195_v28 = vld [vmem:[%s17754_s17 + $0xf8] sm:$0xff] }
 0x87d   : > { %9810 = vmatmul.mubr.f32.gmra.mrb[50].mxu0 %v9653_v56  ;;  %v9665_v56 = vld [vmem:[%s17743_s6 + $0xd0] sm:$0xff] }
 0x87e   : > { %9815 = vmatprep.mubr.f32.mxu0 %v9656_v49  ;;  %11700 = vmatpush1.bf16.msra.mxu0 %v11699_v24  ;;  %v11717_v24 = vpack.c.bf16 %v10191_v40, %v10190_v60  ;;  %v9668_v49 = vld [vmem:[%s17743_s6 + $0xe8] sm:$0xff]  ;;  %v9687_v60 = vld [vmem:[%s17743_s6 + $0x180] sm:$0xff]  ;;  %v9690_v40 = vld [vmem:[%s17743_s6 + $0x198] sm:$0xff] }
 0x87f   : > { %11701 = vmatprep.subr.bf16.mxu0 %v13585_v6 }
 0x881   : > { %9816 = vmatmul.mubr.f32.gmra.mrb[52].mxu0 %v9655_v21  ;;  %v9667_v21 = vld [vmem:[%s17743_s6 + $0xe0] sm:$0xff] }
 0x882   : > { %9821 = vmatprep.mubr.f32.mxu0 %v9658_v16  ;;  %11703 = vmatpush1.bf16.msra.mxu0 %v11702_v55  ;;  %v11720_v55 = vpack.c.bf16 %v10193_v12, %v10192_v22  ;;  %v9670_v16 = vld [vmem:[%s17743_s6 + $0xf8] sm:$0xff]  ;;  %v9693_v12 = vld [vmem:[%s17743_s6 + $0x1b0] sm:$0xff] }
 0x883   : > { %11704 = vmatprep.subr.bf16.mxu0 %v13585_v6  ;;  %v9694_v22 = vld [vmem:[%s17743_s6 + $0x1b8] sm:$0xff] }
 0x885   : > { %9822 = vmatmul.mubr.f32.gmra.mrb[54].mxu0 %v9657_v47  ;;  %v9671_v47 = vld [vmem:[%s17743_s6 + $0x100] sm:$0xff] }
 0x886   : > { %9827 = vmatprep.mubr.f32.mxu0 %v9660_v8  ;;  %11706 = vmatpush1.bf16.msra.mxu0 %v11705_v5  ;;  %v9674_v5 = vld [vmem:[%s17743_s6 + $0x118] sm:$0xff]  ;;  %v9673_v8 = vld [vmem:[%s17743_s6 + $0x110] sm:$0xff] }
 0x887   : > { %11707 = vmatprep.subr.bf16.mxu0 %v13585_v6 }
 0x889   : > { %9828 = vmatmul.mubr.f32.gmra.mrb[56].mxu0 %v9659_v13  ;;  %v9677_v13 = vld [vmem:[%s17743_s6 + $0x130] sm:$0xff] }
 0x88a   : > { %9833 = vmatprep.mubr.f32.mxu0 %v9662_v61  ;;  %11709 = vmatpush1.bf16.msra.mxu0 %v11708_v7  ;;  %v9680_v7 = vld [vmem:[%s17743_s6 + $0x148] sm:$0xff]  ;;  %v9679_v61 = vld [vmem:[%s17743_s6 + $0x140] sm:$0xff] }
 0x88b   : > { %11710 = vmatprep.subr.bf16.mxu0 %v13585_v6 }
 0x88d   : > { %9834 = vmatmul.mubr.f32.gmra.mrb[58].mxu0 %v9661_v27  ;;  %v9684_v27 = vld [vmem:[%s17743_s6 + $0x168] sm:$0xff] }
 0x88e   : > { %9839 = vmatprep.mubr.f32.mxu0 %v9664_v29  ;;  %11712 = vmatpush1.bf16.msra.mxu0 %v11711_v32  ;;  %v9683_v32 = vld [vmem:[%s17743_s6 + $0x160] sm:$0xff]  ;;  %v9686_v29 = vld [vmem:[%s17743_s6 + $0x178] sm:$0xff] }
 0x88f   : > { %11713 = vmatprep.subr.bf16.mxu0 %v13585_v6 }
 0x891   : > { %9840 = vmatmul.mubr.f32.gmra.mrb[60].mxu0 %v9663_v50  ;;  %v11723_v50 = vpack.c.bf16 %v10195_v28, %v10194_v42 }
 0x892   : > { %9845 = vmatprep.mubr.f32.mxu0 %v9666_v33  ;;  %11715 = vmatpush1.bf16.msra.mxu0 %v11714_v63  ;;  %v9685_v63 = vld [vmem:[%s17743_s6 + $0x170] sm:$0xff]  ;;  %v9688_v33 = vld [vmem:[%s17743_s6 + $0x188] sm:$0xff] }
 0x893   : > { %11716 = vmatprep.subr.bf16.mxu0 %v13585_v6 }
 0x895   : > { %9846 = vmatmul.mubr.f32.gmra.mrb[62].mxu0 %v9665_v56  ;;  %v9689_v56 = vld [vmem:[%s17743_s6 + $0x190] sm:$0xff] }
 0x896   : > { %9851 = vmatprep.mubr.f32.mxu0 %v9668_v49  ;;  %11718 = vmatpush1.bf16.msra.mxu0 %v11717_v24  ;;  %v9692_v24 = vld [vmem:[%s17743_s6 + $0x1a8] sm:$0xff]  ;;  %v9691_v49 = vld [vmem:[%s17743_s6 + $0x1a0] sm:$0xff] }
 0x897   : > { %11719 = vmatprep.subr.bf16.mxu0 %v13585_v6 }
 0x899   : > { %9852 = vmatmul.mubr.f32.gmra.mrb[64].mxu0 %v9667_v21  ;;  %v9696_v21 = vld [vmem:[%s17743_s6 + $0x1c8] sm:$0xff] }
 0x89a   : > { %9857 = vmatprep.mubr.f32.mxu0 %v9670_v16  ;;  %11721 = vmatpush1.bf16.msra.mxu0 %v11720_v55  ;;  %v9695_v55 = vld [vmem:[%s17743_s6 + $0x1c0] sm:$0xff]  ;;  %v9698_v16 = vld [vmem:[%s17743_s6 + $0x1d8] sm:$0xff] }
 0x89b   : > { %11722 = vmatprep.subr.bf16.mxu0 %v13585_v6  ;;  %v9676_v6 = vld [vmem:[%s17743_s6 + $0x128] sm:$0xff] }
 0x89d   : > { %9858 = vmatmul.mubr.f32.gmra.mrb[66].mxu0 %v9669_v19  ;;  %v9697_v19 = vld [vmem:[%s17743_s6 + $0x1d0] sm:$0xff] }
 0x89e   : > { %9863 = vmatprep.mubr.f32.mxu0 %v9672_v17  ;;  %11724 = vmatpush1.bf16.msra.mxu0 %v11723_v50  ;;  %v9700_v17 = vld [vmem:[%s17743_s6 + $0x1e8] sm:$0xff] }
 0x8a1   : > { %9864 = vmatmul.mubr.f32.gmra.mrb[68].mxu0 %v9671_v47  ;;  %v9699_v47 = vld [vmem:[%s17743_s6 + $0x1e0] sm:$0xff] }
 0x8a2   : > { %9869 = vmatprep.mubr.f32.mxu0 %v9674_v5  ;;  %v9702_v5 = vld [vmem:[%s17743_s6 + $0x1f8] sm:$0xff] }
 0x8a5   : > { %9870 = vmatmul.mubr.f32.gmra.mrb[70].mxu0 %v9673_v8  ;;  %v9701_v8 = vld [vmem:[%s17743_s6 + $0x1f0] sm:$0xff] }
 0x8a6   : > { %9875 = vmatprep.mubr.f32.mxu0 %v9676_v6  ;;  %v10026_v6 = vlaneseq }
 0x8a9   : > { %9876 = vmatmul.mubr.f32.gmra.mrb[72].mxu0 %v9675_v14  ;;  %v10027_v14 = vshrl.u32 %v10026_v6, 7 }
 0x8aa   : > { %9881 = vmatprep.mubr.f32.mxu0 %v9678_v34 }
 0x8ab   : > { %v10028_v34 = vsub.s32 0, %v10027_v14 }
 0x8ad   : > { %9882 = vmatmul.mubr.f32.gmra.mrb[74].mxu0 %v9677_v13  ;;  %v10024_v13 = vld [vmem:[%s17753_s16] sm:$0x3] }
 0x8ae   : > { %9887 = vmatprep.mubr.f32.mxu0 %v9680_v7  ;;  %v10032_v7 = vsub.s32 1, %v10027_v14 }
 0x8b1   : > { %9888 = vmatmul.mubr.f32.gmra.mrb[76].mxu0 %v9679_v61  ;;  %v17526_v61 = vrot.slane %v10024_v13, %v10028_v34 }
 0x8b2   : > { %9893 = vmatprep.mubr.f32.mxu0 %v9682_v38 }
 0x8b5   : > { %9894 = vmatmul.mubr.f32.gmra.mrb[78].mxu0 %v9681_v4  ;;  %v17528_v4 = vrot.slane %v10024_v13, %v10032_v7 }
 0x8b6   : > { %9899 = vmatprep.mubr.f32.mxu0 %v9684_v27 }
 0x8b9   : > { %9900 = vmatmul.mubr.f32.gmra.mrb[80].mxu0 %v9683_v32 }
 0x8ba   : > { %9905 = vmatprep.mubr.f32.mxu0 %v9686_v29 }
 0x8bd   : > { %9906 = vmatmul.mubr.f32.gmra.mrb[82].mxu0 %v9685_v63  ;;  %v18222_v63 = vld [vmem:[#allocation77_spill] sm:$0xff] }
 0x8be   : > { %9911 = vmatprep.mubr.f32.mxu0 %v9688_v33 }
 0x8c1   : > { %9912 = vmatmul.mubr.f32.gmra.mrb[84].mxu0 %v9687_v60 }
 0x8c2   : > { %9917 = vmatprep.mubr.f32.mxu0 %v9690_v40 }
 0x8c5   : > { %9918 = vmatmul.mubr.f32.gmra.mrb[86].mxu0 %v9689_v56  ;;  %v18223_v56 = vld [vmem:[#allocation78_spill] sm:$0xff] }
 0x8c6   : > { %9923 = vmatprep.mubr.f32.mxu0 %v9692_v24 }
 0x8c9   : > { %9924 = vmatmul.mubr.f32.gmra.mrb[88].mxu0 %v9691_v49 }
 0x8ca   : > { %9929 = vmatprep.mubr.f32.mxu0 %v9694_v22 }
 0x8cd   : > { %9930 = vmatmul.mubr.f32.gmra.mrb[90].mxu0 %v9693_v12 }
 0x8ce   : > { %9935 = vmatprep.mubr.f32.mxu0 %v9696_v21 }
 0x8d1   : > { %9936 = vmatmul.mubr.f32.gmra.mrb[92].mxu0 %v9695_v55 }
 0x8d2   : > { %9941 = vmatprep.mubr.f32.mxu0 %v9698_v16 }
 0x8d5   : > { %9942 = vmatmul.mubr.f32.gmra.mrb[94].mxu0 %v9697_v19 }
 0x8d6   : > { %9947 = vmatprep.mubr.f32.mxu0 %v9700_v17 }
 0x8d9   : > { %9948 = vmatmul.mubr.f32.gmra.mrb[96].mxu0 %v9699_v47 }
 0x8da   : > { %9953 = vmatprep.mubr.f32.mxu0 %v9702_v5 }
 0x8dd   : > { %9954 = vmatmul.mubr.f32.gmra.mrb[98].mxu0 %v9701_v8 }
 0x934   : > { %v9769_v38 = vpop.f32.mrb[36].mxu0 }
 0x935   : > { %v9960_v27 = vadd.f32 %v9769_v38, %v16828_v23  ;;  %v9771_v32 = vpop.f32.mrb[37].mxu0 }
 0x936   : > { %v9961_v29 = vadd.f32 %v9771_v32, %v16831_v0 }
 0x937   : > { %v10036_v42 = vadd.f32 %v17526_v61, %v9960_v27 }
 0x938   : > { %v10037_v28 = vadd.f32 %v17528_v4, %v9961_v29  ;;  %v9775_v50 = vpop.f32.mrb[38].mxu0 }
 0x939   : > { %v9962_v33 = vadd.f32 %v9775_v50, %v18222_v63  ;;  %v9777_v60 = vpop.f32.mrb[39].mxu0  ;;  %v10100_v49 = vmax.f32 %v10036_v42, 0.0 }
 0x93a   : > { %v10101_v40 = vmax.f32 %v10037_v28, 0.0  ;;  %v9963_v24 = vadd.f32 %v9777_v60, %v18223_v56 }
 0x93b   : > { %v10038_v22 = vadd.f32 %v17526_v61, %v9962_v33 }
 0x93c   : > { %v10039_v12 = vadd.f32 %v17528_v4, %v9963_v24  ;;  %v9781_v23 = vpop.f32.mrb[40].mxu0  ;;  %10267 = vmatprep.mubr.f32.mxu0 %v10101_v40 }
 0x93d   : > { %v9964_v0 = vadd.f32 %v9781_v23, %v16854_v39  ;;  %v9783_v21 = vpop.f32.mrb[41].mxu0  ;;  %10268 = vmatmul.mubr.f32.vlgmr.msra.gmra.mrb[100].mxu0 %v10100_v49  ;;  %v10102_v19 = vmax.f32 %v10038_v22, 0.0 }
 0x93e   : > { %v10103_v55 = vmax.f32 %v10039_v12, 0.0  ;;  %v9965_v16 = vadd.f32 %v9783_v21, %v16857_v43 }
 0x93f   : > { %v10040_v17 = vadd.f32 %v17526_v61, %v9964_v0 }
 0x940   : > { %v10041_v47 = vadd.f32 %v17528_v4, %v9965_v16  ;;  %v9787_v5 = vpop.f32.mrb[42].mxu0  ;;  %10272 = vmatprep.mubr.f32.mxu0 %v10103_v55 }
 0x941   : > { %v9966_v8 = vadd.f32 %v9787_v5, %v16866_v3  ;;  %v9789_v6 = vpop.f32.mrb[43].mxu0  ;;  %10273 = vmatmul.mubr.f32.gmra.mrb[102].mxu0 %v10102_v19  ;;  %v10104_v39 = vmax.f32 %v10040_v17, 0.0 }
 0x942   : > { %v10105_v14 = vmax.f32 %v10041_v47, 0.0  ;;  %v9967_v34 = vadd.f32 %v9789_v6, %v16869_v37 }
 0x943   : > { %v10042_v13 = vadd.f32 %v17526_v61, %v9966_v8 }
 0x944   : > { %v10043_v7 = vadd.f32 %v17528_v4, %v9967_v34  ;;  %v9793_v43 = vpop.f32.mrb[44].mxu0  ;;  %10277 = vmatprep.mubr.f32.mxu0 %v10105_v14 }
 0x945   : > { %v9968_v38 = vadd.f32 %v9793_v43, %v16880_v48  ;;  %v9795_v27 = vpop.f32.mrb[45].mxu0  ;;  %10278 = vmatmul.mubr.f32.gmra.mrb[104].mxu0 %v10104_v39  ;;  %v10106_v3 = vmax.f32 %v10042_v13, 0.0 }
 0x946   : > { %v10107_v32 = vmax.f32 %v10043_v7, 0.0  ;;  %v9969_v29 = vadd.f32 %v9795_v27, %v16883_v20 }
 0x947   : > { %v10044_v42 = vadd.f32 %v17526_v61, %v9968_v38 }
 0x948   : > { %v10045_v28 = vadd.f32 %v17528_v4, %v9969_v29  ;;  %v9799_v37 = vpop.f32.mrb[46].mxu0  ;;  %10282 = vmatprep.mubr.f32.mxu0 %v10107_v32 }
 0x949   : > { %v9970_v50 = vadd.f32 %v9799_v37, %v16886_v10  ;;  %v9801_v63 = vpop.f32.mrb[47].mxu0  ;;  %10283 = vmatmul.mubr.f32.gmra.mrb[106].mxu0 %v10106_v3  ;;  %v10108_v48 = vmax.f32 %v10044_v42, 0.0 }
 0x94a   : > { %v10109_v33 = vmax.f32 %v10045_v28, 0.0  ;;  %v9971_v60 = vadd.f32 %v9801_v63, %v16889_v41 }
 0x94b   : > { %v10046_v40 = vadd.f32 %v17526_v61, %v9970_v50 }
 0x94c   : > { %v10047_v56 = vadd.f32 %v17528_v4, %v9971_v60  ;;  %v9805_v20 = vpop.f32.mrb[48].mxu0  ;;  %10287 = vmatprep.mubr.f32.mxu0 %v10109_v33 }
 0x94d   : > { %v9972_v24 = vadd.f32 %v9805_v20, %v16894_v52  ;;  %v9807_v49 = vpop.f32.mrb[49].mxu0  ;;  %10288 = vmatmul.mubr.f32.gmra.mrb[108].mxu0 %v10108_v48  ;;  %v10110_v10 = vmax.f32 %v10046_v40, 0.0  ;;  %v18224_v20 = vld [vmem:[#allocation79_spill] sm:$0xff] }
 0x94e   : > { %v10111_v22 = vmax.f32 %v10047_v56, 0.0  ;;  %v9973_v12 = vadd.f32 %v9807_v49, %v16897_v51 }
 0x94f   : > { %v10048_v23 = vadd.f32 %v17526_v61, %v9972_v24 }
 0x950   : > { %v10049_v0 = vadd.f32 %v17528_v4, %v9973_v12  ;;  %v9811_v41 = vpop.f32.mrb[50].mxu0  ;;  %10292 = vmatprep.mubr.f32.mxu0 %v10111_v22  ;;  %v18225_v12 = vld [vmem:[#allocation80_spill] sm:$0xff] }
 0x951   : > { %v9974_v21 = vadd.f32 %v9811_v41, %v16900_v54  ;;  %v9813_v55 = vpop.f32.mrb[51].mxu0  ;;  %10293 = vmatmul.mubr.f32.gmra.mrb[110].mxu0 %v10110_v10  ;;  %v10112_v52 = vmax.f32 %v10048_v23, 0.0  ;;  %v18226_v41 = vld [vmem:[#allocation81_spill] sm:$0xff] }
 0x952   : > { %v10113_v16 = vmax.f32 %v10049_v0, 0.0  ;;  %v9975_v19 = vadd.f32 %v9813_v55, %v16903_v45 }
 0x953   : > { %v10050_v17 = vadd.f32 %v17526_v61, %v9974_v21 }
 0x954   : > { %v10051_v47 = vadd.f32 %v17528_v4, %v9975_v19  ;;  %v9817_v51 = vpop.f32.mrb[52].mxu0  ;;  %10297 = vmatprep.mubr.f32.mxu0 %v10113_v16  ;;  %v18227_v19 = vld [vmem:[#allocation82_spill] sm:$0xff] }
 0x955   : > { %v9976_v5 = vadd.f32 %v9817_v51, %v16908_v58  ;;  %v9819_v8 = vpop.f32.mrb[53].mxu0  ;;  %10298 = vmatmul.mubr.f32.gmra.mrb[112].mxu0 %v10112_v52  ;;  %v10114_v54 = vmax.f32 %v10050_v17, 0.0 }
 0x956   : > { %v10115_v6 = vmax.f32 %v10051_v47, 0.0  ;;  %v9977_v14 = vadd.f32 %v9819_v8, %v16911_v31  ;;  %v18228_v8 = vld [vmem:[#allocation83_spill] sm:$0xff] }
 0x957   : > { %v10052_v34 = vadd.f32 %v17526_v61, %v9976_v5 }
 0x958   : > { %v10053_v39 = vadd.f32 %v17528_v4, %v9977_v14  ;;  %v9823_v45 = vpop.f32.mrb[54].mxu0  ;;  %10302 = vmatprep.mubr.f32.mxu0 %v10115_v6 }
 0x959   : > { %v9978_v13 = vadd.f32 %v9823_v45, %v16914_v18  ;;  %v9825_v7 = vpop.f32.mrb[55].mxu0  ;;  %10303 = vmatmul.mubr.f32.gmra.mrb[114].mxu0 %v10114_v54  ;;  %v10116_v58 = vmax.f32 %v10052_v34, 0.0  ;;  %v18229_v34 = vld [vmem:[#allocation84_spill] sm:$0xff] }
 0x95a   : > { %v10117_v43 = vmax.f32 %v10053_v39, 0.0  ;;  %v9979_v38 = vadd.f32 %v9825_v7, %v16917_v36 }
 0x95b   : > { %v10054_v27 = vadd.f32 %v17526_v61, %v9978_v13 }
 0x95c   : > { %v10055_v32 = vadd.f32 %v17528_v4, %v9979_v38  ;;  %v9829_v31 = vpop.f32.mrb[56].mxu0  ;;  %10307 = vmatprep.mubr.f32.mxu0 %v10117_v43  ;;  %v18230_v38 = vld [vmem:[#allocation85_spill] sm:$0xff] }
 0x95d   : > { %v9980_v29 = vadd.f32 %v9829_v31, %v16922_v53  ;;  %v9831_v3 = vpop.f32.mrb[57].mxu0  ;;  %10308 = vmatmul.mubr.f32.gmra.mrb[116].mxu0 %v10116_v58  ;;  %v10118_v18 = vmax.f32 %v10054_v27, 0.0  ;;  %v18231_v31 = vld [vmem:[#allocation86_spill] sm:$0xff] }
 0x95e   : > { %v10119_v42 = vmax.f32 %v10055_v32, 0.0  ;;  %v9981_v28 = vadd.f32 %v9831_v3, %v16925_v59 }
 0x95f   : > { %v10056_v37 = vadd.f32 %v17526_v61, %v9980_v29 }
 0x960   : > { %v10057_v50 = vadd.f32 %v17528_v4, %v9981_v28  ;;  %v9835_v36 = vpop.f32.mrb[58].mxu0  ;;  %10312 = vmatprep.mubr.f32.mxu0 %v10119_v42 }
 0x961   : > { %v9982_v63 = vadd.f32 %v9835_v36, %v16928_v30  ;;  %v9837_v33 = vpop.f32.mrb[59].mxu0  ;;  %10313 = vmatmul.mubr.f32.gmra.mrb[118].mxu0 %v10118_v18  ;;  %v10120_v53 = vmax.f32 %v10056_v37, 0.0  ;;  %v18232_v37 = vld [vmem:[#allocation87_spill] sm:$0xff] }
 0x962   : > { %v10121_v60 = vmax.f32 %v10057_v50, 0.0  ;;  %v9983_v48 = vadd.f32 %v9837_v33, %v16931_v35  ;;  %v18233_v33 = vld [vmem:[#allocation88_spill] sm:$0xff] }
 0x963   : > { %v10058_v40 = vadd.f32 %v17526_v61, %v9982_v63 }
 0x964   : > { %v10059_v56 = vadd.f32 %v17528_v4, %v9983_v48  ;;  %v9841_v59 = vpop.f32.mrb[60].mxu0  ;;  %10317 = vmatprep.mubr.f32.mxu0 %v10121_v60 }
 0x965   : > { %v9984_v24 = vadd.f32 %v9841_v59, %v18224_v20  ;;  %v9843_v49 = vpop.f32.mrb[61].mxu0  ;;  %10318 = vmatmul.mubr.f32.gmra.mrb[120].mxu0 %v10120_v53  ;;  %v10122_v30 = vmax.f32 %v10058_v40, 0.0  ;;  %v18234_v59 = vld [vmem:[#allocation32_spill] sm:$0xff] }
 0x966   : > { %v10123_v22 = vmax.f32 %v10059_v56, 0.0  ;;  %v9985_v10 = vadd.f32 %v9843_v49, %v18225_v12 }
 0x967   : > { %v10060_v23 = vadd.f32 %v17526_v61, %v9984_v24 }
 0x968   : > { %v10061_v0 = vadd.f32 %v17528_v4, %v9985_v10  ;;  %v9847_v35 = vpop.f32.mrb[62].mxu0  ;;  %10322 = vmatprep.mubr.f32.mxu0 %v10123_v22  ;;  %v18235_v22 = vld [vmem:[#allocation89_spill] sm:$0xff] }
 0x969   : > { %v9986_v21 = vadd.f32 %v9847_v35, %v18226_v41  ;;  %v9849_v55 = vpop.f32.mrb[63].mxu0  ;;  %10323 = vmatmul.mubr.f32.gmra.mrb[122].mxu0 %v10122_v30  ;;  %v10124_v17 = vmax.f32 %v10060_v23, 0.0  ;;  %v18236_v35 = vld [vmem:[#allocation90_spill] sm:$0xff] }
 0x96a   : > { %v10125_v16 = vmax.f32 %v10061_v0, 0.0  ;;  %v9987_v52 = vadd.f32 %v9849_v55, %v18227_v19 }
 0x96b   : > { %v10062_v47 = vadd.f32 %v17526_v61, %v9986_v21 }
 0x96c   : > { %v10063_v51 = vadd.f32 %v17528_v4, %v9987_v52  ;;  %v9853_v5 = vpop.f32.mrb[64].mxu0  ;;  %10327 = vmatprep.mubr.f32.mxu0 %v10125_v16 }
 0x96d   : > { %v9988_v6 = vadd.f32 %v9853_v5, %v18228_v8  ;;  %v9855_v14 = vpop.f32.mrb[65].mxu0  ;;  %10328 = vmatmul.mubr.f32.gmra.mrb[124].mxu0 %v10124_v17  ;;  %v10126_v45 = vmax.f32 %v10062_v47, 0.0 }
 0x96e   : > { %v10127_v54 = vmax.f32 %v10063_v51, 0.0  ;;  %v9989_v39 = vadd.f32 %v9855_v14, %v18229_v34 }
 0x96f   : > { %v10064_v13 = vadd.f32 %v17526_v61, %v9988_v6 }
 0x970   : > { %v10065_v7 = vadd.f32 %v17528_v4, %v9989_v39  ;;  %v9859_v43 = vpop.f32.mrb[66].mxu0  ;;  %10332 = vmatprep.mubr.f32.mxu0 %v10127_v54 }
 0x971   : > { %v9990_v58 = vadd.f32 %v9859_v43, %v18230_v38  ;;  %v9861_v27 = vpop.f32.mrb[67].mxu0  ;;  %10333 = vmatmul.mubr.f32.gmra.mrb[126].mxu0 %v10126_v45  ;;  %v10128_v3 = vmax.f32 %v10064_v13, 0.0 }
 0x972   : > { %v10129_v32 = vmax.f32 %v10065_v7, 0.0  ;;  %v9991_v29 = vadd.f32 %v9861_v27, %v18231_v31  ;;  %v18237_v7 = vld [vmem:[#allocation91_spill] sm:$0xff]  ;;  %v18238_v27 = vld [vmem:[#allocation92_spill] sm:$0xff] }
 0x973   : > { %v10066_v42 = vadd.f32 %v17526_v61, %v9990_v58 }
 0x974   : > { %v10067_v28 = vadd.f32 %v17528_v4, %v9991_v29  ;;  %v9865_v18 = vpop.f32.mrb[68].mxu0  ;;  %10337 = vmatprep.mubr.f32.mxu0 %v10129_v32 }
 0x975   : > { %v9992_v50 = vadd.f32 %v9865_v18, %v18232_v37  ;;  %v9867_v36 = vpop.f32.mrb[69].mxu0  ;;  %10338 = vmatmul.mubr.f32.gmra.mrb[128].mxu0 %v10128_v3  ;;  %v10130_v48 = vmax.f32 %v10066_v42, 0.0  ;;  %v18239_v3 = vld [vmem:[#allocation93_spill] sm:$0xff] }
 0x976   : > { %v10131_v63 = vmax.f32 %v10067_v28, 0.0  ;;  %v9993_v60 = vadd.f32 %v9867_v36, %v18233_v33 }
 0x977   : > { %v10068_v53 = vadd.f32 %v17526_v61, %v9992_v50  ;;  %v18240_v50 = vld [vmem:[#allocation94_spill] sm:$0xff] }
 0x978   : > { %v10069_v40 = vadd.f32 %v17528_v4, %v9993_v60  ;;  %v9871_v56 = vpop.f32.mrb[70].mxu0  ;;  %10342 = vmatprep.mubr.f32.mxu0 %v10131_v63 }
 0x979   : > { %v9994_v20 = vadd.f32 %v9871_v56, %v18234_v59  ;;  %v9873_v24 = vpop.f32.mrb[71].mxu0  ;;  %10343 = vmatmul.mubr.f32.gmra.mrb[130].mxu0 %v10130_v48  ;;  %v10132_v10 = vmax.f32 %v10068_v53, 0.0 }
 0x97a   : > { %v10133_v49 = vmax.f32 %v10069_v40, 0.0  ;;  %v9995_v12 = vadd.f32 %v9873_v24, %v18235_v22 }
 0x97b   : > { %v10070_v30 = vadd.f32 %v17526_v61, %v9994_v20 }
 0x97c   : > { %v10071_v23 = vadd.f32 %v17528_v4, %v9995_v12  ;;  %v9877_v0 = vpop.f32.mrb[72].mxu0  ;;  %10347 = vmatprep.mubr.f32.mxu0 %v10133_v49  ;;  %v18241_v49 = vld [vmem:[#allocation95_spill] sm:$0xff] }
 0x97d   : > { %v9996_v41 = vadd.f32 %v9877_v0, %v18236_v35  ;;  %v9879_v21 = vpop.f32.mrb[73].mxu0  ;;  %10348 = vmatmul.mubr.f32.gmra.mrb[132].mxu0 %v10132_v10  ;;  %v10134_v19 = vmax.f32 %v10070_v30, 0.0 }
 0x97e   : > { %v10135_v55 = vmax.f32 %v10071_v23, 0.0  ;;  %v9997_v16 = vadd.f32 %v9879_v21, %v16981_v1  ;;  %v18242_v23 = vld [vmem:[#allocation96_spill] sm:$0xff] }
 0x97f   : > { %v10072_v52 = vadd.f32 %v17526_v61, %v9996_v41 }
 0x980   : > { %v10073_v17 = vadd.f32 %v17528_v4, %v9997_v16  ;;  %v9883_v47 = vpop.f32.mrb[74].mxu0  ;;  %10352 = vmatprep.mubr.f32.mxu0 %v10135_v55 }
 0x981   : > { %v9998_v51 = vadd.f32 %v9883_v47, %v16984_v44  ;;  %v9885_v5 = vpop.f32.mrb[75].mxu0  ;;  %10353 = vmatmul.mubr.f32.gmra.mrb[134].mxu0 %v10134_v19  ;;  %v10136_v14 = vmax.f32 %v10072_v52, 0.0 }
 0x982   : > { %v10137_v8 = vmax.f32 %v10073_v17, 0.0  ;;  %v9999_v6 = vadd.f32 %v9885_v5, %v16987_v2 }
 0x983   : > { %v10074_v54 = vadd.f32 %v17526_v61, %v9998_v51  ;;  %v18243_v51 = vld [vmem:[#allocation97_spill] sm:$0xff] }
 0x984   : > { %v10075_v34 = vadd.f32 %v17528_v4, %v9999_v6  ;;  %v9889_v1 = vpop.f32.mrb[76].mxu0  ;;  %10357 = vmatprep.mubr.f32.mxu0 %v10137_v8 }
 0x985   : > { %v10000_v39 = vadd.f32 %v9889_v1, %v16992_v57  ;;  %v9891_v45 = vpop.f32.mrb[77].mxu0  ;;  %10358 = vmatmul.mubr.f32.gmra.mrb[136].mxu0 %v10136_v14  ;;  %v10138_v44 = vmax.f32 %v10074_v54, 0.0  ;;  %v18244_v54 = vld [vmem:[#allocation98_spill] sm:$0xff] }
 0x986   : > { %v10139_v13 = vmax.f32 %v10075_v34, 0.0  ;;  %v10001_v43 = vadd.f32 %v9891_v45, %v18237_v7 }
 0x987   : > { %v10076_v38 = vadd.f32 %v17526_v61, %v10000_v39 }
 0x988   : > { %v10077_v58 = vadd.f32 %v17528_v4, %v10001_v43  ;;  %v9895_v2 = vpop.f32.mrb[78].mxu0  ;;  %10362 = vmatprep.mubr.f32.mxu0 %v10139_v13 }
 0x989   : > { %v10002_v32 = vadd.f32 %v9895_v2, %v18238_v27  ;;  %v9897_v31 = vpop.f32.mrb[79].mxu0  ;;  %10363 = vmatmul.mubr.f32.gmra.mrb[138].mxu0 %v10138_v44  ;;  %v10140_v57 = vmax.f32 %v10076_v38, 0.0  ;;  %v18245_v2 = vld [vmem:[#allocation99_spill] sm:$0xff] }
 0x98a   : > { %v10141_v29 = vmax.f32 %v10077_v58, 0.0  ;;  %v10003_v42 = vadd.f32 %v9897_v31, %v18239_v3  ;;  %v18246_v3 = vld [vmem:[#allocation100_spill] sm:$0xff] }
 0x98b   : > { %v10078_v28 = vadd.f32 %v17526_v61, %v10002_v32 }
 0x98c   : > { %v10079_v18 = vadd.f32 %v17528_v4, %v10003_v42  ;;  %v9901_v37 = vpop.f32.mrb[80].mxu0  ;;  %10367 = vmatprep.mubr.f32.mxu0 %v10141_v29 }
 0x98d   : > { %v10004_v36 = vadd.f32 %v9901_v37, %v18240_v50  ;;  %v9903_v63 = vpop.f32.mrb[81].mxu0  ;;  %10368 = vmatmul.mubr.f32.gmra.mrb[140].mxu0 %v10140_v57  ;;  %v10142_v48 = vmax.f32 %v10078_v28, 0.0 }
 0x98e   : > { %v10143_v33 = vmax.f32 %v10079_v18, 0.0  ;;  %v10005_v60 = vadd.f32 %v9903_v63, %v17021_v26  ;;  %v18247_v18 = vld [vmem:[#allocation101_spill] sm:$0xff] }
 0x98f   : > { %v10080_v53 = vadd.f32 %v17526_v61, %v10004_v36 }
 0x990   : > { %v10081_v40 = vadd.f32 %v17528_v4, %v10005_v60  ;;  %v9907_v56 = vpop.f32.mrb[82].mxu0  ;;  %10372 = vmatprep.mubr.f32.mxu0 %v10143_v33  ;;  %v18248_v33 = vld [vmem:[#allocation102_spill] sm:$0xff] }
 0x991   : > { %v10006_v59 = vadd.f32 %v9907_v56, %v17030_v9  ;;  %v9909_v20 = vpop.f32.mrb[83].mxu0  ;;  %10373 = vmatmul.mubr.f32.gmra.mrb[142].mxu0 %v10142_v48  ;;  %v10144_v12 = vmax.f32 %v10080_v53, 0.0 }
 0x992   : > { %v10145_v24 = vmax.f32 %v10081_v40, 0.0  ;;  %v10007_v22 = vadd.f32 %v9909_v20, %v18241_v49  ;;  %v18249_v40 = vld [vmem:[#allocation103_spill] sm:$0xff] }
 0x993   : > { %v10082_v10 = vadd.f32 %v17526_v61, %v10006_v59 }
 0x994   : > { %v10083_v30 = vadd.f32 %v17528_v4, %v10007_v22  ;;  %v9913_v26 = vpop.f32.mrb[84].mxu0  ;;  %10377 = vmatprep.mubr.f32.mxu0 %v10145_v24  ;;  %v18250_v22 = vld [vmem:[#allocation104_spill] sm:$0xff] }
 0x995   : > { %v10008_v0 = vadd.f32 %v9913_v26, %v18242_v23  ;;  %v9915_v35 = vpop.f32.mrb[85].mxu0  ;;  %10378 = vmatmul.mubr.f32.gmra.mrb[144].mxu0 %v10144_v12  ;;  %v10146_v9 = vmax.f32 %v10082_v10, 0.0 }
 0x996   : > { %v10147_v41 = vmax.f32 %v10083_v30, 0.0  ;;  %v10009_v21 = vadd.f32 %v9915_v35, %v17047_v62 }
 0x997   : > { %v10084_v55 = vadd.f32 %v17526_v61, %v10008_v0 }
 0x998   : > { %v10085_v16 = vadd.f32 %v17528_v4, %v10009_v21  ;;  %v9919_v19 = vpop.f32.mrb[86].mxu0  ;;  %10382 = vmatprep.mubr.f32.mxu0 %v10147_v41  ;;  %v18251_v21 = vld [vmem:[#allocation105_spill] sm:$0xff] }
 0x999   : > { %v10010_v52 = vadd.f32 %v9919_v19, %v17056_v11  ;;  %v9921_v17 = vpop.f32.mrb[87].mxu0  ;;  %10383 = vmatmul.mubr.f32.gmra.mrb[146].mxu0 %v10146_v9  ;;  %v10148_v8 = vmax.f32 %v10084_v55, 0.0  ;;  %v18252_v19 = vld [vmem:[#allocation106_spill] sm:$0xff] }
 0x99a   : > { %v10149_v47 = vmax.f32 %v10085_v16, 0.0  ;;  %v10011_v5 = vadd.f32 %v9921_v17, %v18243_v51 }
 0x99b   : > { %v10086_v6 = vadd.f32 %v17526_v61, %v10010_v52 }
 0x99c   : > { %v10087_v14 = vadd.f32 %v17528_v4, %v10011_v5  ;;  %v9925_v62 = vpop.f32.mrb[88].mxu0  ;;  %10387 = vmatprep.mubr.f32.mxu0 %v10149_v47 }
 0x99d   : > { %v10012_v34 = vadd.f32 %v9925_v62, %v18244_v54  ;;  %v9927_v1 = vpop.f32.mrb[89].mxu0  ;;  %10388 = vmatmul.mubr.f32.gmra.mrb[148].mxu0 %v10148_v8  ;;  %v10150_v11 = vmax.f32 %v10086_v6, 0.0  ;;  %v17661_v8 = vld [vmem:[%s17755_s18] ss:$0 sm:$0xff] }
 0x99e   : > { %v10151_v39 = vmax.f32 %v10087_v14, 0.0  ;;  %v10013_v45 = vadd.f32 %v9927_v1, %v17073_v25 }
 0x99f   : > { %v10088_v13 = vadd.f32 %v17526_v61, %v10012_v34 }
 0x9a0   : > { %v10089_v7 = vadd.f32 %v17528_v4, %v10013_v45  ;;  %v9931_v43 = vpop.f32.mrb[90].mxu0  ;;  %10392 = vmatprep.mubr.f32.mxu0 %v10151_v39 }
 0x9a1   : > { %v10014_v44 = vadd.f32 %v9931_v43, %v17082_v15  ;;  %v9933_v38 = vpop.f32.mrb[91].mxu0  ;;  %10393 = vmatmul.mubr.f32.gmra.mrb[150].mxu0 %v10150_v11  ;;  %v10152_v32 = vmax.f32 %v10088_v13, 0.0 }
 0x9a2   : > { %v10153_v58 = vmax.f32 %v10089_v7, 0.0  ;;  %v10015_v27 = vadd.f32 %v9933_v38, %v18245_v2 }
 0x9a3   : > { %v10090_v31 = vadd.f32 %v17526_v61, %v10014_v44 }
 0x9a4   : > { %v10091_v29 = vadd.f32 %v17528_v4, %v10015_v27  ;;  %v9937_v25 = vpop.f32.mrb[92].mxu0  ;;  %10397 = vmatprep.mubr.f32.mxu0 %v10153_v58 }
 0x9a5   : > { %v10016_v42 = vadd.f32 %v9937_v25, %v18246_v3  ;;  %v9939_v57 = vpop.f32.mrb[93].mxu0  ;;  %10398 = vmatmul.mubr.f32.gmra.mrb[152].mxu0 %v10152_v32  ;;  %v10154_v15 = vmax.f32 %v10090_v31, 0.0 }
 0x9a6   : > { %v10155_v28 = vmax.f32 %v10091_v29, 0.0  ;;  %v10017_v37 = vadd.f32 %v9939_v57, %v18247_v18 }
 0x9a7   : > { %v10092_v50 = vadd.f32 %v17526_v61, %v10016_v42 }
 0x9a8   : > { %v10093_v36 = vadd.f32 %v17528_v4, %v10017_v37  ;;  %v9943_v63 = vpop.f32.mrb[94].mxu0  ;;  %10402 = vmatprep.mubr.f32.mxu0 %v10155_v28 }
 0x9a9   : > { %v10018_v60 = vadd.f32 %v9943_v63, %v18248_v33  ;;  %v9945_v48 = vpop.f32.mrb[95].mxu0  ;;  %10403 = vmatmul.mubr.f32.gmra.mrb[154].mxu0 %v10154_v15  ;;  %v10156_v59 = vmax.f32 %v10092_v50, 0.0 }
 0x9aa   : > { %v10157_v53 = vmax.f32 %v10093_v36, 0.0  ;;  %v10019_v56 = vadd.f32 %v9945_v48, %v18249_v40 }
 0x9ab   : > { %v10094_v20 = vadd.f32 %v17526_v61, %v10018_v60 }
 0x9ac   : > { %v10095_v24 = vadd.f32 %v17528_v4, %v10019_v56  ;;  %v9949_v49 = vpop.f32.mrb[96].mxu0  ;;  %10407 = vmatprep.mubr.f32.mxu0 %v10157_v53 }
 0x9ad   : > { %v10020_v12 = vadd.f32 %v9949_v49, %v18250_v22  ;;  %v9951_v10 = vpop.f32.mrb[97].mxu0  ;;  %10408 = vmatmul.mubr.f32.gmra.mrb[156].mxu0 %v10156_v59  ;;  %v10158_v23 = vmax.f32 %v10094_v20, 0.0 }
 0x9ae   : > { %v10159_v30 = vmax.f32 %v10095_v24, 0.0  ;;  %v10021_v26 = vadd.f32 %v9951_v10, %v17125_v46 }
 0x9af   : > { %v10096_v0 = vadd.f32 %v17526_v61, %v10020_v12 }
 0x9b0   : > { %v10097_v35 = vadd.f32 %v17528_v4, %v10021_v26  ;;  %v9955_v41 = vpop.f32.mrb[98].mxu0  ;;  %10412 = vmatprep.mubr.f32.mxu0 %v10159_v30 }
 0x9b1   : > { %v10022_v9 = vadd.f32 %v9955_v41, %v18251_v21  ;;  %v9957_v55 = vpop.f32.mrb[99].mxu0  ;;  %10413 = vmatmul.mubr.f32.gmra.mrb[158].mxu0 %v10158_v23  ;;  %v10160_v17 = vmax.f32 %v10096_v0, 0.0 }
 0x9b2   : > { %v10161_v16 = vmax.f32 %v10097_v35, 0.0  ;;  %v10023_v52 = vadd.f32 %v9957_v55, %v18252_v19 }
 0x9b3   : > { %v10098_v47 = vadd.f32 %v17526_v61, %v10022_v9 }
 0x9b4   : > { %v10099_v46 = vadd.f32 %v17528_v4, %v10023_v52  ;;  %10417 = vmatprep.mubr.f32.mxu0 %v10161_v16 }
 0x9b5   : > { %10418 = vmatmul.mubr.f32.gmra.mrb[160].mxu0 %v10160_v17  ;;  %v10162_v5 = vmax.f32 %v10098_v47, 0.0 }
 0x9b6   : > { %v10163_v51 = vmax.f32 %v10099_v46, 0.0 }
 0x9b8   : > { %10422 = vmatprep.mubr.f32.mxu0 %v10163_v51 }
 0x9b9   : > { %10423 = vmatmul.mubr.f32.gmra.mrb[162].mxu0 %v10162_v5 }
 0xa10   : > { %v10269_v6 = vpop.f32.mrb[100].mxu0 }
 0xa11   : > { %v10270_v14 = vadd.f32 %v17661_v8, %v10269_v6  ;;  %v10271_v62 = vpop.f32.mrb[101].mxu0 }
 0xa13   : > { %v10428_v61 = vmax.f32 %v10270_v14, 0.0 }
 0xa14   : > { %v10274_v4 = vpop.f32.mrb[102].mxu0 }
 0xa15   : > { %10460 = vst [vmem:[%s17669_s22] sm:$0xff] %v10428_v61  ;;  %v10275_v54 = vadd.f32 %v17661_v8, %v10274_v4  ;;  %v10276_v34 = vpop.f32.mrb[103].mxu0 }
 0xa17   : > { %v10429_v1 = vmax.f32 %v10275_v54, 0.0 }
 0xa18   : > { %v10279_v39 = vpop.f32.mrb[104].mxu0 }
 0xa19   : > { %10461 = vst [vmem:[%s17669_s22 + $0x8] sm:$0xff] %v10429_v1  ;;  %v10280_v45 = vadd.f32 %v17661_v8, %v10279_v39  ;;  %v10281_v11 = vpop.f32.mrb[105].mxu0 }
 0xa1b   : > { %v10430_v13 = vmax.f32 %v10280_v45, 0.0 }
 0xa1c   : > { %v10284_v7 = vpop.f32.mrb[106].mxu0 }
 0xa1d   : > { %10462 = vst [vmem:[%s17669_s22 + $0x10] sm:$0xff] %v10430_v13  ;;  %v10285_v43 = vadd.f32 %v17661_v8, %v10284_v7  ;;  %v10286_v44 = vpop.f32.mrb[107].mxu0 }
 0xa1f   : > { %v10431_v38 = vmax.f32 %v10285_v43, 0.0 }
 0xa20   : > { %v10289_v58 = vpop.f32.mrb[108].mxu0 }
 0xa21   : > { %10463 = vst [vmem:[%s17669_s22 + $0x18] sm:$0xff] %v10431_v38  ;;  %v10290_v2 = vadd.f32 %v17661_v8, %v10289_v58  ;;  %v10291_v27 = vpop.f32.mrb[109].mxu0 }
 0xa23   : > { %v10432_v32 = vmax.f32 %v10290_v2, 0.0 }
 0xa24   : > { %v10294_v31 = vpop.f32.mrb[110].mxu0 }
 0xa25   : > { %10464 = vst [vmem:[%s17669_s22 + $0x20] sm:$0xff] %v10432_v32  ;;  %v10295_v29 = vadd.f32 %v17661_v8, %v10294_v31  ;;  %v10296_v25 = vpop.f32.mrb[111].mxu0 }
 0xa27   : > { %v10433_v3 = vmax.f32 %v10295_v29, 0.0 }
 0xa28   : > { %v10299_v42 = vpop.f32.mrb[112].mxu0 }
 0xa29   : > { %10465 = vst [vmem:[%s17669_s22 + $0x28] sm:$0xff] %v10433_v3  ;;  %v10300_v57 = vadd.f32 %v17661_v8, %v10299_v42  ;;  %v10301_v28 = vpop.f32.mrb[113].mxu0 }
 0xa2b   : > { %v10434_v18 = vmax.f32 %v10300_v57, 0.0 }
 0xa2c   : > { %v10304_v37 = vpop.f32.mrb[114].mxu0 }
 0xa2d   : > { %10466 = vst [vmem:[%s17669_s22 + $0x30] sm:$0xff] %v10434_v18  ;;  %v10305_v15 = vadd.f32 %v17661_v8, %v10304_v37  ;;  %v10306_v50 = vpop.f32.mrb[115].mxu0 }
 0xa2f   : > { %v10435_v36 = vmax.f32 %v10305_v15, 0.0 }
 0xa30   : > { %v10309_v63 = vpop.f32.mrb[116].mxu0 }
 0xa31   : > { %10467 = vst [vmem:[%s17669_s22 + $0x38] sm:$0xff] %v10435_v36  ;;  %v10310_v33 = vadd.f32 %v17661_v8, %v10309_v63  ;;  %v10311_v60 = vpop.f32.mrb[117].mxu0 }
 0xa33   : > { %v10436_v48 = vmax.f32 %v10310_v33, 0.0 }
 0xa34   : > { %v10314_v53 = vpop.f32.mrb[118].mxu0 }
 0xa35   : > { %10468 = vst [vmem:[%s17669_s22 + $0x40] sm:$0xff] %v10436_v48  ;;  %v10315_v40 = vadd.f32 %v17661_v8, %v10314_v53  ;;  %v10316_v56 = vpop.f32.mrb[119].mxu0 }
 0xa37   : > { %v10437_v59 = vmax.f32 %v10315_v40, 0.0 }
 0xa38   : > { %v10319_v20 = vpop.f32.mrb[120].mxu0 }
 0xa39   : > { %10469 = vst [vmem:[%s17669_s22 + $0x48] sm:$0xff] %v10437_v59  ;;  %v10320_v24 = vadd.f32 %v17661_v8, %v10319_v20  ;;  %v10321_v49 = vpop.f32.mrb[121].mxu0 }
 0xa3b   : > { %v10438_v22 = vmax.f32 %v10320_v24, 0.0 }
 0xa3c   : > { %v10324_v12 = vpop.f32.mrb[122].mxu0 }
 0xa3d   : > { %10470 = vst [vmem:[%s17669_s22 + $0x50] sm:$0xff] %v10438_v22  ;;  %v10325_v10 = vadd.f32 %v17661_v8, %v10324_v12  ;;  %v10326_v30 = vpop.f32.mrb[123].mxu0 }
 0xa3f   : > { %v10439_v26 = vmax.f32 %v10325_v10, 0.0 }
 0xa40   : > { %v10329_v23 = vpop.f32.mrb[124].mxu0 }
 0xa41   : > { %10471 = vst [vmem:[%s17669_s22 + $0x58] sm:$0xff] %v10439_v26  ;;  %v10330_v0 = vadd.f32 %v17661_v8, %v10329_v23  ;;  %v10331_v35 = vpop.f32.mrb[125].mxu0 }
 0xa43   : > { %v10440_v41 = vmax.f32 %v10330_v0, 0.0 }
 0xa44   : > { %v10334_v21 = vpop.f32.mrb[126].mxu0 }
 0xa45   : > { %10472 = vst [vmem:[%s17669_s22 + $0x60] sm:$0xff] %v10440_v41  ;;  %v10335_v9 = vadd.f32 %v17661_v8, %v10334_v21  ;;  %v10336_v55 = vpop.f32.mrb[127].mxu0 }
 0xa47   : > { %v10441_v16 = vmax.f32 %v10335_v9, 0.0 }
 0xa48   : > { %v10339_v19 = vpop.f32.mrb[128].mxu0 }
 0xa49   : > { %10473 = vst [vmem:[%s17669_s22 + $0x68] sm:$0xff] %v10441_v16  ;;  %v10340_v52 = vadd.f32 %v17661_v8, %v10339_v19  ;;  %v10341_v17 = vpop.f32.mrb[129].mxu0 }
 0xa4b   : > { %v10442_v47 = vmax.f32 %v10340_v52, 0.0 }
 0xa4c   : > { %v10344_v46 = vpop.f32.mrb[130].mxu0 }
 0xa4d   : > { %10474 = vst [vmem:[%s17669_s22 + $0x70] sm:$0xff] %v10442_v47  ;;  %v10345_v51 = vadd.f32 %v17661_v8, %v10344_v46  ;;  %v10346_v5 = vpop.f32.mrb[131].mxu0 }
 0xa4f   : > { %v10443_v6 = vmax.f32 %v10345_v51, 0.0 }
 0xa50   : > { %v10349_v14 = vpop.f32.mrb[132].mxu0 }
 0xa51   : > { %10475 = vst [vmem:[%s17669_s22 + $0x78] sm:$0xff] %v10443_v6  ;;  %v10350_v62 = vadd.f32 %v17661_v8, %v10349_v14  ;;  %v10351_v61 = vpop.f32.mrb[133].mxu0 }
 0xa53   : > { %v10444_v4 = vmax.f32 %v10350_v62, 0.0 }
 0xa54   : > { %v10354_v54 = vpop.f32.mrb[134].mxu0 }
 0xa55   : > { %10476 = vst [vmem:[%s17669_s22 + $0x80] sm:$0xff] %v10444_v4  ;;  %v10355_v34 = vadd.f32 %v17661_v8, %v10354_v54  ;;  %v10356_v1 = vpop.f32.mrb[135].mxu0 }
 0xa57   : > { %v10445_v39 = vmax.f32 %v10355_v34, 0.0 }
 0xa58   : > { %v10359_v45 = vpop.f32.mrb[136].mxu0 }
 0xa59   : > { %10477 = vst [vmem:[%s17669_s22 + $0x88] sm:$0xff] %v10445_v39  ;;  %v10360_v11 = vadd.f32 %v17661_v8, %v10359_v45  ;;  %v10361_v13 = vpop.f32.mrb[137].mxu0 }
 0xa5b   : > { %v10446_v7 = vmax.f32 %v10360_v11, 0.0 }
 0xa5c   : > { %v10364_v43 = vpop.f32.mrb[138].mxu0 }
 0xa5d   : > { %10478 = vst [vmem:[%s17669_s22 + $0x90] sm:$0xff] %v10446_v7  ;;  %v10365_v44 = vadd.f32 %v17661_v8, %v10364_v43  ;;  %v10366_v38 = vpop.f32.mrb[139].mxu0 }
 0xa5f   : > { %v10447_v58 = vmax.f32 %v10365_v44, 0.0 }
 0xa60   : > { %v10369_v2 = vpop.f32.mrb[140].mxu0 }
 0xa61   : > { %10479 = vst [vmem:[%s17669_s22 + $0x98] sm:$0xff] %v10447_v58  ;;  %v10370_v27 = vadd.f32 %v17661_v8, %v10369_v2  ;;  %v10371_v32 = vpop.f32.mrb[141].mxu0 }
 0xa63   : > { %v10448_v31 = vmax.f32 %v10370_v27, 0.0 }
 0xa64   : > { %v10374_v29 = vpop.f32.mrb[142].mxu0 }
 0xa65   : > { %10480 = vst [vmem:[%s17669_s22 + $0xa0] sm:$0xff] %v10448_v31  ;;  %v10375_v25 = vadd.f32 %v17661_v8, %v10374_v29  ;;  %v10376_v3 = vpop.f32.mrb[143].mxu0 }
 0xa67   : > { %v10449_v42 = vmax.f32 %v10375_v25, 0.0 }
 0xa68   : > { %v10379_v57 = vpop.f32.mrb[144].mxu0 }
 0xa69   : > { %10481 = vst [vmem:[%s17669_s22 + $0xa8] sm:$0xff] %v10449_v42  ;;  %v10380_v28 = vadd.f32 %v17661_v8, %v10379_v57  ;;  %v10381_v18 = vpop.f32.mrb[145].mxu0 }
 0xa6b   : > { %v10450_v37 = vmax.f32 %v10380_v28, 0.0 }
 0xa6c   : > { %v10384_v15 = vpop.f32.mrb[146].mxu0 }
 0xa6d   : > { %10482 = vst [vmem:[%s17669_s22 + $0xb0] sm:$0xff] %v10450_v37  ;;  %v10385_v50 = vadd.f32 %v17661_v8, %v10384_v15  ;;  %v10386_v36 = vpop.f32.mrb[147].mxu0 }
 0xa6f   : > { %v10451_v63 = vmax.f32 %v10385_v50, 0.0 }
 0xa70   : > { %v10389_v33 = vpop.f32.mrb[148].mxu0 }
 0xa71   : > { %10483 = vst [vmem:[%s17669_s22 + $0xb8] sm:$0xff] %v10451_v63  ;;  %v10390_v60 = vadd.f32 %v17661_v8, %v10389_v33  ;;  %v10391_v48 = vpop.f32.mrb[149].mxu0 }
 0xa73   : > { %v10452_v53 = vmax.f32 %v10390_v60, 0.0 }
 0xa74   : > { %v10394_v40 = vpop.f32.mrb[150].mxu0 }
 0xa75   : > { %10484 = vst [vmem:[%s17669_s22 + $0xc0] sm:$0xff] %v10452_v53  ;;  %v10395_v56 = vadd.f32 %v17661_v8, %v10394_v40  ;;  %v10396_v59 = vpop.f32.mrb[151].mxu0 }
 0xa77   : > { %v10453_v20 = vmax.f32 %v10395_v56, 0.0 }
 0xa78   : > { %v10399_v24 = vpop.f32.mrb[152].mxu0 }
 0xa79   : > { %10485 = vst [vmem:[%s17669_s22 + $0xc8] sm:$0xff] %v10453_v20  ;;  %v10400_v49 = vadd.f32 %v17661_v8, %v10399_v24  ;;  %v10401_v22 = vpop.f32.mrb[153].mxu0 }
 0xa7b   : > { %v10454_v12 = vmax.f32 %v10400_v49, 0.0 }
 0xa7c   : > { %v10404_v10 = vpop.f32.mrb[154].mxu0 }
 0xa7d   : > { %10486 = vst [vmem:[%s17669_s22 + $0xd0] sm:$0xff] %v10454_v12  ;;  %v10405_v30 = vadd.f32 %v17661_v8, %v10404_v10  ;;  %v10406_v26 = vpop.f32.mrb[155].mxu0 }
 0xa7f   : > { %v10455_v23 = vmax.f32 %v10405_v30, 0.0 }
 0xa80   : > { %v10409_v0 = vpop.f32.mrb[156].mxu0 }
 0xa81   : > { %10487 = vst [vmem:[%s17669_s22 + $0xd8] sm:$0xff] %v10455_v23  ;;  %v10410_v35 = vadd.f32 %v17661_v8, %v10409_v0  ;;  %v10411_v41 = vpop.f32.mrb[157].mxu0 }
 0xa83   : > { %v10456_v21 = vmax.f32 %v10410_v35, 0.0 }
 0xa84   : > { %v10414_v9 = vpop.f32.mrb[158].mxu0 }
 0xa85   : > { %10488 = vst [vmem:[%s17669_s22 + $0xe0] sm:$0xff] %v10456_v21  ;;  %v10415_v55 = vadd.f32 %v17661_v8, %v10414_v9  ;;  %v10416_v16 = vpop.f32.mrb[159].mxu0 }
 0xa87   : > { %v10457_v19 = vmax.f32 %v10415_v55, 0.0 }
 0xa88   : > { %v10419_v52 = vpop.f32.mrb[160].mxu0 }
 0xa89   : > { %10489 = vst [vmem:[%s17669_s22 + $0xe8] sm:$0xff] %v10457_v19  ;;  %v10420_v17 = vadd.f32 %v17661_v8, %v10419_v52  ;;  %v10421_v47 = vpop.f32.mrb[161].mxu0 }
 0xa8b   : > { %v10458_v46 = vmax.f32 %v10420_v17, 0.0 }
 0xa8c   : > { %v10424_v51 = vpop.f32.mrb[162].mxu0 }
 0xa8d   : > { %10490 = vst [vmem:[%s17669_s22 + $0xf0] sm:$0xff] %v10458_v46  ;;  %v10425_v5 = vadd.f32 %v17661_v8, %v10424_v51  ;;  %v10426_v6 = vpop.f32.mrb[163].mxu0 }
 0xa8f   : > { %v10459_v14 = vmax.f32 %v10425_v5, 0.0 }
 0xa91   : > { %10491 = vst [vmem:[%s17669_s22 + $0xf8] sm:$0xff] %v10459_v14 }
 0xa92 PF: > { %s29_s0 = sadd.s32 1, %s13582_s0  }
 0xa93   : > { %p26_p4 = scmp.ge.s32.totalorder %s29_s0, 4  }
 0xa95   :  { %28 = sbr.rel (!%p26_p4) target bundleno = 5 (0x5), region = 135 }

</bundles_post_ra>
